<compile_context>
chip_gen: v7x
topology: tpu7x:2x2x1
jax: 0.10.0
libtpu: 0.0.40
codegen_flags: <defaults>
</compile_context>

<pallas_src>
import jax
import jax.numpy as jnp
from jax.experimental import pallas as pl
from jax.experimental.pallas import tpu as pltpu


def _round_up(x, m):
    return ((x + m - 1) // m) * m


def _pick_tile_h(H, W, mid_pad, out_pad, vmem_budget_bytes=8 * 1024 * 1024):
    """Largest divisor of H whose per-tile working set fits a conservative
    VMEM budget (sized against v7x's 64 MiB part / 32 MiB scoped default)."""
    def tile_bytes(th):
        patch2 = th * W * 9 * mid_pad * 2              # bf16 stage-2 im2col patch
        mid = (th + 2) * (W + 2) * mid_pad * 2         # bf16 intermediate
        outb = 2 * th * W * out_pad * 4                # double-buffered f32 output
        inb = 2 * (th + 4) * (W + 4) * 128 * 4         # input tile (overestimate)
        return patch2 + mid + outb + inb
    best = 1
    for th in range(1, H + 1):
        if H % th == 0 and tile_bytes(th) <= vmem_budget_bytes:
            best = th
    return best


def _make_fused_kernel(H, W, tile_h, cin, mid_pad, out_pad):
    hm, wm = tile_h + 2, W + 2      # stage-1 output tile incl. 1-halo ring

    def kernel(x_ref, w1_ref, b1_ref, w2_ref, b2_ref, o_ref,
               patch1_ref, mid_ref, patch2_ref):
        # x_ref:      (tile_h+4, W+4, cin)   halo'd, spatially 2-padded input rows
        # w1_ref:     (9*cin, mid_pad)       stage-1 weights, BN scale folded (bf16)
        # b1_ref:     (1, mid_pad)           stage-1 folded BN bias (f32)
        # w2_ref:     (9*mid_pad, out_pad)   stage-2 weights, BN scale folded (bf16)
        # b2_ref:     (1, out_pad)           stage-2 folded BN bias (f32)
        # o_ref:      (tile_h, W, out_pad)
        # patch1_ref: (hm, wm, 9*cin)        bf16 im2col scratch (stage 1)
        # mid_ref:    (hm, wm, mid_pad)      bf16 stage-1 feature map (+halo ring)
        # patch2_ref: (tile_h, W, 9*mid_pad) bf16 im2col scratch (stage 2)
        t = pl.program_id(1)
        row0 = t * tile_h                          # first image row of this tile

        # ---- stage 1: grouped 3x3 conv (dense block-diag weights) as ONE matmul
        for k in range(9):
            dy, dx = k // 3, k % 3
            patch1_ref[:, :, k * cin:(k + 1) * cin] = (
                x_ref[dy:dy + hm, dx:dx + wm, :].astype(patch1_ref.dtype))
        p1 = patch1_ref[...].reshape(hm * wm, 9 * cin)
        mid = jnp.dot(p1, w1_ref[...], preferred_element_type=jnp.float32)
        mid = jnp.maximum(mid + b1_ref[...], 0.0).reshape(hm, wm, mid_pad)

        # Zero the ring of intermediate positions lying outside the image:
        # stage 2's padding=1 must see zeros there, not stage-1 values
        # evaluated at out-of-image positions.
        r = jax.lax.broadcasted_iota(jnp.int32, (hm, wm, 1), 0) + (row0 - 1)
        c = jax.lax.broadcasted_iota(jnp.int32, (hm, wm, 1), 1) - 1
        inside = (r >= 0) & (r < H) & (c >= 0) & (c < W)
        mid_ref[...] = jnp.where(inside, mid, 0.0).astype(mid_ref.dtype)

        # ---- stage 2: 3x3 conv as ONE matmul (K = 9*mid_pad)
        for k in range(9):
            dy, dx = k // 3, k % 3
            patch2_ref[:, :, k * mid_pad:(k + 1) * mid_pad] = (
                mid_ref[dy:dy + tile_h, dx:dx + W, :])
        p2 = patch2_ref[...].reshape(tile_h * W, 9 * mid_pad)
        y = jnp.dot(p2, w2_ref[...], preferred_element_type=jnp.float32)
        y = jnp.maximum(y + b2_ref[...], 0.0)
        o_ref[...] = y.reshape(tile_h, W, out_pad).astype(o_ref.dtype)

    return kernel


def input_cv_block(x_nchw, kparams, *, tile_h=None):
    """Forward pass of InputCvBlock (fused Pallas kernel). NCHW in, NCHW out."""
    x = jnp.transpose(x_nchw, (0, 2, 3, 1))            # NCHW -> NHWC
    N, H, W, cin = x.shape
    w1, b1 = kparams["w1"], kparams["b1"]
    w2, b2 = kparams["w2"], kparams["b2"]
    out_ch = kparams["out_ch"]
    mid_pad = w1.shape[1]
    out_pad = w2.shape[1]

    if tile_h is None:
        tile_h = _pick_tile_h(H, W, mid_pad, out_pad)
    assert H % tile_h == 0, (H, tile_h)
    n_t = H // tile_h

    # Halo'd, overlapping row tiles (layout plumbing in XLA): each grid step
    # gets a (tile_h+4, W+4, cin) slab through a plain auto-pipelined BlockSpec.
    x_pad = jnp.pad(x, ((0, 0), (2, 2), (2, 2), (0, 0)))
    rows = jnp.arange(n_t)[:, None] * tile_h + jnp.arange(tile_h + 4)[None, :]
    x_tiles = x_pad[:, rows]                           # (N, n_t, tile_h+4, W+4, cin)

    kernel = _make_fused_kernel(H, W, tile_h, cin, mid_pad, out_pad)
    hm, wm = tile_h + 2, W + 2

    out = pl.pallas_call(
        kernel,
        out_shape=jax.ShapeDtypeStruct((N, H, W, out_pad), x.dtype),
        grid=(N, n_t),
        in_specs=[
            pl.BlockSpec((None, None, tile_h + 4, W + 4, cin),
                         lambda n, t: (n, t, 0, 0, 0)),
            pl.BlockSpec((9 * cin, mid_pad), lambda n, t: (0, 0)),
            pl.BlockSpec((1, mid_pad), lambda n, t: (0, 0)),
            pl.BlockSpec((9 * mid_pad, out_pad), lambda n, t: (0, 0)),
            pl.BlockSpec((1, out_pad), lambda n, t: (0, 0)),
        ],
        out_specs=pl.BlockSpec((None, tile_h, W, out_pad),
                               lambda n, t: (n, t, 0, 0)),
        scratch_shapes=[
            pltpu.VMEM((hm, wm, 9 * cin), jnp.bfloat16),
            pltpu.VMEM((hm, wm, mid_pad), jnp.bfloat16),
            pltpu.VMEM((tile_h, W, 9 * mid_pad), jnp.bfloat16),
        ],
        compiler_params=pltpu.CompilerParams(
            dimension_semantics=("parallel", "parallel"),
            vmem_limit_bytes=32 * 1024 * 1024),
    )(x_tiles, w1, b1, w2, b2)

    out = out[..., :out_ch]                            # strip lane padding
    return jnp.transpose(out, (0, 3, 1, 2))            # NHWC -> NCHW


def fold_bn(gamma, beta, mean, var, eps=1e-5):
    scale = gamma / jnp.sqrt(var + eps)
    bias = beta - mean * scale
    return scale, bias


def make_params(key, num_in_frames, out_ch, interm_ch=30):
    F = num_in_frames
    in_ch = F * 4
    mid_ch = F * interm_ch
    ks = jax.random.split(key, 10)

    # conv1: grouped conv, PyTorch weight shape (F*30, 4, 3, 3), groups=F.
    w1_torch = 0.1 * jax.random.normal(ks[0], (mid_ch, 4, 3, 3), jnp.float32)
    # dense block-diagonal HWIO weight (3,3,in_ch,mid_ch) reproduces the grouping
    w1_dense = jnp.zeros((3, 3, in_ch, mid_ch), jnp.float32)
    for g in range(F):
        blk = jnp.transpose(w1_torch[g * interm_ch:(g + 1) * interm_ch],
                            (2, 3, 1, 0))  # (3,3,4,30)
        w1_dense = w1_dense.at[:, :, g * 4:(g + 1) * 4,
                               g * interm_ch:(g + 1) * interm_ch].set(blk)

    g1 = 1.0 + 0.1 * jax.random.normal(ks[1], (mid_ch,), jnp.float32)
    b1 = 0.05 * jax.random.normal(ks[2], (mid_ch,), jnp.float32)
    m1 = 0.1 * jax.random.normal(ks[3], (mid_ch,), jnp.float32)
    v1 = 0.5 + 0.5 * jnp.abs(jax.random.normal(ks[4], (mid_ch,), jnp.float32))
    s1, o1 = fold_bn(g1, b1, m1, v1)

    # conv2: standard conv, PyTorch weight shape (out_ch, mid_ch, 3, 3) -> HWIO.
    w2_torch = 0.05 * jax.random.normal(ks[5], (out_ch, mid_ch, 3, 3),
                                        jnp.float32)
    w2_dense = jnp.transpose(w2_torch, (2, 3, 1, 0))   # (3,3,mid_ch,out_ch)

    g2 = 1.0 + 0.1 * jax.random.normal(ks[6], (out_ch,), jnp.float32)
    b2 = 0.05 * jax.random.normal(ks[7], (out_ch,), jnp.float32)
    m2 = 0.1 * jax.random.normal(ks[8], (out_ch,), jnp.float32)
    v2 = 0.5 + 0.5 * jnp.abs(jax.random.normal(ks[9], (out_ch,), jnp.float32))
    s2, o2 = fold_bn(g2, b2, m2, v2)

    # ---- kernel-side packed params: BN scale folded into weights, channel
    # dims zero-padded to lane-dense multiples of 128, bf16 MXU operands.
    mid_pad = _round_up(mid_ch, 128)
    out_pad = _round_up(out_ch, 128)
    w1_f = w1_dense * s1[None, None, None, :]
    w2_f = w2_dense * s2[None, None, None, :]
    w1_k = jnp.zeros((3, 3, in_ch, mid_pad), jnp.float32)
    w1_k = w1_k.at[:, :, :, :mid_ch].set(w1_f).reshape(9 * in_ch, mid_pad)
    w2_k = jnp.zeros((3, 3, mid_pad, out_pad), jnp.float32)
    w2_k = w2_k.at[:, :, :mid_ch, :out_ch].set(w2_f).reshape(9 * mid_pad, out_pad)
    b1_k = jnp.zeros((1, mid_pad), jnp.float32).at[0, :mid_ch].set(o1)
    b2_k = jnp.zeros((1, out_pad), jnp.float32).at[0, :out_ch].set(o2)

    kparams = dict(w1=w1_k.astype(jnp.bfloat16), b1=b1_k,
                   w2=w2_k.astype(jnp.bfloat16), b2=b2_k, out_ch=out_ch)
    rparams = dict(w1=w1_dense.reshape(9, in_ch, mid_ch), s1=s1, o1=o1,
                   w2=w2_dense.reshape(9, mid_ch, out_ch), s2=s2, o2=o2)
    return kparams, rparams


# ----------------------- pure-JAX reference (f32) ----------------------------
def _ref_stage(x_nhwc, w9, scale, bias):
    k = w9.reshape(3, 3, w9.shape[1], w9.shape[2])
    y = jax.lax.conv_general_dilated(
        x_nhwc, k, (1, 1), "SAME",
        dimension_numbers=("NHWC", "HWIO", "NHWC"),
        precision=jax.lax.Precision.HIGHEST)
    y = y * scale.reshape(1, 1, 1, -1) + bias.reshape(1, 1, 1, -1)
    return jnp.maximum(y, 0.0)


def _ref_forward(x_nchw, params):
    x = jnp.transpose(x_nchw, (0, 2, 3, 1))
    y = _ref_stage(x, params["w1"], params["s1"], params["o1"])
    y = _ref_stage(y, params["w2"], params["s2"], params["o2"])
    return jnp.transpose(y, (0, 3, 1, 2))


if __name__ == "__main__":
    num_in_frames = 2
    out_ch = 32
    N, H, W = 2, 16, 16
    in_ch = num_in_frames * 4  # (3+1) channels per frame

    key = jax.random.PRNGKey(0)
    kx, kp = jax.random.split(key)
    x = jax.random.normal(kx, (N, in_ch, H, W), jnp.float32)  # NCHW like PyTorch
    kparams, rparams = make_params(kp, num_in_frames, out_ch)

    ref = jax.block_until_ready(_ref_forward(x, rparams))

    # default tiling (tile_h = H here)
    fwd = jax.jit(lambda a: input_cv_block(a, kparams))
    out = jax.block_until_ready(fwd(x))
    assert out.shape == (N, out_ch, H, W), out.shape
    err = float(jnp.max(jnp.abs(out - ref)))
    # bf16 MXU operands vs f32 reference -> relaxed tolerance
    assert jnp.allclose(out, ref, atol=5e-2, rtol=5e-2), err

    # also exercise the halo-aware H tiling path (two row tiles per image)
    fwd_tiled = jax.jit(lambda a: input_cv_block(a, kparams, tile_h=8))
    out_t = jax.block_until_ready(fwd_tiled(x))
    err_t = float(jnp.max(jnp.abs(out_t - ref)))
    assert jnp.allclose(out_t, ref, atol=5e-2, rtol=5e-2), err_t

    print("KERNEL_OK")
</pallas_src>

<mosaic_0001>
module attributes {stable_mosaic.version = 11 : i64} {
  func.func @kernel(%arg0: i32, %arg1: i32, %arg2: memref<1x1x20x20x8xf32, #tpu.memory_space<vmem>>, %arg3: memref<72x128xbf16, #tpu.memory_space<vmem>>, %arg4: memref<1x128xf32, #tpu.memory_space<vmem>>, %arg5: memref<1152x128xbf16, #tpu.memory_space<vmem>>, %arg6: memref<1x128xf32, #tpu.memory_space<vmem>>, %arg7: memref<1x16x16x128xf32, #tpu.memory_space<vmem>>, %arg8: memref<18x18x72xbf16, #tpu.memory_space<vmem>>, %arg9: memref<18x18x128xbf16, #tpu.memory_space<vmem>>, %arg10: memref<16x16x1152xbf16, #tpu.memory_space<vmem>>) attributes {dimension_semantics = [#tpu.dimension_semantics<parallel>, #tpu.dimension_semantics<parallel>], iteration_bounds = array<i64: 2, 1>, scalar_prefetch = 0 : i64, scratch_operands = 3 : i64, tpu.core_type = #tpu.core_type<tc>, window_params = [{transform_indices = @transform_0, window_bounds = array<i64: 1, 1, 20, 20, 8>}, {pipeline_mode = #tpu.pipeline_mode<synchronous>, transform_indices = @transform_1, window_bounds = array<i64: 72, 128>}, {pipeline_mode = #tpu.pipeline_mode<synchronous>, transform_indices = @transform_2, window_bounds = array<i64: 1, 128>}, {pipeline_mode = #tpu.pipeline_mode<synchronous>, transform_indices = @transform_3, window_bounds = array<i64: 1152, 128>}, {pipeline_mode = #tpu.pipeline_mode<synchronous>, transform_indices = @transform_4, window_bounds = array<i64: 1, 128>}, {transform_indices = @transform_5, window_bounds = array<i64: 1, 16, 16, 128>}]} {
    %c16_i32 = arith.constant 16 : i32
    %0 = arith.muli %arg1, %c16_i32 : i32
    %c0 = arith.constant 0 : index
    %c0_0 = arith.constant 0 : index
    %c0_1 = arith.constant 0 : index
    %c0_2 = arith.constant 0 : index
    %c0_3 = arith.constant 0 : index
    %1 = vector.load %arg2[%c0, %c0_0, %c0_1, %c0_2, %c0_3] : memref<1x1x20x20x8xf32, #tpu.memory_space<vmem>>, vector<1x1x18x18x8xf32>
    %2 = vector.shape_cast %1 : vector<1x1x18x18x8xf32> to vector<18x18x8xf32>
    %3 = arith.truncf %2 : vector<18x18x8xf32> to vector<18x18x8xbf16>
    %c0_4 = arith.constant 0 : index
    %c0_5 = arith.constant 0 : index
    %c0_6 = arith.constant 0 : index
    %4 = vector.load %arg8[%c0_4, %c0_5, %c0_6] : memref<18x18x72xbf16, #tpu.memory_space<vmem>>, vector<18x18x8xbf16>
    tpu.vector_store %arg8[%c0_4, %c0_5, %c0_6], %3 {strides = array<i32>} : memref<18x18x72xbf16, #tpu.memory_space<vmem>>, vector<18x18x8xbf16>,
    %c0_7 = arith.constant 0 : index
    %c0_8 = arith.constant 0 : index
    %c0_9 = arith.constant 0 : index
    %c1 = arith.constant 1 : index
    %c0_10 = arith.constant 0 : index
    %5 = vector.load %arg2[%c0_7, %c0_8, %c0_9, %c1, %c0_10] : memref<1x1x20x20x8xf32, #tpu.memory_space<vmem>>, vector<1x1x18x18x8xf32>
    %6 = vector.shape_cast %5 : vector<1x1x18x18x8xf32> to vector<18x18x8xf32>
    %7 = arith.truncf %6 : vector<18x18x8xf32> to vector<18x18x8xbf16>
    %c0_11 = arith.constant 0 : index
    %c0_12 = arith.constant 0 : index
    %c8 = arith.constant 8 : index
    %8 = vector.load %arg8[%c0_11, %c0_12, %c8] : memref<18x18x72xbf16, #tpu.memory_space<vmem>>, vector<18x18x8xbf16>
    tpu.vector_store %arg8[%c0_11, %c0_12, %c8], %7 {strides = array<i32>} : memref<18x18x72xbf16, #tpu.memory_space<vmem>>, vector<18x18x8xbf16>,
    %c0_13 = arith.constant 0 : index
    %c0_14 = arith.constant 0 : index
    %c0_15 = arith.constant 0 : index
    %c2 = arith.constant 2 : index
    %c0_16 = arith.constant 0 : index
    %9 = vector.load %arg2[%c0_13, %c0_14, %c0_15, %c2, %c0_16] : memref<1x1x20x20x8xf32, #tpu.memory_space<vmem>>, vector<1x1x18x18x8xf32>
    %10 = vector.shape_cast %9 : vector<1x1x18x18x8xf32> to vector<18x18x8xf32>
    %11 = arith.truncf %10 : vector<18x18x8xf32> to vector<18x18x8xbf16>
    %c0_17 = arith.constant 0 : index
    %c0_18 = arith.constant 0 : index
    %c16 = arith.constant 16 : index
    %12 = vector.load %arg8[%c0_17, %c0_18, %c16] : memref<18x18x72xbf16, #tpu.memory_space<vmem>>, vector<18x18x8xbf16>
    tpu.vector_store %arg8[%c0_17, %c0_18, %c16], %11 {strides = array<i32>} : memref<18x18x72xbf16, #tpu.memory_space<vmem>>, vector<18x18x8xbf16>,
    %c0_19 = arith.constant 0 : index
    %c0_20 = arith.constant 0 : index
    %c1_21 = arith.constant 1 : index
    %c0_22 = arith.constant 0 : index
    %c0_23 = arith.constant 0 : index
    %13 = vector.load %arg2[%c0_19, %c0_20, %c1_21, %c0_22, %c0_23] : memref<1x1x20x20x8xf32, #tpu.memory_space<vmem>>, vector<1x1x18x18x8xf32>
    %14 = vector.shape_cast %13 : vector<1x1x18x18x8xf32> to vector<18x18x8xf32>
    %15 = arith.truncf %14 : vector<18x18x8xf32> to vector<18x18x8xbf16>
    %c0_24 = arith.constant 0 : index
    %c0_25 = arith.constant 0 : index
    %c24 = arith.constant 24 : index
    %16 = vector.load %arg8[%c0_24, %c0_25, %c24] : memref<18x18x72xbf16, #tpu.memory_space<vmem>>, vector<18x18x8xbf16>
    tpu.vector_store %arg8[%c0_24, %c0_25, %c24], %15 {strides = array<i32>} : memref<18x18x72xbf16, #tpu.memory_space<vmem>>, vector<18x18x8xbf16>,
    %c0_26 = arith.constant 0 : index
    %c0_27 = arith.constant 0 : index
    %c1_28 = arith.constant 1 : index
    %c1_29 = arith.constant 1 : index
    %c0_30 = arith.constant 0 : index
    %17 = vector.load %arg2[%c0_26, %c0_27, %c1_28, %c1_29, %c0_30] : memref<1x1x20x20x8xf32, #tpu.memory_space<vmem>>, vector<1x1x18x18x8xf32>
    %18 = vector.shape_cast %17 : vector<1x1x18x18x8xf32> to vector<18x18x8xf32>
    %19 = arith.truncf %18 : vector<18x18x8xf32> to vector<18x18x8xbf16>
    %c0_31 = arith.constant 0 : index
    %c0_32 = arith.constant 0 : index
    %c32 = arith.constant 32 : index
    %20 = vector.load %arg8[%c0_31, %c0_32, %c32] : memref<18x18x72xbf16, #tpu.memory_space<vmem>>, vector<18x18x8xbf16>
    tpu.vector_store %arg8[%c0_31, %c0_32, %c32], %19 {strides = array<i32>} : memref<18x18x72xbf16, #tpu.memory_space<vmem>>, vector<18x18x8xbf16>,
    %c0_33 = arith.constant 0 : index
    %c0_34 = arith.constant 0 : index
    %c1_35 = arith.constant 1 : index
    %c2_36 = arith.constant 2 : index
    %c0_37 = arith.constant 0 : index
    %21 = vector.load %arg2[%c0_33, %c0_34, %c1_35, %c2_36, %c0_37] : memref<1x1x20x20x8xf32, #tpu.memory_space<vmem>>, vector<1x1x18x18x8xf32>
    %22 = vector.shape_cast %21 : vector<1x1x18x18x8xf32> to vector<18x18x8xf32>
    %23 = arith.truncf %22 : vector<18x18x8xf32> to vector<18x18x8xbf16>
    %c0_38 = arith.constant 0 : index
    %c0_39 = arith.constant 0 : index
    %c40 = arith.constant 40 : index
    %24 = vector.load %arg8[%c0_38, %c0_39, %c40] : memref<18x18x72xbf16, #tpu.memory_space<vmem>>, vector<18x18x8xbf16>
    tpu.vector_store %arg8[%c0_38, %c0_39, %c40], %23 {strides = array<i32>} : memref<18x18x72xbf16, #tpu.memory_space<vmem>>, vector<18x18x8xbf16>,
    %c0_40 = arith.constant 0 : index
    %c0_41 = arith.constant 0 : index
    %c2_42 = arith.constant 2 : index
    %c0_43 = arith.constant 0 : index
    %c0_44 = arith.constant 0 : index
    %25 = vector.load %arg2[%c0_40, %c0_41, %c2_42, %c0_43, %c0_44] : memref<1x1x20x20x8xf32, #tpu.memory_space<vmem>>, vector<1x1x18x18x8xf32>
    %26 = vector.shape_cast %25 : vector<1x1x18x18x8xf32> to vector<18x18x8xf32>
    %27 = arith.truncf %26 : vector<18x18x8xf32> to vector<18x18x8xbf16>
    %c0_45 = arith.constant 0 : index
    %c0_46 = arith.constant 0 : index
    %c48 = arith.constant 48 : index
    %28 = vector.load %arg8[%c0_45, %c0_46, %c48] : memref<18x18x72xbf16, #tpu.memory_space<vmem>>, vector<18x18x8xbf16>
    tpu.vector_store %arg8[%c0_45, %c0_46, %c48], %27 {strides = array<i32>} : memref<18x18x72xbf16, #tpu.memory_space<vmem>>, vector<18x18x8xbf16>,
    %c0_47 = arith.constant 0 : index
    %c0_48 = arith.constant 0 : index
    %c2_49 = arith.constant 2 : index
    %c1_50 = arith.constant 1 : index
    %c0_51 = arith.constant 0 : index
    %29 = vector.load %arg2[%c0_47, %c0_48, %c2_49, %c1_50, %c0_51] : memref<1x1x20x20x8xf32, #tpu.memory_space<vmem>>, vector<1x1x18x18x8xf32>
    %30 = vector.shape_cast %29 : vector<1x1x18x18x8xf32> to vector<18x18x8xf32>
    %31 = arith.truncf %30 : vector<18x18x8xf32> to vector<18x18x8xbf16>
    %c0_52 = arith.constant 0 : index
    %c0_53 = arith.constant 0 : index
    %c56 = arith.constant 56 : index
    %32 = vector.load %arg8[%c0_52, %c0_53, %c56] : memref<18x18x72xbf16, #tpu.memory_space<vmem>>, vector<18x18x8xbf16>
    tpu.vector_store %arg8[%c0_52, %c0_53, %c56], %31 {strides = array<i32>} : memref<18x18x72xbf16, #tpu.memory_space<vmem>>, vector<18x18x8xbf16>,
    %c0_54 = arith.constant 0 : index
    %c0_55 = arith.constant 0 : index
    %c2_56 = arith.constant 2 : index
    %c2_57 = arith.constant 2 : index
    %c0_58 = arith.constant 0 : index
    %33 = vector.load %arg2[%c0_54, %c0_55, %c2_56, %c2_57, %c0_58] : memref<1x1x20x20x8xf32, #tpu.memory_space<vmem>>, vector<1x1x18x18x8xf32>
    %34 = vector.shape_cast %33 : vector<1x1x18x18x8xf32> to vector<18x18x8xf32>
    %35 = arith.truncf %34 : vector<18x18x8xf32> to vector<18x18x8xbf16>
    %c0_59 = arith.constant 0 : index
    %c0_60 = arith.constant 0 : index
    %c64 = arith.constant 64 : index
    %36 = vector.load %arg8[%c0_59, %c0_60, %c64] : memref<18x18x72xbf16, #tpu.memory_space<vmem>>, vector<18x18x8xbf16>
    tpu.vector_store %arg8[%c0_59, %c0_60, %c64], %35 {strides = array<i32>} : memref<18x18x72xbf16, #tpu.memory_space<vmem>>, vector<18x18x8xbf16>,
    %c0_61 = arith.constant 0 : index
    %c0_62 = arith.constant 0 : index
    %c0_63 = arith.constant 0 : index
    %37 = vector.load %arg8[%c0_61, %c0_62, %c0_63] : memref<18x18x72xbf16, #tpu.memory_space<vmem>>, vector<18x18x72xbf16>
    %38 = vector.shape_cast %37 : vector<18x18x72xbf16> to vector<324x72xbf16>
    %c0_64 = arith.constant 0 : index
    %c0_65 = arith.constant 0 : index
    %39 = vector.load %arg3[%c0_64, %c0_65] : memref<72x128xbf16, #tpu.memory_space<vmem>>, vector<72x128xbf16>
    %cst = arith.constant dense<0.000000e+00> : vector<324x128xf32>
    %40 = tpu.matmul %38, %39, %cst {dimension_numbers = #tpu.dot_dimension_numbers<[1], [0], [0], [1], [0, 0, 1, 1], [], []>} : vector<324x72xbf16>, vector<72x128xbf16>, vector<324x128xf32> -> vector<324x128xf32>
    %c0_66 = arith.constant 0 : index
    %c0_67 = arith.constant 0 : index
    %41 = vector.load %arg4[%c0_66, %c0_67] : memref<1x128xf32, #tpu.memory_space<vmem>>, vector<1x128xf32>
    %42 = vector.broadcast %41 : vector<1x128xf32> to vector<324x128xf32>
    %43 = arith.addf %40, %42 : vector<324x128xf32>
    %cst_68 = arith.constant 0.000000e+00 : f32
    %44 = vector.broadcast %cst_68 : f32 to vector<324x128xf32>
    %45 = arith.maximumf %43, %44 : vector<324x128xf32>
    %46 = vector.shape_cast %45 : vector<324x128xf32> to vector<18x18x128xf32>
    %47 = tpu.iota {dimensions = array<i32: 0>} : vector<18x18x1xi32>
    %c1_i32 = arith.constant 1 : i32
    %48 = arith.subi %0, %c1_i32 : i32
    %49 = vector.broadcast %48 : i32 to vector<18x18x1xi32>
    %50 = arith.addi %47, %49 : vector<18x18x1xi32>
    %51 = tpu.iota {dimensions = array<i32: 1>} : vector<18x18x1xi32>
    %c1_i32_69 = arith.constant 1 : i32
    %52 = vector.broadcast %c1_i32_69 : i32 to vector<18x18x1xi32>
    %53 = arith.subi %51, %52 : vector<18x18x1xi32>
    %c0_i32 = arith.constant 0 : i32
    %54 = vector.broadcast %c0_i32 : i32 to vector<18x18x1xi32>
    %55 = arith.cmpi sge, %50, %54 : vector<18x18x1xi32>
    %c16_i32_70 = arith.constant 16 : i32
    %56 = vector.broadcast %c16_i32_70 : i32 to vector<18x18x1xi32>
    %57 = arith.cmpi slt, %50, %56 : vector<18x18x1xi32>
    %58 = arith.andi %55, %57 : vector<18x18x1xi1>
    %c0_i32_71 = arith.constant 0 : i32
    %59 = vector.broadcast %c0_i32_71 : i32 to vector<18x18x1xi32>
    %60 = arith.cmpi sge, %53, %59 : vector<18x18x1xi32>
    %61 = arith.andi %58, %60 : vector<18x18x1xi1>
    %c16_i32_72 = arith.constant 16 : i32
    %62 = vector.broadcast %c16_i32_72 : i32 to vector<18x18x1xi32>
    %63 = arith.cmpi slt, %53, %62 : vector<18x18x1xi32>
    %64 = arith.andi %61, %63 : vector<18x18x1xi1>
    %cst_73 = arith.constant 0.000000e+00 : f32
    %65 = vector.shape_cast %64 : vector<18x18x1xi1> to vector<18x18x1xi1>
    %66 = vector.broadcast %65 : vector<18x18x1xi1> to vector<18x18x128xi1>
    %67 = vector.broadcast %cst_73 : f32 to vector<18x18x128xf32>
    %68 = arith.select %66, %46, %67 : vector<18x18x128xi1>, vector<18x18x128xf32>
    %69 = arith.truncf %68 : vector<18x18x128xf32> to vector<18x18x128xbf16>
    %c0_74 = arith.constant 0 : index
    %c0_75 = arith.constant 0 : index
    %c0_76 = arith.constant 0 : index
    %70 = vector.load %arg9[%c0_74, %c0_75, %c0_76] : memref<18x18x128xbf16, #tpu.memory_space<vmem>>, vector<18x18x128xbf16>
    tpu.vector_store %arg9[%c0_74, %c0_75, %c0_76], %69 {strides = array<i32>} : memref<18x18x128xbf16, #tpu.memory_space<vmem>>, vector<18x18x128xbf16>,
    %c0_77 = arith.constant 0 : index
    %c0_78 = arith.constant 0 : index
    %c0_79 = arith.constant 0 : index
    %71 = vector.load %arg9[%c0_77, %c0_78, %c0_79] : memref<18x18x128xbf16, #tpu.memory_space<vmem>>, vector<16x16x128xbf16>
    %c0_80 = arith.constant 0 : index
    %c0_81 = arith.constant 0 : index
    %c0_82 = arith.constant 0 : index
    %72 = vector.load %arg10[%c0_80, %c0_81, %c0_82] : memref<16x16x1152xbf16, #tpu.memory_space<vmem>>, vector<16x16x128xbf16>
    tpu.vector_store %arg10[%c0_80, %c0_81, %c0_82], %71 {strides = array<i32>} : memref<16x16x1152xbf16, #tpu.memory_space<vmem>>, vector<16x16x128xbf16>,
    %c0_83 = arith.constant 0 : index
    %c1_84 = arith.constant 1 : index
    %c0_85 = arith.constant 0 : index
    %73 = vector.load %arg9[%c0_83, %c1_84, %c0_85] : memref<18x18x128xbf16, #tpu.memory_space<vmem>>, vector<16x16x128xbf16>
    %c0_86 = arith.constant 0 : index
    %c0_87 = arith.constant 0 : index
    %c128 = arith.constant 128 : index
    %74 = vector.load %arg10[%c0_86, %c0_87, %c128] : memref<16x16x1152xbf16, #tpu.memory_space<vmem>>, vector<16x16x128xbf16>
    tpu.vector_store %arg10[%c0_86, %c0_87, %c128], %73 {strides = array<i32>} : memref<16x16x1152xbf16, #tpu.memory_space<vmem>>, vector<16x16x128xbf16>,
    %c0_88 = arith.constant 0 : index
    %c2_89 = arith.constant 2 : index
    %c0_90 = arith.constant 0 : index
    %75 = vector.load %arg9[%c0_88, %c2_89, %c0_90] : memref<18x18x128xbf16, #tpu.memory_space<vmem>>, vector<16x16x128xbf16>
    %c0_91 = arith.constant 0 : index
    %c0_92 = arith.constant 0 : index
    %c256 = arith.constant 256 : index
    %76 = vector.load %arg10[%c0_91, %c0_92, %c256] : memref<16x16x1152xbf16, #tpu.memory_space<vmem>>, vector<16x16x128xbf16>
    tpu.vector_store %arg10[%c0_91, %c0_92, %c256], %75 {strides = array<i32>} : memref<16x16x1152xbf16, #tpu.memory_space<vmem>>, vector<16x16x128xbf16>,
    %c1_93 = arith.constant 1 : index
    %c0_94 = arith.constant 0 : index
    %c0_95 = arith.constant 0 : index
    %77 = vector.load %arg9[%c1_93, %c0_94, %c0_95] : memref<18x18x128xbf16, #tpu.memory_space<vmem>>, vector<16x16x128xbf16>
    %c0_96 = arith.constant 0 : index
    %c0_97 = arith.constant 0 : index
    %c384 = arith.constant 384 : index
    %78 = vector.load %arg10[%c0_96, %c0_97, %c384] : memref<16x16x1152xbf16, #tpu.memory_space<vmem>>, vector<16x16x128xbf16>
    tpu.vector_store %arg10[%c0_96, %c0_97, %c384], %77 {strides = array<i32>} : memref<16x16x1152xbf16, #tpu.memory_space<vmem>>, vector<16x16x128xbf16>,
    %c1_98 = arith.constant 1 : index
    %c1_99 = arith.constant 1 : index
    %c0_100 = arith.constant 0 : index
    %79 = vector.load %arg9[%c1_98, %c1_99, %c0_100] : memref<18x18x128xbf16, #tpu.memory_space<vmem>>, vector<16x16x128xbf16>
    %c0_101 = arith.constant 0 : index
    %c0_102 = arith.constant 0 : index
    %c512 = arith.constant 512 : index
    %80 = vector.load %arg10[%c0_101, %c0_102, %c512] : memref<16x16x1152xbf16, #tpu.memory_space<vmem>>, vector<16x16x128xbf16>
    tpu.vector_store %arg10[%c0_101, %c0_102, %c512], %79 {strides = array<i32>} : memref<16x16x1152xbf16, #tpu.memory_space<vmem>>, vector<16x16x128xbf16>,
    %c1_103 = arith.constant 1 : index
    %c2_104 = arith.constant 2 : index
    %c0_105 = arith.constant 0 : index
    %81 = vector.load %arg9[%c1_103, %c2_104, %c0_105] : memref<18x18x128xbf16, #tpu.memory_space<vmem>>, vector<16x16x128xbf16>
    %c0_106 = arith.constant 0 : index
    %c0_107 = arith.constant 0 : index
    %c640 = arith.constant 640 : index
    %82 = vector.load %arg10[%c0_106, %c0_107, %c640] : memref<16x16x1152xbf16, #tpu.memory_space<vmem>>, vector<16x16x128xbf16>
    tpu.vector_store %arg10[%c0_106, %c0_107, %c640], %81 {strides = array<i32>} : memref<16x16x1152xbf16, #tpu.memory_space<vmem>>, vector<16x16x128xbf16>,
    %c2_108 = arith.constant 2 : index
    %c0_109 = arith.constant 0 : index
    %c0_110 = arith.constant 0 : index
    %83 = vector.load %arg9[%c2_108, %c0_109, %c0_110] : memref<18x18x128xbf16, #tpu.memory_space<vmem>>, vector<16x16x128xbf16>
    %c0_111 = arith.constant 0 : index
    %c0_112 = arith.constant 0 : index
    %c768 = arith.constant 768 : index
    %84 = vector.load %arg10[%c0_111, %c0_112, %c768] : memref<16x16x1152xbf16, #tpu.memory_space<vmem>>, vector<16x16x128xbf16>
    tpu.vector_store %arg10[%c0_111, %c0_112, %c768], %83 {strides = array<i32>} : memref<16x16x1152xbf16, #tpu.memory_space<vmem>>, vector<16x16x128xbf16>,
    %c2_113 = arith.constant 2 : index
    %c1_114 = arith.constant 1 : index
    %c0_115 = arith.constant 0 : index
    %85 = vector.load %arg9[%c2_113, %c1_114, %c0_115] : memref<18x18x128xbf16, #tpu.memory_space<vmem>>, vector<16x16x128xbf16>
    %c0_116 = arith.constant 0 : index
    %c0_117 = arith.constant 0 : index
    %c896 = arith.constant 896 : index
    %86 = vector.load %arg10[%c0_116, %c0_117, %c896] : memref<16x16x1152xbf16, #tpu.memory_space<vmem>>, vector<16x16x128xbf16>
    tpu.vector_store %arg10[%c0_116, %c0_117, %c896], %85 {strides = array<i32>} : memref<16x16x1152xbf16, #tpu.memory_space<vmem>>, vector<16x16x128xbf16>,
    %c2_118 = arith.constant 2 : index
    %c2_119 = arith.constant 2 : index
    %c0_120 = arith.constant 0 : index
    %87 = vector.load %arg9[%c2_118, %c2_119, %c0_120] : memref<18x18x128xbf16, #tpu.memory_space<vmem>>, vector<16x16x128xbf16>
    %c0_121 = arith.constant 0 : index
    %c0_122 = arith.constant 0 : index
    %c1024 = arith.constant 1024 : index
    %88 = vector.load %arg10[%c0_121, %c0_122, %c1024] : memref<16x16x1152xbf16, #tpu.memory_space<vmem>>, vector<16x16x128xbf16>
    tpu.vector_store %arg10[%c0_121, %c0_122, %c1024], %87 {strides = array<i32>} : memref<16x16x1152xbf16, #tpu.memory_space<vmem>>, vector<16x16x128xbf16>,
    %c0_123 = arith.constant 0 : index
    %c0_124 = arith.constant 0 : index
    %c0_125 = arith.constant 0 : index
    %89 = vector.load %arg10[%c0_123, %c0_124, %c0_125] : memref<16x16x1152xbf16, #tpu.memory_space<vmem>>, vector<16x16x1152xbf16>
    %90 = vector.shape_cast %89 : vector<16x16x1152xbf16> to vector<256x1152xbf16>
    %c0_126 = arith.constant 0 : index
    %c0_127 = arith.constant 0 : index
    %91 = vector.load %arg5[%c0_126, %c0_127] : memref<1152x128xbf16, #tpu.memory_space<vmem>>, vector<1152x128xbf16>
    %cst_128 = arith.constant dense<0.000000e+00> : vector<256x128xf32>
    %92 = tpu.matmul %90, %91, %cst_128 {dimension_numbers = #tpu.dot_dimension_numbers<[1], [0], [0], [1], [0, 0, 1, 1], [], []>} : vector<256x1152xbf16>, vector<1152x128xbf16>, vector<256x128xf32> -> vector<256x128xf32>
    %c0_129 = arith.constant 0 : index
    %c0_130 = arith.constant 0 : index
    %93 = vector.load %arg6[%c0_129, %c0_130] : memref<1x128xf32, #tpu.memory_space<vmem>>, vector<1x128xf32>
    %94 = vector.broadcast %93 : vector<1x128xf32> to vector<256x128xf32>
    %95 = arith.addf %92, %94 : vector<256x128xf32>
    %cst_131 = arith.constant 0.000000e+00 : f32
    %96 = vector.broadcast %cst_131 : f32 to vector<256x128xf32>
    %97 = arith.maximumf %95, %96 : vector<256x128xf32>
    %98 = vector.shape_cast %97 : vector<256x128xf32> to vector<16x16x128xf32>
    %c0_132 = arith.constant 0 : index
    %c0_133 = arith.constant 0 : index
    %c0_134 = arith.constant 0 : index
    %c0_135 = arith.constant 0 : index
    %99 = vector.load %arg7[%c0_132, %c0_133, %c0_134, %c0_135] : memref<1x16x16x128xf32, #tpu.memory_space<vmem>>, vector<1x16x16x128xf32>
    %100 = vector.shape_cast %99 : vector<1x16x16x128xf32> to vector<16x16x128xf32>
    %101 = vector.shape_cast %98 : vector<16x16x128xf32> to vector<1x16x16x128xf32>
    tpu.vector_store %arg7[%c0_132, %c0_133, %c0_134, %c0_135], %101 {strides = array<i32>} : memref<1x16x16x128xf32, #tpu.memory_space<vmem>>, vector<1x16x16x128xf32>,
    return
  }
  func.func @transform_0(%arg0: i32, %arg1: i32) -> (i32, i32, i32, i32, i32) {
    %c0_i32 = arith.constant 0 : i32
    %c0_i32_0 = arith.constant 0 : i32
    %c0_i32_1 = arith.constant 0 : i32
    %c0_i32_2 = arith.constant 0 : i32
    return %arg0, %arg1, %c0_i32, %c0_i32_0, %c0_i32_1 : i32, i32, i32, i32, i32
  }
  func.func @transform_1(%arg0: i32, %arg1: i32) -> (i32, i32) {
    %c0_i32 = arith.constant 0 : i32
    %c0_i32_0 = arith.constant 0 : i32
    %c0_i32_1 = arith.constant 0 : i32
    return %c0_i32, %c0_i32_0 : i32, i32
  }
  func.func @transform_2(%arg0: i32, %arg1: i32) -> (i32, i32) {
    %c0_i32 = arith.constant 0 : i32
    %c0_i32_0 = arith.constant 0 : i32
    %c0_i32_1 = arith.constant 0 : i32
    return %c0_i32, %c0_i32_0 : i32, i32
  }
  func.func @transform_3(%arg0: i32, %arg1: i32) -> (i32, i32) {
    %c0_i32 = arith.constant 0 : i32
    %c0_i32_0 = arith.constant 0 : i32
    %c0_i32_1 = arith.constant 0 : i32
    return %c0_i32, %c0_i32_0 : i32, i32
  }
  func.func @transform_4(%arg0: i32, %arg1: i32) -> (i32, i32) {
    %c0_i32 = arith.constant 0 : i32
    %c0_i32_0 = arith.constant 0 : i32
    %c0_i32_1 = arith.constant 0 : i32
    return %c0_i32, %c0_i32_0 : i32, i32
  }
  func.func @transform_5(%arg0: i32, %arg1: i32) -> (i32, i32, i32, i32) {
    %c0_i32 = arith.constant 0 : i32
    %c0_i32_0 = arith.constant 0 : i32
    %c0_i32_1 = arith.constant 0 : i32
    return %arg0, %arg1, %c0_i32, %c0_i32_0 : i32, i32, i32, i32
  }
}

</mosaic_0001>

<bundles_post_ra>
// kernel: _lambda_.1
= control target key start
LH: loop header
LB: loop body
LE: loop exit
PB: predicated region body
PF: predicated region fallthrough
CT: control target
= control target key end

     0   :  { %s15999_s18 = smov 0   ;;  %s16001_s19 = smov 0   ;;  %s19263_s0 = inlined_call_operand.vmem [shape: f32[2,1,20,20,8], index: 0, kind: input, shape index: {}]   ;;  %s19264_s1 = inlined_call_operand.vmem [shape: bf16[72,128], index: 1, kind: input, shape index: {}]   ;;  %s19265_s2 = inlined_call_operand.vmem [shape: f32[1,128], index: 2, kind: input, shape index: {}]   ;;  %s19266_s3 = inlined_call_operand.vmem [shape: bf16[1152,128], index: 3, kind: input, shape index: {}]   ;;  %s19267_s4 = inlined_call_operand.vmem [shape: f32[1,128], index: 4, kind: input, shape index: {}]   ;;  %s19268_s5 = inlined_call_operand.vmem [shape: f32[2,16,16,128], index: 5, kind: output, shape index: {}]  }
   0x1   :  { %s16003_s20 = smov 0  }
   0x2 LB: > { %s27_s21 = sadd.s32 1, %s15950_s19  ;;  %p13064_p0 = scmp.ge.s32.totalorder %s15954_s20, 1  ;;  %s15954_s20 = sphi %s16003_s20, %s15_s20   ;;  %s15950_s19 = sphi %s16001_s19, %s19568_s19   ;;  %s15946_s18 = sphi %s15999_s18, %s19567_s18  }
   0x3   : > { %p29_p1 = scmp.ge.s32.totalorder %s27_s21, 2  ;;  %p207_p2 = scmp.lt.s32.totalorder %s15954_s20, 3 }
   0x5   : > { %s19570_s21 = smov (%p29_p1, %s27_s21), 0  ;;  %p208_p3 = pnand %p13064_p0, %p207_p2 }
   0x7   : > { %211 = sbr.rel (%p208_p3) target bundleno = 1654 (0x676), region = 40 }
   0xe   : > { %p244_p4 = scmp.lt.s32.totalorder %s15946_s18, 1  ;;  %s15956_s26 = smov 16   ;;  %vm554_vm0 = vcmask 60416   ;;  %v15610_v32 = vld [vmem:[%s19264_s1] sm:$0xff]   ;;  %v15962_v34 = vmov 0.0   ;;  %v15611_v37 = vld [vmem:[%s19264_s1 + $0x8] sm:$0xff]  }
   0xf   : > { %s15957_s27 = smov 8   ;;  %s15958_s28 = smov 24   ;;  %15430 = vmatprep.subr.bf16.mxu0 %v15962_v34  ;;  %v15612_v42 = vld [vmem:[%s19264_s1 + $0x10] sm:$0xff]   ;;  %vm19275_vm1 = vcmask 57344   ;;  %v15613_v44 = vld [vmem:[%s19264_s1 + $0x18] sm:$0xff]   ;;  %vm6554_vm2 = vcmask 1043456  }
  0x10   : > { %s19572_s18 = smov (!%p244_p4, %s15946_s18), 1  ;;  %s15959_s29 = smov 32   ;;  %15431 = vmatpush3.bf16.msra.mxu0 %v15610_v32  ;;  %v15614_v45 = vld [vmem:[%s19264_s1 + $0x20] ss:$0 sps:$4 sm:$0xff]   ;;  %vm19269_vm3 = vmmov 0   ;;  %vm1006_vm4 = vcmask 126016  }
  0x11   : > { %s15572_s22 = smul.u32 480, %s19572_s18  ;;  %s15960_s30 = smov 40   ;;  %15432 = vmatprep.subr.bf16.mxu0 %v15962_v34  ;;  %v6556_v47 = vsel %vm6554_vm2, %v15614_v45, 0  ;;  %15440 = vmatprep.mubr.msk.bf16.mxu0 %vm19269_vm3, %v15962_v34  ;;  %vm1458_vm5 = vcmask 191616   ;;  %vm1911_vm6 = vcmask 257216   ;;  %vm19280_vm7 = vcmask 322816  }
  0x12   : > { %s15961_s6 = smov 48   ;;  %s15963_s9 = smov 56   ;;  %vm2815_vm8 = vcmask 388416   ;;  %vm19271_vm9 = vcmask 454016   ;;  %vm3720_vm10 = vcmask 519616   ;;  %vm19272_vm11 = vcmask 585216  }
  0x13   : > { %s16023_s25 = scalar_lea.vmem %s19263_s0, %s15572_s22  ;;  %s15964_s14 = smov 64   ;;  %vm1009_vm12 = vcmask 122944   ;;  %vm19276_vm13 = vcmask 188544   ;;  %vm6490_vm14 = vcmask 588800   ;;  %vm19274_vm15 = vcmask 254144  }
  0x14   : > { %v1062_v0 = vld [vmem:[%s16023_s25 + $0x2] sm:$0xff]  ;;  %v1063_v2 = vld [vmem:[%s16023_s25 + $0xa] sm:$0xff]  ;;  %v13230_v7 = vld [vmem:[%s16023_s25 + $0x18] sm:$0xff]  ;;  %15433 = vmatpush3.bf16.msra.mxu0 %v15611_v37  ;;  %vm2366_vm2 = vcmask 319744  }
  0x15   : > { %v610_v1 = vld [vmem:[%s16023_s25 + $0x1] sm:$0xff]  ;;  %v14458_v3 = vpack.c.bf16 %v1062_v0, %v1062_v0  ;;  %v611_v5 = vld [vmem:[%s16023_s25 + $0x9] sm:$0xff]  ;;  %v14512_v9 = vpack.c.bf16 %v13230_v7, %v13230_v7  ;;  %v14459_v10 = vpack.c.bf16 %v1063_v2, %v1063_v2  ;;  %v13555_v12 = vld [vmem:[%s16023_s25 + $0x38] sm:$0xff]  ;;  %15434 = vmatprep.subr.bf16.mxu0 %v15962_v34 }
  0x16   : > { %v14404_v4 = vpack.c.bf16 %v610_v1, %v610_v1  ;;  %v13231_v6 = vld [vmem:[%s16023_s25 + $0x20] sm:$0xff]  ;;  %v14405_v11 = vpack.c.bf16 %v611_v5, %v611_v5  ;;  %v16034_v13 = vpack.c.bf16 %v13555_v12, %v13555_v12  ;;  %v13554_v14 = vld [vmem:[%s16023_s25 + $0x30] sm:$0xff]  ;;  %v13557_v16 = vld [vmem:[%s16023_s25 + $0x48] sm:$0xff] }
  0x17   : > { %v14513_v8 = vpack.c.bf16 %v13231_v6, %v13231_v6  ;;  %1296 = vrot.lane.b32.xlu1 %v14458_v3, %s15956_s26  ;;  %559 = vst.msk [vmem:[#allocation2 + $0xc] sm:$0xf] %vm554_vm0, %v14512_v9  ;;  %v16039_v15 = vpack.c.bf16 %v13554_v14, %v13554_v14  ;;  %v16046_v17 = vpack.c.bf16 %v13557_v16, %v13557_v16  ;;  %v13339_v18 = vld [vmem:[%s16023_s25 + $0x21] sm:$0xff]  ;;  %v13338_v19 = vld [vmem:[%s16023_s25 + $0x19] sm:$0xff]  ;;  %v13662_v30 = vld [vmem:[%s16023_s25 + $0x31] sm:$0xff] }
  0x18   : > { %844 = vrot.lane.b32.xlu0 %v14404_v4, %s15957_s27  ;;  %563 = vst.msk [vmem:[#allocation2 + $0x1c] sm:$0xf] %vm554_vm0, %v16034_v13  ;;  %v14567_v20 = vpack.c.bf16 %v13339_v18, %v13339_v18  ;;  %v14566_v21 = vpack.c.bf16 %v13338_v19, %v13338_v19  ;;  %v13447_v22 = vld [vmem:[%s16023_s25 + $0x22] sm:$0xff]  ;;  %v13446_v23 = vld [vmem:[%s16023_s25 + $0x1a] sm:$0xff]  ;;  %v16071_v31 = vpack.c.bf16 %v13662_v30, %v13662_v30  ;;  %v13770_v38 = vld [vmem:[%s16023_s25 + $0x32] sm:$0xff] }
  0x19   : > { %560 = vst.msk [vmem:[#allocation2 + $0x10] sm:$0xf] %vm554_vm0, %v14513_v8  ;;  %562 = vst.msk [vmem:[#allocation2 + $0x18] sm:$0xf] %vm554_vm0, %v16039_v15  ;;  %v266_v24 = vld [vmem:[%s16023_s25] sm:$0xff]  ;;  %v267_v26 = vld [vmem:[%s16023_s25 + $0x8] sm:$0xff]  ;;  %v14621_v27 = vpack.c.bf16 %v13447_v22, %v13447_v22  ;;  %v14620_v28 = vpack.c.bf16 %v13446_v23, %v13446_v23  ;;  %v16096_v41 = vpack.c.bf16 %v13770_v38, %v13770_v38  ;;  %15435 = vmatpush3.bf16.msra.mxu0 %v15612_v42 }
  0x1a   : > { %565 = vst.msk [vmem:[#allocation2 + $0x24] sm:$0xf] %vm554_vm0, %v16046_v17  ;;  %v14350_v25 = vpack.c.bf16 %v266_v24, %v266_v24  ;;  %v14351_v29 = vpack.c.bf16 %v267_v26, %v267_v26  ;;  %v13663_v33 = vld [vmem:[%s16023_s25 + $0x39] sm:$0xff]  ;;  %v268_v39 = vld [vmem:[%s16023_s25 + $0x10] sm:$0x3]  ;;  %15436 = vmatprep.subr.bf16.mxu0 %v15962_v34  ;;  %v13561_v19 = vld [vmem:[%s16023_s25 + $0x68] sm:$0xff] }
  0x1b   : > { %1298 = vrot.lane.b32.xlu1 %v14459_v10, %s15956_s26  ;;  %v13771_v35 = vld [vmem:[%s16023_s25 + $0x3a] sm:$0xff]  ;;  %v16083_v36 = vpack.c.bf16 %v13663_v33, %v13663_v33  ;;  %v14352_v43 = vpack.c.bf16 %v268_v39, %v268_v39  ;;  %v612_v46 = vld [vmem:[%s16023_s25 + $0x11] sm:$0x3]  ;;  %v13232_v51 = vld [vmem:[%s16023_s25 + $0x28] sm:$0x3] }
  0x1c   : > { %846 = vrot.lane.b32.xlu0 %v14405_v11, %s15957_s27  ;;  %555 = vst.msk [vmem:[#allocation2] sm:$0xf] %vm554_vm0, %v14350_v25  ;;  %556 = vst.msk [vmem:[#allocation2 + $0x4] sm:$0xf] %vm554_vm0, %v14351_v29  ;;  %v16094_v40 = vpack.c.bf16 %v13771_v35, %v13771_v35  ;;  %v1064_v48 = vld [vmem:[%s16023_s25 + $0x12] sm:$0x3]  ;;  %v14406_v49 = vpack.c.bf16 %v612_v46, %v612_v46  ;;  %v14514_v54 = vpack.c.bf16 %v13232_v51, %v13232_v51 }
  0x1d   : > { %558 = vst.msk [vmem:[#allocation2 + $0x8] sm:$0x1] %vm19275_vm1, %v14352_v43  ;;  %15437 = vmatpush3.bf16.msra.mxu0 %v15613_v44  ;;  %v14460_v50 = vpack.c.bf16 %v1064_v48, %v1064_v48  ;;  %v13340_v52 = vld [vmem:[%s16023_s25 + $0x29] sm:$0x3]  ;;  %v13558_v56 = vld [vmem:[%s16023_s25 + $0x50] sm:$0xff]  ;;  %v13668_v26 = vld [vmem:[%s16023_s25 + $0x61] sm:$0xff] }
  0x1e   : > { %15438 = vmatprep.subr.bf16.mxu0 %v15962_v34  ;;  %v13665_v53 = vld [vmem:[%s16023_s25 + $0x49] sm:$0xff]  ;;  %v14568_v57 = vpack.c.bf16 %v13340_v52, %v13340_v52  ;;  %v13666_v59 = vld [vmem:[%s16023_s25 + $0x51] sm:$0xff]  ;;  %v14678_v62 = vpack.c.bf16 %v13558_v56, %v13558_v56  ;;  %v13556_v0 = vld [vmem:[%s16023_s25 + $0x40] sm:$0x3] }
  0x1f   : > { %1751 = vrot.lane.b32.xlu1 %v14513_v8, %s15958_s28  ;;  %v13773_v55 = vld [vmem:[%s16023_s25 + $0x4a] sm:$0xff]  ;;  %v14731_v58 = vpack.c.bf16 %v13665_v53, %v13665_v53  ;;  %v13774_v63 = vld [vmem:[%s16023_s25 + $0x52] sm:$0xff]  ;;  %v16153_v1 = vpack.c.bf16 %v13666_v59, %v13666_v59  ;;  %v14676_v4 = vpack.c.bf16 %v13556_v0, %v13556_v0  ;;  %v13664_v5 = vld [vmem:[%s16023_s25 + $0x41] sm:$0x3] }
  0x20   : > { %1749 = vrot.lane.b32.xlu0 %v14512_v9, %s15958_s28  ;;  %v13448_v60 = vld [vmem:[%s16023_s25 + $0x2a] sm:$0x3]  ;;  %v16146_v61 = vpack.c.bf16 %v13773_v55, %v13773_v55  ;;  %v16158_v3 = vpack.c.bf16 %v13774_v63, %v13774_v63  ;;  %v271_v6 = vld [vmem:[%s16023_s25 + $0x28] sm:$0x3]  ;;  %v13772_v8 = vld [vmem:[%s16023_s25 + $0x42] sm:$0x3]  ;;  %v14730_v9 = vpack.c.bf16 %v13664_v5, %v13664_v5 }
  0x21   : > { %15439 = vmatpush3.bf16.msra.mxu0 %v6556_v47  ;;  %v14622_v2 = vpack.c.bf16 %v13448_v60, %v13448_v60  ;;  %v14355_v7 = vpack.c.bf16 %v271_v6, %v271_v6  ;;  %v14784_v10 = vpack.c.bf16 %v13772_v8, %v13772_v8  ;;  %v615_v11 = vld [vmem:[%s16023_s25 + $0x29] sm:$0x3]  ;;  %v13343_v18 = vld [vmem:[%s16023_s25 + $0x41] sm:$0x3]  ;;  %v13559_v29 = vld [vmem:[%s16023_s25 + $0x58] sm:$0x3] }
  0x22   : > { %v14409_v12 = vpack.c.bf16 %v615_v11, %v615_v11  ;;  %v13451_v23 = vld [vmem:[%s16023_s25 + $0x42] sm:$0x3]  ;;  %v13669_v25 = vld [vmem:[%s16023_s25 + $0x69] sm:$0xff]  ;;  %v14679_v32 = vpack.c.bf16 %v13559_v29, %v13559_v29  ;;  %v13775_v48 = vld [vmem:[%s16023_s25 + $0x5a] sm:$0x3] }
  0x23   : > { %2203 = vrot.lane.b32.xlu1 %v14567_v20, %s15959_s29  ;;  %561 = vst.msk [vmem:[#allocation2 + $0x14] sm:$0x1] %vm19275_vm1, %v14355_v7  ;;  %v14625_v24 = vpack.c.bf16 %v13451_v23, %v13451_v23  ;;  %v13777_v33 = vld [vmem:[%s16023_s25 + $0x6a] sm:$0xff]  ;;  %v13776_v35 = vld [vmem:[%s16023_s25 + $0x62] sm:$0xff]  ;;  %v14787_v51 = vpack.c.bf16 %v13775_v48, %v13775_v48  ;;  %v13563_v60 = vld [vmem:[%s16023_s25 + $0x78] sm:$0xff]  ;;  %v4347_v7 = vlaneseq }
  0x24   : > { %2201 = vrot.lane.b32.xlu0 %v14566_v21, %s15959_s29  ;;  %v16225_v38 = vpack.c.bf16 %v13777_v33, %v13777_v33  ;;  %v16227_v39 = vpack.c.bf16 %v13776_v35, %v13776_v35  ;;  %v276_v42 = vld [vmem:[%s16023_s25 + $0x50] sm:$0xff]  ;;  %v618_v52 = vld [vmem:[%s16023_s25 + $0x41] sm:$0x3]  ;;  %v16263_v63 = vpack.c.bf16 %v13563_v60, %v13563_v60  ;;  %v13238_v0 = vld [vmem:[%s16023_s25 + $0x58] sm:$0x3] }
  0x25   : > { %v14360_v46 = vpack.c.bf16 %v276_v42, %v276_v42  ;;  %v14412_v55 = vpack.c.bf16 %v618_v52, %v618_v52  ;;  %v1070_v56 = vld [vmem:[%s16023_s25 + $0x42] sm:$0x3]  ;;  %v15966_v5 = vmov 1966171168   ;;  %v13346_v8 = vld [vmem:[%s16023_s25 + $0x59] sm:$0x3] }
  0x26   : > { %v14466_v59 = vpack.c.bf16 %v1070_v56, %v1070_v56  ;;  %v4345_v6 = vunpack.c.l.s4 %v15966_v5  ;;  %v13562_v35 = vld [vmem:[%s16023_s25 + $0x70] sm:$0x3] }
  0x27   : > { %2655 = vrot.lane.b32.xlu1 %v14621_v27, %s15960_s30  ;;  %566 = vst.msk [vmem:[#allocation2 + $0x28] sm:$0xf] %vm554_vm0, %v14360_v46  ;;  %v14682_v46 = vpack.c.bf16 %v13562_v35, %v13562_v35  ;;  %v13457_v35 = vld [vmem:[%s16023_s25 + $0x72] sm:$0x3] }
  0x28   : > { %2653 = vrot.lane.b32.xlu0 %v14620_v28, %s15960_s30 }
  0x2b   : > { %3108 = vrot.lane.b32.xlu1 %v16034_v13, %s15961_s6 }
  0x2c   : > { %3106 = vrot.lane.b32.xlu0 %v16039_v15, %s15961_s6 }
  0x2f   : > { %3558 = vrot.lane.b32.xlu1 %v16071_v31, %s15963_s9 }
  0x30   : > { %850 = vrot.lane.b32.xlu0 %v14566_v21, %s15957_s27  ;;  %v16197_v21 = vpack.c.bf16 %v13561_v19, %v13561_v19 }
  0x33   : > { %1302 = vrot.lane.b32.xlu1 %v14620_v28, %s15956_s26  ;;  %v16209_v28 = vpack.c.bf16 %v13668_v26, %v13668_v26 }
  0x34   : > { %3560 = vrot.lane.b32.xlu0 %v16083_v36, %s15963_s9 }
  0x37   : > { %4012 = vrot.lane.b32.xlu1 %v16094_v40, %s15964_s14 }
  0x38   : > { %4010 = vrot.lane.b32.xlu0 %v16096_v41, %s15964_s14 }
  0x3b   : > { %1755 = vrot.lane.b32.xlu1 %v16039_v15, %s15958_s28  ;;  %v13235_v15 = vld [vmem:[%s16023_s25 + $0x40] sm:$0x3] }
  0x3c   : > { %852 = vrot.lane.b32.xlu0 %v14567_v20, %s15957_s27  ;;  %v14517_v16 = vpack.c.bf16 %v13235_v15, %v13235_v15  ;;  %v13560_v20 = vld [vmem:[%s16023_s25 + $0x60] sm:$0xff] }
  0x3d   : > { %v14680_v22 = vpack.c.bf16 %v13560_v20, %v13560_v20  ;;  %v13779_v15 = vld [vmem:[%s16023_s25 + $0x7a] sm:$0xff] }
  0x3e   : > { %v278_v20 = vld [vmem:[%s16023_s25 + $0x60] sm:$0xff] }
  0x3f   : > { %2207 = vrot.lane.b32.xlu1 %v16071_v31, %s15959_s29 }
  0x40   : > { %1304 = vrot.lane.b32.xlu0 %v14621_v27, %s15956_s26  ;;  %v16207_v27 = vpack.c.bf16 %v13669_v25, %v13669_v25 }
  0x43   : > { %1757 = vrot.lane.b32.xlu1 %v16034_v13, %s15958_s28  ;;  %v1067_v13 = vld [vmem:[%s16023_s25 + $0x2a] sm:$0x3] }
  0x44   : > { %848 = vrot.lane.b32.xlu0 %v14406_v49, %s15957_s27  ;;  %v14463_v14 = vpack.c.bf16 %v1067_v13, %v1067_v13  ;;  %v4346_v13 = vunpack.c.0.s8 %v4345_v6  ;;  %v13780_v6 = vld [vmem:[%s16023_s25 + $0x82] sm:$0xff] }
  0x47   : > { %1300 = vrot.lane.b32.xlu1 %v14460_v50, %s15956_s26 }
  0x48   : > { %2659 = vrot.lane.b32.xlu0 %v16096_v41, %s15960_s30 }
  0x4b   : > { %3112 = vrot.lane.b32.xlu1 %v16046_v17, %s15961_s6 }
  0x4c   : > { %2209 = vrot.lane.b32.xlu0 %v16083_v36, %s15959_s29 }
  0x4f   : > { %2661 = vrot.lane.b32.xlu1 %v16094_v40, %s15960_s30 }
  0x50   : > { %1753 = vrot.lane.b32.xlu0 %v14514_v54, %s15958_s28 }
  0x53   : > { %2205 = vrot.lane.b32.xlu1 %v14568_v57, %s15959_s29 }
  0x54   : > { %3564 = vrot.lane.b32.xlu0 %v14731_v58, %s15963_s9 }
  0x57   : > { %4016 = vrot.lane.b32.xlu1 %v16146_v61, %s15964_s14 }
  0x58   : > { %3114 = vrot.lane.b32.xlu0 %v14678_v62, %s15961_s6 }
  0x5b   : > { %3566 = vrot.lane.b32.xlu1 %v16153_v1, %s15963_s9 }
  0x5c   : > { %2657 = vrot.lane.b32.xlu0 %v14622_v2, %s15960_s30 }
  0x5f   : > { %4018 = vrot.lane.b32.xlu1 %v16158_v3, %s15964_s14 }
  0x60   : > { %3110 = vrot.lane.b32.xlu0 %v14676_v4, %s15961_s6  ;;  %v14520_v4 = vpack.c.bf16 %v13238_v0, %v13238_v0 }
  0x63   : > { %858 = vrot.lane.b32.xlu1 %v16083_v36, %s15957_s27 }
  0x64   : > { %856 = vrot.lane.b32.xlu0 %v16071_v31, %s15957_s27 }
  0x67   : > { %1308 = vrot.lane.b32.xlu1 %v16096_v41, %s15956_s26  ;;  %v13667_v41 = vld [vmem:[%s16023_s25 + $0x59] sm:$0x3] }
  0x68   : > { %3562 = vrot.lane.b32.xlu0 %v14730_v9, %s15963_s9  ;;  %v14733_v47 = vpack.c.bf16 %v13667_v41, %v13667_v41  ;;  %v13671_v9 = vld [vmem:[%s16023_s25 + $0x79] sm:$0xff] }
  0x6b   : > { %4014 = vrot.lane.b32.xlu1 %v14784_v10, %s15964_s14 }
  0x6c   : > { %1310 = vrot.lane.b32.xlu0 %v16094_v40, %s15956_s26  ;;  %v274_v40 = vld [vmem:[%s16023_s25 + $0x40] sm:$0x3] }
  0x6d   : > { %v14358_v43 = vpack.c.bf16 %v274_v40, %v274_v40 }
  0x6f   : > { %1761 = vrot.lane.b32.xlu1 %v16046_v17, %s15958_s28  ;;  %v14571_v17 = vpack.c.bf16 %v13343_v18, %v13343_v18  ;;  %564 = vst.msk [vmem:[#allocation2 + $0x20] sm:$0x1] %vm19275_vm1, %v14358_v43 }
  0x70   : > { %854 = vrot.lane.b32.xlu0 %v14409_v12, %s15957_s27  ;;  %v16279_v12 = vpack.c.bf16 %v13671_v9, %v13671_v9 }
  0x73   : > { %1306 = vrot.lane.b32.xlu1 %v14463_v14, %s15956_s26  ;;  %v16281_v14 = vshrl.u32 %v4347_v7, 7  ;;  %v13778_v7 = vld [vmem:[%s16023_s25 + $0x72] sm:$0x3] }
  0x74   : > { %1763 = vrot.lane.b32.xlu0 %v14678_v62, %s15958_s28 }
  0x75   : > { %v16292_v19 = vsub.s32 %v4346_v13, %v16281_v14 }
  0x77   : > { %2215 = vrot.lane.b32.xlu1 %v16153_v1, %s15959_s29 }
  0x78   : > { %2213 = vrot.lane.b32.xlu0 %v14731_v58, %s15959_s29 }
  0x7b   : > { %2665 = vrot.lane.b32.xlu1 %v16146_v61, %s15960_s30 }
  0x7c   : > { %1759 = vrot.lane.b32.xlu0 %v14517_v16, %s15958_s28 }
  0x7f   : > { %2211 = vrot.lane.b32.xlu1 %v14571_v17, %s15959_s29  ;;  %v16289_v17 = vpack.c.bf16 %v13779_v15, %v13779_v15  ;;  %v1073_v15 = vld [vmem:[%s16023_s25 + $0x5a] sm:$0x3] }
  0x80   : > { %2667 = vrot.lane.b32.xlu0 %v16158_v3, %s15960_s30 }
  0x83   : > { %3120 = vrot.lane.b32.xlu1 %v16197_v21, %s15961_s6 }
  0x84   : > { %3118 = vrot.lane.b32.xlu0 %v14680_v22, %s15961_s6 }
  0x87   : > { %2663 = vrot.lane.b32.xlu1 %v14625_v24, %s15960_s30 }
  0x88   : > { %862 = vrot.lane.b32.xlu0 %v14731_v58, %s15957_s27 }
  0x89   : > { %v1297_v30 = vpop.permute.xlu1 %1296 }
  0x8a   : > { %v845_v31 = vpop.permute.xlu0 %844 }
  0x8b   : > { %1007 = vst.msk [vmem:[#allocation2] sm:$0xf] %vm1006_vm4, %v845_v31  ;;  %3572 = vrot.lane.b32.xlu1 %v16207_v27, %s15963_s9  ;;  %v13564_v31 = vld [vmem:[%s16023_s25 + $0x80] sm:$0xff] }
  0x8c   : > { %3570 = vrot.lane.b32.xlu0 %v16209_v28, %s15963_s9  ;;  %1459 = vst.msk [vmem:[#allocation2] sm:$0xf] %vm1458_vm5, %v1297_v30  ;;  %v16311_v43 = vpack.c.bf16 %v13564_v31, %v13564_v31 }
  0x8d   : > { %v1299_v36 = vpop.permute.xlu1 %1298 }
  0x8e   : > { %v847_v37 = vpop.permute.xlu0 %846 }
  0x8f   : > { %1008 = vst.msk [vmem:[#allocation2 + $0x4] sm:$0xf] %vm1006_vm4, %v847_v37  ;;  %3116 = vrot.lane.b32.xlu1 %v14679_v32, %s15961_s6 }
  0x90   : > { %1314 = vrot.lane.b32.xlu0 %v16146_v61, %s15956_s26  ;;  %1460 = vst.msk [vmem:[#allocation2 + $0x4] sm:$0xf] %vm1458_vm5, %v1299_v36 }
  0x91   : > { %v1752_v44 = vpop.permute.xlu1 %1751 }
  0x92   : > { %v1750_v45 = vpop.permute.xlu0 %1749  ;;  %1913 = vst.msk [vmem:[#allocation2 + $0x4] sm:$0xf] %vm1911_vm6, %v1752_v44 }
  0x93   : > { %1912 = vst.msk [vmem:[#allocation2] sm:$0xf] %vm1911_vm6, %v1750_v45  ;;  %4024 = vrot.lane.b32.xlu1 %v16225_v38, %s15964_s14 }
  0x94   : > { %4022 = vrot.lane.b32.xlu0 %v16227_v39, %s15964_s14 }
  0x95   : > { %v2204_v49 = vpop.permute.xlu1 %2203 }
  0x96   : > { %v2202_v50 = vpop.permute.xlu0 %2201  ;;  %2365 = vst.msk [vmem:[#allocation2 + $0x4] sm:$0xf] %vm19280_vm7, %v2204_v49  ;;  %v13670_v49 = vld [vmem:[%s16023_s25 + $0x71] sm:$0x3] }
  0x97   : > { %2364 = vst.msk [vmem:[#allocation2] sm:$0xf] %vm19280_vm7, %v2202_v50  ;;  %3568 = vrot.lane.b32.xlu1 %v14733_v47, %s15963_s9 }
  0x98   : > { %1767 = vrot.lane.b32.xlu0 %v14680_v22, %s15958_s28  ;;  %v14362_v22 = vpack.c.bf16 %v278_v20, %v278_v20  ;;  %v14469_v20 = vpack.c.bf16 %v1073_v15, %v1073_v15 }
  0x99   : > { %v2656_v53 = vpop.permute.xlu1 %2655 }
  0x9a   : > { %v2654_v54 = vpop.permute.xlu0 %2653  ;;  %2817 = vst.msk [vmem:[#allocation2 + $0x4] sm:$0xf] %vm2815_vm8, %v2656_v53 }
  0x9b   : > { %2816 = vst.msk [vmem:[#allocation2] sm:$0xf] %vm2815_vm8, %v2654_v54  ;;  %4020 = vrot.lane.b32.xlu1 %v14787_v51, %s15964_s14 }
  0x9c   : > { %2219 = vrot.lane.b32.xlu0 %v16209_v28, %s15959_s29  ;;  %568 = vst.msk [vmem:[#allocation2 + $0x30] sm:$0xf] %vm554_vm0, %v14362_v22 }
  0x9d   : > { %v3109_v57 = vpop.permute.xlu1 %3108 }
  0x9e   : > { %v3107_v58 = vpop.permute.xlu0 %3106  ;;  %3270 = vst.msk [vmem:[#allocation2 + $0x4] sm:$0xf] %vm19271_vm9, %v3109_v57  ;;  %v14736_v57 = vpack.c.bf16 %v13670_v49, %v13670_v49 }
  0x9f   : > { %3269 = vst.msk [vmem:[#allocation2] sm:$0xf] %vm19271_vm9, %v3107_v58  ;;  %864 = vrot.lane.b32.xlu1 %v16153_v1, %s15957_s27 }
  0xa0   : > { %860 = vrot.lane.b32.xlu0 %v14412_v55, %s15957_s27 }
  0xa1   : > { %v3559_v61 = vpop.permute.xlu1 %3558 }
  0xa2   : > { %v851_v62 = vpop.permute.xlu0 %850  ;;  %3721 = vst.msk [vmem:[#allocation2] sm:$0xf] %vm3720_vm10, %v3559_v61  ;;  %v13672_v61 = vld [vmem:[%s16023_s25 + $0x81] sm:$0xff] }
  0xa3   : > { %1011 = vst.msk [vmem:[#allocation2 + $0xc] sm:$0xf] %vm1006_vm4, %v851_v62  ;;  %1312 = vrot.lane.b32.xlu1 %v14466_v59, %s15956_s26  ;;  %v277_v59 = vld [vmem:[%s16023_s25 + $0x58] sm:$0x3]  ;;  %v16336_v5 = vpack.c.bf16 %v13672_v61, %v13672_v61 }
  0xa4   : > { %2671 = vrot.lane.b32.xlu0 %v16227_v39, %s15960_s30  ;;  %v14361_v62 = vpack.c.bf16 %v277_v59, %v277_v59 }
  0xa5   : > { %v1303_v1 = vpop.permute.xlu1 %1302 }
  0xa6   : > { %v3561_v2 = vpop.permute.xlu0 %3560  ;;  %1463 = vst.msk [vmem:[#allocation2 + $0xc] sm:$0xf] %vm1458_vm5, %v1303_v1 }
  0xa7   : > { %3722 = vst.msk [vmem:[#allocation2 + $0x4] sm:$0xf] %vm3720_vm10, %v3561_v2  ;;  %3124 = vrot.lane.b32.xlu1 %v16263_v63, %s15961_s6 }
  0xa8   : > { %1316 = vrot.lane.b32.xlu0 %v16158_v3, %s15956_s26  ;;  %v14574_v3 = vpack.c.bf16 %v13346_v8, %v13346_v8  ;;  %567 = vst.msk [vmem:[#allocation2 + $0x2c] sm:$0x1] %vm19275_vm1, %v14361_v62 }
  0xa9   : > { %v4013_v10 = vpop.permute.xlu1 %4012 }
  0xaa   : > { %v4011_v11 = vpop.permute.xlu0 %4010  ;;  %4174 = vst.msk [vmem:[#allocation2 + $0x4] sm:$0xf] %vm19272_vm11, %v4013_v10  ;;  %v14790_v10 = vpack.c.bf16 %v13778_v7, %v13778_v7 }
  0xab   : > { %4173 = vst.msk [vmem:[#allocation2] sm:$0xf] %vm19272_vm11, %v4011_v11  ;;  %1769 = vrot.lane.b32.xlu1 %v16197_v21, %s15958_s28  ;;  %v13454_v21 = vld [vmem:[%s16023_s25 + $0x5a] sm:$0x3] }
  0xac   : > { %1765 = vrot.lane.b32.xlu0 %v14520_v4, %s15958_s28  ;;  %v14628_v30 = vpack.c.bf16 %v13454_v21, %v13454_v21  ;;  %v621_v11 = vld [vmem:[%s16023_s25 + $0x59] sm:$0x3]  ;;  %v13241_v21 = vld [vmem:[%s16023_s25 + $0x70] sm:$0x3] }
  0xad   : > { %v1756_v16 = vpop.permute.xlu1 %1755 }
  0xae   : > { %v853_v18 = vpop.permute.xlu0 %852  ;;  %1916 = vst.msk [vmem:[#allocation2 + $0xc] sm:$0xf] %vm1911_vm6, %v1756_v16 }
  0xaf   : > { %1012 = vst.msk [vmem:[#allocation2 + $0x10] sm:$0xf] %vm1006_vm4, %v853_v18  ;;  %2217 = vrot.lane.b32.xlu1 %v14574_v3, %s15959_s29 }
  0xb0   : > { %3576 = vrot.lane.b32.xlu0 %v16279_v12, %s15963_s9 }
  0xb1   : > { %v2208_v23 = vpop.permute.xlu1 %2207  ;;  %v13879_v26 = vld.sshfl [vmem:[#allocation2 + $0x4] sm:$0x33 pattern:$0x75316420] }
  0xb2   : > { %v1305_v24 = vpop.permute.xlu0 %1304  ;;  %v13878_v25 = vld.sshfl [vmem:[#allocation2] sm:$0x33 pattern:$0x75316420]  ;;  %2368 = vst.msk [vmem:[#allocation2 + $0xc] sm:$0xf] %vm19280_vm7, %v2208_v23  ;;  %v4367_v32 = vcombine.high %v13879_v26, %v13879_v26  ;;  %v4374_v33 = vrot.slane %v13879_v26, %v16292_v19 }
  0xb3   : > { %1464 = vst.msk [vmem:[#allocation2 + $0x10] sm:$0xf] %vm1458_vm5, %v1305_v24  ;;  %v4343_v29 = vcombine.high %v13878_v25, %v13878_v25  ;;  %4028 = vrot.lane.b32.xlu1 %v16289_v17, %s15964_s14  ;;  %v4350_v36 = vrot.slane %v13878_v25, %v16292_v19  ;;  %v13566_v24 = vld [vmem:[%s16023_s25 + $0x90] sm:$0xff] }
  0xb4   : > { %2221 = vrot.lane.b32.xlu0 %v16207_v27, %s15959_s29  ;;  %v4381_v42 = vrot.slane %v4367_v32, %v16292_v19  ;;  %v13349_v25 = vld [vmem:[%s16023_s25 + $0x71] sm:$0x3]  ;;  %v279_v32 = vld [vmem:[%s16023_s25 + $0x68] sm:$0xff] }
  0xb5   : > { %v4357_v37 = vrot.slane %v4343_v29, %v16292_v19  ;;  %v1758_v40 = vpop.permute.xlu1 %1757  ;;  %v14577_v31 = vpack.c.bf16 %v13349_v25, %v13349_v25 }
  0xb6   : > { %v849_v41 = vpop.permute.xlu0 %848  ;;  %1917 = vst.msk [vmem:[#allocation2 + $0x10] sm:$0xf] %vm1911_vm6, %v1758_v40  ;;  %v5470_v47 = vcombine.low %v4374_v33, %v4381_v42  ;;  %v13934_v48 = vcombine.high %v4374_v33, %v4381_v42  ;;  %v13674_v33 = vld [vmem:[%s16023_s25 + $0x91] sm:$0xff] }
  0xb7   : > { %1010 = vst.msk [vmem:[#allocation2 + $0x8] sm:$0x1] %vm1009_vm12, %v849_v41  ;;  %v5468_v44 = vcombine.low %v4350_v36, %v4357_v37  ;;  %v13933_v45 = vcombine.high %v4350_v36, %v4357_v37  ;;  %2673 = vrot.lane.b32.xlu1 %v16225_v38, %s15960_s30  ;;  %v281_v36 = vld [vmem:[%s16023_s25 + $0x78] sm:$0xff]  ;;  %v14363_v37 = vpack.c.bf16 %v279_v32, %v279_v32 }
  0xb8   : > { %2669 = vrot.lane.b32.xlu0 %v14628_v30, %s15960_s30  ;;  %v5492_v54 = vrot.slane %v5470_v47, %v16292_v19  ;;  %v5499_v55 = vrot.slane %v13934_v48, %v16292_v19  ;;  %v16376_v30 = vpack.c.bf16 %v13566_v24, %v13566_v24  ;;  %v14365_v42 = vpack.c.bf16 %v281_v36, %v281_v36  ;;  %v13782_v47 = vld [vmem:[%s16023_s25 + $0x92] sm:$0xff]  ;;  %v13565_v48 = vld [vmem:[%s16023_s25 + $0x88] sm:$0x3] }
  0xb9   : > { %v5478_v50 = vrot.slane %v5468_v44, %v16292_v19  ;;  %v5485_v51 = vrot.slane %v13933_v45, %v16292_v19  ;;  %v1301_v52 = vpop.permute.xlu1 %1300  ;;  %569 = vst.msk [vmem:[#allocation2 + $0x34] sm:$0xf] %vm554_vm0, %v14363_v37  ;;  %v16388_v44 = vpack.c.bf16 %v13674_v33, %v13674_v33  ;;  %v14631_v45 = vpack.c.bf16 %v13457_v35, %v13457_v35 }
  0xba   : > { %v2660_v53 = vpop.permute.xlu0 %2659  ;;  %1462 = vst.msk [vmem:[#allocation2 + $0x8] sm:$0x1] %vm19276_vm13, %v1301_v52  ;;  %v5501_v58 = vcombine.low %v5492_v54, %v5499_v55  ;;  %v16399_v55 = vpack.c.bf16 %v13782_v47, %v13782_v47  ;;  %v13352_v47 = vld [vmem:[%s16023_s25 + $0x89] sm:$0x3] }
  0xbb   : > { %2820 = vst.msk [vmem:[#allocation2 + $0xc] sm:$0xf] %vm2815_vm8, %v2660_v53  ;;  %v5500_v56 = vcombine.low %v5478_v50, %v5485_v51  ;;  %3126 = vrot.lane.b32.xlu1 %v16311_v43, %s15961_s6 }
  0xbc   : > { %3122 = vrot.lane.b32.xlu0 %v14682_v46, %s15961_s6  ;;  %v5515_v2 = vrot.slane %v5501_v58, %v16292_v19  ;;  %571 = vst.msk [vmem:[#allocation2 + $0x3c] sm:$0xf] %vm554_vm0, %v14365_v42 }
  0xbd   : > { %v5508_v60 = vrot.slane %v5500_v56, %v16292_v19  ;;  %v3113_v0 = vpop.permute.xlu1 %3112  ;;  %v14685_v56 = vpack.c.bf16 %v13565_v48, %v13565_v48 }
  0xbe   : > { %v2210_v1 = vpop.permute.xlu0 %2209  ;;  %3273 = vst.msk [vmem:[#allocation2 + $0xc] sm:$0xf] %vm19271_vm9, %v3113_v0  ;;  %v280_v0 = vld [vmem:[%s16023_s25 + $0x70] sm:$0x3] }
  0xbf   : > { %2369 = vst.msk [vmem:[#allocation2 + $0x10] sm:$0xf] %vm19280_vm7, %v2210_v1  ;;  %3574 = vrot.lane.b32.xlu1 %v14736_v57, %s15963_s9  ;;  %v5516_v4 = vcombine.low %v5508_v60, %v5515_v2  ;;  %v13673_v1 = vld [vmem:[%s16023_s25 + $0x89] sm:$0x3]  ;;  %v14364_v2 = vpack.c.bf16 %v280_v0, %v280_v0 }
  0xc0   : > { %868 = vrot.lane.b32.xlu0 %v16209_v28, %s15957_s27  ;;  %v16349_v28 = vpack.c.bf16 %v13780_v6, %v13780_v6 }
  0xc1   : > { %15441 = vmatmul.mubr.msk.bf16.vlgmr.msra.gmra.mrb[0].mxu0 %vm6490_vm14, %v5516_v4  ;;  %v2662_v8 = vpop.permute.xlu1 %2661  ;;  %570 = vst.msk [vmem:[#allocation2 + $0x38] sm:$0x1] %vm19275_vm1, %v14364_v2  ;;  %vm19282_vm1 = vcmask 454016   ;;  %v13675_v2 = vld [vmem:[%s16023_s25 + $0x99] sm:$0xff] }
  0xc2   : > { %v1754_v9 = vpop.permute.xlu0 %1753  ;;  %2821 = vst.msk [vmem:[#allocation2 + $0x10] sm:$0xf] %vm2815_vm8, %v2662_v8  ;;  %15444 = vmatprep.mubr.msk.bf16.mxu0 %vm19269_vm3, %v15962_v34  ;;  %vm19277_vm3 = vcmask 385344  }
  0xc3   : > { %1915 = vst.msk [vmem:[#allocation2 + $0x8] sm:$0x1] %vm19274_vm15, %v1754_v9  ;;  %1320 = vrot.lane.b32.xlu1 %v16227_v39, %s15956_s26  ;;  %v14415_v39 = vpack.c.bf16 %v621_v11, %v621_v11  ;;  %v13781_v11 = vld [vmem:[%s16023_s25 + $0x8a] sm:$0x3] }
  0xc4   : > { %3578 = vrot.lane.b32.xlu0 %v16336_v5, %s15963_s9 }
  0xc5   : > { %v2206_v3 = vpop.permute.xlu1 %2205 }
  0xc6   : > { %v3565_v13 = vpop.permute.xlu0 %3564  ;;  %2367 = vst.msk [vmem:[#allocation2 + $0x8] sm:$0x1] %vm2366_vm2, %v2206_v3 }
  0xc7   : > { %3725 = vst.msk [vmem:[#allocation2 + $0xc] sm:$0xf] %vm3720_vm10, %v3565_v13  ;;  %4030 = vrot.lane.b32.xlu1 %v16349_v28, %s15964_s14 }
  0xc8   : > { %4026 = vrot.lane.b32.xlu0 %v14790_v10, %s15964_s14  ;;  %v14739_v10 = vpack.c.bf16 %v13673_v1, %v13673_v1  ;;  %v13677_v1 = vld [vmem:[%s16023_s25 + $0xa9] sm:$0xff] }
  0xc9   : > { %v4017_v16 = vpop.permute.xlu1 %4016 }
  0xca   : > { %v3115_v18 = vpop.permute.xlu0 %3114  ;;  %4177 = vst.msk [vmem:[#allocation2 + $0xc] sm:$0xf] %vm19272_vm11, %v4017_v16 }
  0xcb   : > { %3274 = vst.msk [vmem:[#allocation2 + $0x10] sm:$0xf] %vm19271_vm9, %v3115_v18  ;;  %1773 = vrot.lane.b32.xlu1 %v16263_v63, %s15958_s28  ;;  %vm19273_vm9 = vcmask 450944   ;;  %v14523_v63 = vpack.c.bf16 %v13241_v21, %v13241_v21 }
  0xcc   : > { %866 = vrot.lane.b32.xlu0 %v14415_v39, %s15957_s27 }
  0xcd   : > { %v3567_v22 = vpop.permute.xlu1 %3566 }
  0xce   : > { %v2658_v23 = vpop.permute.xlu0 %2657  ;;  %3726 = vst.msk [vmem:[#allocation2 + $0x10] sm:$0xf] %vm3720_vm10, %v3567_v22 }
  0xcf   : > { %2819 = vst.msk [vmem:[#allocation2 + $0x8] sm:$0x1] %vm19277_vm3, %v2658_v23  ;;  %2225 = vrot.lane.b32.xlu1 %v16279_v12, %s15959_s29 }
  0xd0   : > { %1318 = vrot.lane.b32.xlu0 %v14469_v20, %s15956_s26 }
  0xd1   : > { %v4019_v26 = vpop.permute.xlu1 %4018  ;;  %v13881_v46 = vld.sshfl [vmem:[#allocation2 + $0xc] sm:$0x33 pattern:$0x75316420] }
  0xd2   : > { %v3111_v29 = vpop.permute.xlu0 %3110  ;;  %4178 = vst.msk [vmem:[#allocation2 + $0x10] sm:$0xf] %vm19272_vm11, %v4019_v26  ;;  %vm3723_vm11 = vcmask 516544   ;;  %v4405_v52 = vcombine.high %v13881_v46, %v13881_v46  ;;  %v4412_v59 = vrot.slane %v13881_v46, %v16292_v19 }
  0xd3   : > { %3272 = vst.msk [vmem:[#allocation2 + $0x8] sm:$0x1] %vm19273_vm9, %v3111_v29  ;;  %2677 = vrot.lane.b32.xlu1 %v16289_v17, %s15960_s30  ;;  %vm4175_vm9 = vcmask 582144  }
  0xd4   : > { %1771 = vrot.lane.b32.xlu0 %v14523_v63, %s15958_s28  ;;  %v4419_v60 = vrot.slane %v4405_v52, %v16292_v19  ;;  %v4420_v7 = vcombine.high %v4412_v59, %v4412_v59  ;;  %v13569_v52 = vld [vmem:[%s16023_s25 + $0xa8] sm:$0xff] }
  0xd5   : > { %v859_v40 = vpop.permute.xlu1 %858 }
  0xd6   : > { %v857_v41 = vpop.permute.xlu0 %856  ;;  %1015 = vst.msk [vmem:[#allocation2 + $0x1c] sm:$0xf] %vm1006_vm4, %v859_v40  ;;  %v4421_v8 = vcombine.high %v4419_v60, %v4419_v60  ;;  %v5518_v18 = vcombine.low %v4419_v60, %v4420_v7  ;;  %v16494_v7 = vpack.c.bf16 %v13677_v1, %v13677_v1 }
  0xd7   : > { %1014 = vst.msk [vmem:[#allocation2 + $0x18] sm:$0xf] %vm1006_vm4, %v857_v41  ;;  %3130 = vrot.lane.b32.xlu1 %v16376_v30, %s15961_s6 }
  0xd8   : > { %2223 = vrot.lane.b32.xlu0 %v14577_v31, %s15959_s29  ;;  %v5534_v25 = vrot.slane %v5518_v18, %v16292_v19  ;;  %v1076_v31 = vld [vmem:[%s16023_s25 + $0x72] sm:$0x3] }
  0xd9   : > { %v1309_v49 = vpop.permute.xlu1 %1308  ;;  %v13882_v51 = vld.sshfl [vmem:[#allocation2 + $0x10] sm:$0x33 pattern:$0x75316420] }
  0xda   : > { %v3563_v50 = vpop.permute.xlu0 %3562  ;;  %1466 = vst.msk [vmem:[#allocation2 + $0x18] sm:$0xf] %vm1458_vm5, %v1309_v49  ;;  %v4429_v53 = vcombine.high %v13882_v51, %v13882_v51  ;;  %v4436_v54 = vrot.slane %v13882_v51, %v16292_v19  ;;  %v14580_v51 = vpack.c.bf16 %v13352_v47, %v13352_v47 }
  0xdb   : > { %3724 = vst.msk [vmem:[#allocation2 + $0x8] sm:$0x1] %vm3723_vm11, %v3563_v50  ;;  %3582 = vrot.lane.b32.xlu1 %v16388_v44, %s15963_s9 }
  0xdc   : > { %2675 = vrot.lane.b32.xlu0 %v14631_v45, %s15960_s30  ;;  %v16406_v61 = vrot.slane %v4429_v53, %v16292_v19  ;;  %v4444_v62 = vcombine.high %v4436_v54, %v4436_v54  ;;  %v5519_v3 = vcombine.low %v4421_v8, %v4436_v54  ;;  %v13567_v53 = vld [vmem:[%s16023_s25 + $0x98] sm:$0xff]  ;;  %v16496_v8 = vpack.c.bf16 %v13675_v2, %v13675_v2 }
  0xdd   : > { %v4015_v57 = vpop.permute.xlu1 %4014 }
  0xde   : > { %v1311_v58 = vpop.permute.xlu0 %1310  ;;  %4176 = vst.msk [vmem:[#allocation2 + $0x8] sm:$0x1] %vm4175_vm9, %v4015_v57  ;;  %v5520_v9 = vcombine.low %v16406_v61, %v4444_v62  ;;  %v5541_v22 = vrot.slane %v5519_v3, %v16292_v19  ;;  %v16476_v57 = vpack.c.bf16 %v13569_v52, %v13569_v52 }
  0xdf   : > { %1467 = vst.msk [vmem:[#allocation2 + $0x1c] sm:$0xf] %vm1458_vm5, %v1311_v58  ;;  %4034 = vrot.lane.b32.xlu1 %v16399_v55, %s15964_s14  ;;  %v16478_v58 = vpack.c.bf16 %v13567_v53, %v13567_v53  ;;  %v627_v53 = vld [vmem:[%s16023_s25 + $0x89] sm:$0x3] }
  0xe0   : > { %3128 = vrot.lane.b32.xlu0 %v14685_v56, %s15961_s6  ;;  %v5548_v20 = vrot.slane %v5520_v9, %v16292_v19  ;;  %v284_v9 = vld [vmem:[%s16023_s25 + $0x90] sm:$0xff] }
  0xe1   : > { %v1762_v4 = vpop.permute.xlu1 %1761 }
  0xe2   : > { %v855_v6 = vpop.permute.xlu0 %854  ;;  %1919 = vst.msk [vmem:[#allocation2 + $0x18] sm:$0xf] %vm1911_vm6, %v1762_v4  ;;  %v5550_v26 = vcombine.low %v5541_v22, %v5548_v20 }
  0xe3   : > { %1013 = vst.msk [vmem:[#allocation2 + $0x14] sm:$0x1] %vm1009_vm12, %v855_v6  ;;  %874 = vrot.lane.b32.xlu1 %v16279_v12, %s15957_s27  ;;  %v624_v12 = vld [vmem:[%s16023_s25 + $0x71] sm:$0x3] }
  0xe4   : > { %870 = vrot.lane.b32.xlu0 %v16207_v27, %s15957_s27  ;;  %v14793_v27 = vpack.c.bf16 %v13781_v11, %v13781_v11  ;;  %v5564_v36 = vrot.slane %v5550_v26, %v16292_v19  ;;  %v14368_v11 = vpack.c.bf16 %v284_v9, %v284_v9 }
  0xe5   : > { %v1307_v13 = vpop.permute.xlu1 %1306  ;;  %v13880_v15 = vld.sshfl [vmem:[#allocation2 + $0x8] sm:$0x1 pattern:$0x75316420] }
  0xe6   : > { %v1764_v39 = vpop.permute.xlu0 %1763  ;;  %1465 = vst.msk [vmem:[#allocation2 + $0x14] sm:$0x1] %vm19276_vm13, %v1307_v13  ;;  %v4397_v16 = vrot.slane %v13880_v15, %v16292_v19  ;;  %vm19283_vm13 = vmmov %vm19282_vm1  ;;  %v13783_v15 = vld [vmem:[%s16023_s25 + $0x9a] sm:$0xff] }
  0xe7   : > { %1920 = vst.msk [vmem:[#allocation2 + $0x1c] sm:$0xf] %vm1911_vm6, %v1764_v39  ;;  %1322 = vrot.lane.b32.xlu1 %v16225_v38, %s15956_s26  ;;  %v14418_v38 = vpack.c.bf16 %v624_v12, %v624_v12  ;;  %v13785_v39 = vld [vmem:[%s16023_s25 + $0xaa] sm:$0xff]  ;;  %v16516_v22 = vpack.c.bf16 %v13783_v15, %v13783_v15 }
  0xe8   : > { %3580 = vrot.lane.b32.xlu0 %v14739_v10, %s15963_s9  ;;  %v5517_v21 = vcombine.low %v4397_v16, %v4412_v59  ;;  %v13460_v59 = vld [vmem:[%s16023_s25 + $0x8a] sm:$0x3]  ;;  %v13568_v10 = vld [vmem:[%s16023_s25 + $0xa0] sm:$0x3]  ;;  %574 = vst.msk [vmem:[#allocation2 + $0x48] sm:$0xf] %vm554_vm0, %v14368_v11 }
  0xe9   : > { %v2216_v23 = vpop.permute.xlu1 %2215  ;;  %v14634_v0 = vpack.c.bf16 %v13460_v59, %v13460_v59 }
  0xea   : > { %v2214_v63 = vpop.permute.xlu0 %2213  ;;  %2372 = vst.msk [vmem:[#allocation2 + $0x1c] sm:$0xf] %vm19280_vm7, %v2216_v23  ;;  %v5527_v24 = vrot.slane %v5517_v21, %v16292_v19 }
  0xeb   : > { %2371 = vst.msk [vmem:[#allocation2 + $0x18] sm:$0xf] %vm19280_vm7, %v2214_v63  ;;  %4032 = vrot.lane.b32.xlu1 %v14793_v27, %s15964_s14  ;;  %v16511_v27 = vpack.c.bf16 %v13785_v39, %v13785_v39  ;;  %v13678_v39 = vld [vmem:[%s16023_s25 + $0xb1] sm:$0xff] }
  0xec   : > { %1326 = vrot.lane.b32.xlu0 %v16289_v17, %s15956_s26  ;;  %v5549_v29 = vcombine.low %v5527_v24, %v5534_v25  ;;  %v14472_v17 = vpack.c.bf16 %v1076_v31, %v1076_v31 }
  0xed   : > { %v2666_v32 = vpop.permute.xlu1 %2665 }
  0xee   : > { %v1760_v33 = vpop.permute.xlu0 %1759  ;;  %2823 = vst.msk [vmem:[#allocation2 + $0x18] sm:$0xf] %vm2815_vm8, %v2666_v32  ;;  %v5557_v35 = vrot.slane %v5549_v29, %v16292_v19  ;;  %v283_v32 = vld [vmem:[%s16023_s25 + $0x88] sm:$0x3] }
  0xef   : > { %1918 = vst.msk [vmem:[#allocation2 + $0x14] sm:$0x1] %vm19274_vm15, %v1760_v33  ;;  %1775 = vrot.lane.b32.xlu1 %v16311_v43, %s15958_s28  ;;  %v13244_v43 = vld [vmem:[%s16023_s25 + $0x88] sm:$0x3]  ;;  %vm19281_vm15 = vmmov 0  }
  0xf0   : > { %872 = vrot.lane.b32.xlu0 %v14418_v38, %s15957_s27  ;;  %v5565_v37 = vcombine.low %v5557_v35, %v5564_v36  ;;  %v14526_v46 = vpack.c.bf16 %v13244_v43, %v13244_v43  ;;  %v13676_v33 = vld [vmem:[%s16023_s25 + $0xa1] sm:$0x3]  ;;  %v14367_v35 = vpack.c.bf16 %v283_v32, %v283_v32 }
  0xf1   : > { %v2212_v40 = vpop.permute.xlu1 %2211 }
  0xf2   : > { %v2668_v41 = vpop.permute.xlu0 %2667  ;;  %2370 = vst.msk [vmem:[#allocation2 + $0x14] sm:$0x1] %vm2366_vm2, %v2212_v40  ;;  %15445 = vmatmul.mubr.msk.bf16.gmra.mrb[4].mxu0 %vm6490_vm14, %v5565_v37  ;;  %v4445_v40 = vcombine.high %v16406_v61, %v16406_v61  ;;  %v14742_v61 = vpack.c.bf16 %v13676_v33, %v13676_v33 }
  0xf3   : > { %2824 = vst.msk [vmem:[#allocation2 + $0x1c] sm:$0xf] %vm2815_vm8, %v2668_v41  ;;  %1324 = vrot.lane.b32.xlu1 %v14472_v17, %s15956_s26  ;;  %15448 = vmatprep.mubr.msk.bf16.mxu0 %vm19281_vm15, %v15962_v34 }
  0xf4   : > { %1779 = vrot.lane.b32.xlu0 %v16376_v30, %s15958_s28  ;;  %v282_v30 = vld [vmem:[%s16023_s25 + $0x80] sm:$0xff] }
  0xf5   : > { %v3121_v42 = vpop.permute.xlu1 %3120  ;;  %v14366_v48 = vpack.c.bf16 %v282_v30, %v282_v30 }
  0xf6   : > { %v3119_v45 = vpop.permute.xlu0 %3118  ;;  %3277 = vst.msk [vmem:[#allocation2 + $0x1c] sm:$0xf] %vm19282_vm1, %v3121_v42  ;;  %vm19284_vm1 = vcmask 450944  }
  0xf7   : > { %3276 = vst.msk [vmem:[#allocation2 + $0x18] sm:$0xf] %vm19283_vm13, %v3119_v45  ;;  %2231 = vrot.lane.b32.xlu1 %v16388_v44, %s15959_s29  ;;  %vm19285_vm13 = vcmask 585216  }
  0xf8   : > { %2227 = vrot.lane.b32.xlu0 %v16336_v5, %s15959_s29  ;;  %572 = vst.msk [vmem:[#allocation2 + $0x40] sm:$0xf] %vm554_vm0, %v14366_v48 }
  0xf9   : > { %v2664_v49 = vpop.permute.xlu1 %2663 }
  0xfa   : > { %v863_v50 = vpop.permute.xlu0 %862  ;;  %2822 = vst.msk [vmem:[#allocation2 + $0x14] sm:$0x1] %vm19277_vm3, %v2664_v49  ;;  %vm19286_vm3 = vmmov %vm19285_vm13 }
  0xfb   : > { %1017 = vst.msk [vmem:[#allocation2 + $0x24] sm:$0xf] %vm1006_vm4, %v863_v50  ;;  %2679 = vrot.lane.b32.xlu1 %v16349_v28, %s15960_s30 }
  0xfc   : > { %1777 = vrot.lane.b32.xlu0 %v14526_v46, %s15958_s28  ;;  %v13784_v46 = vld [vmem:[%s16023_s25 + $0xa2] sm:$0x3] }
  0xfd   : > { %v3573_v54 = vpop.permute.xlu1 %3572 }
  0xfe   : > { %v3571_v56 = vpop.permute.xlu0 %3570  ;;  %3729 = vst.msk [vmem:[#allocation2 + $0x1c] sm:$0xf] %vm3720_vm10, %v3573_v54 }
  0xff   : > { %3728 = vst.msk [vmem:[#allocation2 + $0x18] sm:$0xf] %vm3720_vm10, %v3571_v56  ;;  %2229 = vrot.lane.b32.xlu1 %v14580_v51, %s15959_s29 }
 0x100   : > { %2683 = vrot.lane.b32.xlu0 %v16399_v55, %s15960_s30 }
 0x101   : > { %v3117_v60 = vpop.permute.xlu1 %3116 }
 0x102   : > { %v1315_v62 = vpop.permute.xlu0 %1314  ;;  %3275 = vst.msk [vmem:[#allocation2 + $0x14] sm:$0x1] %vm19284_vm1, %v3117_v60  ;;  %vm19288_vm1 = vcmask 57344  }
 0x103   : > { %1469 = vst.msk [vmem:[#allocation2 + $0x24] sm:$0xf] %vm1458_vm5, %v1315_v62  ;;  %3136 = vrot.lane.b32.xlu1 %v16476_v57, %s15961_s6  ;;  %v1079_v62 = vld [vmem:[%s16023_s25 + $0x8a] sm:$0x3] }
 0x104   : > { %3132 = vrot.lane.b32.xlu0 %v16478_v58, %s15961_s6  ;;  %573 = vst.msk [vmem:[#allocation2 + $0x44] sm:$0x1] %vm19288_vm1, %v14367_v35  ;;  %v14475_v2 = vpack.c.bf16 %v1079_v62, %v1079_v62  ;;  %vm19291_vm1 = vcmask 585216  }
 0x105   : > { %v4025_v4 = vpop.permute.xlu1 %4024 }
 0x106   : > { %v4023_v6 = vpop.permute.xlu0 %4022  ;;  %4181 = vst.msk [vmem:[#allocation2 + $0x1c] sm:$0xf] %vm19285_vm13, %v4025_v4  ;;  %vm19289_vm13 = vcmask 454016   ;;  %v13570_v4 = vld [vmem:[%s16023_s25 + $0xb0] sm:$0xff] }
 0x107   : > { %4180 = vst.msk [vmem:[#allocation2 + $0x18] sm:$0xf] %vm19286_vm3, %v4023_v6  ;;  %2681 = vrot.lane.b32.xlu1 %v14634_v0, %s15960_s30  ;;  %vm19287_vm3 = vcmask 188544  }
 0x108   : > { %876 = vrot.lane.b32.xlu0 %v16336_v5, %s15957_s27  ;;  %v14688_v5 = vpack.c.bf16 %v13568_v10, %v13568_v10  ;;  %v13247_v10 = vld [vmem:[%s16023_s25 + $0xa0] sm:$0x3] }
 0x109   : > { %v3569_v3 = vpop.permute.xlu1 %3568 }
 0x10a   : > { %v1768_v13 = vpop.permute.xlu0 %1767  ;;  %3727 = vst.msk [vmem:[#allocation2 + $0x14] sm:$0x1] %vm3723_vm11, %v3569_v3 }
 0x10b   : > { %1922 = vst.msk [vmem:[#allocation2 + $0x24] sm:$0xf] %vm1911_vm6, %v1768_v13  ;;  %3588 = vrot.lane.b32.xlu1 %v16494_v7, %s15963_s9  ;;  %v14529_v13 = vpack.c.bf16 %v13247_v10, %v13247_v10  ;;  %v630_v10 = vld [vmem:[%s16023_s25 + $0xa1] sm:$0x3] }
 0x10c   : > { %3584 = vrot.lane.b32.xlu0 %v16496_v8, %s15963_s9 }
 0x10d   : > { %v4021_v16 = vpop.permute.xlu1 %4020  ;;  %v13885_v12 = vld.sshfl [vmem:[#allocation2 + $0x1c] sm:$0x33 pattern:$0x75316420] }
 0x10e   : > { %v2220_v18 = vpop.permute.xlu0 %2219  ;;  %v13884_v20 = vld.sshfl [vmem:[#allocation2 + $0x18] sm:$0x33 pattern:$0x75316420]  ;;  %4179 = vst.msk [vmem:[#allocation2 + $0x14] sm:$0x1] %vm4175_vm9, %v4021_v16  ;;  %v4491_v23 = vcombine.high %v13885_v12, %v13885_v12  ;;  %v16519_v63 = vrot.slane %v13885_v12, %v16292_v19 }
 0x10f   : > { %2374 = vst.msk [vmem:[#allocation2 + $0x24] sm:$0xf] %vm19280_vm7, %v2220_v18  ;;  %v4467_v21 = vcombine.high %v13884_v20, %v13884_v20  ;;  %3134 = vrot.lane.b32.xlu1 %v14688_v5, %s15961_s6  ;;  %v4474_v24 = vrot.slane %v13884_v20, %v16292_v19  ;;  %v13355_v5 = vld [vmem:[%s16023_s25 + $0xa1] sm:$0x3]  ;;  %v16595_v20 = vpack.c.bf16 %v13678_v39, %v13678_v39  ;;  %v13786_v12 = vld [vmem:[%s16023_s25 + $0xb2] sm:$0xff] }
 0x110   : > { %1328 = vrot.lane.b32.xlu0 %v16349_v28, %s15956_s26  ;;  %v16524_v29 = vrot.slane %v4491_v23, %v16292_v19  ;;  %v14583_v18 = vpack.c.bf16 %v13355_v5, %v13355_v5 }
 0x111   : > { %v4481_v25 = vrot.slane %v4467_v21, %v16292_v19  ;;  %v865_v26 = vpop.permute.xlu1 %864  ;;  %v13572_v21 = vld [vmem:[%s16023_s25 + $0xc0] sm:$0xff] }
 0x112   : > { %v861_v38 = vpop.permute.xlu0 %860  ;;  %1018 = vst.msk [vmem:[#allocation2 + $0x28] sm:$0xf] %vm1006_vm4, %v865_v26  ;;  %v5569_v31 = vcombine.low %v16519_v63, %v16524_v29  ;;  %v16606_v26 = vpack.c.bf16 %v13572_v21, %v13572_v21 }
 0x113   : > { %1016 = vst.msk [vmem:[#allocation2 + $0x20] sm:$0x1] %vm1009_vm12, %v861_v38  ;;  %v13935_v28 = vcombine.high %v4474_v24, %v4481_v25  ;;  %4040 = vrot.lane.b32.xlu1 %v16511_v27, %s15964_s14  ;;  %v5567_v43 = vcombine.low %v4474_v24, %v4481_v25  ;;  %v16604_v25 = vpack.c.bf16 %v13786_v12, %v13786_v12  ;;  %v285_v38 = vld [vmem:[%s16023_s25 + $0x98] sm:$0xff] }
 0x114   : > { %4036 = vrot.lane.b32.xlu0 %v16516_v22, %s15964_s14  ;;  %v5597_v45 = vrot.slane %v5569_v31, %v16292_v19  ;;  %v13463_v31 = vld [vmem:[%s16023_s25 + $0xa2] sm:$0x3]  ;;  %v14369_v32 = vpack.c.bf16 %v285_v38, %v285_v38 }
 0x115   : > { %v1313_v36 = vpop.permute.xlu1 %1312  ;;  %v13883_v37 = vld.sshfl [vmem:[#allocation2 + $0x14] sm:$0x1 pattern:$0x75316420]  ;;  %v5590_v42 = vrot.slane %v13935_v28, %v16292_v19  ;;  %v5583_v50 = vrot.slane %v5567_v43, %v16292_v19  ;;  %v13680_v28 = vld [vmem:[%s16023_s25 + $0xc1] sm:$0xff] }
 0x116   : > { %v2672_v17 = vpop.permute.xlu0 %2671  ;;  %1468 = vst.msk [vmem:[#allocation2 + $0x20] sm:$0x1] %vm19287_vm3, %v1313_v36  ;;  %v4459_v41 = vrot.slane %v13883_v37, %v16292_v19  ;;  %vm19290_vm3 = vcmask 254144   ;;  %v16618_v36 = vpack.c.bf16 %v13680_v28, %v13680_v28  ;;  %v13788_v37 = vld [vmem:[%s16023_s25 + $0xc2] sm:$0xff] }
 0x117   : > { %2826 = vst.msk [vmem:[#allocation2 + $0x24] sm:$0xf] %vm2815_vm8, %v2672_v17  ;;  %1781 = vrot.lane.b32.xlu1 %v16478_v58, %s15958_s28  ;;  %v5599_v51 = vcombine.low %v5590_v42, %v5597_v45  ;;  %v14637_v17 = vpack.c.bf16 %v13463_v31, %v13463_v31  ;;  %v16624_v45 = vpack.c.bf16 %v13788_v37, %v13788_v37 }
 0x118   : > { %880 = vrot.lane.b32.xlu0 %v16388_v44, %s15957_s27  ;;  %v5566_v30 = vcombine.low %v4445_v40, %v4459_v41  ;;  %v14796_v44 = vpack.c.bf16 %v13784_v46, %v13784_v46  ;;  %575 = vst.msk [vmem:[#allocation2 + $0x4c] sm:$0xf] %vm554_vm0, %v14369_v32  ;;  %v13571_v40 = vld [vmem:[%s16023_s25 + $0xb8] sm:$0x3] }
 0x119   : > { %v3125_v47 = vpop.permute.xlu1 %3124  ;;  %v5613_v59 = vrot.slane %v5599_v51, %v16292_v19 }
 0x11a   : > { %v1317_v48 = vpop.permute.xlu0 %1316  ;;  %3279 = vst.msk [vmem:[#allocation2 + $0x24] sm:$0xf] %vm19289_vm13, %v3125_v47  ;;  %v5576_v49 = vrot.slane %v5566_v30, %v16292_v19  ;;  %vm19292_vm13 = vcmask 385344   ;;  %v286_v47 = vld [vmem:[%s16023_s25 + $0xa0] sm:$0x3] }
 0x11b   : > { %1470 = vst.msk [vmem:[#allocation2 + $0x28] sm:$0xf] %vm1458_vm5, %v1317_v48  ;;  %1332 = vrot.lane.b32.xlu1 %v16399_v55, %s15956_s26  ;;  %v14421_v55 = vpack.c.bf16 %v627_v53, %v627_v53  ;;  %v13679_v48 = vld [vmem:[%s16023_s25 + $0xb9] sm:$0x3] }
 0x11c   : > { %3586 = vrot.lane.b32.xlu0 %v14742_v61, %s15963_s9  ;;  %v5598_v52 = vcombine.low %v5576_v49, %v5583_v50  ;;  %v14691_v61 = vpack.c.bf16 %v13571_v40, %v13571_v40  ;;  %v287_v49 = vld [vmem:[%s16023_s25 + $0xa8] sm:$0xff]  ;;  %v14370_v50 = vpack.c.bf16 %v286_v47, %v286_v47  ;;  %v14745_v53 = vpack.c.bf16 %v13679_v48, %v13679_v48 }
 0x11d   : > { %v1770_v54 = vpop.permute.xlu1 %1769 }
 0x11e   : > { %v1766_v56 = vpop.permute.xlu0 %1765  ;;  %1923 = vst.msk [vmem:[#allocation2 + $0x28] sm:$0xf] %vm1911_vm6, %v1770_v54  ;;  %v5606_v58 = vrot.slane %v5598_v52, %v16292_v19  ;;  %v14371_v52 = vpack.c.bf16 %v287_v49, %v287_v49  ;;  %v13787_v54 = vld [vmem:[%s16023_s25 + $0xba] sm:$0x3] }
 0x11f   : > { %1921 = vst.msk [vmem:[#allocation2 + $0x20] sm:$0x1] %vm19290_vm3, %v1766_v56  ;;  %4038 = vrot.lane.b32.xlu1 %v14796_v44, %s15964_s14  ;;  %vm19293_vm3 = vcmask 454016   ;;  %v14799_v62 = vpack.c.bf16 %v13787_v54, %v13787_v54  ;;  %v13681_v54 = vld [vmem:[%s16023_s25 + $0xc9] sm:$0xff] }
 0x120   : > { %2233 = vrot.lane.b32.xlu0 %v16496_v8, %s15959_s29  ;;  %v5614_v60 = vcombine.low %v5606_v58, %v5613_v59  ;;  %577 = vst.msk [vmem:[#allocation2 + $0x54] sm:$0xf] %vm554_vm0, %v14371_v52 }
 0x121   : > { %v2218_v0 = vpop.permute.xlu1 %2217 }
 0x122   : > { %v3577_v1 = vpop.permute.xlu0 %3576  ;;  %2373 = vst.msk [vmem:[#allocation2 + $0x20] sm:$0x1] %vm2366_vm2, %v2218_v0  ;;  %15449 = vmatmul.mubr.msk.bf16.gmra.mrb[8].mxu0 %vm6490_vm14, %v5614_v60 }
 0x123   : > { %3731 = vst.msk [vmem:[#allocation2 + $0x24] sm:$0xf] %vm3720_vm10, %v3577_v1  ;;  %1785 = vrot.lane.b32.xlu1 %v16476_v57, %s15958_s28  ;;  %15452 = vmatprep.mubr.msk.bf16.mxu0 %vm19281_vm15, %v15962_v34  ;;  %v16579_v57 = vpack.c.bf16 %v13570_v4, %v13570_v4 }
 0x124   : > { %878 = vrot.lane.b32.xlu0 %v14421_v55, %s15957_s27 }
 0x125   : > { %v4029_v6 = vpop.permute.xlu1 %4028 }
 0x126   : > { %v2222_v9 = vpop.permute.xlu0 %2221  ;;  %4183 = vst.msk [vmem:[#allocation2 + $0x24] sm:$0xf] %vm19291_vm1, %v4029_v6  ;;  %vm19294_vm1 = vcmask 450944  }
 0x127   : > { %2375 = vst.msk [vmem:[#allocation2 + $0x28] sm:$0xf] %vm19280_vm7, %v2222_v9  ;;  %1330 = vrot.lane.b32.xlu1 %v14475_v2, %s15956_s26  ;;  %v13936_v2 = vcombine.high %v16519_v63, %v16524_v29  ;;  %v14424_v29 = vpack.c.bf16 %v630_v10, %v630_v10 }
 0x128   : > { %2685 = vrot.lane.b32.xlu0 %v16516_v22, %s15960_s30 }
 0x129   : > { %v2674_v11 = vpop.permute.xlu1 %2673  ;;  %v5625_v63 = vrot.slane %v13936_v2, %v16292_v19 }
 0x12a   : > { %v2670_v3 = vpop.permute.xlu0 %2669  ;;  %2827 = vst.msk [vmem:[#allocation2 + $0x28] sm:$0xf] %vm2815_vm8, %v2674_v11 }
 0x12b   : > { %2825 = vst.msk [vmem:[#allocation2 + $0x20] sm:$0x1] %vm19292_vm13, %v2670_v3  ;;  %3138 = vrot.lane.b32.xlu1 %v16579_v57, %s15961_s6  ;;  %vm19295_vm13 = vcmask 585216  }
 0x12c   : > { %2237 = vrot.lane.b32.xlu0 %v16494_v7, %s15959_s29 }
 0x12d   : > { %v3127_v15 = vpop.permute.xlu1 %3126  ;;  %v13887_v41 = vld.sshfl [vmem:[#allocation2 + $0x24] sm:$0x33 pattern:$0x75316420] }
 0x12e   : > { %v3123_v16 = vpop.permute.xlu0 %3122  ;;  %3280 = vst.msk [vmem:[#allocation2 + $0x28] sm:$0xf] %vm19293_vm3, %v3127_v15  ;;  %v4529_v46 = vcombine.high %v13887_v41, %v13887_v41  ;;  %v4536_v30 = vrot.slane %v13887_v41, %v16292_v19  ;;  %vm19296_vm3 = vcmask 57344  }
 0x12f   : > { %3278 = vst.msk [vmem:[#allocation2 + $0x20] sm:$0x1] %vm19294_vm1, %v3123_v16  ;;  %2689 = vrot.lane.b32.xlu1 %v16511_v27, %s15960_s30  ;;  %vm19297_vm1 = vcmask 188544  }
 0x130   : > { %1783 = vrot.lane.b32.xlu0 %v14529_v13, %s15958_s28  ;;  %576 = vst.msk [vmem:[#allocation2 + $0x50] sm:$0x1] %vm19296_vm3, %v14370_v50  ;;  %v4543_v56 = vrot.slane %v4529_v46, %v16292_v19  ;;  %v4544_v58 = vcombine.high %v4536_v30, %v4536_v30  ;;  %vm19299_vm3 = vcmask 454016  }
 0x131   : > { %v3575_v23 = vpop.permute.xlu1 %3574 }
 0x132   : > { %v869_v24 = vpop.permute.xlu0 %868  ;;  %3730 = vst.msk [vmem:[#allocation2 + $0x20] sm:$0x1] %vm3723_vm11, %v3575_v23  ;;  %v4545_v4 = vcombine.high %v4543_v56, %v4543_v56  ;;  %v5617_v9 = vcombine.low %v4543_v56, %v4544_v58 }
 0x133   : > { %1020 = vst.msk [vmem:[#allocation2 + $0x30] sm:$0xf] %vm1006_vm4, %v869_v24  ;;  %2235 = vrot.lane.b32.xlu1 %v14583_v18, %s15959_s29  ;;  %v1082_v18 = vld [vmem:[%s16023_s25 + $0xa2] sm:$0x3] }
 0x134   : > { %3590 = vrot.lane.b32.xlu0 %v16595_v20, %s15963_s9  ;;  %v5639_v39 = vrot.slane %v5617_v9, %v16292_v19  ;;  %v14478_v38 = vpack.c.bf16 %v1082_v18, %v1082_v18 }
 0x135   : > { %v1321_v33 = vpop.permute.xlu1 %1320 }
 0x136   : > { %v3579_v35 = vpop.permute.xlu0 %3578  ;;  %1472 = vst.msk [vmem:[#allocation2 + $0x30] sm:$0xf] %vm1458_vm5, %v1321_v33 }
 0x137   : > { %3732 = vst.msk [vmem:[#allocation2 + $0x28] sm:$0xf] %vm3720_vm10, %v3579_v35  ;;  %4042 = vrot.lane.b32.xlu1 %v16604_v25, %s15964_s14  ;;  %v13250_v35 = vld [vmem:[%s16023_s25 + $0xb8] sm:$0x3] }
 0x138   : > { %3142 = vrot.lane.b32.xlu0 %v16606_v26, %s15961_s6  ;;  %v14532_v37 = vpack.c.bf16 %v13250_v35, %v13250_v35 }
 0x139   : > { %v4031_v43 = vpop.permute.xlu1 %4030 }
 0x13a   : > { %v4027_v42 = vpop.permute.xlu0 %4026  ;;  %4184 = vst.msk [vmem:[#allocation2 + $0x28] sm:$0xf] %vm19295_vm13, %v4031_v43  ;;  %vm19298_vm13 = vcmask 254144  }
 0x13b   : > { %4182 = vst.msk [vmem:[#allocation2 + $0x20] sm:$0x1] %vm4175_vm9, %v4027_v42  ;;  %3594 = vrot.lane.b32.xlu1 %v16618_v36, %s15963_s9 }
 0x13c   : > { %2687 = vrot.lane.b32.xlu0 %v14637_v17, %s15960_s30  ;;  %v288_v17 = vld [vmem:[%s16023_s25 + $0xb0] sm:$0xff] }
 0x13d   : > { %v1774_v51 = vpop.permute.xlu1 %1773  ;;  %v14372_v40 = vpack.c.bf16 %v288_v17, %v288_v17 }
 0x13e   : > { %v867_v44 = vpop.permute.xlu0 %866  ;;  %1925 = vst.msk [vmem:[#allocation2 + $0x30] sm:$0xf] %vm1911_vm6, %v1774_v51 }
 0x13f   : > { %1019 = vst.msk [vmem:[#allocation2 + $0x2c] sm:$0x1] %vm1009_vm12, %v867_v44  ;;  %4046 = vrot.lane.b32.xlu1 %v16624_v45, %s15964_s14 }
 0x140   : > { %3140 = vrot.lane.b32.xlu0 %v14691_v61, %s15961_s6  ;;  %578 = vst.msk [vmem:[#allocation2 + $0x58] sm:$0xf] %vm554_vm0, %v14372_v40  ;;  %v13573_v61 = vld [vmem:[%s16023_s25 + $0xc8] sm:$0xff] }
 0x141   : > { %v2226_v59 = vpop.permute.xlu1 %2225  ;;  %v16644_v0 = vld.sshfl [vmem:[#allocation2 + $0x28] sm:$0x33 pattern:$0x75316420]  ;;  %v16702_v48 = vpack.c.bf16 %v13573_v61, %v13573_v61  ;;  %v13791_v61 = vld [vmem:[%s16023_s25 + $0xda] sm:$0xff] }
 0x142   : > { %v1319_v55 = vpop.permute.xlu0 %1318  ;;  %v13886_v60 = vld.sshfl [vmem:[#allocation2 + $0x20] sm:$0x1 pattern:$0x75316420]  ;;  %2377 = vst.msk [vmem:[#allocation2 + $0x30] sm:$0xf] %vm19280_vm7, %v2226_v59  ;;  %v16654_v6 = vrot.slane %v16644_v0, %v16292_v19  ;;  %v4553_v51 = vcombine.high %v16644_v0, %v16644_v0  ;;  %v16724_v0 = vpack.c.bf16 %v13681_v54, %v13681_v54 }
 0x143   : > { %1471 = vst.msk [vmem:[#allocation2 + $0x2c] sm:$0x1] %vm19297_vm1, %v1319_v55  ;;  %v4521_v1 = vrot.slane %v13886_v60, %v16292_v19  ;;  %3592 = vrot.lane.b32.xlu1 %v14745_v53, %s15963_s9  ;;  %vm19300_vm1 = vcmask 385344   ;;  %v15967_v54 = vmov 0.0|0.0  }
 0x144   : > { %882 = vrot.lane.b32.xlu0 %v16496_v8, %s15957_s27  ;;  %v5618_v5 = vcombine.low %v4545_v4, %v16654_v6  ;;  %v4567_v59 = vrot.slane %v4553_v51, %v16292_v19  ;;  %v4568_v55 = vcombine.high %v16654_v6, %v16654_v6 }
 0x145   : > { %v5616_v11 = vcombine.low %v4521_v1, %v4536_v30  ;;  %v2678_v3 = vpop.permute.xlu1 %2677  ;;  %v13574_v1 = vld [vmem:[%s16023_s25 + $0xd0] sm:$0x3] }
 0x146   : > { %v1772_v13 = vpop.permute.xlu0 %1771  ;;  %2829 = vst.msk [vmem:[#allocation2 + $0x30] sm:$0xf] %vm2815_vm8, %v2678_v3  ;;  %v5646_v15 = vrot.slane %v5618_v5, %v16292_v19  ;;  %v4569_v10 = vcombine.high %v4567_v59, %v4567_v59  ;;  %v13789_v5 = vld [vmem:[%s16023_s25 + $0xca] sm:$0xff] }
 0x147   : > { %1924 = vst.msk [vmem:[#allocation2 + $0x2c] sm:$0x1] %vm19298_vm13, %v1772_v13  ;;  %v5632_v8 = vrot.slane %v5616_v11, %v16292_v19  ;;  %4044 = vrot.lane.b32.xlu1 %v14799_v62, %s15964_s14  ;;  %vm19301_vm13 = vcmask 585216   ;;  %v5664_v11 = vcombine.low %v4567_v59, %v4568_v55  ;;  %v13576_v55 = vld [vmem:[%s16023_s25 + $0xe0] sm:$0xff] }
 0x148   : > { %1334 = vrot.lane.b32.xlu0 %v16516_v22, %s15956_s26  ;;  %v5648_v23 = vcombine.low %v5639_v39, %v5646_v15  ;;  %v13575_v39 = vld [vmem:[%s16023_s25 + $0xd8] sm:$0xff] }
 0x149   : > { %v5647_v16 = vcombine.low %v5625_v63, %v5632_v8  ;;  %v3131_v12 = vpop.permute.xlu1 %3130  ;;  %v5674_v15 = vrot.slane %v5664_v11, %v16292_v19  ;;  %v15625_v11 = vld [vmem:[%s19266_s3 + $0x68] sm:$0xff]  }
 0x14a   : > { %v2224_v21 = vpop.permute.xlu0 %2223  ;;  %3282 = vst.msk [vmem:[#allocation2 + $0x30] sm:$0xf] %vm19299_vm3, %v3131_v12  ;;  %v5662_v22 = vrot.slane %v5648_v23, %v16292_v19  ;;  %vm19302_vm3 = vcmask 450944   ;;  %v16745_v12 = vpack.c.bf16 %v13789_v5, %v13789_v5  ;;  %v15626_v5 = vld [vmem:[%s19266_s3 + $0x28] sm:$0xff]  }
 0x14b   : > { %2376 = vst.msk [vmem:[#allocation2 + $0x2c] sm:$0x1] %vm2366_vm2, %v2224_v21  ;;  %v5655_v24 = vrot.slane %v5647_v16, %v16292_v19  ;;  %886 = vrot.lane.b32.xlu1 %v16494_v7, %s15957_s27  ;;  %v16749_v21 = vpack.c.bf16 %v13575_v39, %v13575_v39 }
 0x14c   : > { %884 = vrot.lane.b32.xlu0 %v14424_v29, %s15957_s27 }
 0x14d   : > { %v3583_v28 = vpop.permute.xlu1 %3582  ;;  %v5663_v32 = vcombine.low %v5655_v24, %v5662_v22  ;;  %v13682_v24 = vld [vmem:[%s16023_s25 + $0xd1] sm:$0x3]  ;;  %v15615_v22 = vld [vmem:[%s19266_s3 + $0x40] sm:$0xff]  }
 0x14e   : > { %v2676_v31 = vpop.permute.xlu0 %2675  ;;  %3734 = vst.msk [vmem:[#allocation2 + $0x30] sm:$0xf] %vm3720_vm10, %v3583_v28  ;;  %14958 = vmatprep.subr.bf16.mxu1 %v15615_v22  ;;  %v13361_v22 = vld [vmem:[%s16023_s25 + $0xd1] sm:$0x3] }
 0x14f   : > { %2828 = vst.msk [vmem:[#allocation2 + $0x2c] sm:$0x1] %vm19300_vm1, %v2676_v31  ;;  %15453 = vmatmul.mubr.msk.bf16.gmra.mrb[12].mxu0 %vm6490_vm14, %v5663_v32  ;;  %1336 = vrot.lane.b32.xlu1 %v14478_v38, %s15956_s26  ;;  %vm19303_vm1 = vcmask 188544   ;;  %v15616_v31 = vld [vmem:[%s19266_s3] sm:$0xff]  }
 0x150   : > { %1787 = vrot.lane.b32.xlu0 %v16579_v57, %s15958_s28  ;;  %15456 = vmatprep.mubr.msk.bf16.mxu0 %vm19281_vm15, %v15962_v34  ;;  %v13358_v57 = vld [vmem:[%s16023_s25 + $0xb9] sm:$0x3] }
 0x151   : > { %v4035_v7 = vpop.permute.xlu1 %4034  ;;  %v14586_v42 = vpack.c.bf16 %v13358_v57, %v13358_v57  ;;  %14959 = vmatpush3.bf16.msra.mxu1 %v15616_v31  ;;  %v13577_v31 = vld [vmem:[%s16023_s25 + $0xe8] sm:$0x3] }
 0x152   : > { %v3129_v33 = vpop.permute.xlu0 %3128  ;;  %4186 = vst.msk [vmem:[#allocation2 + $0x30] sm:$0xf] %vm19301_vm13, %v4035_v7  ;;  %vm19304_vm13 = vcmask 254144   ;;  %v14748_v7 = vpack.c.bf16 %v13682_v24, %v13682_v24 }
 0x153   : > { %3281 = vst.msk [vmem:[#allocation2 + $0x2c] sm:$0x1] %vm19302_vm3, %v3129_v33  ;;  %2239 = vrot.lane.b32.xlu1 %v16595_v20, %s15959_s29  ;;  %v289_v33 = vld [vmem:[%s16023_s25 + $0xb8] sm:$0x3]  ;;  %vm19305_vm3 = vcmask 57344  }
 0x154   : > { %1338 = vrot.lane.b32.xlu0 %v16511_v27, %s15956_s26  ;;  %v14373_v17 = vpack.c.bf16 %v289_v33, %v289_v33  ;;  %v14589_v33 = vpack.c.bf16 %v13361_v22, %v13361_v22 }
 0x155   : > { %v875_v41 = vpop.permute.xlu1 %874 }
 0x156   : > { %v871_v43 = vpop.permute.xlu0 %870  ;;  %1023 = vst.msk [vmem:[#allocation2 + $0x3c] sm:$0xf] %vm1006_vm4, %v875_v41  ;;  %v13683_v41 = vld [vmem:[%s16023_s25 + $0xd9] sm:$0xff] }
 0x157   : > { %1021 = vst.msk [vmem:[#allocation2 + $0x34] sm:$0xf] %vm1006_vm4, %v871_v43  ;;  %1791 = vrot.lane.b32.xlu1 %v16606_v26, %s15958_s28  ;;  %v13466_v26 = vld [vmem:[%s16023_s25 + $0xba] sm:$0x3]  ;;  %v15618_v43 = vld [vmem:[%s19266_s3 + $0x8] sm:$0xff]  }
 0x158   : > { %1789 = vrot.lane.b32.xlu0 %v14532_v37, %s15958_s28  ;;  %v14640_v53 = vpack.c.bf16 %v13466_v26, %v13466_v26  ;;  %v15617_v37 = vld [vmem:[%s19266_s3 + $0x48] sm:$0xff]   ;;  %579 = vst.msk [vmem:[#allocation2 + $0x5c] sm:$0x1] %vm19305_vm3, %v14373_v17  ;;  %v15620_v26 = vld [vmem:[%s19266_s3 + $0x10] sm:$0xff]   ;;  %vm19308_vm3 = vcmask 385344  }
 0x159   : > { %v1323_v27 = vpop.permute.xlu1 %1322  ;;  %v13890_v30 = vld.sshfl [vmem:[#allocation2 + $0x30] sm:$0x33 pattern:$0x75316420]  ;;  %14960 = vmatprep.subr.bf16.mxu1 %v15617_v37 }
 0x15a   : > { %v3581_v46 = vpop.permute.xlu0 %3580  ;;  %1473 = vst.msk [vmem:[#allocation2 + $0x34] sm:$0xf] %vm1458_vm5, %v1323_v27  ;;  %v4591_v47 = vcombine.high %v13890_v30, %v13890_v30  ;;  %v4598_v44 = vrot.slane %v13890_v30, %v16292_v19  ;;  %14961 = vmatpush3.bf16.msra.mxu1 %v15618_v43  ;;  %v15619_v27 = vld [vmem:[%s19266_s3 + $0x50] sm:$0xff]  }
 0x15b   : > { %3733 = vst.msk [vmem:[#allocation2 + $0x2c] sm:$0x1] %vm3723_vm11, %v3581_v46  ;;  %2241 = vrot.lane.b32.xlu1 %v14586_v42, %s15959_s29  ;;  %v16783_v42 = vpack.c.bf16 %v13683_v41, %v13683_v41  ;;  %14962 = vmatprep.subr.bf16.mxu1 %v15619_v27  ;;  %v13469_v43 = vld [vmem:[%s16023_s25 + $0xd2] sm:$0x3] }
 0x15c   : > { %2691 = vrot.lane.b32.xlu0 %v16604_v25, %s15960_s30  ;;  %v4605_v52 = vrot.slane %v4591_v47, %v16292_v19  ;;  %v13790_v47 = vld [vmem:[%s16023_s25 + $0xd2] sm:$0x3] }
 0x15d   : > { %v4033_v49 = vpop.permute.xlu1 %4032 }
 0x15e   : > { %v1327_v50 = vpop.permute.xlu0 %1326  ;;  %4185 = vst.msk [vmem:[#allocation2 + $0x2c] sm:$0x1] %vm4175_vm9, %v4033_v49  ;;  %v5666_v60 = vcombine.low %v4598_v44, %v4605_v52  ;;  %v13937_v62 = vcombine.high %v4598_v44, %v4605_v52  ;;  %v14802_v49 = vpack.c.bf16 %v13790_v47, %v13790_v47  ;;  %14963 = vmatpush3.bf16.msra.mxu1 %v15620_v26  ;;  %v633_v52 = vld [vmem:[%s16023_s25 + $0xb9] sm:$0x3] }
 0x15f   : > { %1475 = vst.msk [vmem:[#allocation2 + $0x3c] sm:$0xf] %vm1458_vm5, %v1327_v50  ;;  %3144 = vrot.lane.b32.xlu1 %v16702_v48, %s15961_s6  ;;  %v15621_v50 = vld [vmem:[%s19266_s3 + $0x58] sm:$0xff]   ;;  %v14427_v59 = vpack.c.bf16 %v633_v52, %v633_v52  ;;  %v14643_v47 = vpack.c.bf16 %v13469_v43, %v13469_v43  ;;  %v13578_v43 = vld [vmem:[%s16023_s25 + $0xf0] sm:$0xff] }
 0x160   : > { %2243 = vrot.lane.b32.xlu0 %v16618_v36, %s15959_s29  ;;  %v5688_v3 = vrot.slane %v5666_v60, %v16292_v19  ;;  %v5695_v13 = vrot.slane %v13937_v62, %v16292_v19  ;;  %14964 = vmatprep.subr.bf16.mxu1 %v15621_v50  ;;  %v15623_v60 = vld [vmem:[%s19266_s3 + $0x60] sm:$0xff]  }
 0x161   : > { %v1776_v56 = vpop.permute.xlu1 %1775 }
 0x162   : > { %v873_v58 = vpop.permute.xlu0 %872  ;;  %1926 = vst.msk [vmem:[#allocation2 + $0x34] sm:$0xf] %vm1911_vm6, %v1776_v56  ;;  %v5697_v18 = vcombine.low %v5688_v3, %v5695_v13  ;;  %v13980_v56 = vcombine.low %v15967_v54, %v15967_v54 }
 0x163   : > { %1022 = vst.msk [vmem:[#allocation2 + $0x38] sm:$0x1] %vm1009_vm12, %v873_v58  ;;  %2693 = vrot.lane.b32.xlu1 %v14640_v53, %s15960_s30  ;;  %v15622_v53 = vld [vmem:[%s19266_s3 + $0x18] sm:$0xff]   ;;  %v13981_v58 = vcombine.high %v15967_v54, %v15967_v54 }
 0x164   : > { %888 = vrot.lane.b32.xlu0 %v16595_v20, %s15957_s27  ;;  %v14694_v20 = vpack.c.bf16 %v13574_v1, %v13574_v1  ;;  %v5711_v32 = vrot.slane %v5697_v18, %v16292_v19  ;;  %14965 = vmatpush3.bf16.msra.mxu1 %v15622_v53  ;;  %8910 = vst [vmem:[#allocation3] sm:$0xf] %v13980_v56  ;;  %8912 = vst [vmem:[#allocation3 + $0x8] sm:$0x1] %v13980_v56  ;;  %v15627_v18 = vld [vmem:[%s19266_s3 + $0x70] sm:$0xff]  }
 0x165   : > { %v1325_v2 = vpop.permute.xlu1 %1324  ;;  %v13889_v9 = vld.sshfl [vmem:[#allocation2 + $0x2c] sm:$0x1 pattern:$0x75316420]  ;;  %8911 = vst [vmem:[#allocation3 + $0x4] sm:$0xf] %v13981_v58  ;;  %14966 = vmatprep.subr.bf16.mxu1 %v15623_v60 }
 0x166   : > { %v1780_v4 = vpop.permute.xlu0 %1779  ;;  %1474 = vst.msk [vmem:[#allocation2 + $0x38] sm:$0x1] %vm19303_vm1, %v1325_v2  ;;  %v4583_v6 = vrot.slane %v13889_v9, %v16292_v19  ;;  %vm19306_vm1 = vcmask 454016   ;;  %v1085_v2 = vld [vmem:[%s16023_s25 + $0xba] sm:$0x3]  ;;  %v16825_v9 = vpack.c.bf16 %v13576_v55, %v13576_v55 }
 0x167   : > { %1928 = vst.msk [vmem:[#allocation2 + $0x3c] sm:$0xf] %vm1911_vm6, %v1780_v4  ;;  %3596 = vrot.lane.b32.xlu1 %v16724_v0, %s15963_s9  ;;  %v15624_v4 = vld [vmem:[%s19266_s3 + $0x20] sm:$0xff]   ;;  %8961 = vst [vmem:[#allocation3 + $0xcc] sm:$0xf] %v13980_v56 }
 0x168   : > { %2695 = vrot.lane.b32.xlu0 %v16624_v45, %s15960_s30  ;;  %v5665_v63 = vcombine.low %v4569_v10, %v4583_v6  ;;  %8962 = vst [vmem:[#allocation3 + $0xd0] sm:$0xf] %v13981_v58  ;;  %8963 = vst [vmem:[#allocation3 + $0xd4] sm:$0x1] %v13980_v56  ;;  %v14481_v10 = vpack.c.bf16 %v1085_v2, %v1085_v2  ;;  %v13684_v6 = vld [vmem:[%s16023_s25 + $0xe1] sm:$0xff]  ;;  %14967 = vmatpush3.bf16.msra.mxu1 %v15624_v4 }
 0x169   : > { %v2232_v8 = vpop.permute.xlu1 %2231  ;;  %14968 = vmatprep.subr.bf16.mxu1 %v15625_v11  ;;  %v13793_v4 = vld [vmem:[%s16023_s25 + $0xea] sm:$0x3] }
 0x16a   : > { %v2228_v29 = vpop.permute.xlu0 %2227  ;;  %2380 = vst.msk [vmem:[#allocation2 + $0x3c] sm:$0xf] %vm19280_vm7, %v2232_v8  ;;  %v5681_v16 = vrot.slane %v5665_v63, %v16292_v19  ;;  %v16840_v63 = vpack.c.bf16 %v13684_v6, %v13684_v6  ;;  %v13792_v8 = vld [vmem:[%s16023_s25 + $0xe2] sm:$0xff] }
 0x16b   : > { %2378 = vst.msk [vmem:[#allocation2 + $0x34] sm:$0xf] %vm19280_vm7, %v2228_v29  ;;  %3146 = vrot.lane.b32.xlu1 %v14694_v20, %s15961_s6  ;;  %v13253_v20 = vld [vmem:[%s16023_s25 + $0xd0] sm:$0x3]  ;;  %v290_v29 = vld [vmem:[%s16023_s25 + $0xc0] sm:$0xff] }
 0x16c   : > { %1340 = vrot.lane.b32.xlu0 %v16604_v25, %s15956_s26  ;;  %v5696_v23 = vcombine.low %v5674_v15, %v5681_v16  ;;  %v14535_v39 = vpack.c.bf16 %v13253_v20, %v13253_v20  ;;  %14969 = vmatpush3.bf16.msra.mxu1 %v15626_v5  ;;  %v291_v15 = vld [vmem:[%s16023_s25 + $0xc8] sm:$0xff]  ;;  %v14374_v16 = vpack.c.bf16 %v290_v29, %v290_v29 }
 0x16d   : > { %v2680_v38 = vpop.permute.xlu1 %2679  ;;  %14970 = vmatprep.subr.bf16.mxu1 %v15627_v18  ;;  %v14805_v29 = vpack.c.bf16 %v13793_v4, %v13793_v4 }
 0x16e   : > { %v1778_v28 = vpop.permute.xlu0 %1777  ;;  %2830 = vst.msk [vmem:[#allocation2 + $0x34] sm:$0xf] %vm2815_vm8, %v2680_v38  ;;  %v5704_v25 = vrot.slane %v5696_v23, %v16292_v19  ;;  %v14375_v38 = vpack.c.bf16 %v291_v15, %v291_v15 }
 0x16f   : > { %1927 = vst.msk [vmem:[#allocation2 + $0x38] sm:$0x1] %vm19304_vm13, %v1778_v28  ;;  %4048 = vrot.lane.b32.xlu1 %v16745_v12, %s15964_s14  ;;  %vm19307_vm13 = vmmov %vm19306_vm1  ;;  %v15628_v28 = vld [vmem:[%s19266_s3 + $0x30] sm:$0xff]  }
 0x170   : > { %3148 = vrot.lane.b32.xlu0 %v16749_v21, %s15961_s6  ;;  %v5712_v35 = vcombine.low %v5704_v25, %v5711_v32  ;;  %580 = vst.msk [vmem:[#allocation2 + $0x60] sm:$0xf] %vm554_vm0, %v14374_v16  ;;  %v15631_v25 = vld [vmem:[#allocation3] sm:$0xff]   ;;  %v15632_v32 = vld [vmem:[#allocation3 + $0x8] ss:$0 sps:$4 sm:$0x11]   ;;  %14971 = vmatpush3.bf16.msra.mxu1 %v15628_v28 }
 0x171   : > { %v2230_v57 = vpop.permute.xlu1 %2229  ;;  %581 = vst.msk [vmem:[#allocation2 + $0x64] sm:$0xf] %vm554_vm0, %v14375_v38  ;;  %v9286_v17 = vshrl.u32 %v15631_v25, 16  ;;  %v9288_v37 = vshll.u32 %v15631_v25, 16 }
 0x172   : > { %v2684_v40 = vpop.permute.xlu0 %2683  ;;  %2379 = vst.msk [vmem:[#allocation2 + $0x38] sm:$0x1] %vm2366_vm2, %v2230_v57  ;;  %15457 = vmatmul.mubr.msk.bf16.gmra.mrb[16].mxu0 %vm6490_vm14, %v5712_v35  ;;  %v15629_v35 = vld [vmem:[%s19266_s3 + $0x78] sm:$0xff]   ;;  %v9293_v57 = vshll.u32 %v15632_v32, 16 }
 0x173   : > { %2832 = vst.msk [vmem:[#allocation2 + $0x3c] sm:$0xf] %vm2815_vm8, %v2684_v40  ;;  %3598 = vrot.lane.b32.xlu1 %v14748_v7, %s15963_s9  ;;  %15460 = vmatprep.mubr.msk.bf16.mxu0 %vm19281_vm15, %v15962_v34  ;;  %v16859_v7 = vpack.c.bf16 %v13792_v8, %v13792_v8  ;;  %v9290_v27 = vrot.slane %v9288_v37, 1 }
 0x174   : > { %1793 = vrot.lane.b32.xlu0 %v16702_v48, %s15958_s28  ;;  %v16797_v48 = vpack.c.bf16 %v13791_v61, %v13791_v61  ;;  %v15630_v61 = vld [vmem:[%s19266_s3 + $0x38] sm:$0xff]   ;;  %14972 = vmatprep.subr.bf16.mxu1 %v15629_v35 }
 0x175   : > { %v3137_v46 = vpop.permute.xlu1 %3136  ;;  %14973 = vmatpush3.bf16.msra.mxu1 %v15630_v61  ;;  %v9291_v26 = vor.u32 %v9290_v27, %v9286_v17 }
 0x176   : > { %v3133_v30 = vpop.permute.xlu0 %3132  ;;  %3285 = vst.msk [vmem:[#allocation2 + $0x3c] sm:$0xf] %vm19306_vm1, %v3137_v46  ;;  %vm19309_vm1 = vcmask 450944   ;;  %v9295_v46 = vrot.slane %v9293_v57, 1 }
 0x177   : > { %3283 = vst.msk [vmem:[#allocation2 + $0x34] sm:$0xf] %vm19307_vm13, %v3133_v30  ;;  %2245 = vrot.lane.b32.xlu1 %v16724_v0, %s15959_s29  ;;  %vm19310_vm13 = vcmask 585216   ;;  %v14697_v30 = vpack.c.bf16 %v13577_v31, %v13577_v31 }
 0x178   : > { %3600 = vrot.lane.b32.xlu0 %v16783_v42, %s15963_s9 }
 0x179   : > { %v2682_v51 = vpop.permute.xlu1 %2681 }
 0x17a   : > { %v877_v44 = vpop.permute.xlu0 %876  ;;  %2831 = vst.msk [vmem:[#allocation2 + $0x38] sm:$0x1] %vm19308_vm3, %v2682_v51  ;;  %vm19311_vm3 = vmmov %vm19310_vm13 }
 0x17b   : > { %1024 = vst.msk [vmem:[#allocation2 + $0x40] sm:$0xf] %vm1006_vm4, %v877_v44  ;;  %4052 = vrot.lane.b32.xlu1 %v16797_v48, %s15964_s14 }
 0x17c   : > { %4050 = vrot.lane.b32.xlu0 %v14802_v49, %s15964_s14  ;;  %v15633_v49 = vld [vmem:[#allocation3] sm:$0xff]  }
 0x17d   : > { %v3589_v62 = vpop.permute.xlu1 %3588 }
 0x17e   : > { %v3585_v1 = vpop.permute.xlu0 %3584  ;;  %3737 = vst.msk [vmem:[#allocation2 + $0x3c] sm:$0xf] %vm3720_vm10, %v3589_v62 }
 0x17f   : > { %3735 = vst.msk [vmem:[#allocation2 + $0x34] sm:$0xf] %vm3720_vm10, %v3585_v1  ;;  %2697 = vrot.lane.b32.xlu1 %v16745_v12, %s15960_s30 }
 0x180   : > { %890 = vrot.lane.b32.xlu0 %v14427_v59, %s15957_s27  ;;  %v13685_v59 = vld [vmem:[%s16023_s25 + $0xe9] sm:$0x3] }
 0x181   : > { %v3135_v3 = vpop.permute.xlu1 %3134  ;;  %v14751_v2 = vpack.c.bf16 %v13685_v59, %v13685_v59  ;;  %v13794_v59 = vld [vmem:[%s16023_s25 + $0xf2] sm:$0xff] }
 0x182   : > { %v1329_v13 = vpop.permute.xlu0 %1328  ;;  %3284 = vst.msk [vmem:[#allocation2 + $0x38] sm:$0x1] %vm19309_vm1, %v3135_v3  ;;  %vm19278_vm1 = vsmask.f32 7424 }
 0x183   : > { %1476 = vst.msk [vmem:[#allocation2 + $0x40] sm:$0xf] %vm1458_vm5, %v1329_v13  ;;  %3150 = vrot.lane.b32.xlu1 %v16825_v9, %s15961_s6  ;;  %v9296_v54 = vsel %vm19278_vm1, %v9291_v26, %v9295_v46  ;;  %v14698_v46 = vpack.c.bf16 %v13578_v43, %v13578_v43  ;;  %vm19319_vm1 = vcmask 450944  }
 0x184   : > { %1342 = vrot.lane.b32.xlu0 %v14481_v10, %s15956_s26  ;;  %12127 = vmatprep.mubr.bf16.mxu1 %v9296_v54 }
 0x185   : > { %v4041_v23 = vpop.permute.xlu1 %4040  ;;  %12128 = vmatmul.mubr.bf16.vlgmr.msra.gmra.mrb[0].mxu1 %v15633_v49 }
 0x186   : > { %v4037_v24 = vpop.permute.xlu0 %4036  ;;  %4189 = vst.msk [vmem:[#allocation2 + $0x3c] sm:$0xf] %vm19310_vm13, %v4041_v23  ;;  %vm19312_vm13 = vcmask 188544  }
 0x187   : > { %4187 = vst.msk [vmem:[#allocation2 + $0x34] sm:$0xf] %vm19311_vm3, %v4037_v24  ;;  %3602 = vrot.lane.b32.xlu1 %v16840_v63, %s15963_s9  ;;  %vm19313_vm3 = vcmask 454016  }
 0x188   : > { %1795 = vrot.lane.b32.xlu0 %v14535_v39, %s15958_s28 }
 0x189   : > { %v1782_v40 = vpop.permute.xlu1 %1781 }
 0x18a   : > { %v881_v41 = vpop.permute.xlu0 %880  ;;  %1929 = vst.msk [vmem:[#allocation2 + $0x40] sm:$0xf] %vm1911_vm6, %v1782_v40 }
 0x18b   : > { %1026 = vst.msk [vmem:[#allocation2 + $0x48] sm:$0xf] %vm1006_vm4, %v881_v41  ;;  %4054 = vrot.lane.b32.xlu1 %v16859_v7, %s15964_s14 }
 0x18c   : > { %2247 = vrot.lane.b32.xlu0 %v14589_v33, %s15959_s29  ;;  %v293_v33 = vld [vmem:[%s16023_s25 + $0xd8] sm:$0xff] }
 0x18d   : > { %v1333_v50 = vpop.permute.xlu1 %1332  ;;  %v13893_v52 = vld.sshfl [vmem:[#allocation2 + $0x3c] sm:$0x33 pattern:$0x75316420]  ;;  %v14377_v35 = vpack.c.bf16 %v293_v33, %v293_v33 }
 0x18e   : > { %v3587_v51 = vpop.permute.xlu0 %3586  ;;  %v13891_v44 = vld.sshfl [vmem:[#allocation2 + $0x34] sm:$0x33 pattern:$0x75316420]  ;;  %1478 = vst.msk [vmem:[#allocation2 + $0x48] sm:$0xf] %vm1458_vm5, %v1333_v50  ;;  %v4653_v60 = vcombine.high %v13893_v52, %v13893_v52  ;;  %v4660_v62 = vrot.slane %v13893_v52, %v16292_v19 }
 0x18f   : > { %3736 = vst.msk [vmem:[#allocation2 + $0x38] sm:$0x1] %vm3723_vm11, %v3587_v51  ;;  %v4615_v53 = vcombine.high %v13891_v44, %v13891_v44  ;;  %3152 = vrot.lane.b32.xlu1 %v14697_v30, %s15961_s6  ;;  %v4622_v10 = vrot.slane %v13891_v44, %v16292_v19  ;;  %v13686_v30 = vld [vmem:[%s16023_s25 + $0xf1] sm:$0xff]  ;;  %v294_v50 = vld [vmem:[%s16023_s25 + $0xe0] sm:$0xff] }
 0x190   : > { %2699 = vrot.lane.b32.xlu0 %v14643_v47, %s15960_s30  ;;  %v16893_v20 = vrot.slane %v4653_v60, %v16292_v19  ;;  %v4668_v5 = vcombine.high %v4660_v62, %v4660_v62  ;;  %583 = vst.msk [vmem:[#allocation2 + $0x6c] sm:$0xf] %vm554_vm0, %v14377_v35  ;;  %v16944_v49 = vpack.c.bf16 %v13686_v30, %v13686_v30  ;;  %v13687_v44 = vld [vmem:[%s16023_s25 + $0xf9] sm:$0xff] }
 0x191   : > { %v4039_v56 = vpop.permute.xlu1 %4038  ;;  %v4629_v55 = vrot.slane %v4615_v53, %v16292_v19  ;;  %v14378_v52 = vpack.c.bf16 %v294_v50, %v294_v50  ;;  %v16956_v54 = vpack.c.bf16 %v13687_v44, %v13687_v44 }
 0x192   : > { %v2234_v58 = vpop.permute.xlu0 %2233  ;;  %4188 = vst.msk [vmem:[#allocation2 + $0x38] sm:$0x1] %vm4175_vm9, %v4039_v56  ;;  %v5716_v23 = vcombine.low %v16893_v20, %v4668_v5  ;;  %v13795_v56 = vld [vmem:[%s16023_s25 + $0xfa] sm:$0xff] }
 0x193   : > { %2381 = vst.msk [vmem:[#allocation2 + $0x40] sm:$0xf] %vm19280_vm7, %v2234_v58  ;;  %894 = vrot.lane.b32.xlu1 %v16724_v0, %s15957_s27  ;;  %v5713_v8 = vcombine.low %v4622_v10, %v4629_v55  ;;  %v13938_v0 = vcombine.high %v4622_v10, %v4629_v55  ;;  %v16964_v60 = vpack.c.bf16 %v13795_v56, %v13795_v56 }
 0x194   : > { %892 = vrot.lane.b32.xlu0 %v16618_v36, %s15957_s27  ;;  %v6592_v1 = vpop.f32.mrb[0].mxu0  ;;  %v5744_v25 = vrot.slane %v5716_v23, %v16292_v19  ;;  %584 = vst.msk [vmem:[#allocation2 + $0x70] sm:$0xf] %vm554_vm0, %v14378_v52 }
 0x195   : > { %v15442_v6 = vpop.f32.mrb[1].mxu0  ;;  %v1786_v11 = vpop.permute.xlu1 %1785  ;;  %v5723_v24 = vrot.slane %v5713_v8, %v16292_v19  ;;  %v5730_v22 = vrot.slane %v13938_v0, %v16292_v19  ;;  %v292_v1 = vld [vmem:[%s16023_s25 + $0xd0] sm:$0x3] }
 0x196   : > { %1931 = vst.msk [vmem:[#allocation2 + $0x48] sm:$0xf] %vm1911_vm6, %v1786_v11  ;;  %v879_v3 = vpop.permute.xlu0 %878  ;;  %v6595_v13 = vpop.f32.mrb[2].mxu0  ;;  %v14376_v4 = vpack.c.bf16 %v292_v1, %v292_v1 }
 0x197   : > { %1025 = vst.msk [vmem:[#allocation2 + $0x44] sm:$0x1] %vm1009_vm12, %v879_v3  ;;  %v15443_v36 = vpop.f32.mrb[3].mxu0  ;;  %1344 = vrot.lane.b32.xlu1 %v16624_v45, %s15956_s26  ;;  %v5745_v32 = vcombine.low %v5723_v24, %v5730_v22 }
 0x198   : > { %3604 = vrot.lane.b32.xlu0 %v14751_v2, %s15963_s9 }
 0x199   : > { %v1331_v39 = vpop.permute.xlu1 %1330  ;;  %v13892_v15 = vld.sshfl [vmem:[#allocation2 + $0x38] sm:$0x1 pattern:$0x75316420]  ;;  %v5753_v57 = vrot.slane %v5745_v32, %v16292_v19 }
 0x19a   : > { %1477 = vst.msk [vmem:[#allocation2 + $0x44] sm:$0x1] %vm19312_vm13, %v1331_v39  ;;  %v2686_v16 = vpop.permute.xlu0 %2685  ;;  %v4645_v18 = vrot.slane %v13892_v15, %v16292_v19  ;;  %vm19314_vm13 = vcmask 254144   ;;  %v15968_v15 = vmov 1983009808  }
 0x19b   : > { %2833 = vst.msk [vmem:[#allocation2 + $0x40] sm:$0xf] %vm2815_vm8, %v2686_v16  ;;  %4056 = vrot.lane.b32.xlu1 %v14805_v29, %s15964_s14  ;;  %v636_v29 = vld [vmem:[%s16023_s25 + $0xd1] sm:$0x3]  ;;  %v6876_v16 = vunpack.c.l.s4 %v15968_v15 }
 0x19c   : > { %1346 = vrot.lane.b32.xlu0 %v16745_v12, %s15956_s26  ;;  %v5715_v45 = vcombine.low %v4645_v18, %v4660_v62  ;;  %v16968_v62 = vpack.c.bf16 %v13794_v59, %v13794_v59  ;;  %v14430_v22 = vpack.c.bf16 %v636_v29, %v636_v29 }
 0x19d   : > { %v3139_v38 = vpop.permute.xlu1 %3138  ;;  %v6877_v32 = vunpack.c.0.s8 %v6876_v16 }
 0x19e   : > { %3286 = vst.msk [vmem:[#allocation2 + $0x40] sm:$0xf] %vm19313_vm3, %v3139_v38  ;;  %v2238_v28 = vpop.permute.xlu0 %2237  ;;  %v5737_v31 = vrot.slane %v5715_v45, %v16292_v19  ;;  %vm19315_vm3 = vcmask 585216   ;;  %v1088_v45 = vld [vmem:[%s16023_s25 + $0xd2] sm:$0x3] }
 0x19f   : > { %2383 = vst.msk [vmem:[#allocation2 + $0x48] sm:$0xf] %vm19280_vm7, %v2238_v28  ;;  %1799 = vrot.lane.b32.xlu1 %v16825_v9, %s15958_s28  ;;  %v13579_v9 = vld [vmem:[%s16023_s25 + $0xf8] sm:$0xff]  ;;  %v14484_v35 = vpack.c.bf16 %v1088_v45, %v1088_v45  ;;  %v13582_v45 = vld [vmem:[%s16023_s25 + $0x110] sm:$0xff] }
 0x1a0   : > { %1797 = vrot.lane.b32.xlu0 %v16749_v21, %s15958_s28  ;;  %v5746_v12 = vcombine.low %v5737_v31, %v5744_v25  ;;  %v16933_v27 = vpack.c.bf16 %v13579_v9, %v13579_v9 }
 0x1a1   : > { %v2690_v17 = vpop.permute.xlu1 %2689 }
 0x1a2   : > { %2835 = vst.msk [vmem:[#allocation2 + $0x48] sm:$0xf] %vm2815_vm8, %v2690_v17  ;;  %v1784_v37 = vpop.permute.xlu0 %1783  ;;  %v5760_v40 = vrot.slane %v5746_v12, %v16292_v19 }
 0x1a3   : > { %1930 = vst.msk [vmem:[#allocation2 + $0x44] sm:$0x1] %vm19314_vm13, %v1784_v37  ;;  %2251 = vrot.lane.b32.xlu1 %v16840_v63, %s15959_s29  ;;  %vm19316_vm13 = vcmask 454016   ;;  %v13581_v37 = vld [vmem:[%s16023_s25 + $0x108] sm:$0xff] }
 0x1a4   : > { %2249 = vrot.lane.b32.xlu0 %v16783_v42, %s15959_s29  ;;  %v5761_v21 = vcombine.low %v5753_v57, %v5760_v40 }
 0x1a5   : > { %v2236_v41 = vpop.permute.xlu1 %2235 }
 0x1a6   : > { %2382 = vst.msk [vmem:[#allocation2 + $0x44] sm:$0x1] %vm2366_vm2, %v2236_v41  ;;  %v3591_v61 = vpop.permute.xlu0 %3590  ;;  %15461 = vmatmul.mubr.msk.bf16.gmra.mrb[20].mxu0 %vm6490_vm14, %v5761_v21 }
 0x1a7   : > { %3738 = vst.msk [vmem:[#allocation2 + $0x40] sm:$0xf] %vm3720_vm10, %v3591_v61  ;;  %2703 = vrot.lane.b32.xlu1 %v16859_v7, %s15960_s30  ;;  %15464 = vmatprep.mubr.msk.bf16.mxu0 %vm19281_vm15, %v15962_v34  ;;  %v17020_v61 = vsub.s32 %v6877_v32, %v16281_v14 }
 0x1a8   : > { %2701 = vrot.lane.b32.xlu0 %v16797_v48, %s15960_s30 }
 0x1a9   : > { %v4043_v47 = vpop.permute.xlu1 %4042 }
 0x1aa   : > { %4190 = vst.msk [vmem:[#allocation2 + $0x40] sm:$0xf] %vm19315_vm3, %v4043_v47  ;;  %v3143_v26 = vpop.permute.xlu0 %3142  ;;  %vm19317_vm3 = vcmask 385344  }
 0x1ab   : > { %3288 = vst.msk [vmem:[#allocation2 + $0x48] sm:$0xf] %vm19316_vm13, %v3143_v26  ;;  %3156 = vrot.lane.b32.xlu1 %v16933_v27, %s15961_s6  ;;  %vm19318_vm13 = vcmask 585216   ;;  %v17026_v26 = vpack.c.bf16 %v13581_v37, %v13581_v37  ;;  %v297_v37 = vld [vmem:[%s16023_s25 + $0xf8] sm:$0xff] }
 0x1ac   : > { %3154 = vrot.lane.b32.xlu0 %v14698_v46, %s15961_s6 }
 0x1ad   : > { %v3595_v51 = vpop.permute.xlu1 %3594 }
 0x1ae   : > { %3740 = vst.msk [vmem:[#allocation2 + $0x48] sm:$0xf] %vm3720_vm10, %v3595_v51  ;;  %v2688_v53 = vpop.permute.xlu0 %2687 }
 0x1af   : > { %2834 = vst.msk [vmem:[#allocation2 + $0x44] sm:$0x1] %vm19317_vm3, %v2688_v53  ;;  %3606 = vrot.lane.b32.xlu1 %v16944_v49, %s15963_s9  ;;  %vm19321_vm3 = vcmask 188544  }
 0x1b0   : > { %898 = vrot.lane.b32.xlu0 %v16783_v42, %s15957_s27 }
 0x1b1   : > { %v4047_v58 = vpop.permute.xlu1 %4046  ;;  %v13894_v42 = vld.sshfl [vmem:[#allocation2 + $0x40] sm:$0x33 pattern:$0x75316420] }
 0x1b2   : > { %4192 = vst.msk [vmem:[#allocation2 + $0x48] sm:$0xf] %vm19318_vm13, %v4047_v58  ;;  %v3141_v55 = vpop.permute.xlu0 %3140  ;;  %v4684_v6 = vrot.slane %v13894_v42, %v16292_v19  ;;  %v13256_v58 = vld [vmem:[%s16023_s25 + $0xe8] sm:$0x3]  ;;  %vm19322_vm13 = vcmask 254144  }
 0x1b3   : > { %3287 = vst.msk [vmem:[#allocation2 + $0x44] sm:$0x1] %vm19319_vm1, %v3141_v55  ;;  %1350 = vrot.lane.b32.xlu1 %v16797_v48, %s15956_s26  ;;  %v4677_v48 = vcombine.high %v13894_v42, %v13894_v42  ;;  %vm19320_vm1 = vcmask 57344  }
 0x1b4   : > { %3608 = vrot.lane.b32.xlu0 %v16956_v54, %s15963_s9  ;;  %582 = vst.msk [vmem:[#allocation2 + $0x68] sm:$0x1] %vm19320_vm1, %v14376_v4  ;;  %v4692_v0 = vcombine.high %v4684_v6, %v4684_v6  ;;  %vm19323_vm1 = vcmask 454016  }
 0x1b5   : > { %v3593_v2 = vpop.permute.xlu1 %3592  ;;  %v4691_v8 = vrot.slane %v4677_v48, %v16292_v19 }
 0x1b6   : > { %3739 = vst.msk [vmem:[#allocation2 + $0x44] sm:$0x1] %vm3723_vm11, %v3593_v2  ;;  %v883_v10 = vpop.permute.xlu0 %882 }
 0x1b7   : > { %1027 = vst.msk [vmem:[#allocation2 + $0x4c] sm:$0xf] %vm1006_vm4, %v883_v10  ;;  %4060 = vrot.lane.b32.xlu1 %v16964_v60, %s15964_s14  ;;  %v5763_v24 = vcombine.low %v4691_v8, %v4692_v0  ;;  %v4693_v33 = vcombine.high %v4691_v8, %v4691_v8 }
 0x1b8   : > { %4058 = vrot.lane.b32.xlu0 %v16968_v62, %s15964_s14 }
 0x1b9   : > { %v4045_v11 = vpop.permute.xlu1 %4044  ;;  %v13896_v3 = vld.sshfl [vmem:[#allocation2 + $0x48] sm:$0x33 pattern:$0x75316420]  ;;  %v5779_v17 = vrot.slane %v5763_v24, %v16292_v19 }
 0x1ba   : > { %4191 = vst.msk [vmem:[#allocation2 + $0x44] sm:$0x1] %vm4175_vm9, %v4045_v11  ;;  %v1335_v13 = vpop.permute.xlu0 %1334  ;;  %v4715_v5 = vcombine.high %v13896_v3, %v13896_v3  ;;  %v16988_v18 = vrot.slane %v13896_v3, %v16292_v19  ;;  %v13364_v11 = vld [vmem:[%s16023_s25 + $0xe9] sm:$0x3] }
 0x1bb   : > { %1479 = vst.msk [vmem:[#allocation2 + $0x4c] sm:$0xf] %vm1458_vm5, %v1335_v13  ;;  %1803 = vrot.lane.b32.xlu1 %v14698_v46, %s15958_s28  ;;  %v14592_v15 = vpack.c.bf16 %v13364_v11, %v13364_v11  ;;  %v13797_v24 = vld [vmem:[%s16023_s25 + $0x10a] sm:$0xff] }
 0x1bc   : > { %900 = vrot.lane.b32.xlu0 %v16840_v63, %s15957_s27  ;;  %v16991_v23 = vrot.slane %v4715_v5, %v16292_v19  ;;  %v4669_v63 = vcombine.high %v16893_v20, %v16893_v20  ;;  %v13689_v5 = vld [vmem:[%s16023_s25 + $0x109] sm:$0xff] }
 0x1bd   : > { %v887_v36 = vpop.permute.xlu1 %886  ;;  %v639_v11 = vld [vmem:[%s16023_s25 + $0xe9] sm:$0x3] }
 0x1be   : > { %1029 = vst.msk [vmem:[#allocation2 + $0x54] sm:$0xf] %vm1006_vm4, %v887_v36  ;;  %v885_v39 = vpop.permute.xlu0 %884  ;;  %v5762_v31 = vcombine.low %v4669_v63, %v4684_v6  ;;  %v5765_v20 = vcombine.low %v16988_v18, %v16991_v23  ;;  %v14538_v6 = vpack.c.bf16 %v13256_v58, %v13256_v58  ;;  %v17060_v63 = vpack.c.bf16 %v13689_v5, %v13689_v5  ;;  %v295_v58 = vld [vmem:[%s16023_s25 + $0xe8] sm:$0x3] }
 0x1bf   : > { %1028 = vst.msk [vmem:[#allocation2 + $0x50] sm:$0x1] %vm1009_vm12, %v885_v39  ;;  %2255 = vrot.lane.b32.xlu1 %v16944_v49, %s15959_s29  ;;  %v17052_v39 = vadd.s32 4294967295, %v16281_v14  ;;  %v14433_v5 = vpack.c.bf16 %v639_v11, %v639_v11 }
 0x1c0   : > { %1352 = vrot.lane.b32.xlu0 %v16859_v7, %s15956_s26  ;;  %v17011_v7 = vld [vmem:[%s19265_s2] ss:$0 sm:$0xff]  ;;  %v5772_v9 = vrot.slane %v5762_v31, %v16292_v19  ;;  %v5793_v30 = vrot.slane %v5765_v20, %v16292_v19  ;;  %v296_v20 = vld [vmem:[%s16023_s25 + $0xf0] sm:$0xff] }
 0x1c1   : > { %v1337_v38 = vpop.permute.xlu1 %1336  ;;  %v13895_v28 = vld.sshfl [vmem:[#allocation2 + $0x44] sm:$0x1 pattern:$0x75316420] }
 0x1c2   : > { %1480 = vst.msk [vmem:[#allocation2 + $0x50] sm:$0x1] %vm19321_vm3, %v1337_v38  ;;  %v1788_v25 = vpop.permute.xlu0 %1787  ;;  %v4707_v12 = vrot.slane %v13895_v28, %v16292_v19  ;;  %v5794_v50 = vcombine.low %v5772_v9, %v5779_v17  ;;  %vm19279_vm3 = vcmp.ge.s32.totalorder %v17052_v39, 0  ;;  %v13472_v17 = vld [vmem:[%s16023_s25 + $0xea] sm:$0x3]  ;;  %v14381_v9 = vpack.c.bf16 %v297_v37, %v297_v37 }
 0x1c3   : > { %1932 = vst.msk [vmem:[#allocation2 + $0x4c] sm:$0xf] %vm1911_vm6, %v1788_v25  ;;  %1805 = vrot.lane.b32.xlu1 %v16933_v27, %s15958_s28  ;;  %v17072_v25 = vpack.c.bf16 %v13797_v24, %v13797_v24 }
 0x1c4   : > { %896 = vrot.lane.b32.xlu0 %v14430_v22, %s15957_s27  ;;  %v5764_v57 = vcombine.low %v4693_v33, %v4707_v12  ;;  %v5802_v4 = vrot.slane %v5794_v50, %v16292_v19  ;;  %v17076_v33 = vpack.c.bf16 %v13582_v45, %v13582_v45  ;;  %v13690_v12 = vld [vmem:[%s16023_s25 + $0x111] sm:$0xff]  ;;  %587 = vst.msk [vmem:[#allocation2 + $0x7c] sm:$0xf] %vm554_vm0, %v14381_v9 }
 0x1c5   : > { %v2240_v40 = vpop.permute.xlu1 %2239  ;;  %v6600_v21 = vpop.f32.mrb[4].mxu0 }
 0x1c6   : > { %2384 = vst.msk [vmem:[#allocation2 + $0x4c] sm:$0xf] %vm19280_vm7, %v2240_v40  ;;  %v1339_v41 = vpop.permute.xlu0 %1338  ;;  %v6601_v43 = vadd.f32 %v17011_v7, %v6600_v21  ;;  %v15446_v27 = vpop.f32.mrb[5].mxu0  ;;  %v5786_v46 = vrot.slane %v5764_v57, %v16292_v19  ;;  %v14380_v57 = vpack.c.bf16 %v296_v20, %v296_v20  ;;  %v13939_v20 = vcombine.high %v16988_v18, %v16991_v23 }
 0x1c7   : > { %1481 = vst.msk [vmem:[#allocation2 + $0x54] sm:$0xf] %vm1458_vm5, %v1339_v41  ;;  %1348 = vrot.lane.b32.xlu1 %v14484_v35, %s15956_s26  ;;  %v6603_v47 = vpop.f32.mrb[6].mxu0  ;;  %v14646_v27 = vpack.c.bf16 %v13472_v17, %v13472_v17 }
 0x1c8   : > { %v6760_v51 = vmax.f32 %v6601_v43, 0.0  ;;  %2707 = vrot.lane.b32.xlu0 %v16968_v62, %s15960_s30  ;;  %v6604_v44 = vadd.f32 %v17011_v7, %v6603_v47  ;;  %v15447_v52 = vpop.f32.mrb[7].mxu0  ;;  %v5795_v53 = vcombine.low %v5786_v46, %v5793_v30  ;;  %v17088_v43 = vpack.c.bf16 %v13690_v12, %v13690_v12  ;;  %586 = vst.msk [vmem:[#allocation2 + $0x78] sm:$0xf] %vm554_vm0, %v14380_v57  ;;  %v13798_v46 = vld [vmem:[%s16023_s25 + $0x112] sm:$0xff] }
 0x1c9   : > { %v1792_v56 = vpop.permute.xlu1 %1791  ;;  %v13580_v47 = vld [vmem:[%s16023_s25 + $0x100] sm:$0x3] }
 0x1ca   : > { %v6874_v59 = vcombine.high %v6760_v51, %v6760_v51  ;;  %v6881_v55 = vrot.slane %v6760_v51, %v17020_v61  ;;  %v17033_v42 = vmax.f32 %v6604_v44, 0.0  ;;  %1934 = vst.msk [vmem:[#allocation2 + $0x54] sm:$0xf] %vm1911_vm6, %v1792_v56  ;;  %v1790_v1 = vpop.permute.xlu0 %1789  ;;  %v5809_v2 = vrot.slane %v5795_v53, %v16292_v19  ;;  %v13688_v56 = vld [vmem:[%s16023_s25 + $0x101] sm:$0x3] }
 0x1cb   : > { %1933 = vst.msk [vmem:[#allocation2 + $0x50] sm:$0x1] %vm19322_vm13, %v1790_v1  ;;  %3160 = vrot.lane.b32.xlu1 %v17026_v26, %s15961_s6  ;;  %vm19324_vm13 = vcmask 385344   ;;  %v17100_v51 = vpack.c.bf16 %v13798_v46, %v13798_v46  ;;  %v14700_v44 = vpack.c.bf16 %v13580_v47, %v13580_v47  ;;  %v13367_v46 = vld [vmem:[%s16023_s25 + $0x101] sm:$0x3] }
 0x1cc   : > { %v6888_v10 = vrot.slane %v6874_v59, %v17020_v61  ;;  %v6889_v48 = vcombine.high %v6881_v55, %v6881_v55  ;;  %2257 = vrot.lane.b32.xlu0 %v16956_v54, %s15959_s29  ;;  %v5810_v13 = vcombine.low %v5802_v4, %v5809_v2  ;;  %v17048_v36 = vrot.slane %v17033_v42, %v17020_v61  ;;  %v13796_v4 = vld [vmem:[%s16023_s25 + $0x102] sm:$0x3] }
 0x1cd   : > { %v2242_v3 = vpop.permute.xlu1 %2241  ;;  %v14379_v55 = vpack.c.bf16 %v295_v58, %v295_v58  ;;  %v14754_v2 = vpack.c.bf16 %v13688_v56, %v13688_v56 }
 0x1ce   : > { %v7871_v8 = vcombine.low %v6889_v48, %v6888_v10  ;;  %v6890_v0 = vcombine.high %v6888_v10, %v6888_v10  ;;  %2385 = vst.msk [vmem:[#allocation2 + $0x50] sm:$0x1] %vm2366_vm2, %v2242_v3  ;;  %v2692_v29 = vpop.permute.xlu0 %2691  ;;  %15465 = vmatmul.mubr.msk.bf16.gmra.mrb[24].mxu0 %vm6490_vm14, %v5810_v13 }
 0x1cf   : > { %2836 = vst.msk [vmem:[#allocation2 + $0x4c] sm:$0xf] %vm2815_vm8, %v2692_v29  ;;  %2709 = vrot.lane.b32.xlu1 %v16964_v60, %s15960_s30  ;;  %15468 = vmatprep.mubr.msk.bf16.mxu0 %vm19281_vm15, %v15962_v34 }
 0x1d0   : > { %v7872_v16 = vcombine.low %v6890_v0, %v17048_v36  ;;  %1801 = vrot.lane.b32.xlu0 %v14538_v6, %s15958_s28  ;;  %v7879_v38 = vrot.slane %v7871_v8, %v17020_v61  ;;  %v14808_v6 = vpack.c.bf16 %v13796_v4, %v13796_v4  ;;  %v1091_v8 = vld [vmem:[%s16023_s25 + $0xea] sm:$0x3] }
 0x1d1   : > { %v3145_v22 = vpop.permute.xlu1 %3144  ;;  %v14487_v29 = vpack.c.bf16 %v1091_v8, %v1091_v8  ;;  %v13584_v8 = vld [vmem:[%s16023_s25 + $0x120] sm:$0xff] }
 0x1d2   : > { %v7886_v28 = vrot.slane %v7872_v16, %v17020_v61  ;;  %3289 = vst.msk [vmem:[#allocation2 + $0x4c] sm:$0xf] %vm19323_vm1, %v3145_v22  ;;  %v2244_v31 = vpop.permute.xlu0 %2243  ;;  %vm19325_vm1 = vcmask 450944  }
 0x1d3   : > { %2386 = vst.msk [vmem:[#allocation2 + $0x54] sm:$0xf] %vm19280_vm7, %v2244_v31  ;;  %2253 = vrot.lane.b32.xlu1 %v14592_v15, %s15959_s29 }
 0x1d4   : > { %v7887_v32 = vcombine.low %v7879_v38, %v7886_v28  ;;  %3612 = vrot.lane.b32.xlu0 %v17060_v63, %s15963_s9  ;;  %v13259_v38 = vld [vmem:[%s16023_s25 + $0x100] sm:$0x3] }
 0x1d5   : > { %v2694_v35 = vpop.permute.xlu1 %2693 }
 0x1d6   : > { %v8625_v40 = vsel %vm19279_vm3, %v7887_v32, 0.0  ;;  %2837 = vst.msk [vmem:[#allocation2 + $0x50] sm:$0x1] %vm19324_vm13, %v2694_v35  ;;  %v889_v21 = vpop.permute.xlu0 %888  ;;  %vm19326_vm13 = vcmask 585216   ;;  %vm19327_vm3 = vcmask 454016  }
 0x1d7   : > { %v14836_v41 = vpack.c.bf16 %v8625_v40, %v8625_v40  ;;  %1030 = vst.msk [vmem:[#allocation2 + $0x58] sm:$0xf] %vm1006_vm4, %v889_v21  ;;  %4064 = vrot.lane.b32.xlu1 %v17072_v25, %s15964_s14 }
 0x1d8   : > { %3162 = vrot.lane.b32.xlu0 %v17076_v33, %s15961_s6 }
 0x1d9   : > { %8913 = vst [vmem:[#allocation3 + $0xc] sm:$0xf] %v14836_v41  ;;  %v3597_v30 = vpop.permute.xlu1 %3596 }
 0x1da   : > { %3741 = vst.msk [vmem:[#allocation2 + $0x4c] sm:$0xf] %vm3720_vm10, %v3597_v30  ;;  %v2696_v50 = vpop.permute.xlu0 %2695  ;;  %v299_v30 = vld [vmem:[%s16023_s25 + $0x108] sm:$0xff] }
 0x1db   : > { %2838 = vst.msk [vmem:[#allocation2 + $0x54] sm:$0xf] %vm2815_vm8, %v2696_v50  ;;  %3614 = vrot.lane.b32.xlu1 %v17088_v43, %s15963_s9 }
 0x1dc   : > { %2705 = vrot.lane.b32.xlu0 %v14646_v27, %s15960_s30  ;;  %v14541_v27 = vpack.c.bf16 %v13259_v38, %v13259_v38 }
 0x1dd   : > { %v3147_v52 = vpop.permute.xlu1 %3146 }
 0x1de   : > { %3290 = vst.msk [vmem:[#allocation2 + $0x50] sm:$0x1] %vm19325_vm1, %v3147_v52  ;;  %v1341_v53 = vpop.permute.xlu0 %1340  ;;  %vm19328_vm1 = vcmask 57344   ;;  %v5821_v52 = vrot.slane %v13939_v20, %v16292_v19 }
 0x1df   : > { %1482 = vst.msk [vmem:[#allocation2 + $0x58] sm:$0xf] %vm1458_vm5, %v1341_v53  ;;  %4066 = vrot.lane.b32.xlu1 %v17100_v51, %s15964_s14  ;;  %v14383_v53 = vpack.c.bf16 %v299_v30, %v299_v30 }
 0x1e0   : > { %3158 = vrot.lane.b32.xlu0 %v14700_v44, %s15961_s6  ;;  %585 = vst.msk [vmem:[#allocation2 + $0x74] sm:$0x1] %vm19328_vm1, %v14379_v55  ;;  %vm19331_vm1 = vcmask 188544  }
 0x1e1   : > { %v4049_v59 = vpop.permute.xlu1 %4048  ;;  %589 = vst.msk [vmem:[#allocation2 + $0x84] sm:$0xf] %vm554_vm0, %v14383_v53 }
 0x1e2   : > { %4193 = vst.msk [vmem:[#allocation2 + $0x4c] sm:$0xf] %vm19326_vm13, %v4049_v59  ;;  %v3149_v1 = vpop.permute.xlu0 %3148 }
 0x1e3   : > { %3291 = vst.msk [vmem:[#allocation2 + $0x54] sm:$0xf] %vm19327_vm3, %v3149_v1  ;;  %906 = vrot.lane.b32.xlu1 %v16956_v54, %s15957_s27  ;;  %vm19329_vm3 = vmmov %vm19326_vm13  ;;  %vm19330_vm13 = vcmask 454016  }
 0x1e4   : > { %904 = vrot.lane.b32.xlu0 %v16944_v49, %s15957_s27 }
 0x1e5   : > { %v3599_v10 = vpop.permute.xlu1 %3598 }
 0x1e6   : > { %3742 = vst.msk [vmem:[#allocation2 + $0x50] sm:$0x1] %vm3723_vm11, %v3599_v10  ;;  %v1794_v48 = vpop.permute.xlu0 %1793 }
 0x1e7   : > { %1935 = vst.msk [vmem:[#allocation2 + $0x58] sm:$0xf] %vm1911_vm6, %v1794_v48  ;;  %1356 = vrot.lane.b32.xlu1 %v16968_v62, %s15956_s26 }
 0x1e8   : > { %3610 = vrot.lane.b32.xlu0 %v14754_v2, %s15963_s9  ;;  %v14595_v2 = vpack.c.bf16 %v13367_v46, %v13367_v46 }
 0x1e9   : > { %v2246_v54 = vpop.permute.xlu1 %2245  ;;  %v13897_v3 = vld.sshfl [vmem:[#allocation2 + $0x4c] sm:$0x33 pattern:$0x75316420] }
 0x1ea   : > { %2387 = vst.msk [vmem:[#allocation2 + $0x58] sm:$0xf] %vm19280_vm7, %v2246_v54  ;;  %v3601_v49 = vpop.permute.xlu0 %3600  ;;  %v4739_v13 = vcombine.high %v13897_v3, %v13897_v3  ;;  %v4746_v15 = vrot.slane %v13897_v3, %v16292_v19  ;;  %v13585_v3 = vld [vmem:[%s16023_s25 + $0x128] sm:$0xff] }
 0x1eb   : > { %3743 = vst.msk [vmem:[#allocation2 + $0x54] sm:$0xf] %vm3720_vm10, %v3601_v49  ;;  %4062 = vrot.lane.b32.xlu1 %v14808_v6, %s15964_s14 }
 0x1ec   : > { %1358 = vrot.lane.b32.xlu0 %v16964_v60, %s15956_s26  ;;  %v4753_v16 = vrot.slane %v4739_v13, %v16292_v19  ;;  %v6891_v60 = vcombine.high %v17033_v42, %v17033_v42  ;;  %v6906_v42 = vcombine.high %v17048_v36, %v17048_v36 }
 0x1ed   : > { %v4053_v62 = vpop.permute.xlu1 %4052 }
 0x1ee   : > { %4195 = vst.msk [vmem:[#allocation2 + $0x54] sm:$0xf] %vm19329_vm3, %v4053_v62  ;;  %v4051_v0 = vpop.permute.xlu0 %4050  ;;  %v5812_v45 = vcombine.low %v4746_v15, %v4753_v16  ;;  %v6905_v28 = vrot.slane %v6891_v60, %v17020_v61  ;;  %v13940_v23 = vcombine.high %v4746_v15, %v4753_v16  ;;  %vm19332_vm3 = vcmask 254144  }
 0x1ef   : > { %4194 = vst.msk [vmem:[#allocation2 + $0x50] sm:$0x1] %vm4175_vm9, %v4051_v0  ;;  %1809 = vrot.lane.b32.xlu1 %v17026_v26, %s15958_s28  ;;  %v7550_v26 = vadd.s32 16, %v16281_v14 }
 0x1f0   : > { %902 = vrot.lane.b32.xlu0 %v14433_v5, %s15957_s27  ;;  %v5828_v57 = vrot.slane %v5812_v45, %v16292_v19  ;;  %v7888_v47 = vcombine.low %v6906_v42, %v6905_v28  ;;  %v6907_v56 = vcombine.high %v6905_v28, %v6905_v28  ;;  %v5835_v4 = vrot.slane %v13940_v23, %v16292_v19 }
 0x1f1   : > { %v2698_v24 = vpop.permute.xlu1 %2697  ;;  %v17164_v21 = vadd.s32 4294967295, %v7550_v26  ;;  %v17198_v45 = vpack.c.bf16 %v13585_v3, %v13585_v3  ;;  %v17204_v42 = vpack.c.bf16 %v13584_v8, %v13584_v8 }
 0x1f2   : > { %2839 = vst.msk [vmem:[#allocation2 + $0x58] sm:$0xf] %vm2815_vm8, %v2698_v24  ;;  %v891_v22 = vpop.permute.xlu0 %890  ;;  %v5843_v48 = vcombine.low %v5821_v52, %v5828_v57  ;;  %v7896_v62 = vrot.slane %v7888_v47, %v17020_v61  ;;  %v13693_v57 = vld [vmem:[%s16023_s25 + $0x129] sm:$0xff]  ;;  %v13583_v47 = vld [vmem:[%s16023_s25 + $0x118] sm:$0x3] }
 0x1f3   : > { %1031 = vst.msk [vmem:[#allocation2 + $0x5c] sm:$0x1] %vm1009_vm12, %v891_v22  ;;  %1354 = vrot.lane.b32.xlu1 %v14487_v29, %s15956_s26  ;;  %v17225_v46 = vpack.c.bf16 %v13693_v57, %v13693_v57 }
 0x1f4   : > { %1811 = vrot.lane.b32.xlu0 %v17076_v33, %s15958_s28  ;;  %v5851_v24 = vrot.slane %v5843_v48, %v16292_v19 }
 0x1f5   : > { %v3151_v31 = vpop.permute.xlu1 %3150  ;;  %v6608_v32 = vpop.f32.mrb[8].mxu0  ;;  %v17149_v12 = vld.sshfl [vmem:[#allocation2 + $0x54] sm:$0x33 pattern:$0x75316420] }
 0x1f6   : > { %3292 = vst.msk [vmem:[#allocation2 + $0x58] sm:$0xf] %vm19330_vm13, %v3151_v31  ;;  %v1343_v35 = vpop.permute.xlu0 %1342  ;;  %v6609_v33 = vadd.f32 %v17011_v7, %v6608_v32  ;;  %v15450_v14 = vpop.f32.mrb[9].mxu0  ;;  %v17157_v37 = vrot.slane %v17149_v12, %v16292_v19  ;;  %vm7667_vm13 = vcmp.lt.s32.totalorder %v17164_v21, 16  ;;  %v13475_v31 = vld [vmem:[%s16023_s25 + $0x102] sm:$0x3] }
 0x1f7   : > { %v13898_v17 = vld.sshfl [vmem:[#allocation2 + $0x50] sm:$0x1 pattern:$0x75316420]  ;;  %1483 = vst.msk [vmem:[#allocation2 + $0x5c] sm:$0x1] %vm19331_vm1, %v1343_v35  ;;  %2263 = vrot.lane.b32.xlu1 %v17088_v43, %s15959_s29  ;;  %v14649_v23 = vpack.c.bf16 %v13475_v31, %v13475_v31 }
 0x1f8   : > { %v6611_v36 = vpop.f32.mrb[10].mxu0  ;;  %v4769_v18 = vrot.slane %v13898_v17, %v16292_v19  ;;  %v6762_v40 = vmax.f32 %v6609_v33, 0.0  ;;  %2261 = vrot.lane.b32.xlu0 %v17060_v63, %s15959_s29  ;;  %vm19333_vm1 = vcmask 585216   ;;  %v4792_v8 = vcombine.high %v17157_v37, %v17157_v37 }
 0x1f9   : > { %v6612_v9 = vadd.f32 %v17011_v7, %v6611_v36  ;;  %v15451_v41 = vpop.f32.mrb[11].mxu0  ;;  %v3603_v50 = vpop.permute.xlu1 %3602 }
 0x1fa   : > { %v5814_v44 = vcombine.low %v4769_v18, %v17157_v37  ;;  %v6908_v58 = vcombine.high %v6762_v40, %v6762_v40  ;;  %v6915_v59 = vrot.slane %v6762_v40, %v17020_v61  ;;  %3744 = vst.msk [vmem:[#allocation2 + $0x58] sm:$0xf] %vm3720_vm10, %v3603_v50  ;;  %v1796_v1 = vpop.permute.xlu0 %1795  ;;  %v13692_v41 = vld [vmem:[%s16023_s25 + $0x121] sm:$0xff]  ;;  %v4777_v50 = vcombine.high %v17149_v12, %v17149_v12 }
 0x1fb   : > { %v17174_v55 = vmax.f32 %v6612_v9, 0.0  ;;  %1936 = vst.msk [vmem:[#allocation2 + $0x5c] sm:$0x1] %vm19332_vm3, %v1796_v1  ;;  %2713 = vrot.lane.b32.xlu1 %v17072_v25, %s15960_s30  ;;  %vm19334_vm3 = vcmask 385344   ;;  %v17229_v30 = vpack.c.bf16 %v13692_v41, %v13692_v41 }
 0x1fc   : > { %v5842_v10 = vrot.slane %v5814_v44, %v16292_v19  ;;  %v6922_v6 = vrot.slane %v6908_v58, %v17020_v61  ;;  %v6923_v54 = vcombine.high %v6915_v59, %v6915_v59  ;;  %v7889_v11 = vcombine.low %v6907_v56, %v6915_v59  ;;  %1807 = vrot.lane.b32.xlu0 %v14541_v27, %s15958_s28  ;;  %v13801_v59 = vld [vmem:[%s16023_s25 + $0x12a] sm:$0xff] }
 0x1fd   : > { %v6932_v49 = vrot.slane %v17174_v55, %v17020_v61  ;;  %v4055_v13 = vpop.permute.xlu1 %4054  ;;  %v14703_v58 = vpack.c.bf16 %v13583_v47, %v13583_v47  ;;  %v4791_v1 = vrot.slane %v4777_v50, %v16292_v19  ;;  %v642_v50 = vld [vmem:[%s16023_s25 + $0x101] sm:$0x3] }
 0x1fe   : > { %v5844_v5 = vcombine.low %v5835_v4, %v5842_v10  ;;  %v6924_v0 = vcombine.high %v6922_v6, %v6922_v6  ;;  %v7903_v29 = vrot.slane %v7889_v11, %v17020_v61  ;;  %v7911_v15 = vrot.slane %v6923_v54, %v17020_v61  ;;  %4196 = vst.msk [vmem:[#allocation2 + $0x58] sm:$0xf] %vm19333_vm1, %v4055_v13  ;;  %v2248_v16 = vpop.permute.xlu0 %2247 }
 0x1ff   : > { %v6940_v60 = vcombine.high %v6932_v49, %v6932_v49  ;;  %2388 = vst.msk [vmem:[#allocation2 + $0x5c] sm:$0x1] %vm2366_vm2, %v2248_v16  ;;  %2259 = vrot.lane.b32.xlu1 %v14595_v2, %s15959_s29  ;;  %vm19335_vm1 = vcmask 450944   ;;  %v13800_v2 = vld [vmem:[%s16023_s25 + $0x122] sm:$0xff]  ;;  %v17247_v11 = vpack.c.bf16 %v13801_v59, %v13801_v59 }
 0x200   : > { %v5858_v22 = vrot.slane %v5844_v5, %v16292_v19  ;;  %v7904_v26 = vcombine.low %v7896_v62, %v7903_v29  ;;  %v7912_v38 = vcombine.low %v6922_v6, %v6924_v0  ;;  %v8627_v28 = vsel %vm7667_vm13, %v7911_v15, 0.0  ;;  %2715 = vrot.lane.b32.xlu0 %v17100_v51, %s15960_s30  ;;  %v13691_v5 = vld [vmem:[%s16023_s25 + $0x119] sm:$0x3]  ;;  %v298_v0 = vld [vmem:[%s16023_s25 + $0x100] sm:$0x3] }
 0x201   : > { %v14838_v32 = vpack.c.bf16 %v8627_v28, %v8627_v28  ;;  %v7913_v20 = vcombine.low %v6932_v49, %v6940_v60  ;;  %v3153_v35 = vpop.permute.xlu1 %3152  ;;  %v17251_v13 = vpack.c.bf16 %v13800_v2, %v13800_v2  ;;  %v4793_v62 = vcombine.high %v4791_v1, %v4791_v1  ;;  %v300_v60 = vld [vmem:[%s16023_s25 + $0x110] sm:$0xff]  ;;  %v1094_v59 = vld [vmem:[%s16023_s25 + $0x102] sm:$0x3] }
 0x202   : > { %v5859_v33 = vcombine.low %v5851_v24, %v5858_v22  ;;  %v7920_v14 = vrot.slane %v7912_v38, %v17020_v61  ;;  %v14837_v17 = vpack.c.bf16 %v7904_v26, %v7904_v26  ;;  %v2700_v36 = vpop.permute.xlu0 %2699  ;;  %v14382_v24 = vpack.c.bf16 %v298_v0, %v298_v0 }
 0x203   : > { %8915 = vst [vmem:[#allocation3 + $0x14] sm:$0x1] %v14838_v32  ;;  %v7927_v18 = vrot.slane %v7913_v20, %v17020_v61  ;;  %2840 = vst.msk [vmem:[#allocation2 + $0x5c] sm:$0x1] %vm19334_vm3, %v2700_v36  ;;  %3168 = vrot.lane.b32.xlu1 %v17198_v45, %s15961_s6  ;;  %v14384_v28 = vpack.c.bf16 %v300_v60, %v300_v60  ;;  %vm19336_vm3 = vsmask.f32 7424  ;;  %v14757_v32 = vpack.c.bf16 %v13691_v5, %v13691_v5 }
 0x204   : > { %15469 = vmatmul.mubr.msk.bf16.gmra.mrb[28].mxu0 %vm6490_vm14, %v5859_v33  ;;  %8914 = vst [vmem:[#allocation3 + $0x10] sm:$0xf] %v14837_v17  ;;  %3293 = vst.msk [vmem:[#allocation2 + $0x5c] sm:$0x1] %vm19335_vm1, %v3153_v35  ;;  %3166 = vrot.lane.b32.xlu0 %v17204_v42, %s15961_s6  ;;  %vm19337_vm1 = vcmask 57344   ;;  %v5860_v35 = vcombine.low %v4791_v1, %v4792_v8 }
 0x205   : > { %15472 = vmatprep.mubr.msk.bf16.mxu0 %vm19281_vm15, %v15962_v34  ;;  %v17219_v40 = vcombine.low %v7920_v14, %v7927_v18  ;;  %v895_v9 = vpop.permute.xlu1 %894  ;;  %v13900_v52 = vld.sshfl [vmem:[#allocation2 + $0x58] sm:$0x33 pattern:$0x75316420]  ;;  %588 = vst.msk [vmem:[#allocation2 + $0x80] sm:$0x1] %vm19337_vm1, %v14382_v24 }
 0x206   : > { %1033 = vst.msk [vmem:[#allocation2 + $0x64] sm:$0xf] %vm1006_vm4, %v895_v9  ;;  %v893_v27 = vpop.permute.xlu0 %892  ;;  %v4801_v6 = vcombine.high %v13900_v52, %v13900_v52  ;;  %v4808_v54 = vrot.slane %v13900_v52, %v16292_v19  ;;  %v13799_v20 = vld [vmem:[%s16023_s25 + $0x11a] sm:$0x3]  ;;  %v13262_v24 = vld [vmem:[%s16023_s25 + $0x118] sm:$0x3] }
 0x207   : > { %1032 = vst.msk [vmem:[#allocation2 + $0x60] sm:$0xf] %vm1006_vm4, %v893_v27  ;;  %2711 = vrot.lane.b32.xlu1 %v14649_v23, %s15960_s30  ;;  %v14811_v9 = vpack.c.bf16 %v13799_v20, %v13799_v20  ;;  %v5870_v27 = vrot.slane %v5860_v35, %v16292_v19 }
 0x208   : > { %910 = vrot.lane.b32.xlu0 %v17060_v63, %s15957_s27  ;;  %v4815_v26 = vrot.slane %v4801_v6, %v16292_v19  ;;  %v5861_v38 = vcombine.low %v4793_v62, %v4808_v54  ;;  %590 = vst.msk [vmem:[#allocation2 + $0x88] sm:$0xf] %vm554_vm0, %v14384_v28  ;;  %v13587_v6 = vld [vmem:[%s16023_s25 + $0x138] sm:$0xff] }
 0x209   : > { %v1345_v44 = vpop.permute.xlu1 %1344  ;;  %v17302_v8 = vpack.c.bf16 %v13587_v6, %v13587_v6  ;;  %v13370_v28 = vld [vmem:[%s16023_s25 + $0x119] sm:$0x3] }
 0x20a   : > { %1484 = vst.msk [vmem:[#allocation2 + $0x60] sm:$0xf] %vm1458_vm5, %v1345_v44  ;;  %v3605_v53 = vpop.permute.xlu0 %3604  ;;  %v15635_v56 = vld [vmem:[#allocation3 + $0x14] ss:$0 sps:$4 sm:$0x11]   ;;  %v4817_v36 = vcombine.high %v4815_v26, %v4815_v26  ;;  %v5877_v57 = vrot.slane %v5861_v38, %v16292_v19 }
 0x20b   : > { %3745 = vst.msk [vmem:[#allocation2 + $0x5c] sm:$0x1] %vm3723_vm11, %v3605_v53  ;;  %3620 = vrot.lane.b32.xlu1 %v17225_v46, %s15963_s9  ;;  %v15634_v63 = vld [vmem:[#allocation3 + $0xc] sm:$0xff]   ;;  %v9305_v10 = vshll.u32 %v15635_v56, 16 }
 0x20c   : > { %3618 = vrot.lane.b32.xlu0 %v17229_v30, %s15963_s9  ;;  %v9300_v4 = vshll.u32 %v15634_v63, 16  ;;  %v9298_v3 = vshrl.u32 %v15634_v63, 16  ;;  %v15636_v31 = vld [vmem:[#allocation3 + $0xc] sm:$0xff]   ;;  %v5892_v56 = vcombine.low %v5870_v27, %v5877_v57  ;;  %v13803_v27 = vld [vmem:[%s16023_s25 + $0x13a] sm:$0xff] }
 0x20d   : > { %v4057_v12 = vpop.permute.xlu1 %4056  ;;  %v9307_v16 = vrot.slane %v9305_v10, 1 }
 0x20e   : > { %4197 = vst.msk [vmem:[#allocation2 + $0x5c] sm:$0x1] %vm4175_vm9, %v4057_v12  ;;  %v1347_v48 = vpop.permute.xlu0 %1346  ;;  %v9302_v49 = vrot.slane %v9300_v4, 1  ;;  %v5900_v2 = vrot.slane %v5892_v56, %v16292_v19 }
 0x20f   : > { %1485 = vst.msk [vmem:[#allocation2 + $0x64] sm:$0xf] %vm1458_vm5, %v1347_v48  ;;  %3164 = vrot.lane.b32.xlu1 %v14703_v58, %s15961_s6  ;;  %v14436_v58 = vpack.c.bf16 %v642_v50, %v642_v50 }
 0x210   : > { %1362 = vrot.lane.b32.xlu0 %v17072_v25, %s15956_s26  ;;  %v9303_v15 = vor.u32 %v9302_v49, %v9298_v3  ;;  %v4816_v25 = vcombine.high %v4808_v54, %v4808_v54 }
 0x211   : > { %v1800_v29 = vpop.permute.xlu1 %1799 }
 0x212   : > { %1938 = vst.msk [vmem:[#allocation2 + $0x64] sm:$0xf] %vm1911_vm6, %v1800_v29  ;;  %v1798_v22 = vpop.permute.xlu0 %1797  ;;  %v9308_v37 = vsel %vm19336_vm3, %v9303_v15, %v9307_v16  ;;  %v5862_v23 = vcombine.low %v4815_v26, %v4816_v25  ;;  %vm19338_vm3 = vcmask 454016  }
 0x213   : > { %1937 = vst.msk [vmem:[#allocation2 + $0x60] sm:$0xf] %vm1911_vm6, %v1798_v22  ;;  %4072 = vrot.lane.b32.xlu1 %v17247_v11, %s15964_s14  ;;  %12135 = vmatprep.mubr.bf16.mxu1 %v9308_v37  ;;  %vm19339_vm1 = vmmov %vm19338_vm3 }
 0x214   : > { %4070 = vrot.lane.b32.xlu0 %v17251_v13, %s15964_s14  ;;  %12136 = vmatmul.mubr.bf16.gmra.mrb[4].mxu1 %v15636_v31  ;;  %v5884_v52 = vrot.slane %v5862_v23, %v16292_v19 }
 0x215   : > { %v2252_v33 = vpop.permute.xlu1 %2251  ;;  %v13901_v14 = vld.sshfl [vmem:[#allocation2 + $0x5c] sm:$0x1 pattern:$0x75316420] }
 0x216   : > { %2390 = vst.msk [vmem:[#allocation2 + $0x64] sm:$0xf] %vm19280_vm7, %v2252_v33  ;;  %v2250_v17 = vpop.permute.xlu0 %2249  ;;  %v4831_v18 = vrot.slane %v13901_v14, %v16292_v19  ;;  %v13695_v14 = vld [vmem:[%s16023_s25 + $0x139] sm:$0xff] }
 0x217   : > { %2389 = vst.msk [vmem:[#allocation2 + $0x60] sm:$0xf] %vm19280_vm7, %v2250_v17  ;;  %3616 = vrot.lane.b32.xlu1 %v14757_v32, %s15963_s9 }
 0x218   : > { %1815 = vrot.lane.b32.xlu0 %v17204_v42, %s15958_s28  ;;  %v5863_v41 = vcombine.low %v4817_v36, %v4831_v18  ;;  %v6925_v42 = vcombine.high %v17174_v55, %v17174_v55  ;;  %v14490_v55 = vpack.c.bf16 %v1094_v59, %v1094_v59  ;;  %v14598_v36 = vpack.c.bf16 %v13370_v28, %v13370_v28 }
 0x219   : > { %v2704_v47 = vpop.permute.xlu1 %2703  ;;  %v17342_v59 = vpack.c.bf16 %v13803_v27, %v13803_v27 }
 0x21a   : > { %2842 = vst.msk [vmem:[#allocation2 + $0x64] sm:$0xf] %vm2815_vm8, %v2704_v47  ;;  %v2702_v44 = vpop.permute.xlu0 %2701  ;;  %v5891_v53 = vrot.slane %v5863_v41, %v16292_v19  ;;  %v6939_v10 = vrot.slane %v6925_v42, %v17020_v61  ;;  %v17330_v41 = vpack.c.bf16 %v13695_v14, %v13695_v14 }
 0x21b   : > { %2841 = vst.msk [vmem:[#allocation2 + $0x60] sm:$0xf] %vm2815_vm8, %v2702_v44  ;;  %4068 = vrot.lane.b32.xlu1 %v14811_v9, %s15964_s14 }
 0x21c   : > { %2267 = vrot.lane.b32.xlu0 %v17229_v30, %s15959_s29  ;;  %v5893_v63 = vcombine.low %v5884_v52, %v5891_v53  ;;  %v6941_v62 = vcombine.high %v6939_v10, %v6939_v10 }
 0x21d   : > { %v3157_v1 = vpop.permute.xlu1 %3156 }
 0x21e   : > { %3295 = vst.msk [vmem:[#allocation2 + $0x64] sm:$0xf] %vm19338_vm3, %v3157_v1  ;;  %v3155_v12 = vpop.permute.xlu0 %3154  ;;  %v5907_v4 = vrot.slane %v5893_v63, %v16292_v19  ;;  %v7929_v37 = vcombine.low %v6939_v10, %v6941_v62  ;;  %vm19340_vm3 = vcmask 585216   ;;  %v13478_v10 = vld [vmem:[%s16023_s25 + $0x11a] sm:$0x3] }
 0x21f   : > { %3294 = vst.msk [vmem:[#allocation2 + $0x60] sm:$0xf] %vm19339_vm1, %v3155_v12  ;;  %912 = vrot.lane.b32.xlu1 %v17088_v43, %s15957_s27  ;;  %vm19341_vm1 = vmmov %vm19340_vm3 }
 0x220   : > { %908 = vrot.lane.b32.xlu0 %v14436_v58, %s15957_s27  ;;  %v5908_v48 = vcombine.low %v5900_v2, %v5907_v4  ;;  %v7937_v47 = vrot.slane %v7929_v37, %v17020_v61  ;;  %v302_v2 = vld [vmem:[%s16023_s25 + $0x120] sm:$0xff] }
 0x221   : > { %v3607_v54 = vpop.permute.xlu1 %3606  ;;  %v14386_v6 = vpack.c.bf16 %v302_v2, %v302_v2 }
 0x222   : > { %3746 = vst.msk [vmem:[#allocation2 + $0x60] sm:$0xf] %vm3720_vm10, %v3607_v54  ;;  %v899_v3 = vpop.permute.xlu0 %898  ;;  %v6616_v49 = vpop.f32.mrb[12].mxu0  ;;  %15473 = vmatmul.mubr.msk.bf16.gmra.mrb[32].mxu0 %vm6490_vm14, %v5908_v48 }
 0x223   : > { %1035 = vst.msk [vmem:[#allocation2 + $0x6c] sm:$0xf] %vm1006_vm4, %v899_v3  ;;  %v6617_v5 = vadd.f32 %v17011_v7, %v6616_v49  ;;  %v15454_v43 = vpop.f32.mrb[13].mxu0  ;;  %1360 = vrot.lane.b32.xlu1 %v14490_v55, %s15956_s26  ;;  %15476 = vmatprep.mubr.msk.bf16.mxu0 %vm19281_vm15, %v15962_v34 }
 0x224   : > { %2719 = vrot.lane.b32.xlu0 %v17251_v13, %s15960_s30  ;;  %v6619_v0 = vpop.f32.mrb[14].mxu0  ;;  %592 = vst.msk [vmem:[#allocation2 + $0x90] sm:$0xf] %vm554_vm0, %v14386_v6 }
 0x225   : > { %v6764_v29 = vmax.f32 %v6617_v5, 0.0  ;;  %v6620_v15 = vadd.f32 %v17011_v7, %v6619_v0  ;;  %v15455_v16 = vpop.f32.mrb[15].mxu0  ;;  %v1351_v60 = vpop.permute.xlu1 %1350  ;;  %v14544_v7 = vpack.c.bf16 %v13262_v24, %v13262_v24  ;;  %v14652_v0 = vpack.c.bf16 %v13478_v10, %v13478_v10  ;;  %v13586_v24 = vld [vmem:[%s16023_s25 + $0x130] sm:$0x3] }
 0x226   : > { %1487 = vst.msk [vmem:[#allocation2 + $0x6c] sm:$0xf] %vm1458_vm5, %v1351_v60  ;;  %v3609_v22 = vpop.permute.xlu0 %3608 }
 0x227   : > { %v6942_v26 = vcombine.high %v6764_v29, %v6764_v29  ;;  %v6949_v25 = vrot.slane %v6764_v29, %v17020_v61  ;;  %v6765_v38 = vmax.f32 %v6620_v15, 0.0  ;;  %3747 = vst.msk [vmem:[#allocation2 + $0x64] sm:$0xf] %vm3720_vm10, %v3609_v22  ;;  %3172 = vrot.lane.b32.xlu1 %v17302_v8, %s15961_s6  ;;  %v13588_v29 = vld [vmem:[%s16023_s25 + $0x140] sm:$0xff] }
 0x228   : > { %1364 = vrot.lane.b32.xlu0 %v17100_v51, %s15956_s26  ;;  %v17371_v37 = vpack.c.bf16 %v13588_v29, %v13588_v29 }
 0x229   : > { %v6956_v31 = vrot.slane %v6942_v26, %v17020_v61  ;;  %v6957_v32 = vcombine.high %v6949_v25, %v6949_v25  ;;  %v6959_v20 = vcombine.high %v6765_v38, %v6765_v38  ;;  %v6966_v35 = vrot.slane %v6765_v38, %v17020_v61  ;;  %v4061_v33 = vpop.permute.xlu1 %4060 }
 0x22a   : > { %4199 = vst.msk [vmem:[#allocation2 + $0x64] sm:$0xf] %vm19340_vm3, %v4061_v33  ;;  %v4059_v17 = vpop.permute.xlu0 %4058  ;;  %vm19342_vm3 = vcmp.ge.s32.totalorder %v17052_v39, 0 }
 0x22b   : > { %v7930_v18 = vcombine.low %v6949_v25, %v6957_v32  ;;  %v7952_v23 = vrot.slane %v6956_v31, %v17020_v61  ;;  %v6958_v57 = vcombine.high %v6956_v31, %v6956_v31  ;;  %v17324_v51 = vrot.slane %v6959_v20, %v17020_v61  ;;  %4198 = vst.msk [vmem:[#allocation2 + $0x60] sm:$0xf] %vm19341_vm1, %v4059_v17  ;;  %vm19343_vm1 = vmmov %vm19342_vm3 }
 0x22c   : > { %1817 = vrot.lane.b32.xlu1 %v17198_v45, %s15958_s28  ;;  %v6974_v9 = vcombine.high %v6966_v35, %v6966_v35  ;;  %1813 = vrot.lane.b32.xlu0 %v14544_v7, %s15958_s28  ;;  %v8628_v1 = vsel %vm19342_vm3, %v17219_v40, 0.0  ;;  %v13694_v7 = vld [vmem:[%s16023_s25 + $0x131] sm:$0x3]  ;;  %v14706_v20 = vpack.c.bf16 %v13586_v24, %v13586_v24  ;;  %vm19344_vm3 = vcmask 188544  }
 0x22d   : > { %v7944_v50 = vrot.slane %v7930_v18, %v17020_v61  ;;  %v8630_v44 = vsel %vm7667_vm13, %v7952_v23, 0.0  ;;  %v7953_v52 = vcombine.low %v6958_v57, %v6966_v35  ;;  %v1804_v53 = vpop.permute.xlu1 %1803  ;;  %v14760_v27 = vpack.c.bf16 %v13694_v7, %v13694_v7 }
 0x22e   : > { %v14841_v56 = vpack.c.bf16 %v8630_v44, %v8630_v44  ;;  %v7954_v45 = vcombine.low %v6974_v9, %v17324_v51  ;;  %1940 = vst.msk [vmem:[#allocation2 + $0x6c] sm:$0xf] %vm1911_vm6, %v1804_v53  ;;  %v901_v42 = vpop.permute.xlu0 %900  ;;  %v13696_v44 = vld [vmem:[%s16023_s25 + $0x141] sm:$0xff] }
 0x22f   : > { %v7945_v58 = vcombine.low %v7937_v47, %v7944_v50  ;;  %v7961_v63 = vrot.slane %v7953_v52, %v17020_v61  ;;  %1036 = vst.msk [vmem:[#allocation2 + $0x70] sm:$0xf] %vm1006_vm4, %v901_v42  ;;  %v301_v42 = vld [vmem:[%s16023_s25 + $0x118] sm:$0x3] }
 0x230   : > { %2265 = vrot.lane.b32.xlu1 %v14598_v36, %s15959_s29  ;;  %8918 = vst [vmem:[#allocation3 + $0x20] sm:$0x1] %v14841_v56  ;;  %v7968_v12 = vrot.slane %v7954_v45, %v17020_v61  ;;  %3624 = vrot.lane.b32.xlu0 %v17330_v41, %s15963_s9 }
 0x231   : > { %v14887_v4 = vpack.c.bf16 %v7945_v58, %v8628_v1  ;;  %v2256_v55 = vpop.permute.xlu1 %2255  ;;  %v13903_v48 = vld.sshfl [vmem:[#allocation2 + $0x64] sm:$0x33 pattern:$0x75316420] }
 0x232   : > { %v7969_v54 = vcombine.low %v7961_v63, %v7968_v12  ;;  %2392 = vst.msk [vmem:[#allocation2 + $0x6c] sm:$0xf] %vm19280_vm7, %v2256_v55  ;;  %v1353_v3 = vpop.permute.xlu0 %1352  ;;  %v13902_v49 = vld.sshfl [vmem:[#allocation2 + $0x60] sm:$0x33 pattern:$0x75316420]  ;;  %v4863_v40 = vcombine.high %v13903_v48, %v13903_v48  ;;  %v4870_v5 = vrot.slane %v13903_v48, %v16292_v19  ;;  %v14385_v12 = vpack.c.bf16 %v301_v42, %v301_v42 }
 0x233   : > { %14924 = vst [vmem:[#allocation3 + $0x18] sm:$0xff] %v14887_v4   ;;  %1488 = vst.msk [vmem:[#allocation2 + $0x70] sm:$0xf] %vm1458_vm5, %v1353_v3  ;;  %v4839_v43 = vcombine.high %v13902_v49, %v13902_v49  ;;  %v4846_v22 = vrot.slane %v13902_v49, %v16292_v19  ;;  %v17393_v4 = vpack.c.bf16 %v13696_v44, %v13696_v44  ;;  %v13804_v48 = vld [vmem:[%s16023_s25 + $0x142] sm:$0xff]  ;;  %v13373_v44 = vld [vmem:[%s16023_s25 + $0x131] sm:$0x3] }
 0x234   : > { %4076 = vrot.lane.b32.xlu1 %v17342_v59, %s15964_s14  ;;  %v8631_v62 = vsel %vm19343_vm1, %v7969_v54, 0.0  ;;  %2269 = vrot.lane.b32.xlu0 %v17225_v46, %s15959_s29  ;;  %v4877_v15 = vrot.slane %v4863_v40, %v16292_v19  ;;  %vm19345_vm1 = vcmask 454016   ;;  %v13802_v54 = vld [vmem:[%s16023_s25 + $0x132] sm:$0x3] }
 0x235   : > { %v14842_v16 = vpack.c.bf16 %v8631_v62, %v8631_v62  ;;  %v1806_v60 = vpop.permute.xlu1 %1805  ;;  %v4853_v26 = vrot.slane %v4839_v43, %v16292_v19 }
 0x236   : > { %1941 = vst.msk [vmem:[#allocation2 + $0x70] sm:$0xf] %vm1911_vm6, %v1806_v60  ;;  %v897_v25 = vpop.permute.xlu0 %896  ;;  %v5911_v38 = vcombine.low %v4870_v5, %v4877_v15  ;;  %v13942_v28 = vcombine.high %v4870_v5, %v4877_v15  ;;  %v14814_v5 = vpack.c.bf16 %v13802_v54, %v13802_v54  ;;  %v17415_v15 = vld [vmem:[%s19265_s2] ss:$0 sm:$0xff] }
 0x237   : > { %8919 = vst [vmem:[#allocation3 + $0x24] sm:$0xf] %v14842_v16  ;;  %1034 = vst.msk [vmem:[#allocation2 + $0x68] sm:$0x1] %vm1009_vm12, %v897_v25  ;;  %v5909_v31 = vcombine.low %v4846_v22, %v4853_v26  ;;  %v13941_v32 = vcombine.high %v4846_v22, %v4853_v26 }
 0x238   : > { %2721 = vrot.lane.b32.xlu1 %v17247_v11, %s15960_s30  ;;  %2717 = vrot.lane.b32.xlu0 %v14652_v0, %s15960_s30  ;;  %v5933_v35 = vrot.slane %v5911_v38, %v16292_v19  ;;  %v5940_v33 = vrot.slane %v13942_v28, %v16292_v19  ;;  %v15638_v14 = vld [vmem:[#allocation3 + $0x20] ss:$0 sps:$4 sm:$0x11]   ;;  %v645_v0 = vld [vmem:[%s16023_s25 + $0x119] sm:$0x3]  ;;  %v6975_v28 = vcombine.high %v17324_v51, %v17324_v51 }
 0x239   : > { %v1349_v17 = vpop.permute.xlu1 %1348  ;;  %v5919_v36 = vrot.slane %v5909_v31, %v16292_v19  ;;  %v5926_v18 = vrot.slane %v13941_v32, %v16292_v19  ;;  %v9317_v53 = vshll.u32 %v15638_v14, 16  ;;  %v14439_v26 = vpack.c.bf16 %v645_v0, %v645_v0  ;;  %v1097_v38 = vld [vmem:[%s16023_s25 + $0x11a] sm:$0x3] }
 0x23a   : > { %1486 = vst.msk [vmem:[#allocation2 + $0x68] sm:$0x1] %vm19344_vm3, %v1349_v17  ;;  %v2708_v23 = vpop.permute.xlu0 %2707  ;;  %v5942_v57 = vcombine.low %v5933_v35, %v5940_v33  ;;  %v15637_v9 = vld [vmem:[#allocation3 + $0x18] sm:$0xff]   ;;  %vm19346_vm3 = vcmask 57344   ;;  %v14493_v14 = vpack.c.bf16 %v1097_v38, %v1097_v38 }
 0x23b   : > { %2844 = vst.msk [vmem:[#allocation2 + $0x6c] sm:$0xf] %vm2815_vm8, %v2708_v23  ;;  %v5941_v47 = vcombine.low %v5919_v36, %v5926_v18  ;;  %v9312_v52 = vshll.u32 %v15637_v9, 16  ;;  %v9310_v63 = vshrl.u32 %v15637_v9, 16  ;;  %v9319_v10 = vrot.slane %v9317_v53, 1  ;;  %v15639_v40 = vld [vmem:[#allocation3 + $0x18] sm:$0xff]  }
 0x23c   : > { %3174 = vrot.lane.b32.xlu1 %v17371_v37, %s15961_s6  ;;  %3170 = vrot.lane.b32.xlu0 %v14706_v20, %s15961_s6  ;;  %v5956_v50 = vrot.slane %v5942_v57, %v16292_v19  ;;  %591 = vst.msk [vmem:[#allocation2 + $0x8c] sm:$0x1] %vm19346_vm3, %v14385_v12  ;;  %vm19350_vm3 = vcmask 454016   ;;  %v13265_v17 = vld [vmem:[%s16023_s25 + $0x130] sm:$0x3]  ;;  %v303_v12 = vld [vmem:[%s16023_s25 + $0x128] sm:$0xff] }
 0x23d   : > { %v3161_v56 = vpop.permute.xlu1 %3160  ;;  %v5949_v45 = vrot.slane %v5941_v47, %v16292_v19  ;;  %v9314_v1 = vrot.slane %v9312_v52, 1  ;;  %v13590_v47 = vld [vmem:[%s16023_s25 + $0x150] sm:$0xff] }
 0x23e   : > { %3297 = vst.msk [vmem:[#allocation2 + $0x6c] sm:$0xf] %vm19345_vm1, %v3161_v56  ;;  %v2258_v58 = vpop.permute.xlu0 %2257  ;;  %vm19347_vm1 = vsmask.f32 7424  ;;  %v17451_v42 = vpack.c.bf16 %v13590_v47, %v13590_v47 }
 0x23f   : > { %2393 = vst.msk [vmem:[#allocation2 + $0x70] sm:$0xf] %vm19280_vm7, %v2258_v58  ;;  %v5957_v2 = vcombine.low %v5949_v45, %v5956_v50  ;;  %v9315_v55 = vor.u32 %v9314_v1, %v9310_v63  ;;  %vm19348_vm7 = vcmask 254144   ;;  %v14601_v63 = vpack.c.bf16 %v13373_v44, %v13373_v44  ;;  %v13698_v1 = vld [vmem:[%s16023_s25 + $0x151] sm:$0xff] }
 0x240   : > { %3622 = vrot.lane.b32.xlu1 %v14760_v27, %s15963_s9  ;;  %916 = vrot.lane.b32.xlu0 %v17229_v30, %s15957_s27  ;;  %v17406_v30 = vpack.c.bf16 %v13804_v48, %v13804_v48  ;;  %v14547_v27 = vpack.c.bf16 %v13265_v17, %v13265_v17  ;;  %v14387_v48 = vpack.c.bf16 %v303_v12, %v303_v12  ;;  %v304_v17 = vld [vmem:[%s16023_s25 + $0x130] sm:$0x3] }
 0x241   : > { %15477 = vmatmul.mubr.msk.bf16.gmra.mrb[36].mxu0 %vm6490_vm14, %v5957_v2  ;;  %v2710_v6 = vpop.permute.xlu1 %2709  ;;  %v9320_v49 = vsel %vm19347_vm1, %v9315_v55, %v9319_v10  ;;  %vm19351_vm1 = vcmask 385344   ;;  %v13481_v55 = vld [vmem:[%s16023_s25 + $0x132] sm:$0x3]  ;;  %v305_v10 = vld [vmem:[%s16023_s25 + $0x138] sm:$0xff] }
 0x242   : > { %2845 = vst.msk [vmem:[#allocation2 + $0x70] sm:$0xf] %vm2815_vm8, %v2710_v6  ;;  %v1802_v3 = vpop.permute.xlu0 %1801  ;;  %15480 = vmatprep.mubr.msk.bf16.mxu0 %vm19281_vm15, %v15962_v34  ;;  %12143 = vmatprep.mubr.bf16.mxu1 %v9320_v49  ;;  %v14389_v54 = vpack.c.bf16 %v305_v10, %v305_v10 }
 0x243   : > { %1939 = vst.msk [vmem:[#allocation2 + $0x68] sm:$0x1] %vm19348_vm7, %v1802_v3  ;;  %12144 = vmatmul.mubr.bf16.gmra.mrb[8].mxu1 %v15639_v40  ;;  %vm19349_vm7 = vcmask 585216   ;;  %v17462_v3 = vpack.c.bf16 %v13698_v1, %v13698_v1  ;;  %v14655_v40 = vpack.c.bf16 %v13481_v55, %v13481_v55 }
 0x244   : > { %1368 = vrot.lane.b32.xlu1 %v17251_v13, %s15956_s26  ;;  %3626 = vrot.lane.b32.xlu0 %v17393_v4, %s15963_s9  ;;  %593 = vst.msk [vmem:[#allocation2 + $0x94] sm:$0xf] %vm554_vm0, %v14387_v48  ;;  %595 = vst.msk [vmem:[#allocation2 + $0x9c] sm:$0xf] %vm554_vm0, %v14389_v54 }
 0x245   : > { %v2254_v43 = vpop.permute.xlu1 %2253  ;;  %v6624_v62 = vpop.f32.mrb[16].mxu0 }
 0x246   : > { %2391 = vst.msk [vmem:[#allocation2 + $0x68] sm:$0x1] %vm2366_vm2, %v2254_v43  ;;  %v3613_v29 = vpop.permute.xlu0 %3612  ;;  %v6625_v13 = vadd.f32 %v17415_v15, %v6624_v62  ;;  %v15458_v16 = vpop.f32.mrb[17].mxu0  ;;  %v13589_v62 = vld [vmem:[%s16023_s25 + $0x148] sm:$0x3] }
 0x247   : > { %3749 = vst.msk [vmem:[#allocation2 + $0x6c] sm:$0xf] %vm3720_vm10, %v3613_v29  ;;  %v17421_v60 = vpop.f32.mrb[18].mxu0 }
 0x248   : > { %4078 = vrot.lane.b32.xlu1 %v17406_v30, %s15964_s14  ;;  %v6766_v24 = vmax.f32 %v6625_v13, 0.0  ;;  %4074 = vrot.lane.b32.xlu0 %v14814_v5, %s15964_s14  ;;  %v15459_v22 = vpop.f32.mrb[19].mxu0  ;;  %v13806_v5 = vld [vmem:[%s16023_s25 + $0x152] sm:$0xff] }
 0x249   : > { %v4065_v25 = vpop.permute.xlu1 %4064  ;;  %v17474_v22 = vpack.c.bf16 %v13806_v5, %v13806_v5 }
 0x24a   : > { %v6976_v7 = vcombine.high %v6766_v24, %v6766_v24  ;;  %v6983_v31 = vrot.slane %v6766_v24, %v17020_v61  ;;  %4201 = vst.msk [vmem:[#allocation2 + $0x6c] sm:$0xf] %vm19349_vm7, %v4065_v25  ;;  %v3163_v32 = vpop.permute.xlu0 %3162 }
 0x24b   : > { %3298 = vst.msk [vmem:[#allocation2 + $0x70] sm:$0xf] %vm19350_vm3, %v3163_v32  ;;  %vm19352_vm3 = vcmask 450944  }
 0x24c   : > { %1821 = vrot.lane.b32.xlu1 %v17302_v8, %s15958_s28  ;;  %v6990_v20 = vrot.slane %v6976_v7, %v17020_v61  ;;  %v6991_v35 = vcombine.high %v6983_v31, %v6983_v31  ;;  %v7970_v33 = vcombine.low %v6975_v28, %v6983_v31  ;;  %914 = vrot.lane.b32.xlu0 %v14439_v26, %s15957_s27 }
 0x24d   : > { %v3615_v51 = vpop.permute.xlu1 %3614  ;;  %v14709_v26 = vpack.c.bf16 %v13589_v62, %v13589_v62 }
 0x24e   : > { %v6992_v36 = vcombine.high %v6990_v20, %v6990_v20  ;;  %v7971_v18 = vcombine.low %v6991_v35, %v6990_v20  ;;  %3750 = vst.msk [vmem:[#allocation2 + $0x70] sm:$0xf] %vm3720_vm10, %v3615_v51  ;;  %v2706_v23 = vpop.permute.xlu0 %2705  ;;  %v7978_v8 = vrot.slane %v7970_v33, %v17020_v61  ;;  %v13697_v51 = vld [vmem:[%s16023_s25 + $0x149] sm:$0x3] }
 0x24f   : > { %2843 = vst.msk [vmem:[#allocation2 + $0x68] sm:$0x1] %vm19351_vm1, %v2706_v23  ;;  %vm19353_vm1 = vcmask 57344  }
 0x250   : > { %2273 = vrot.lane.b32.xlu1 %v17330_v41, %s15959_s29  ;;  %v7985_v57 = vrot.slane %v7971_v18, %v17020_v61  ;;  %v7993_v9 = vrot.slane %v6992_v36, %v17020_v61  ;;  %1366 = vrot.lane.b32.xlu0 %v14493_v14, %s15956_s26 }
 0x251   : > { %v4067_v50 = vpop.permute.xlu1 %4066  ;;  %v13905_v49 = vld.sshfl [vmem:[#allocation2 + $0x6c] sm:$0x33 pattern:$0x75316420] }
 0x252   : > { %v7986_v52 = vcombine.low %v7978_v8, %v7985_v57  ;;  %v8633_v53 = vsel %vm7667_vm13, %v7993_v9, 0.0  ;;  %4202 = vst.msk [vmem:[#allocation2 + $0x70] sm:$0xf] %vm19349_vm7, %v4067_v50  ;;  %v3159_v56 = vpop.permute.xlu0 %3158  ;;  %v4901_v13 = vcombine.high %v13905_v49, %v13905_v49  ;;  %v4908_v31 = vrot.slane %v13905_v49, %v16292_v19 }
 0x253   : > { %v14844_v45 = vpack.c.bf16 %v8633_v53, %v8633_v53  ;;  %3296 = vst.msk [vmem:[#allocation2 + $0x68] sm:$0x1] %vm19352_vm3, %v3159_v56  ;;  %v14388_v8 = vpack.c.bf16 %v304_v17, %v304_v17  ;;  %v13805_v53 = vld [vmem:[%s16023_s25 + $0x14a] sm:$0x3]  ;;  %vm19354_vm7 = vsmask.f32 7424 }
 0x254   : > { %2725 = vrot.lane.b32.xlu1 %v17342_v59, %s15960_s30  ;;  %v14843_v58 = vpack.c.bf16 %v7986_v52, %v7986_v52  ;;  %1819 = vrot.lane.b32.xlu0 %v14547_v27, %s15958_s28  ;;  %v4915_v32 = vrot.slane %v4901_v13, %v16292_v19  ;;  %v4916_v9 = vcombine.high %v4908_v31, %v4908_v31  ;;  %vm19355_vm3 = vcmask 188544  }
 0x255   : > { %8921 = vst [vmem:[#allocation3 + $0x2c] sm:$0x1] %v14844_v45  ;;  %v907_v2 = vpop.permute.xlu1 %906  ;;  %594 = vst.msk [vmem:[#allocation2 + $0x98] sm:$0x1] %vm19353_vm1, %v14388_v8  ;;  %v14763_v52 = vpack.c.bf16 %v13697_v51, %v13697_v51  ;;  %vm19356_vm1 = vcmask 322816  }
 0x256   : > { %8920 = vst [vmem:[#allocation3 + $0x28] sm:$0xf] %v14843_v58  ;;  %1039 = vst.msk [vmem:[#allocation2 + $0x7c] sm:$0xf] %vm1006_vm4, %v907_v2  ;;  %v905_v6 = vpop.permute.xlu0 %904  ;;  %v4917_v27 = vcombine.high %v4915_v32, %v4915_v32  ;;  %v5959_v2 = vcombine.low %v4915_v32, %v4916_v9 }
 0x257   : > { %1038 = vst.msk [vmem:[#allocation2 + $0x78] sm:$0xf] %vm1006_vm4, %v905_v6 }
 0x258   : > { %3178 = vrot.lane.b32.xlu1 %v17451_v42, %s15961_s6  ;;  %2271 = vrot.lane.b32.xlu0 %v14601_v63, %s15959_s29  ;;  %v14974_v10 = vpop.f32.mrb[0].mxu1  ;;  %v5975_v13 = vrot.slane %v5959_v2, %v16292_v19 }
 0x259   : > { %v1357_v43 = vpop.permute.xlu1 %1356  ;;  %v13906_v0 = vld.sshfl [vmem:[#allocation2 + $0x70] sm:$0x33 pattern:$0x75316420]  ;;  %v14975_v48 = vpop.f32.mrb[1].mxu1 }
 0x25a   : > { %1490 = vst.msk [vmem:[#allocation2 + $0x78] sm:$0xf] %vm1458_vm5, %v1357_v43  ;;  %v3611_v29 = vpop.permute.xlu0 %3610  ;;  %v4925_v16 = vcombine.high %v13906_v0, %v13906_v0  ;;  %v4932_v24 = vrot.slane %v13906_v0, %v16292_v19  ;;  %v14977_v49 = vpop.f32.mrb[2].mxu1  ;;  %v648_v43 = vld [vmem:[%s16023_s25 + $0x131] sm:$0x3]  ;;  %v17510_v62 = vadd.f32 %v14975_v48, %v14974_v10  ;;  %v13591_v10 = vld [vmem:[%s16023_s25 + $0x158] sm:$0xff] }
 0x25b   : > { %3748 = vst.msk [vmem:[#allocation2 + $0x68] sm:$0x1] %vm3723_vm11, %v3611_v29  ;;  %v14978_v0 = vpop.f32.mrb[3].mxu1 }
 0x25c   : > { %3630 = vrot.lane.b32.xlu1 %v17462_v3, %s15963_s9  ;;  %2723 = vrot.lane.b32.xlu0 %v14655_v40, %s15960_s30  ;;  %v15641_v25 = vld [vmem:[#allocation3 + $0x2c] ss:$0 sps:$4 sm:$0x11]   ;;  %v17481_v20 = vrot.slane %v4925_v16, %v16292_v19  ;;  %v4940_v35 = vcombine.high %v4932_v24, %v4932_v24  ;;  %v5960_v56 = vcombine.low %v4917_v27, %v4932_v24 }
 0x25d   : > { %v4063_v38 = vpop.permute.xlu1 %4062  ;;  %v15640_v28 = vld [vmem:[#allocation3 + $0x24] sm:$0xff]   ;;  %v9329_v14 = vshll.u32 %v15641_v25, 16  ;;  %v6628_v40 = vadd.f32 %v17415_v15, %v17421_v60  ;;  %v17515_v24 = vadd.f32 %v14978_v0, %v14977_v49  ;;  %v14442_v60 = vpack.c.bf16 %v648_v43, %v648_v43  ;;  %v1100_v25 = vld [vmem:[%s16023_s25 + $0x132] sm:$0x3] }
 0x25e   : > { %4200 = vst.msk [vmem:[#allocation2 + $0x68] sm:$0x1] %vm4175_vm9, %v4063_v38  ;;  %v1359_v7 = vpop.permute.xlu0 %1358  ;;  %v9324_v33 = vshll.u32 %v15640_v28, 16  ;;  %v9322_v18 = vshrl.u32 %v15640_v28, 16  ;;  %v5961_v47 = vcombine.low %v17481_v20, %v4940_v35  ;;  %v15642_v63 = vld [vmem:[#allocation3 + $0x24] sm:$0xff]   ;;  %v5982_v54 = vrot.slane %v5960_v56, %v16292_v19 }
 0x25f   : > { %1491 = vst.msk [vmem:[#allocation2 + $0x7c] sm:$0xf] %vm1458_vm5, %v1359_v7  ;;  %v9331_v44 = vrot.slane %v9329_v14, 1  ;;  %v6767_v38 = vmax.f32 %v6628_v40, 0.0  ;;  %v14496_v35 = vpack.c.bf16 %v1100_v25, %v1100_v25 }
 0x260   : > { %4082 = vrot.lane.b32.xlu1 %v17474_v22, %s15964_s14  ;;  %3176 = vrot.lane.b32.xlu0 %v14709_v26, %s15961_s6  ;;  %v9326_v23 = vrot.slane %v9324_v33, 1  ;;  %v5989_v55 = vrot.slane %v5961_v47, %v16292_v19 }
 0x261   : > { %v1810_v36 = vpop.permute.xlu1 %1809  ;;  %v6993_v33 = vcombine.high %v6767_v38, %v6767_v38 }
 0x262   : > { %1943 = vst.msk [vmem:[#allocation2 + $0x78] sm:$0xf] %vm1911_vm6, %v1810_v36  ;;  %v903_v57 = vpop.permute.xlu0 %902  ;;  %v9327_v50 = vor.u32 %v9326_v23, %v9322_v18  ;;  %v5991_v16 = vcombine.low %v5982_v54, %v5989_v55  ;;  %v13268_v36 = vld [vmem:[%s16023_s25 + $0x148] sm:$0x3]  ;;  %v7000_v23 = vrot.slane %v6767_v38, %v17020_v61 }
 0x263   : > { %1037 = vst.msk [vmem:[#allocation2 + $0x74] sm:$0x1] %vm1009_vm12, %v903_v57  ;;  %v14550_v8 = vpack.c.bf16 %v13268_v36, %v13268_v36  ;;  %v13376_v57 = vld [vmem:[%s16023_s25 + $0x149] sm:$0x3] }
 0x264   : > { %922 = vrot.lane.b32.xlu1 %v17330_v41, %s15957_s27  ;;  %918 = vrot.lane.b32.xlu0 %v17225_v46, %s15957_s27  ;;  %v9332_v58 = vsel %vm19354_vm7, %v9327_v50, %v9331_v44  ;;  %v14817_v46 = vpack.c.bf16 %v13805_v53, %v13805_v53  ;;  %vm19357_vm7 = vmmov %vm19356_vm1  ;;  %v6005_v32 = vrot.slane %v5991_v16, %v16292_v19 }
 0x265   : > { %v1355_v45 = vpop.permute.xlu1 %1354  ;;  %v13904_v1 = vld.sshfl [vmem:[#allocation2 + $0x68] sm:$0x1 pattern:$0x75316420]  ;;  %12151 = vmatprep.mubr.bf16.mxu1 %v9332_v58  ;;  %v7008_v56 = vcombine.high %v7000_v23, %v7000_v23  ;;  %v14604_v58 = vpack.c.bf16 %v13376_v57, %v13376_v57  ;;  %v13592_v57 = vld [vmem:[%s16023_s25 + $0x160] sm:$0x3] }
 0x266   : > { %1489 = vst.msk [vmem:[#allocation2 + $0x74] sm:$0x1] %vm19355_vm3, %v1355_v45  ;;  %v1812_v12 = vpop.permute.xlu0 %1811  ;;  %v4893_v41 = vrot.slane %v13904_v1, %v16292_v19  ;;  %12152 = vmatmul.mubr.bf16.gmra.mrb[12].mxu1 %v15642_v63  ;;  %vm19358_vm3 = vcmask 254144  }
 0x267   : > { %1944 = vst.msk [vmem:[#allocation2 + $0x7c] sm:$0xf] %vm1911_vm6, %v1812_v12  ;;  %v7994_v49 = vcombine.low %v7000_v23, %v7008_v56  ;;  %v13807_v56 = vld [vmem:[%s16023_s25 + $0x15a] sm:$0xff] }
 0x268   : > { %1370 = vrot.lane.b32.xlu1 %v17247_v11, %s15956_s26  ;;  %3628 = vrot.lane.b32.xlu0 %v14763_v52, %s15963_s9  ;;  %v5958_v6 = vcombine.low %v4893_v41, %v4908_v31  ;;  %v13593_v41 = vld [vmem:[%s16023_s25 + $0x168] sm:$0xff] }
 0x269   : > { %v2264_v5 = vpop.permute.xlu1 %2263  ;;  %v17564_v40 = vpack.c.bf16 %v13593_v41, %v13593_v41  ;;  %v8002_v38 = vrot.slane %v7994_v49, %v17020_v61 }
 0x26a   : > { %2396 = vst.msk [vmem:[#allocation2 + $0x7c] sm:$0xf] %vm19356_vm1, %v2264_v5  ;;  %v2262_v11 = vpop.permute.xlu0 %2261  ;;  %v5968_v29 = vrot.slane %v5958_v6, %v16292_v19  ;;  %vm19359_vm1 = vcmask 454016  }
 0x26b   : > { %2395 = vst.msk [vmem:[#allocation2 + $0x78] sm:$0xf] %vm19357_vm7, %v2262_v11  ;;  %vm19360_vm7 = vmmov %vm19359_vm1  ;;  %v17573_v11 = vpack.c.bf16 %v13591_v10, %v13591_v10 }
 0x26c   : > { %4080 = vrot.lane.b32.xlu1 %v14817_v46, %s15964_s14  ;;  %1374 = vrot.lane.b32.xlu0 %v17342_v59, %s15956_s26  ;;  %v5990_v26 = vcombine.low %v5968_v29, %v5975_v13  ;;  %v13484_v29 = vld [vmem:[%s16023_s25 + $0x14a] sm:$0x3] }
 0x26d   : > { %v2714_v28 = vpop.permute.xlu1 %2713 }
 0x26e   : > { %2847 = vst.msk [vmem:[#allocation2 + $0x78] sm:$0xf] %vm2815_vm8, %v2714_v28  ;;  %v1808_v7 = vpop.permute.xlu0 %1807  ;;  %v5998_v31 = vrot.slane %v5990_v26, %v16292_v19 }
 0x26f   : > { %1942 = vst.msk [vmem:[#allocation2 + $0x74] sm:$0x1] %vm19358_vm3, %v1808_v7  ;;  %vm19361_vm3 = vcmask 385344   ;;  %v14658_v7 = vpack.c.bf16 %v13484_v29, %v13484_v29 }
 0x270   : > { %1823 = vrot.lane.b32.xlu1 %v17371_v37, %s15958_s28  ;;  %920 = vrot.lane.b32.xlu0 %v14442_v60, %s15957_s27  ;;  %v6006_v59 = vcombine.low %v5998_v31, %v6005_v32  ;;  %v7007_v37 = vrot.slane %v6993_v33, %v17020_v61  ;;  %v13701_v32 = vld [vmem:[%s16023_s25 + $0x169] sm:$0xff] }
 0x271   : > { %v2260_v14 = vpop.permute.xlu1 %2259 }
 0x272   : > { %2394 = vst.msk [vmem:[#allocation2 + $0x74] sm:$0x1] %vm2366_vm2, %v2260_v14  ;;  %v2716_v51 = vpop.permute.xlu0 %2715  ;;  %15481 = vmatmul.mubr.msk.bf16.gmra.mrb[40].mxu0 %vm6490_vm14, %v6006_v59  ;;  %v7009_v9 = vcombine.high %v7007_v37, %v7007_v37  ;;  %v13699_v14 = vld [vmem:[%s16023_s25 + $0x159] sm:$0xff] }
 0x273   : > { %2848 = vst.msk [vmem:[#allocation2 + $0x7c] sm:$0xf] %vm2815_vm8, %v2716_v51  ;;  %15484 = vmatprep.mubr.msk.bf16.mxu0 %vm19281_vm15, %v15962_v34 }
 0x274   : > { %1372 = vrot.lane.b32.xlu1 %v14496_v35, %s15956_s26  ;;  %1827 = vrot.lane.b32.xlu0 %v17451_v42, %s15958_s28  ;;  %v306_v42 = vld [vmem:[%s16023_s25 + $0x140] sm:$0xff]  ;;  %v7995_v2 = vcombine.low %v7007_v37, %v7009_v9 }
 0x275   : > { %v3169_v17 = vpop.permute.xlu1 %3168  ;;  %v14390_v50 = vpack.c.bf16 %v306_v42, %v306_v42  ;;  %v308_v42 = vld [vmem:[%s16023_s25 + $0x150] sm:$0xff] }
 0x276   : > { %3301 = vst.msk [vmem:[#allocation2 + $0x7c] sm:$0xf] %vm19359_vm1, %v3169_v17  ;;  %v3167_v18 = vpop.permute.xlu0 %3166  ;;  %v8009_v13 = vrot.slane %v7995_v2, %v17020_v61  ;;  %vm19362_vm1 = vcmask 450944  }
 0x277   : > { %3300 = vst.msk [vmem:[#allocation2 + $0x78] sm:$0xf] %vm19360_vm7, %v3167_v18  ;;  %vm19363_vm7 = vcmask 585216   ;;  %v17595_v18 = vpack.c.bf16 %v13701_v32, %v13701_v32 }
 0x278   : > { %2279 = vrot.lane.b32.xlu1 %v17462_v3, %s15959_s29  ;;  %2275 = vrot.lane.b32.xlu0 %v17393_v4, %s15959_s29  ;;  %596 = vst.msk [vmem:[#allocation2 + $0xa0] sm:$0xf] %vm554_vm0, %v14390_v50  ;;  %v8010_v35 = vcombine.low %v8002_v38, %v8009_v13  ;;  %v13700_v13 = vld [vmem:[%s16023_s25 + $0x161] sm:$0x3]  ;;  %v4941_v38 = vcombine.high %v17481_v20, %v17481_v20 }
 0x279   : > { %v2712_v27 = vpop.permute.xlu1 %2711  ;;  %v6632_v47 = vpop.f32.mrb[20].mxu0  ;;  %v14766_v20 = vpack.c.bf16 %v13700_v13, %v13700_v13 }
 0x27a   : > { %2846 = vst.msk [vmem:[#allocation2 + $0x74] sm:$0x1] %vm19361_vm3, %v2712_v27  ;;  %v911_v44 = vpop.permute.xlu0 %910  ;;  %v6633_v52 = vadd.f32 %v17415_v15, %v6632_v47  ;;  %v15462_v53 = vpop.f32.mrb[21].mxu0  ;;  %vm19364_vm3 = vmmov %vm19363_vm7  ;;  %v14392_v47 = vpack.c.bf16 %v308_v42, %v308_v42 }
 0x27b   : > { %1041 = vst.msk [vmem:[#allocation2 + $0x84] sm:$0xf] %vm1006_vm4, %v911_v44  ;;  %v6635_v45 = vpop.f32.mrb[22].mxu0 }
 0x27c   : > { %2727 = vrot.lane.b32.xlu1 %v17406_v30, %s15960_s30  ;;  %v6768_v63 = vmax.f32 %v6633_v52, 0.0  ;;  %1825 = vrot.lane.b32.xlu0 %v14550_v8, %s15958_s28  ;;  %v6636_v1 = vadd.f32 %v17415_v15, %v6635_v45  ;;  %v15463_v12 = vpop.f32.mrb[23].mxu0  ;;  %v17599_v8 = vpack.c.bf16 %v13699_v14, %v13699_v14  ;;  %598 = vst.msk [vmem:[#allocation2 + $0xa8] sm:$0xf] %vm554_vm0, %v14392_v47  ;;  %v13809_v52 = vld [vmem:[%s16023_s25 + $0x16a] sm:$0xff] }
 0x27d   : > { %v3621_v55 = vpop.permute.xlu1 %3620  ;;  %v17620_v41 = vpack.c.bf16 %v13809_v52, %v13809_v52  ;;  %v651_v52 = vld [vmem:[%s16023_s25 + $0x149] sm:$0x3] }
 0x27e   : > { %v7010_v46 = vcombine.high %v6768_v63, %v6768_v63  ;;  %v7017_v48 = vrot.slane %v6768_v63, %v17020_v61  ;;  %v17559_v6 = vmax.f32 %v6636_v1, 0.0  ;;  %3753 = vst.msk [vmem:[#allocation2 + $0x7c] sm:$0xf] %vm3720_vm10, %v3621_v55  ;;  %v3619_v54 = vpop.permute.xlu0 %3618  ;;  %v17624_v55 = vpack.c.bf16 %v13807_v56, %v13807_v56 }
 0x27f   : > { %3752 = vst.msk [vmem:[#allocation2 + $0x78] sm:$0xf] %vm3720_vm10, %v3619_v54 }
 0x280   : > { %2277 = vrot.lane.b32.xlu1 %v14604_v58, %s15959_s29  ;;  %v7024_v5 = vrot.slane %v7010_v46, %v17020_v61  ;;  %v7025_v43 = vcombine.high %v7017_v48, %v7017_v48  ;;  %v17569_v0 = vrot.slane %v17559_v6, %v17020_v61  ;;  %2731 = vrot.lane.b32.xlu0 %v17474_v22, %s15960_s30 }
 0x281   : > { %v3165_v16 = vpop.permute.xlu1 %3164 }
 0x282   : > { %v7026_v60 = vcombine.high %v7024_v5, %v7024_v5  ;;  %v8011_v26 = vcombine.low %v7017_v48, %v7025_v43  ;;  %3299 = vst.msk [vmem:[#allocation2 + $0x74] sm:$0x1] %vm19362_vm1, %v3165_v16  ;;  %v1363_v25 = vpop.permute.xlu0 %1362  ;;  %v8034_v28 = vrot.slane %v17569_v0, %v17020_v61  ;;  %vm19365_vm1 = vcmp.ge.s32.totalorder %v17052_v39, 0 }
 0x283   : > { %1493 = vst.msk [vmem:[#allocation2 + $0x84] sm:$0xf] %vm1458_vm5, %v1363_v25  ;;  %v8634_v9 = vsel %vm19365_vm1, %v8010_v35, 0.0  ;;  %vm19368_vm1 = vcmask 57344  }
 0x284   : > { %3184 = vrot.lane.b32.xlu1 %v17564_v40, %s15961_s6  ;;  %v8012_v31 = vcombine.low %v7024_v5, %v7026_v60  ;;  %3180 = vrot.lane.b32.xlu0 %v17573_v11, %s15961_s6  ;;  %v8636_v59 = vsel %vm7667_vm13, %v8034_v28, 0.0  ;;  %v8019_v51 = vrot.slane %v8011_v26, %v17020_v61 }
 0x285   : > { %v4073_v33 = vpop.permute.xlu1 %4072  ;;  %v14847_v17 = vpack.c.bf16 %v8636_v59, %v8636_v59  ;;  %v307_v59 = vld [vmem:[%s16023_s25 + $0x148] sm:$0x3] }
 0x286   : > { %v8026_v37 = vrot.slane %v8012_v31, %v17020_v61  ;;  %4205 = vst.msk [vmem:[#allocation2 + $0x7c] sm:$0xf] %vm19363_vm7, %v4073_v33  ;;  %v4071_v36 = vpop.permute.xlu0 %4070  ;;  %vm19366_vm7 = vcmask 322816  }
 0x287   : > { %4204 = vst.msk [vmem:[#allocation2 + $0x78] sm:$0xf] %vm19364_vm3, %v4071_v36  ;;  %8924 = vst [vmem:[#allocation3 + $0x38] sm:$0x1] %v14847_v17  ;;  %vm19367_vm3 = vcmask 188544  }
 0x288   : > { %2729 = vrot.lane.b32.xlu1 %v14658_v7, %s15960_s30  ;;  %v8027_v23 = vcombine.low %v8019_v51, %v8026_v37  ;;  %924 = vrot.lane.b32.xlu0 %v17393_v4, %s15957_s27  ;;  %v14712_v4 = vpack.c.bf16 %v13592_v57, %v13592_v57  ;;  %v14391_v51 = vpack.c.bf16 %v307_v59, %v307_v59  ;;  %v13808_v37 = vld [vmem:[%s16023_s25 + $0x162] sm:$0x3] }
 0x289   : > { %v3617_v27 = vpop.permute.xlu1 %3616 }
 0x28a   : > { %v14892_v50 = vpack.c.bf16 %v8027_v23, %v8634_v9  ;;  %3751 = vst.msk [vmem:[#allocation2 + $0x74] sm:$0x1] %vm3723_vm11, %v3617_v27  ;;  %v1816_v44 = vpop.permute.xlu0 %1815 }
 0x28b   : > { %1946 = vst.msk [vmem:[#allocation2 + $0x84] sm:$0xf] %vm1911_vm6, %v1816_v44 }
 0x28c   : > { %3636 = vrot.lane.b32.xlu1 %v17595_v18, %s15963_s9  ;;  %14925 = vst [vmem:[#allocation3 + $0x30] sm:$0xff] %v14892_v50   ;;  %3632 = vrot.lane.b32.xlu0 %v17599_v8, %s15963_s9  ;;  %597 = vst.msk [vmem:[#allocation2 + $0xa4] sm:$0x1] %vm19368_vm1, %v14391_v51  ;;  %v14820_v50 = vpack.c.bf16 %v13808_v37, %v13808_v37  ;;  %vm19371_vm1 = vcmask 254144  }
 0x28d   : > { %v4069_v53 = vpop.permute.xlu1 %4068  ;;  %v13909_v45 = vld.sshfl [vmem:[#allocation2 + $0x7c] sm:$0x33 pattern:$0x75316420] }
 0x28e   : > { %4203 = vst.msk [vmem:[#allocation2 + $0x74] sm:$0x1] %vm4175_vm9, %v4069_v53  ;;  %v2268_v58 = vpop.permute.xlu0 %2267  ;;  %v13908_v63 = vld.sshfl [vmem:[#allocation2 + $0x78] sm:$0x33 pattern:$0x75316420]  ;;  %v4987_v1 = vcombine.high %v13909_v45, %v13909_v45  ;;  %v17616_v12 = vrot.slane %v13909_v45, %v16292_v19  ;;  %v7027_v53 = vcombine.high %v17559_v6, %v17559_v6 }
 0x28f   : > { %2398 = vst.msk [vmem:[#allocation2 + $0x84] sm:$0xf] %vm19366_vm7, %v2268_v58  ;;  %v4963_v2 = vcombine.high %v13908_v63, %v13908_v63  ;;  %v15644_v48 = vld [vmem:[#allocation3 + $0x38] ss:$0 sps:$4 sm:$0x11]   ;;  %v4970_v54 = vrot.slane %v13908_v63, %v16292_v19  ;;  %vm19369_vm7 = vcmask 454016   ;;  %v14445_v63 = vpack.c.bf16 %v651_v52, %v651_v52 }
 0x290   : > { %3182 = vrot.lane.b32.xlu1 %v14712_v4, %s15961_s6  ;;  %1376 = vrot.lane.b32.xlu0 %v17406_v30, %s15956_s26  ;;  %v17627_v10 = vrot.slane %v4987_v1, %v16292_v19  ;;  %v9341_v26 = vshll.u32 %v15644_v48, 16  ;;  %v1103_v1 = vld [vmem:[%s16023_s25 + $0x14a] sm:$0x3]  ;;  %v7041_v6 = vrot.slane %v7027_v53, %v17020_v61 }
 0x291   : > { %v913_v46 = vpop.permute.xlu1 %912  ;;  %v4977_v49 = vrot.slane %v4963_v2, %v16292_v19 }
 0x292   : > { %1042 = vst.msk [vmem:[#allocation2 + $0x88] sm:$0xf] %vm1006_vm4, %v913_v46  ;;  %v909_v5 = vpop.permute.xlu0 %908  ;;  %v6010_v43 = vcombine.low %v17616_v12, %v17627_v10  ;;  %v9343_v57 = vrot.slane %v9341_v26, 1  ;;  %v7042_v46 = vcombine.high %v17569_v0, %v17569_v0 }
 0x293   : > { %1040 = vst.msk [vmem:[#allocation2 + $0x80] sm:$0x1] %vm1009_vm12, %v909_v5  ;;  %v15643_v30 = vld [vmem:[#allocation3 + $0x30] sm:$0xff]   ;;  %v13943_v29 = vcombine.high %v4970_v54, %v4977_v49  ;;  %v6008_v31 = vcombine.low %v4970_v54, %v4977_v49 }
 0x294   : > { %4088 = vrot.lane.b32.xlu1 %v17620_v41, %s15964_s14  ;;  %4084 = vrot.lane.b32.xlu0 %v17624_v55, %s15964_s14  ;;  %v9336_v60 = vshll.u32 %v15643_v30, 16  ;;  %v6038_v35 = vrot.slane %v6010_v43, %v16292_v19  ;;  %v9334_v33 = vshrl.u32 %v15643_v30, 16  ;;  %v15645_v47 = vld [vmem:[#allocation3 + $0x30] sm:$0xff]   ;;  %v14499_v43 = vpack.c.bf16 %v1103_v1, %v1103_v1  ;;  %v13594_v30 = vld [vmem:[%s16023_s25 + $0x170] sm:$0xff] }
 0x295   : > { %v1361_v16 = vpop.permute.xlu1 %1360  ;;  %v13907_v25 = vld.sshfl [vmem:[#allocation2 + $0x74] sm:$0x1 pattern:$0x75316420]  ;;  %v6031_v32 = vrot.slane %v13943_v29, %v16292_v19  ;;  %v6024_v9 = vrot.slane %v6008_v31, %v16292_v19  ;;  %v8035_v26 = vcombine.low %v7042_v46, %v7041_v6 }
 0x296   : > { %1492 = vst.msk [vmem:[#allocation2 + $0x80] sm:$0x1] %vm19367_vm3, %v1361_v16  ;;  %v2720_v28 = vpop.permute.xlu0 %2719  ;;  %v4955_v7 = vrot.slane %v13907_v25, %v16292_v19  ;;  %v9338_v14 = vrot.slane %v9336_v60, 1  ;;  %vm19370_vm3 = vsmask.f32 7424 }
 0x297   : > { %2850 = vst.msk [vmem:[#allocation2 + $0x84] sm:$0xf] %vm2815_vm8, %v2720_v28  ;;  %v6040_v27 = vcombine.low %v6031_v32, %v6038_v35 }
 0x298   : > { %1829 = vrot.lane.b32.xlu1 %v17573_v11, %s15958_s28  ;;  %928 = vrot.lane.b32.xlu0 %v17462_v3, %s15957_s27  ;;  %v6007_v17 = vcombine.low %v4941_v38, %v4955_v7  ;;  %v9339_v23 = vor.u32 %v9338_v14, %v9334_v33  ;;  %v17688_v38 = vpack.c.bf16 %v13594_v30, %v13594_v30  ;;  %v13271_v33 = vld [vmem:[%s16023_s25 + $0x160] sm:$0x3]  ;;  %v13487_v30 = vld [vmem:[%s16023_s25 + $0x162] sm:$0x3] }
 0x299   : > { %v3173_v36 = vpop.permute.xlu1 %3172  ;;  %v6054_v45 = vrot.slane %v6040_v27, %v16292_v19 }
 0x29a   : > { %3303 = vst.msk [vmem:[#allocation2 + $0x84] sm:$0xf] %vm19369_vm7, %v3173_v36  ;;  %v1365_v42 = vpop.permute.xlu0 %1364  ;;  %v6017_v11 = vrot.slane %v6007_v17, %v16292_v19  ;;  %v9344_v3 = vsel %vm19370_vm3, %v9339_v23, %v9343_v57  ;;  %vm19372_vm7 = vcmask 585216   ;;  %vm19373_vm3 = vcmask 322816  }
 0x29b   : > { %1494 = vst.msk [vmem:[#allocation2 + $0x88] sm:$0xf] %vm1458_vm5, %v1365_v42  ;;  %12159 = vmatprep.mubr.bf16.mxu1 %v9344_v3  ;;  %v14553_v57 = vpack.c.bf16 %v13271_v33, %v13271_v33  ;;  %v13379_v42 = vld [vmem:[%s16023_s25 + $0x161] sm:$0x3]  ;;  %v13702_v3 = vld [vmem:[%s16023_s25 + $0x171] sm:$0xff] }
 0x29c   : > { %1380 = vrot.lane.b32.xlu1 %v17474_v22, %s15956_s26  ;;  %3634 = vrot.lane.b32.xlu0 %v14766_v20, %s15963_s9  ;;  %v6039_v44 = vcombine.low %v6017_v11, %v6024_v9  ;;  %v8043_v20 = vrot.slane %v8035_v26, %v17020_v61  ;;  %v14607_v53 = vpack.c.bf16 %v13379_v42, %v13379_v42  ;;  %v13703_v33 = vld [vmem:[%s16023_s25 + $0x179] sm:$0x3]  ;;  %v311_v42 = vld [vmem:[%s16023_s25 + $0x168] sm:$0xff] }
 0x29d   : > { %12160 = vmatmul.mubr.bf16.gmra.mrb[16].mxu1 %v15645_v47  ;;  %v14661_v26 = vpack.c.bf16 %v13487_v30, %v13487_v30 }
 0x29e   : > { %v1818_v4 = vpop.permute.xlu1 %1817  ;;  %v1814_v56 = vpop.permute.xlu0 %1813  ;;  %v6047_v22 = vrot.slane %v6039_v44, %v16292_v19 }
 0x29f   : > { %1947 = vst.msk [vmem:[#allocation2 + $0x88] sm:$0xf] %vm1911_vm6, %v1818_v4 }
 0x2a0   : > { %1945 = vst.msk [vmem:[#allocation2 + $0x80] sm:$0x1] %vm19371_vm1, %v1814_v56  ;;  %4086 = vrot.lane.b32.xlu1 %v14820_v50, %s15964_s14  ;;  %2281 = vrot.lane.b32.xlu0 %v17599_v8, %s15959_s29  ;;  %v6055_v58 = vcombine.low %v6047_v22, %v6054_v45  ;;  %vm19374_vm1 = vcmask 385344   ;;  %v17723_v45 = vpack.c.bf16 %v13702_v3, %v13702_v3 }
 0x2a1   : > { %v6640_v54 = vpop.f32.mrb[24].mxu0 }
 0x2a2   : > { %v2266_v2 = vpop.permute.xlu1 %2265  ;;  %v3625_v48 = vpop.permute.xlu0 %3624  ;;  %15485 = vmatmul.mubr.msk.bf16.gmra.mrb[44].mxu0 %vm6490_vm14, %v6055_v58  ;;  %v6641_v49 = vadd.f32 %v17415_v15, %v6640_v54  ;;  %v13810_v58 = vld [vmem:[%s16023_s25 + $0x172] sm:$0xff] }
 0x2a3   : > { %2397 = vst.msk [vmem:[#allocation2 + $0x80] sm:$0x1] %vm2366_vm2, %v2266_v2  ;;  %v15466_v5 = vpop.f32.mrb[25].mxu0  ;;  %15488 = vmatprep.mubr.msk.bf16.mxu0 %vm19281_vm15, %v15962_v34  ;;  %v17730_v54 = vpack.c.bf16 %v13810_v58, %v13810_v58 }
 0x2a4   : > { %3755 = vst.msk [vmem:[#allocation2 + $0x84] sm:$0xf] %vm3720_vm10, %v3625_v48  ;;  %1833 = vrot.lane.b32.xlu1 %v17564_v40, %s15958_s28  ;;  %926 = vrot.lane.b32.xlu0 %v14445_v63, %s15957_s27  ;;  %v6643_v0 = vpop.f32.mrb[26].mxu0  ;;  %v6770_v29 = vmax.f32 %v6641_v49, 0.0  ;;  %v7043_v40 = vcombine.high %v7041_v6, %v7041_v6  ;;  %v13596_v6 = vld [vmem:[%s16023_s25 + $0x180] sm:$0xff] }
 0x2a5   : > { %v6644_v13 = vadd.f32 %v17415_v15, %v6643_v0  ;;  %v15467_v16 = vpop.f32.mrb[27].mxu0  ;;  %v17734_v49 = vpack.c.bf16 %v13596_v6, %v13596_v6  ;;  %v13704_v5 = vld [vmem:[%s16023_s25 + $0x181] sm:$0xff] }
 0x2a6   : > { %v4077_v60 = vpop.permute.xlu1 %4076  ;;  %v2270_v25 = vpop.permute.xlu0 %2269  ;;  %v7044_v28 = vcombine.high %v6770_v29, %v6770_v29  ;;  %v7051_v7 = vrot.slane %v6770_v29, %v17020_v61  ;;  %v17743_v16 = vpack.c.bf16 %v13704_v5, %v13704_v5  ;;  %v13944_v5 = vcombine.high %v17616_v12, %v17627_v10 }
 0x2a7   : > { %4207 = vst.msk [vmem:[#allocation2 + $0x84] sm:$0xf] %vm19372_vm7, %v4077_v60  ;;  %v17691_v31 = vmax.f32 %v6644_v13, 0.0  ;;  %vm19375_vm7 = vcmask 454016   ;;  %v309_v13 = vld [vmem:[%s16023_s25 + $0x158] sm:$0xff] }
 0x2a8   : > { %2399 = vst.msk [vmem:[#allocation2 + $0x88] sm:$0xf] %vm19373_vm3, %v2270_v25  ;;  %1378 = vrot.lane.b32.xlu1 %v14499_v43, %s15956_s26  ;;  %2733 = vrot.lane.b32.xlu0 %v17624_v55, %s15960_s30  ;;  %v7058_v15 = vrot.slane %v7044_v28, %v17020_v61  ;;  %v7059_v32 = vcombine.high %v7051_v7, %v7051_v7  ;;  %vm19376_vm3 = vcmp.ge.s32.totalorder %v17052_v39, 0  ;;  %v13812_v25 = vld [vmem:[%s16023_s25 + $0x182] sm:$0xff] }
 0x2a9   : > { %v8036_v35 = vcombine.low %v7043_v40, %v7051_v7  ;;  %v7068_v14 = vrot.slane %v17691_v31, %v17020_v61  ;;  %v14393_v60 = vpack.c.bf16 %v309_v13, %v309_v13  ;;  %v13595_v40 = vld [vmem:[%s16023_s25 + $0x178] sm:$0x3] }
 0x2aa   : > { %v2722_v59 = vpop.permute.xlu1 %2721  ;;  %v2718_v51 = vpop.permute.xlu0 %2717  ;;  %v8052_v17 = vcombine.low %v7059_v32, %v7058_v15  ;;  %v7060_v36 = vcombine.high %v7058_v15, %v7058_v15 }
 0x2ab   : > { %2851 = vst.msk [vmem:[#allocation2 + $0x88] sm:$0xf] %vm2815_vm8, %v2722_v59  ;;  %v8050_v37 = vrot.slane %v8036_v35, %v17020_v61  ;;  %v7076_v23 = vcombine.high %v7068_v14, %v7068_v14  ;;  %v17755_v59 = vpack.c.bf16 %v13812_v25, %v13812_v25 }
 0x2ac   : > { %2849 = vst.msk [vmem:[#allocation2 + $0x80] sm:$0x1] %vm19374_vm1, %v2718_v51  ;;  %3186 = vrot.lane.b32.xlu1 %v17688_v38, %s15961_s6  ;;  %2285 = vrot.lane.b32.xlu0 %v17595_v18, %s15959_s29  ;;  %v8053_v9 = vcombine.low %v7060_v36, %v7068_v14  ;;  %v8060_v44 = vrot.slane %v8052_v17, %v17020_v61  ;;  %vm19377_vm1 = vcmask 450944  }
 0x2ad   : > { %v8051_v11 = vcombine.low %v8043_v20, %v8050_v37  ;;  %v8075_v47 = vrot.slane %v7076_v23, %v17020_v61  ;;  %599 = vst.msk [vmem:[#allocation2 + $0xac] sm:$0xf] %vm554_vm0, %v14393_v60  ;;  %v14715_v14 = vpack.c.bf16 %v13595_v40, %v13595_v40 }
 0x2ae   : > { %v3175_v27 = vpop.permute.xlu1 %3174  ;;  %v3171_v50 = vpop.permute.xlu0 %3170  ;;  %v8067_v52 = vrot.slane %v8053_v9, %v17020_v61  ;;  %v13911_v29 = vld.sshfl [vmem:[#allocation2 + $0x84] sm:$0x33 pattern:$0x75316420]  ;;  %v14769_v9 = vpack.c.bf16 %v13703_v33, %v13703_v33 }
 0x2af   : > { %3304 = vst.msk [vmem:[#allocation2 + $0x88] sm:$0xf] %vm19375_vm7, %v3175_v27  ;;  %v8637_v4 = vsel %vm19376_vm3, %v8051_v11, 0.0  ;;  %v8639_v22 = vsel %vm7667_vm13, %v8075_v47, 0.0  ;;  %v5025_v7 = vcombine.high %v13911_v29, %v13911_v29  ;;  %vm19378_vm7 = vcmask 585216  }
 0x2b0   : > { %3302 = vst.msk [vmem:[#allocation2 + $0x80] sm:$0x1] %vm19377_vm1, %v3171_v50  ;;  %2737 = vrot.lane.b32.xlu1 %v17620_v41, %s15960_s30  ;;  %v14848_v56 = vpack.c.bf16 %v8637_v4, %v8637_v4  ;;  %1831 = vrot.lane.b32.xlu0 %v14553_v57, %s15958_s28  ;;  %v8068_v63 = vcombine.low %v8060_v44, %v8067_v52  ;;  %v310_v11 = vld [vmem:[%s16023_s25 + $0x160] sm:$0x3]  ;;  %v13811_v44 = vld [vmem:[%s16023_s25 + $0x17a] sm:$0x3] }
 0x2b1   : > { %v14850_v1 = vpack.c.bf16 %v8639_v22, %v8639_v22  ;;  %v5032_v35 = vrot.slane %v13911_v29, %v16292_v19  ;;  %v5039_v37 = vrot.slane %v5025_v7, %v16292_v19  ;;  %v14395_v27 = vpack.c.bf16 %v311_v42, %v311_v42  ;;  %v654_v29 = vld [vmem:[%s16023_s25 + $0x161] sm:$0x3] }
 0x2b2   : > { %v3623_v2 = vpop.permute.xlu1 %3622  ;;  %8925 = vst [vmem:[#allocation3 + $0x3c] sm:$0xf] %v14848_v56  ;;  %v917_v46 = vpop.permute.xlu0 %916  ;;  %v14849_v48 = vpack.c.bf16 %v8068_v63, %v8068_v63  ;;  %v14394_v3 = vpack.c.bf16 %v310_v11, %v310_v11  ;;  %vm19379_vm3 = vcmask 57344   ;;  %vm19380_vm1 = vcmask 322816  }
 0x2b3   : > { %3754 = vst.msk [vmem:[#allocation2 + $0x80] sm:$0x1] %vm3723_vm11, %v3623_v2  ;;  %8927 = vst [vmem:[#allocation3 + $0x44] sm:$0x1] %v14850_v1  ;;  %v5040_v57 = vcombine.high %v5032_v35, %v5032_v35  ;;  %v14448_v25 = vpack.c.bf16 %v654_v29, %v654_v29 }
 0x2b4   : > { %1044 = vst.msk [vmem:[#allocation2 + $0x90] sm:$0xf] %vm1006_vm4, %v917_v46  ;;  %2283 = vrot.lane.b32.xlu1 %v14607_v53, %s15959_s29  ;;  %3638 = vrot.lane.b32.xlu0 %v17723_v45, %s15963_s9  ;;  %8926 = vst [vmem:[#allocation3 + $0x40] sm:$0xf] %v14849_v48  ;;  %v5041_v53 = vcombine.high %v5039_v37, %v5039_v37  ;;  %v14823_v46 = vpack.c.bf16 %v13811_v44, %v13811_v44 }
 0x2b5   : > { %601 = vst.msk [vmem:[#allocation2 + $0xb4] sm:$0xf] %vm554_vm0, %v14395_v27  ;;  %v6058_v2 = vcombine.low %v5039_v37, %v5040_v57  ;;  %v17829_v27 = vld [vmem:[%s19265_s2] ss:$0 sm:$0xff] }
 0x2b6   : > { %v1369_v43 = vpop.permute.xlu1 %1368  ;;  %v3627_v0 = vpop.permute.xlu0 %3626  ;;  %600 = vst.msk [vmem:[#allocation2 + $0xb0] sm:$0x1] %vm19379_vm3, %v14394_v3  ;;  %vm19382_vm3 = vsmask.f32 7424 }
 0x2b7   : > { %1496 = vst.msk [vmem:[#allocation2 + $0x90] sm:$0xf] %vm1458_vm5, %v1369_v43 }
 0x2b8   : > { %3756 = vst.msk [vmem:[#allocation2 + $0x88] sm:$0xf] %vm3720_vm10, %v3627_v0  ;;  %4090 = vrot.lane.b32.xlu1 %v17730_v54, %s15964_s14  ;;  %3190 = vrot.lane.b32.xlu0 %v17734_v49, %s15961_s6 }
 0x2ba   : > { %v4079_v28 = vpop.permute.xlu1 %4078  ;;  %v4075_v15 = vpop.permute.xlu0 %4074  ;;  %v15647_v32 = vld [vmem:[#allocation3 + $0x44] ss:$0 sps:$4 sm:$0x11]  }
 0x2bb   : > { %4208 = vst.msk [vmem:[#allocation2 + $0x88] sm:$0xf] %vm19378_vm7, %v4079_v28  ;;  %v15646_v51 = vld [vmem:[#allocation3 + $0x3c] sm:$0xff]   ;;  %v9353_v23 = vshll.u32 %v15647_v32, 16  ;;  %vm19381_vm7 = vcmask 188544  }
 0x2bc   : > { %4206 = vst.msk [vmem:[#allocation2 + $0x80] sm:$0x1] %vm4175_vm9, %v4075_v15  ;;  %3642 = vrot.lane.b32.xlu1 %v17743_v16, %s15963_s9  ;;  %2735 = vrot.lane.b32.xlu0 %v14661_v26, %s15960_s30  ;;  %v9348_v36 = vshll.u32 %v15646_v51, 16  ;;  %v9346_v47 = vshrl.u32 %v15646_v51, 16  ;;  %v15648_v6 = vld [vmem:[#allocation3 + $0x3c] sm:$0xff]   ;;  %v6080_v26 = vrot.slane %v6058_v2, %v16292_v19 }
 0x2bd   : > { %v9355_v58 = vrot.slane %v9353_v23, 1  ;;  %v1106_v28 = vld [vmem:[%s16023_s25 + $0x162] sm:$0x3] }
 0x2be   : > { %v1822_v20 = vpop.permute.xlu1 %1821  ;;  %v915_v17 = vpop.permute.xlu0 %914  ;;  %v9350_v50 = vrot.slane %v9348_v36, 1 }
 0x2bf   : > { %1949 = vst.msk [vmem:[#allocation2 + $0x90] sm:$0xf] %vm1911_vm6, %v1822_v20 }
 0x2c0   : > { %1043 = vst.msk [vmem:[#allocation2 + $0x8c] sm:$0x1] %vm1009_vm12, %v915_v17  ;;  %4094 = vrot.lane.b32.xlu1 %v17755_v59, %s15964_s14  ;;  %3188 = vrot.lane.b32.xlu0 %v14715_v14, %s15961_s6  ;;  %v9351_v22 = vor.u32 %v9350_v50, %v9346_v47  ;;  %v14502_v14 = vpack.c.bf16 %v1106_v28, %v1106_v28  ;;  %v13274_v17 = vld [vmem:[%s16023_s25 + $0x178] sm:$0x3] }
 0x2c2   : > { %v2274_v4 = vpop.permute.xlu1 %2273  ;;  %v17768_v52 = vld.sshfl [vmem:[#allocation2 + $0x88] sm:$0x33 pattern:$0x75316420]  ;;  %v1367_v56 = vpop.permute.xlu0 %1366  ;;  %v9356_v43 = vsel %vm19382_vm3, %v9351_v22, %v9355_v58  ;;  %vm19385_vm3 = vcmask 385344  }
 0x2c3   : > { %2401 = vst.msk [vmem:[#allocation2 + $0x90] sm:$0xf] %vm19380_vm1, %v2274_v4  ;;  %v13910_v63 = vld.sshfl [vmem:[#allocation2 + $0x80] sm:$0x1 pattern:$0x75316420]  ;;  %v17775_v1 = vrot.slane %v17768_v52, %v16292_v19  ;;  %12167 = vmatprep.mubr.bf16.mxu1 %v9356_v43  ;;  %v5049_v29 = vcombine.high %v17768_v52, %v17768_v52 }
 0x2c4   : > { %1495 = vst.msk [vmem:[#allocation2 + $0x8c] sm:$0x1] %vm19381_vm7, %v1367_v56  ;;  %3640 = vrot.lane.b32.xlu1 %v14769_v9, %s15963_s9  ;;  %v5017_v48 = vrot.slane %v13910_v63, %v16292_v19  ;;  %930 = vrot.lane.b32.xlu0 %v17599_v8, %s15957_s27  ;;  %vm19383_vm1 = vcmask 254144   ;;  %v6066_v8 = vrot.slane %v13944_v5, %v16292_v19  ;;  %vm19384_vm7 = vcmask 454016   ;;  %v312_v9 = vld [vmem:[%s16023_s25 + $0x170] sm:$0xff] }
 0x2c5   : > { %v6059_v30 = vcombine.low %v5041_v53, %v17775_v1  ;;  %12168 = vmatmul.mubr.bf16.gmra.mrb[20].mxu1 %v15648_v6  ;;  %v14396_v50 = vpack.c.bf16 %v312_v9, %v312_v9  ;;  %v13597_v53 = vld [vmem:[%s16023_s25 + $0x188] sm:$0xff] }
 0x2c6   : > { %v2726_v0 = vpop.permute.xlu1 %2725  ;;  %v6057_v13 = vcombine.low %v5017_v48, %v5032_v35  ;;  %v1820_v60 = vpop.permute.xlu0 %1819  ;;  %v17842_v43 = vpack.c.bf16 %v13597_v53, %v13597_v53 }
 0x2c7   : > { %2853 = vst.msk [vmem:[#allocation2 + $0x90] sm:$0xf] %vm2815_vm8, %v2726_v0  ;;  %v6087_v12 = vrot.slane %v6059_v30, %v16292_v19  ;;  %v13490_v30 = vld [vmem:[%s16023_s25 + $0x17a] sm:$0x3] }
 0x2c8   : > { %1948 = vst.msk [vmem:[#allocation2 + $0x8c] sm:$0x1] %vm19383_vm1, %v1820_v60  ;;  %4092 = vrot.lane.b32.xlu1 %v14823_v46, %s15964_s14  ;;  %v6073_v10 = vrot.slane %v6057_v13, %v16292_v19  ;;  %1382 = vrot.lane.b32.xlu0 %v17624_v55, %s15956_s26  ;;  %vm19386_vm1 = vcmask 585216  }
 0x2c9   : > { %v6089_v40 = vcombine.low %v6080_v26, %v6087_v12  ;;  %602 = vst.msk [vmem:[#allocation2 + $0xb8] sm:$0xf] %vm554_vm0, %v14396_v50 }
 0x2ca   : > { %v3179_v7 = vpop.permute.xlu1 %3178  ;;  %v6088_v15 = vcombine.low %v6066_v8, %v6073_v10  ;;  %v2272_v32 = vpop.permute.xlu0 %2271 }
 0x2cb   : > { %3306 = vst.msk [vmem:[#allocation2 + $0x90] sm:$0xf] %vm19384_vm7, %v3179_v7  ;;  %v6103_v35 = vrot.slane %v6089_v40, %v16292_v19  ;;  %vm19387_vm7 = vcmask 450944  }
 0x2cc   : > { %2400 = vst.msk [vmem:[#allocation2 + $0x8c] sm:$0x1] %vm2366_vm2, %v2272_v32  ;;  %934 = vrot.lane.b32.xlu1 %v17595_v18, %s15957_s27  ;;  %v6096_v33 = vrot.slane %v6088_v15, %v16292_v19  ;;  %932 = vrot.lane.b32.xlu0 %v14448_v25, %s15957_s27  ;;  %v7061_v18 = vcombine.high %v17691_v31, %v17691_v31  ;;  %v13382_v31 = vld [vmem:[%s16023_s25 + $0x179] sm:$0x3] }
 0x2cd   : > { %v14664_v25 = vpack.c.bf16 %v13490_v30, %v13490_v30  ;;  %v13599_v30 = vld [vmem:[%s16023_s25 + $0x198] sm:$0xff] }
 0x2ce   : > { %v3631_v55 = vpop.permute.xlu1 %3630  ;;  %v6104_v51 = vcombine.low %v6096_v33, %v6103_v35  ;;  %v2724_v20 = vpop.permute.xlu0 %2723  ;;  %v7075_v23 = vrot.slane %v7061_v18, %v17020_v61  ;;  %v13705_v35 = vld [vmem:[%s16023_s25 + $0x189] sm:$0xff] }
 0x2cf   : > { %3758 = vst.msk [vmem:[#allocation2 + $0x90] sm:$0xf] %vm3720_vm10, %v3631_v55 }
 0x2d0   : > { %2852 = vst.msk [vmem:[#allocation2 + $0x8c] sm:$0x1] %vm19385_vm3, %v2724_v20  ;;  %15489 = vmatmul.mubr.msk.bf16.gmra.mrb[48].mxu0 %vm6490_vm14, %v6104_v51  ;;  %1384 = vrot.lane.b32.xlu1 %v14502_v14, %s15956_s26  ;;  %v7077_v44 = vcombine.high %v7075_v23, %v7075_v23  ;;  %v5063_v14 = vrot.slane %v5049_v29, %v16292_v19  ;;  %vm19388_vm3 = vcmp.ge.s32.totalorder %v17052_v39, 0 }
 0x2d1   : > { %1835 = vrot.lane.b32.xlu0 %v17688_v38, %s15958_s28  ;;  %15492 = vmatprep.mubr.msk.bf16.mxu0 %vm19281_vm15, %v15962_v34  ;;  %v14556_v38 = vpack.c.bf16 %v13274_v17, %v13274_v17 }
 0x2d2   : > { %v4083_v37 = vpop.permute.xlu1 %4082  ;;  %v3177_v36 = vpop.permute.xlu0 %3176  ;;  %v8076_v0 = vcombine.low %v7075_v23, %v7077_v44  ;;  %v5064_v23 = vcombine.high %v17775_v1, %v17775_v1 }
 0x2d3   : > { %4210 = vst.msk [vmem:[#allocation2 + $0x90] sm:$0xf] %vm19386_vm1, %v4083_v37  ;;  %vm19389_vm1 = vcmask 188544  }
 0x2d4   : > { %3305 = vst.msk [vmem:[#allocation2 + $0x8c] sm:$0x1] %vm19387_vm7, %v3177_v36  ;;  %2287 = vrot.lane.b32.xlu1 %v17723_v45, %s15959_s29  ;;  %v8084_v33 = vrot.slane %v8076_v0, %v17020_v61  ;;  %v17869_v36 = vpack.c.bf16 %v13705_v35, %v13705_v35  ;;  %vm19390_vm7 = vcmask 322816  }
 0x2d5   : > { %1386 = vrot.lane.b32.xlu0 %v17620_v41, %s15956_s26  ;;  %v14610_v41 = vpack.c.bf16 %v13382_v31, %v13382_v31 }
 0x2d6   : > { %v923_v57 = vpop.permute.xlu1 %922  ;;  %v919_v42 = vpop.permute.xlu0 %918 }
 0x2d7   : > { %1047 = vst.msk [vmem:[#allocation2 + $0x9c] sm:$0xf] %vm1006_vm4, %v923_v57  ;;  %v6648_v11 = vpop.f32.mrb[28].mxu0  ;;  %1045 = vst.msk [vmem:[#allocation2 + $0x94] sm:$0xf] %vm1006_vm4, %v919_v42 }
 0x2d8   : > { %v6649_v3 = vadd.f32 %v17829_v27, %v6648_v11  ;;  %v15470_v47 = vpop.f32.mrb[29].mxu0  ;;  %1839 = vrot.lane.b32.xlu1 %v17734_v49, %s15958_s28 }
 0x2d9   : > { %1837 = vrot.lane.b32.xlu0 %v14556_v38, %s15958_s28  ;;  %v6651_v4 = vpop.f32.mrb[30].mxu0  ;;  %v13598_v47 = vld [vmem:[%s16023_s25 + $0x190] sm:$0x3] }
 0x2da   : > { %v6772_v56 = vmax.f32 %v6649_v3, 0.0  ;;  %v6652_v22 = vadd.f32 %v17829_v27, %v6651_v4  ;;  %v15471_v58 = vpop.f32.mrb[31].mxu0  ;;  %v1371_v63 = vpop.permute.xlu1 %1370  ;;  %v13914_v2 = vld.sshfl [vmem:[#allocation2 + $0x90] sm:$0x33 pattern:$0x75316420]  ;;  %v5065_v4 = vcombine.high %v5063_v14, %v5063_v14 }
 0x2db   : > { %1497 = vst.msk [vmem:[#allocation2 + $0x94] sm:$0xf] %vm1458_vm5, %v1371_v63  ;;  %v3629_v6 = vpop.permute.xlu0 %3628  ;;  %v5087_v49 = vcombine.high %v13914_v2, %v13914_v2  ;;  %v5094_v40 = vrot.slane %v13914_v2, %v16292_v19  ;;  %v14718_v2 = vpack.c.bf16 %v13598_v47, %v13598_v47 }
 0x2dc   : > { %v7078_v46 = vcombine.high %v6772_v56, %v6772_v56  ;;  %v7085_v48 = vrot.slane %v6772_v56, %v17020_v61  ;;  %v6773_v5 = vmax.f32 %v6652_v22, 0.0  ;;  %3757 = vst.msk [vmem:[#allocation2 + $0x8c] sm:$0x1] %vm3723_vm11, %v3629_v6  ;;  %2289 = vrot.lane.b32.xlu1 %v14610_v41, %s15959_s29  ;;  %v6105_v22 = vcombine.low %v5063_v14, %v5064_v23 }
 0x2dd   : > { %2739 = vrot.lane.b32.xlu0 %v17730_v54, %s15960_s30  ;;  %v5101_v28 = vrot.slane %v5087_v49, %v16292_v19  ;;  %v13813_v49 = vld [vmem:[%s16023_s25 + $0x18a] sm:$0xff] }
 0x2de   : > { %v7092_v13 = vrot.slane %v7078_v46, %v17020_v61  ;;  %v7093_v60 = vcombine.high %v7085_v48, %v7085_v48  ;;  %v7095_v26 = vcombine.high %v6773_v5, %v6773_v5  ;;  %v7102_v12 = vrot.slane %v6773_v5, %v17020_v61  ;;  %v4081_v8 = vpop.permute.xlu1 %4080 }
 0x2df   : > { %4209 = vst.msk [vmem:[#allocation2 + $0x8c] sm:$0x1] %vm4175_vm9, %v4081_v8  ;;  %v1375_v10 = vpop.permute.xlu0 %1374  ;;  %v6107_v38 = vcombine.low %v5094_v40, %v5101_v28  ;;  %v13945_v31 = vcombine.high %v5094_v40, %v5101_v28  ;;  %v17908_v40 = vpack.c.bf16 %v13599_v30, %v13599_v30 }
 0x2e0   : > { %v7094_v7 = vcombine.high %v7092_v13, %v7092_v13  ;;  %v8077_v15 = vcombine.low %v7085_v48, %v7093_v60  ;;  %v17855_v52 = vrot.slane %v7095_v26, %v17020_v61  ;;  %v7110_v32 = vcombine.high %v7102_v12, %v7102_v12  ;;  %1499 = vst.msk [vmem:[#allocation2 + $0x9c] sm:$0xf] %vm1458_vm5, %v1375_v10 }
 0x2e1   : > { %3192 = vrot.lane.b32.xlu1 %v17842_v43, %s15961_s6  ;;  %2291 = vrot.lane.b32.xlu0 %v17743_v16, %s15959_s29  ;;  %v6129_v58 = vrot.slane %v6107_v38, %v16292_v19  ;;  %v6115_v60 = vrot.slane %v6105_v22, %v16292_v19  ;;  %v17902_v10 = vpack.c.bf16 %v13813_v49, %v13813_v49  ;;  %v313_v38 = vld [vmem:[%s16023_s25 + $0x178] sm:$0x3] }
 0x2e2   : > { %v8091_v55 = vrot.slane %v8077_v15, %v17020_v61  ;;  %v8093_v51 = vcombine.low %v7092_v13, %v7094_v7  ;;  %v8094_v20 = vcombine.low %v7102_v12, %v7110_v32  ;;  %v8116_v18 = vrot.slane %v17855_v52, %v17020_v61  ;;  %v1824_v37 = vpop.permute.xlu1 %1823  ;;  %v13706_v7 = vld [vmem:[%s16023_s25 + $0x191] sm:$0x3] }
 0x2e3   : > { %1950 = vst.msk [vmem:[#allocation2 + $0x94] sm:$0xf] %vm1911_vm6, %v1824_v37  ;;  %v921_v17 = vpop.permute.xlu0 %920 }
 0x2e4   : > { %v8092_v57 = vcombine.low %v8084_v33, %v8091_v55  ;;  %v8101_v42 = vrot.slane %v8093_v51, %v17020_v61  ;;  %v8108_v11 = vrot.slane %v8094_v20, %v17020_v61  ;;  %v8642_v9 = vsel %vm7667_vm13, %v8116_v18, 0.0  ;;  %1046 = vst.msk [vmem:[#allocation2 + $0x98] sm:$0x1] %vm1009_vm12, %v921_v17  ;;  %v13707_v18 = vld [vmem:[%s16023_s25 + $0x199] sm:$0xff] }
 0x2e5   : > { %2741 = vrot.lane.b32.xlu1 %v14664_v25, %s15960_s30  ;;  %v14853_v3 = vpack.c.bf16 %v8642_v9, %v8642_v9  ;;  %936 = vrot.lane.b32.xlu0 %v17723_v45, %s15957_s27  ;;  %v6136_v45 = vrot.slane %v13945_v31, %v16292_v19  ;;  %v14397_v31 = vpack.c.bf16 %v313_v38, %v313_v38  ;;  %v13815_v9 = vld [vmem:[%s16023_s25 + $0x19a] sm:$0xff] }
 0x2e6   : > { %v8640_v1 = vsel %vm19388_vm3, %v8092_v57, 0.0  ;;  %v8109_v41 = vcombine.low %v8101_v42, %v8108_v11  ;;  %v1373_v50 = vpop.permute.xlu1 %1372  ;;  %v13913_v44 = vld.sshfl [vmem:[#allocation2 + $0x8c] sm:$0x1 pattern:$0x75316420]  ;;  %vm19391_vm3 = vmmov %vm19390_vm7  ;;  %v17929_v57 = vpack.c.bf16 %v13707_v18, %v13707_v18  ;;  %v17940_v22 = vpack.c.bf16 %v13815_v9, %v13815_v9  ;;  %v13708_v38 = vld [vmem:[%s16023_s25 + $0x1a1] sm:$0xff] }
 0x2e7   : > { %8930 = vst [vmem:[#allocation3 + $0x50] sm:$0x1] %v14853_v3  ;;  %1498 = vst.msk [vmem:[#allocation2 + $0x98] sm:$0x1] %vm19389_vm1, %v1373_v50  ;;  %v1828_v53 = vpop.permute.xlu0 %1827  ;;  %v5079_v56 = vrot.slane %v13913_v44, %v16292_v19  ;;  %v14980_v6 = vpop.f32.mrb[4].mxu1  ;;  %v6138_v12 = vcombine.low %v6129_v58, %v6136_v45  ;;  %vm19392_vm1 = vcmask 254144  }
 0x2e8   : > { %v14897_v63 = vpack.c.bf16 %v8109_v41, %v8640_v1  ;;  %1952 = vst.msk [vmem:[#allocation2 + $0x9c] sm:$0xf] %vm1911_vm6, %v1828_v53  ;;  %v14981_v5 = vpop.f32.mrb[5].mxu1  ;;  %v13814_v3 = vld [vmem:[%s16023_s25 + $0x192] sm:$0x3] }
 0x2e9   : > { %3644 = vrot.lane.b32.xlu1 %v17869_v36, %s15963_s9  ;;  %2743 = vrot.lane.b32.xlu0 %v17755_v59, %s15960_s30  ;;  %v6106_v46 = vcombine.low %v5065_v4, %v5079_v56  ;;  %v17896_v29 = vadd.f32 %v14981_v5, %v14980_v6  ;;  %v14983_v13 = vpop.f32.mrb[6].mxu1  ;;  %v6152_v33 = vrot.slane %v6138_v12, %v16292_v19  ;;  %v657_v56 = vld [vmem:[%s16023_s25 + $0x179] sm:$0x3] }
 0x2ea   : > { %14926 = vst [vmem:[#allocation3 + $0x48] sm:$0xff] %v14897_v63   ;;  %v2280_v48 = vpop.permute.xlu1 %2279  ;;  %v14984_v8 = vpop.f32.mrb[7].mxu1  ;;  %v14826_v49 = vpack.c.bf16 %v13814_v3, %v13814_v3 }
 0x2eb   : > { %2404 = vst.msk [vmem:[#allocation2 + $0x9c] sm:$0xf] %vm19390_vm7, %v2280_v48  ;;  %v2276_v0 = vpop.permute.xlu0 %2275  ;;  %v6122_v26 = vrot.slane %v6106_v46, %v16292_v19  ;;  %v17906_v25 = vadd.f32 %v14984_v8, %v14983_v13  ;;  %vm19393_vm7 = vcmask 57344   ;;  %v7111_v48 = vcombine.high %v17855_v52, %v17855_v52 }
 0x2ec   : > { %2402 = vst.msk [vmem:[#allocation2 + $0x94] sm:$0xf] %vm19391_vm3, %v2276_v0  ;;  %vm19394_vm3 = vcmask 454016  }
 0x2ed   : > { %3194 = vrot.lane.b32.xlu1 %v14718_v2, %s15961_s6  ;;  %1388 = vrot.lane.b32.xlu0 %v17730_v54, %s15956_s26  ;;  %v6137_v28 = vcombine.low %v6115_v60, %v6122_v26  ;;  %v14772_v54 = vpack.c.bf16 %v13706_v7, %v13706_v7  ;;  %603 = vst.msk [vmem:[#allocation2 + $0xbc] sm:$0x1] %vm19393_vm7, %v14397_v31  ;;  %vm19396_vm7 = vsmask.f32 7424  ;;  %v13600_v26 = vld [vmem:[%s16023_s25 + $0x1a0] sm:$0xff] }
 0x2ee   : > { %v2728_v15 = vpop.permute.xlu1 %2727  ;;  %v15650_v14 = vld [vmem:[#allocation3 + $0x50] ss:$0 sps:$4 sm:$0x11]   ;;  %v14451_v60 = vpack.c.bf16 %v657_v56, %v657_v56  ;;  %v1109_v7 = vld [vmem:[%s16023_s25 + $0x17a] sm:$0x3] }
 0x2ef   : > { %2854 = vst.msk [vmem:[#allocation2 + $0x94] sm:$0xf] %vm2815_vm8, %v2728_v15  ;;  %v1826_v32 = vpop.permute.xlu0 %1825  ;;  %v6145_v35 = vrot.slane %v6137_v28, %v16292_v19  ;;  %v9365_v23 = vshll.u32 %v15650_v14, 16  ;;  %v13816_v56 = vld [vmem:[%s16023_s25 + $0x1a2] sm:$0xff] }
 0x2f0   : > { %1951 = vst.msk [vmem:[#allocation2 + $0x98] sm:$0x1] %vm19392_vm1, %v1826_v32  ;;  %vm19395_vm1 = vmmov %vm19394_vm3 }
 0x2f1   : > { %4096 = vrot.lane.b32.xlu1 %v17902_v10, %s15964_s14  ;;  %3196 = vrot.lane.b32.xlu0 %v17908_v40, %s15961_s6  ;;  %v6153_v55 = vcombine.low %v6145_v35, %v6152_v33  ;;  %v15649_v51 = vld [vmem:[#allocation3 + $0x48] sm:$0xff]   ;;  %v9367_v53 = vrot.slane %v9365_v23, 1 }
 0x2f2   : > { %v2278_v20 = vpop.permute.xlu1 %2277  ;;  %v9360_v17 = vshll.u32 %v15649_v51, 16  ;;  %v9358_v42 = vshrl.u32 %v15649_v51, 16  ;;  %v15651_v6 = vld [vmem:[#allocation3 + $0x48] sm:$0xff]   ;;  %v17963_v51 = vpack.c.bf16 %v13600_v26, %v13600_v26 }
 0x2f3   : > { %2403 = vst.msk [vmem:[#allocation2 + $0x98] sm:$0x1] %vm2366_vm2, %v2278_v20  ;;  %v2732_v37 = vpop.permute.xlu0 %2731  ;;  %15493 = vmatmul.mubr.msk.bf16.gmra.mrb[52].mxu0 %vm6490_vm14, %v6153_v55  ;;  %v14505_v20 = vpack.c.bf16 %v1109_v7, %v1109_v7 }
 0x2f4   : > { %2856 = vst.msk [vmem:[#allocation2 + $0x9c] sm:$0xf] %vm2815_vm8, %v2732_v37  ;;  %15496 = vmatprep.mubr.msk.bf16.mxu0 %vm19281_vm15, %v15962_v34  ;;  %v9362_v11 = vrot.slane %v9360_v17, 1 }
 0x2f5   : > { %3646 = vrot.lane.b32.xlu1 %v14772_v54, %s15963_s9  ;;  %1841 = vrot.lane.b32.xlu0 %v17842_v43, %s15958_s28  ;;  %v6656_v1 = vpop.f32.mrb[32].mxu0 }
 0x2f6   : > { %v3185_v47 = vpop.permute.xlu1 %3184  ;;  %v6657_v50 = vadd.f32 %v17829_v27, %v6656_v1  ;;  %v15474_v44 = vpop.f32.mrb[33].mxu0  ;;  %v9363_v4 = vor.u32 %v9362_v11, %v9358_v42  ;;  %v13277_v11 = vld [vmem:[%s16023_s25 + $0x190] sm:$0x3] }
 0x2f7   : > { %3309 = vst.msk [vmem:[#allocation2 + $0x9c] sm:$0xf] %vm19394_vm3, %v3185_v47  ;;  %v3181_v41 = vpop.permute.xlu0 %3180  ;;  %v6659_v43 = vpop.f32.mrb[34].mxu0  ;;  %vm19397_vm3 = vcmask 385344  }
 0x2f8   : > { %3307 = vst.msk [vmem:[#allocation2 + $0x94] sm:$0xf] %vm19395_vm1, %v3181_v41  ;;  %v6774_v58 = vmax.f32 %v6657_v50, 0.0  ;;  %v6660_v45 = vadd.f32 %v17829_v27, %v6659_v43  ;;  %v15475_v63 = vpop.f32.mrb[35].mxu0  ;;  %v9368_v2 = vsel %vm19396_vm7, %v9363_v4, %v9367_v53  ;;  %vm19398_vm1 = vcmask 450944  }
 0x2f9   : > { %2293 = vrot.lane.b32.xlu1 %v17869_v36, %s15959_s29  ;;  %3648 = vrot.lane.b32.xlu0 %v17929_v57, %s15963_s9  ;;  %v17977_v50 = vpack.c.bf16 %v13708_v38, %v13708_v38  ;;  %vm19399_vm7 = vcmp.ge.s32.totalorder %v17052_v39, 0  ;;  %v14559_v53 = vpack.c.bf16 %v13277_v11, %v13277_v11 }
 0x2fa   : > { %v2730_v46 = vpop.permute.xlu1 %2729  ;;  %12175 = vmatprep.mubr.bf16.mxu1 %v9368_v2  ;;  %v7112_v5 = vcombine.high %v6774_v58, %v6774_v58  ;;  %v7119_v30 = vrot.slane %v6774_v58, %v17020_v61  ;;  %v6775_v0 = vmax.f32 %v6660_v45, 0.0  ;;  %v13385_v2 = vld [vmem:[%s16023_s25 + $0x191] sm:$0x3] }
 0x2fb   : > { %2855 = vst.msk [vmem:[#allocation2 + $0x98] sm:$0x1] %vm19397_vm3, %v2730_v46  ;;  %v925_v13 = vpop.permute.xlu0 %924  ;;  %12176 = vmatmul.mubr.bf16.gmra.mrb[24].mxu1 %v15651_v6  ;;  %vm19400_vm3 = vcmask 585216   ;;  %v17990_v46 = vpack.c.bf16 %v13816_v56, %v13816_v56 }
 0x2fc   : > { %1048 = vst.msk [vmem:[#allocation2 + $0xa0] sm:$0xf] %vm1006_vm4, %v925_v13  ;;  %v7126_v12 = vrot.slane %v7112_v5, %v17020_v61  ;;  %v7127_v8 = vcombine.high %v7119_v30, %v7119_v30  ;;  %v8117_v52 = vcombine.low %v7111_v48, %v7119_v30  ;;  %v7129_v28 = vcombine.high %v6775_v0, %v6775_v0  ;;  %v13601_v5 = vld [vmem:[%s16023_s25 + $0x1a8] sm:$0x3] }
 0x2fd   : > { %4100 = vrot.lane.b32.xlu1 %v17940_v22, %s15964_s14  ;;  %4098 = vrot.lane.b32.xlu0 %v14826_v49, %s15964_s14  ;;  %v7136_v15 = vrot.slane %v6775_v0, %v17020_v61  ;;  %v14613_v48 = vpack.c.bf16 %v13385_v2, %v13385_v2  ;;  %v13493_v0 = vld [vmem:[%s16023_s25 + $0x192] sm:$0x3]  ;;  %v14721_v26 = vpack.c.bf16 %v13601_v5, %v13601_v5 }
 0x2fe   : > { %v3637_v32 = vpop.permute.xlu1 %3636  ;;  %v8118_v35 = vcombine.low %v7127_v8, %v7126_v12  ;;  %v7128_v33 = vcombine.high %v7126_v12, %v7126_v12  ;;  %v7143_v14 = vrot.slane %v7129_v28, %v17020_v61  ;;  %v8125_v18 = vrot.slane %v8117_v52, %v17020_v61  ;;  %v315_v8 = vld [vmem:[%s16023_s25 + $0x188] sm:$0xff] }
 0x2ff   : > { %3761 = vst.msk [vmem:[#allocation2 + $0x9c] sm:$0xf] %vm3720_vm10, %v3637_v32  ;;  %v3633_v54 = vpop.permute.xlu0 %3632  ;;  %v7144_v55 = vcombine.high %v7136_v15, %v7136_v15  ;;  %v14667_v52 = vpack.c.bf16 %v13493_v0, %v13493_v0  ;;  %v13817_v28 = vld [vmem:[%s16023_s25 + $0x1aa] sm:$0x3]  ;;  %v14399_v7 = vpack.c.bf16 %v315_v8, %v315_v8 }
 0x300   : > { %3759 = vst.msk [vmem:[#allocation2 + $0x94] sm:$0xf] %vm3720_vm10, %v3633_v54  ;;  %v8132_v37 = vrot.slane %v8118_v35, %v17020_v61  ;;  %v7145_v17 = vcombine.high %v7143_v14, %v7143_v14  ;;  %v8134_v23 = vcombine.low %v7128_v33, %v7136_v15  ;;  %v13709_v32 = vld [vmem:[%s16023_s25 + $0x1a9] sm:$0x3] }
 0x301   : > { %2745 = vrot.lane.b32.xlu1 %v17902_v10, %s15960_s30  ;;  %938 = vrot.lane.b32.xlu0 %v14451_v60, %s15957_s27  ;;  %v8135_v31 = vcombine.low %v7144_v55, %v7143_v14  ;;  %v314_v60 = vld [vmem:[%s16023_s25 + $0x180] sm:$0xff]  ;;  %605 = vst.msk [vmem:[#allocation2 + $0xc4] sm:$0xf] %vm554_vm0, %v14399_v7  ;;  %v14829_v14 = vpack.c.bf16 %v13817_v28, %v13817_v28 }
 0x302   : > { %v3183_v42 = vpop.permute.xlu1 %3182  ;;  %v8133_v9 = vcombine.low %v8125_v18, %v8132_v37  ;;  %v8142_v3 = vrot.slane %v8134_v23, %v17020_v61  ;;  %v8157_v47 = vrot.slane %v7145_v17, %v17020_v61  ;;  %v14398_v12 = vpack.c.bf16 %v314_v60, %v314_v60 }
 0x303   : > { %3308 = vst.msk [vmem:[#allocation2 + $0x98] sm:$0x1] %vm19398_vm1, %v3183_v42  ;;  %v1377_v1 = vpop.permute.xlu0 %1376  ;;  %v8149_v41 = vrot.slane %v8135_v31, %v17020_v61  ;;  %vm19401_vm1 = vmmov %vm19400_vm3  ;;  %v14775_v55 = vpack.c.bf16 %v13709_v32, %v13709_v32 }
 0x304   : > { %1500 = vst.msk [vmem:[#allocation2 + $0xa0] sm:$0xf] %vm1458_vm5, %v1377_v1  ;;  %v8643_v44 = vsel %vm19399_vm7, %v8133_v9, 0.0  ;;  %v8645_v4 = vsel %vm7667_vm13, %v8157_v47, 0.0  ;;  %vm19402_vm7 = vcmask 322816  }
 0x305   : > { %3198 = vrot.lane.b32.xlu1 %v17963_v51, %s15961_s6  ;;  %1390 = vrot.lane.b32.xlu0 %v14505_v20, %s15956_s26  ;;  %v14854_v43 = vpack.c.bf16 %v8643_v44, %v8643_v44  ;;  %v8150_v58 = vcombine.low %v8142_v3, %v8149_v41  ;;  %v14856_v45 = vpack.c.bf16 %v8645_v4, %v8645_v4 }
 0x306   : > { %v4089_v63 = vpop.permute.xlu1 %4088  ;;  %604 = vst.msk [vmem:[#allocation2 + $0xc0] sm:$0xf] %vm554_vm0, %v14398_v12 }
 0x307   : > { %4213 = vst.msk [vmem:[#allocation2 + $0x9c] sm:$0xf] %vm19400_vm3, %v4089_v63  ;;  %v4085_v6 = vpop.permute.xlu0 %4084  ;;  %8931 = vst [vmem:[#allocation3 + $0x54] sm:$0xf] %v14854_v43  ;;  %v14855_v49 = vpack.c.bf16 %v8150_v58, %v8150_v58  ;;  %vm19403_vm3 = vsmask.f32 7424 }
 0x308   : > { %8933 = vst [vmem:[#allocation3 + $0x5c] sm:$0x1] %v14856_v45  ;;  %4211 = vst.msk [vmem:[#allocation2 + $0x94] sm:$0xf] %vm19401_vm1, %v4085_v6  ;;  %vm19404_vm1 = vcmask 188544  }
 0x309   : > { %3650 = vrot.lane.b32.xlu1 %v17977_v50, %s15963_s9  ;;  %1843 = vrot.lane.b32.xlu0 %v14559_v53, %s15958_s28  ;;  %8932 = vst [vmem:[#allocation3 + $0x58] sm:$0xf] %v14855_v49 }
 0x30a   : > { %v1830_v30 = vpop.permute.xlu1 %1829 }
 0x30b   : > { %1953 = vst.msk [vmem:[#allocation2 + $0xa0] sm:$0xf] %vm1911_vm6, %v1830_v30  ;;  %v929_v13 = vpop.permute.xlu0 %928 }
 0x30c   : > { %1050 = vst.msk [vmem:[#allocation2 + $0xa8] sm:$0xf] %vm1006_vm4, %v929_v13 }
 0x30d   : > { %4102 = vrot.lane.b32.xlu1 %v17990_v46, %s15964_s14  ;;  %2295 = vrot.lane.b32.xlu0 %v14613_v48, %s15959_s29 }
 0x30e   : > { %v1381_v15 = vpop.permute.xlu1 %1380  ;;  %v13917_v35 = vld.sshfl [vmem:[#allocation2 + $0x9c] sm:$0x33 pattern:$0x75316420] }
 0x30f   : > { %1502 = vst.msk [vmem:[#allocation2 + $0xa8] sm:$0xf] %vm1458_vm5, %v1381_v15  ;;  %v3635_v33 = vpop.permute.xlu0 %3634  ;;  %v15653_v54 = vld [vmem:[#allocation3 + $0x5c] ss:$0 sps:$4 sm:$0x11]   ;;  %v5149_v17 = vcombine.high %v13917_v35, %v13917_v35  ;;  %v5156_v23 = vrot.slane %v13917_v35, %v16292_v19 }
 0x310   : > { %3760 = vst.msk [vmem:[#allocation2 + $0x98] sm:$0x1] %vm3723_vm11, %v3635_v33  ;;  %v15652_v20 = vld [vmem:[#allocation3 + $0x54] sm:$0xff]   ;;  %v9377_v42 = vshll.u32 %v15653_v54, 16 }
 0x311   : > { %3200 = vrot.lane.b32.xlu1 %v14721_v26, %s15961_s6  ;;  %2747 = vrot.lane.b32.xlu0 %v14667_v52, %s15960_s30  ;;  %v13915_v37 = vld.sshfl [vmem:[#allocation2 + $0x94] sm:$0x33 pattern:$0x75316420]  ;;  %v9372_v31 = vshll.u32 %v15652_v20, 16  ;;  %v9370_v9 = vshrl.u32 %v15652_v20, 16  ;;  %v18019_v56 = vrot.slane %v5149_v17, %v16292_v19  ;;  %v5164_v43 = vcombine.high %v5156_v23, %v5156_v23 }
 0x312   : > { %v4087_v18 = vpop.permute.xlu1 %4086  ;;  %v5111_v11 = vcombine.high %v13915_v37, %v13915_v37  ;;  %v5118_v1 = vrot.slane %v13915_v37, %v16292_v19  ;;  %v9379_v2 = vrot.slane %v9377_v42, 1  ;;  %v15654_v26 = vld [vmem:[#allocation3 + $0x54] sm:$0xff]  }
 0x313   : > { %4212 = vst.msk [vmem:[#allocation2 + $0x98] sm:$0x1] %vm4175_vm9, %v4087_v18  ;;  %v2282_v38 = vpop.permute.xlu0 %2281  ;;  %v9374_v47 = vrot.slane %v9372_v31, 1  ;;  %v6157_v35 = vcombine.low %v18019_v56, %v5164_v43 }
 0x314   : > { %2405 = vst.msk [vmem:[#allocation2 + $0xa0] sm:$0xf] %vm19402_vm7, %v2282_v38  ;;  %v6664_v3 = vpop.f32.mrb[36].mxu0  ;;  %v5125_v41 = vrot.slane %v5111_v11, %v16292_v19  ;;  %vm19405_vm7 = vcmask 454016  }
 0x315   : > { %4104 = vrot.lane.b32.xlu1 %v14829_v14, %s15964_s14  ;;  %3652 = vrot.lane.b32.xlu0 %v14775_v55, %s15963_s9  ;;  %v6665_v44 = vadd.f32 %v17829_v27, %v6664_v3  ;;  %v15478_v4 = vpop.f32.mrb[37].mxu0  ;;  %v9375_v63 = vor.u32 %v9374_v47, %v9370_v9 }
 0x316   : > { %v1834_v53 = vpop.permute.xlu1 %1833  ;;  %v6667_v45 = vpop.f32.mrb[38].mxu0  ;;  %v6154_v6 = vcombine.low %v5118_v1, %v5125_v41  ;;  %v13946_v49 = vcombine.high %v5118_v1, %v5125_v41  ;;  %v6185_v1 = vrot.slane %v6157_v35, %v16292_v19 }
 0x317   : > { %1955 = vst.msk [vmem:[#allocation2 + $0xa8] sm:$0xf] %vm1911_vm6, %v1834_v53  ;;  %v927_v58 = vpop.permute.xlu0 %926  ;;  %v6776_v48 = vmax.f32 %v6665_v44, 0.0  ;;  %v6668_v5 = vadd.f32 %v17829_v27, %v6667_v45  ;;  %v15479_v30 = vpop.f32.mrb[39].mxu0  ;;  %v9380_v60 = vsel %vm19403_vm3, %v9375_v63, %v9379_v2  ;;  %vm19406_vm3 = vcmask 322816  }
 0x318   : > { %1049 = vst.msk [vmem:[#allocation2 + $0xa4] sm:$0x1] %vm1009_vm12, %v927_v58  ;;  %v14986_v0 = vpop.f32.mrb[8].mxu1  ;;  %12183 = vmatprep.mubr.bf16.mxu1 %v9380_v60  ;;  %v6164_v33 = vrot.slane %v6154_v6, %v16292_v19  ;;  %v6171_v14 = vrot.slane %v13946_v49, %v16292_v19 }
 0x319   : > { %942 = vrot.lane.b32.xlu1 %v17869_v36, %s15957_s27  ;;  %940 = vrot.lane.b32.xlu0 %v17743_v16, %s15957_s27  ;;  %v14987_v13 = vpop.f32.mrb[9].mxu1  ;;  %v7146_v12 = vcombine.high %v6776_v48, %v6776_v48  ;;  %v7153_v8 = vrot.slane %v6776_v48, %v17020_v61  ;;  %v6777_v52 = vmax.f32 %v6668_v5, 0.0  ;;  %v13603_v48 = vld [vmem:[%s16023_s25 + $0x1b8] sm:$0xff] }
 0x31a   : > { %v18030_v28 = vadd.f32 %v14987_v13, %v14986_v0  ;;  %v1379_v7 = vpop.permute.xlu1 %1378  ;;  %v14989_v27 = vpop.f32.mrb[10].mxu1  ;;  %v13916_v15 = vld.sshfl [vmem:[#allocation2 + $0x98] sm:$0x1 pattern:$0x75316420]  ;;  %12184 = vmatmul.mubr.bf16.gmra.mrb[28].mxu1 %v15654_v26  ;;  %v13602_v13 = vld [vmem:[%s16023_s25 + $0x1b0] sm:$0xff] }
 0x31b   : > { %1501 = vst.msk [vmem:[#allocation2 + $0xa4] sm:$0x1] %vm19404_vm1, %v1379_v7  ;;  %v2734_v36 = vpop.permute.xlu0 %2733  ;;  %v14990_v32 = vpop.f32.mrb[11].mxu1  ;;  %v5141_v16 = vrot.slane %v13916_v15, %v16292_v19  ;;  %v7160_v54 = vrot.slane %v7146_v12, %v17020_v61  ;;  %v7161_v55 = vcombine.high %v7153_v8, %v7153_v8  ;;  %v7163_v20 = vcombine.high %v6777_v52, %v6777_v52 }
 0x31c   : > { %v7170_v18 = vrot.slane %v6777_v52, %v17020_v61  ;;  %2857 = vst.msk [vmem:[#allocation2 + $0xa0] sm:$0xf] %vm2815_vm8, %v2734_v36  ;;  %v18042_v37 = vadd.f32 %v14990_v32, %v14989_v27  ;;  %vm19407_vm1 = vcmask 254144   ;;  %v18076_v12 = vpack.c.bf16 %v13603_v48, %v13603_v48  ;;  %v13711_v52 = vld [vmem:[%s16023_s25 + $0x1b9] sm:$0xff]  ;;  %v13710_v27 = vld [vmem:[%s16023_s25 + $0x1b1] sm:$0xff] }
 0x31d   : > { %1394 = vrot.lane.b32.xlu1 %v17902_v10, %s15956_s26  ;;  %1392 = vrot.lane.b32.xlu0 %v17755_v59, %s15956_s26  ;;  %v6156_v17 = vcombine.low %v5141_v16, %v5156_v23  ;;  %v7162_v38 = vcombine.high %v7160_v54, %v7160_v54  ;;  %v8158_v31 = vcombine.low %v7153_v8, %v7161_v55  ;;  %v13819_v16 = vld [vmem:[%s16023_s25 + $0x1ba] sm:$0xff] }
 0x31e   : > { %v7177_v42 = vrot.slane %v7163_v20, %v17020_v61  ;;  %v7178_v11 = vcombine.high %v7170_v18, %v7170_v18  ;;  %v3187_v9 = vpop.permute.xlu1 %3186  ;;  %v6186_v10 = vcombine.low %v6164_v33, %v6171_v14  ;;  %v14722_v8 = vpack.c.bf16 %v13602_v13, %v13602_v13  ;;  %v13818_v33 = vld [vmem:[%s16023_s25 + $0x1b2] sm:$0xff] }
 0x31f   : > { %3310 = vst.msk [vmem:[#allocation2 + $0xa0] sm:$0xf] %vm19405_vm7, %v3187_v9  ;;  %v2286_v3 = vpop.permute.xlu0 %2285  ;;  %v6178_v47 = vrot.slane %v6156_v17, %v16292_v19  ;;  %v8159_v41 = vcombine.low %v7160_v54, %v7162_v38  ;;  %v8166_v23 = vrot.slane %v8158_v31, %v17020_v61  ;;  %vm19408_vm7 = vcmp.ge.s32.totalorder %v17052_v39, 0  ;;  %v317_v9 = vld [vmem:[%s16023_s25 + $0x198] sm:$0xff] }
 0x320   : > { %v7179_v44 = vcombine.high %v7177_v42, %v7177_v42  ;;  %v8175_v4 = vcombine.low %v7170_v18, %v7178_v11  ;;  %2407 = vst.msk [vmem:[#allocation2 + $0xa8] sm:$0xf] %vm19406_vm3, %v2286_v3  ;;  %v6194_v63 = vrot.slane %v6186_v10, %v16292_v19  ;;  %vm19409_vm3 = vcmask 585216   ;;  %v318_v3 = vld [vmem:[%s16023_s25 + $0x1a0] sm:$0xff] }
 0x321   : > { %1847 = vrot.lane.b32.xlu1 %v17963_v51, %s15958_s28  ;;  %1845 = vrot.lane.b32.xlu0 %v17908_v40, %s15958_s28  ;;  %v6187_v59 = vcombine.low %v6178_v47, %v6185_v1  ;;  %v8173_v53 = vrot.slane %v8159_v41, %v17020_v61  ;;  %v18088_v36 = vpack.c.bf16 %v13711_v52, %v13711_v52  ;;  %v316_v47 = vld [vmem:[%s16023_s25 + $0x190] sm:$0x3] }
 0x322   : > { %v8176_v43 = vcombine.low %v7177_v42, %v7179_v44  ;;  %v2738_v58 = vpop.permute.xlu1 %2737  ;;  %v8183_v6 = vrot.slane %v8175_v4, %v17020_v61  ;;  %v14776_v32 = vpack.c.bf16 %v13710_v27, %v13710_v27  ;;  %v18097_v54 = vpack.c.bf16 %v13819_v16, %v13819_v16 }
 0x323   : > { %2859 = vst.msk [vmem:[#allocation2 + $0xa8] sm:$0xf] %vm2815_vm8, %v2738_v58  ;;  %v1832_v45 = vpop.permute.xlu0 %1831  ;;  %v6201_v2 = vrot.slane %v6187_v59, %v16292_v19  ;;  %v8174_v51 = vcombine.low %v8166_v23, %v8173_v53  ;;  %v18100_v55 = vpack.c.bf16 %v13818_v33, %v13818_v33  ;;  %v14401_v1 = vpack.c.bf16 %v317_v9, %v317_v9 }
 0x324   : > { %v8190_v40 = vrot.slane %v8176_v43, %v17020_v61  ;;  %1954 = vst.msk [vmem:[#allocation2 + $0xa4] sm:$0x1] %vm19407_vm1, %v1832_v45  ;;  %vm19410_vm1 = vcmask 454016   ;;  %v14402_v10 = vpack.c.bf16 %v318_v3, %v318_v3  ;;  %v14400_v41 = vpack.c.bf16 %v316_v47, %v316_v47 }
 0x325   : > { %2299 = vrot.lane.b32.xlu1 %v17977_v50, %s15959_s29  ;;  %2297 = vrot.lane.b32.xlu0 %v17929_v57, %s15959_s29  ;;  %v6202_v49 = vcombine.low %v6194_v63, %v6201_v2  ;;  %v8646_v5 = vsel %vm19408_vm7, %v8174_v51, 0.0  ;;  %vm19411_vm7 = vcmask 385344   ;;  %607 = vst.msk [vmem:[#allocation2 + $0xcc] sm:$0xf] %vm554_vm0, %v14401_v1  ;;  %v660_v51 = vld [vmem:[%s16023_s25 + $0x191] sm:$0x3] }
 0x326   : > { %v8191_v30 = vcombine.low %v8183_v6, %v8190_v40  ;;  %v2284_v0 = vpop.permute.xlu1 %2283  ;;  %608 = vst.msk [vmem:[#allocation2 + $0xd0] sm:$0xf] %vm554_vm0, %v14402_v10  ;;  %vm19414_vm0 = vcmask 188544  }
 0x327   : > { %2406 = vst.msk [vmem:[#allocation2 + $0xa4] sm:$0x1] %vm2366_vm2, %v2284_v0  ;;  %v3639_v60 = vpop.permute.xlu0 %3638  ;;  %15497 = vmatmul.mubr.msk.bf16.gmra.mrb[56].mxu0 %vm6490_vm14, %v6202_v49  ;;  %v1112_v0 = vld [vmem:[%s16023_s25 + $0x192] sm:$0x3] }
 0x328   : > { %v14902_v26 = vpack.c.bf16 %v8191_v30, %v8646_v5  ;;  %3762 = vst.msk [vmem:[#allocation2 + $0xa0] sm:$0xf] %vm3720_vm10, %v3639_v60  ;;  %15500 = vmatprep.mubr.msk.bf16.mxu0 %vm19281_vm15, %v15962_v34  ;;  %v14454_v30 = vpack.c.bf16 %v660_v51, %v660_v51 }
 0x329   : > { %2751 = vrot.lane.b32.xlu1 %v17990_v46, %s15960_s30  ;;  %2749 = vrot.lane.b32.xlu0 %v17940_v22, %s15960_s30 }
 0x32a   : > { %14927 = vst [vmem:[#allocation3 + $0x60] sm:$0xff] %v14902_v26   ;;  %v4091_v7 = vpop.permute.xlu1 %4090 }
 0x32b   : > { %4214 = vst.msk [vmem:[#allocation2 + $0xa0] sm:$0xf] %vm19409_vm3, %v4091_v7  ;;  %v3191_v15 = vpop.permute.xlu0 %3190 }
 0x32c   : > { %3312 = vst.msk [vmem:[#allocation2 + $0xa8] sm:$0xf] %vm19410_vm1, %v3191_v15  ;;  %vm19412_vm1 = vcmask 450944   ;;  %v13605_v15 = vld [vmem:[%s16023_s25 + $0x1c8] sm:$0xff] }
 0x32d   : > { %3204 = vrot.lane.b32.xlu1 %v18076_v12, %s15961_s6  ;;  %3202 = vrot.lane.b32.xlu0 %v14722_v8, %s15961_s6 }
 0x32e   : > { %v3643_v35 = vpop.permute.xlu1 %3642 }
 0x32f   : > { %3764 = vst.msk [vmem:[#allocation2 + $0xa8] sm:$0xf] %vm3720_vm10, %v3643_v35  ;;  %v2736_v14 = vpop.permute.xlu0 %2735 }
 0x330   : > { %2858 = vst.msk [vmem:[#allocation2 + $0xa4] sm:$0x1] %vm19411_vm7, %v2736_v14  ;;  %vm19413_vm7 = vcmask 57344  }
 0x331   : > { %3656 = vrot.lane.b32.xlu1 %v18088_v36, %s15963_s9  ;;  %3654 = vrot.lane.b32.xlu0 %v14776_v32, %s15963_s9  ;;  %606 = vst.msk [vmem:[#allocation2 + $0xc8] sm:$0x1] %vm19413_vm7, %v14400_v41  ;;  %v13280_v41 = vld [vmem:[%s16023_s25 + $0x1a8] sm:$0x3]  ;;  %vm19417_vm7 = vcmask 454016  }
 0x332   : > { %v4095_v20 = vpop.permute.xlu1 %4094  ;;  %v13918_v17 = vld.sshfl [vmem:[#allocation2 + $0xa0] sm:$0x33 pattern:$0x75316420] }
 0x333   : > { %4216 = vst.msk [vmem:[#allocation2 + $0xa8] sm:$0xf] %vm19409_vm3, %v4095_v20  ;;  %v3189_v18 = vpop.permute.xlu0 %3188  ;;  %v5173_v42 = vcombine.high %v13918_v17, %v13918_v17  ;;  %v5180_v11 = vrot.slane %v13918_v17, %v16292_v19  ;;  %vm19415_vm3 = vcmask 322816   ;;  %v18161_v20 = vld [vmem:[%s19265_s2] ss:$0 sm:$0xff] }
 0x334   : > { %3311 = vst.msk [vmem:[#allocation2 + $0xa4] sm:$0x1] %vm19412_vm1, %v3189_v18  ;;  %vm19416_vm1 = vcmask 254144  }
 0x335   : > { %4108 = vrot.lane.b32.xlu1 %v18097_v54, %s15964_s14  ;;  %4106 = vrot.lane.b32.xlu0 %v18100_v55, %s15964_s14  ;;  %v5187_v53 = vrot.slane %v5173_v42, %v16292_v19  ;;  %v5188_v43 = vcombine.high %v5180_v11, %v5180_v11  ;;  %v14725_v42 = vpack.c.bf16 %v13605_v15, %v13605_v15 }
 0x336   : > { %v3641_v38 = vpop.permute.xlu1 %3640 }
 0x337   : > { %3763 = vst.msk [vmem:[#allocation2 + $0xa4] sm:$0x1] %vm3723_vm11, %v3641_v38  ;;  %v931_v31 = vpop.permute.xlu0 %930  ;;  %v6204_v5 = vcombine.low %v5187_v53, %v5188_v43  ;;  %v5189_v52 = vcombine.high %v5187_v53, %v5187_v53 }
 0x338   : > { %1051 = vst.msk [vmem:[#allocation2 + $0xac] sm:$0xf] %vm1006_vm4, %v931_v31 }
 0x339   : > { %1398 = vrot.lane.b32.xlu1 %v17940_v22, %s15956_s26  ;;  %946 = vrot.lane.b32.xlu0 %v17929_v57, %s15957_s27  ;;  %v14992_v23 = vpop.f32.mrb[12].mxu1 }
 0x33a   : > { %v4093_v44 = vpop.permute.xlu1 %4092  ;;  %v13920_v4 = vld.sshfl [vmem:[#allocation2 + $0xa8] sm:$0x33 pattern:$0x75316420]  ;;  %v14993_v57 = vpop.f32.mrb[13].mxu1 }
 0x33b   : > { %4215 = vst.msk [vmem:[#allocation2 + $0xa4] sm:$0x1] %vm4175_vm9, %v4093_v44  ;;  %v1383_v59 = vpop.permute.xlu0 %1382  ;;  %v5211_v22 = vcombine.high %v13920_v4, %v13920_v4  ;;  %v18127_v58 = vadd.f32 %v14993_v57, %v14992_v23  ;;  %v14995_v45 = vpop.f32.mrb[14].mxu1  ;;  %v18134_v49 = vrot.slane %v13920_v4, %v16292_v19 }
 0x33c   : > { %1503 = vst.msk [vmem:[#allocation2 + $0xac] sm:$0xf] %vm1458_vm5, %v1383_v59  ;;  %v14996_v2 = vpop.f32.mrb[15].mxu1 }
 0x33d   : > { %1851 = vrot.lane.b32.xlu1 %v14722_v8, %s15958_s28  ;;  %948 = vrot.lane.b32.xlu0 %v17977_v50, %s15957_s27  ;;  %v18131_v40 = vadd.f32 %v14996_v2, %v14995_v45  ;;  %v18137_v48 = vrot.slane %v5211_v22, %v16292_v19  ;;  %v5165_v50 = vcombine.high %v18019_v56, %v18019_v56 }
 0x33e   : > { %v935_v63 = vpop.permute.xlu1 %934  ;;  %v6220_v56 = vrot.slane %v6204_v5, %v16292_v19  ;;  %v14562_v45 = vpack.c.bf16 %v13280_v41, %v13280_v41 }
 0x33f   : > { %1053 = vst.msk [vmem:[#allocation2 + $0xb4] sm:$0xf] %vm1006_vm4, %v935_v63  ;;  %v933_v6 = vpop.permute.xlu0 %932  ;;  %v6203_v26 = vcombine.low %v5165_v50, %v5180_v11  ;;  %v6206_v27 = vcombine.low %v18134_v49, %v18137_v48  ;;  %v13388_v63 = vld [vmem:[%s16023_s25 + $0x1a9] sm:$0x3] }
 0x340   : > { %1052 = vst.msk [vmem:[#allocation2 + $0xb0] sm:$0x1] %vm1009_vm12, %v933_v6  ;;  %v13713_v6 = vld [vmem:[%s16023_s25 + $0x1c9] sm:$0xff] }
 0x341   : > { %2303 = vrot.lane.b32.xlu1 %v14776_v32, %s15959_s29  ;;  %1400 = vrot.lane.b32.xlu0 %v17990_v46, %s15956_s26  ;;  %v14508_v46 = vpack.c.bf16 %v1112_v0, %v1112_v0  ;;  %v6213_v33 = vrot.slane %v6203_v26, %v16292_v19  ;;  %v6234_v38 = vrot.slane %v6206_v27, %v16292_v19 }
 0x342   : > { %v1385_v13 = vpop.permute.xlu1 %1384  ;;  %v13919_v60 = vld.sshfl [vmem:[#allocation2 + $0xa4] sm:$0x1 pattern:$0x75316420] }
 0x343   : > { %1504 = vst.msk [vmem:[#allocation2 + $0xb0] sm:$0x1] %vm19414_vm0, %v1385_v13  ;;  %v1836_v8 = vpop.permute.xlu0 %1835  ;;  %v5203_v7 = vrot.slane %v13919_v60, %v16292_v19  ;;  %v6235_v11 = vcombine.low %v6213_v33, %v6220_v56  ;;  %v14616_v60 = vpack.c.bf16 %v13388_v63, %v13388_v63  ;;  %vm19418_vm0 = vmmov %vm19415_vm3  ;;  %v13714_v33 = vld [vmem:[%s16023_s25 + $0x1d1] sm:$0xff] }
 0x344   : > { %1956 = vst.msk [vmem:[#allocation2 + $0xac] sm:$0xf] %vm1911_vm6, %v1836_v8  ;;  %v14779_v8 = vpack.c.bf16 %v13713_v6, %v13713_v6 }
 0x345   : > { %1853 = vrot.lane.b32.xlu1 %v18076_v12, %s15958_s28  ;;  %944 = vrot.lane.b32.xlu0 %v14454_v30, %s15957_s27  ;;  %v6205_v32 = vcombine.low %v5189_v52, %v5203_v7  ;;  %v6672_v35 = vpop.f32.mrb[40].mxu0  ;;  %v13821_v52 = vld [vmem:[%s16023_s25 + $0x1ca] sm:$0xff]  ;;  %v15655_v7 = vld [vmem:[#allocation3 + $0x60] sm:$0xff]  }
 0x346   : > { %v2288_v16 = vpop.permute.xlu1 %2287  ;;  %v6673_v12 = vadd.f32 %v18161_v20, %v6672_v35  ;;  %v15482_v18 = vpop.f32.mrb[41].mxu0 }
 0x347   : > { %2408 = vst.msk [vmem:[#allocation2 + $0xac] sm:$0xf] %vm19415_vm3, %v2288_v16  ;;  %v1387_v14 = vpop.permute.xlu0 %1386  ;;  %v6227_v17 = vrot.slane %v6205_v32, %v16292_v19  ;;  %v6675_v31 = vpop.f32.mrb[42].mxu0  ;;  %v14833_v32 = vpack.c.bf16 %v13821_v52, %v13821_v52  ;;  %v13496_v18 = vld [vmem:[%s16023_s25 + $0x1aa] sm:$0x3]  ;;  %vm19419_vm3 = vcmp.ge.s32.totalorder %v17052_v39, 0 }
 0x348   : > { %1505 = vst.msk [vmem:[#allocation2 + $0xb4] sm:$0xf] %vm1458_vm5, %v1387_v14  ;;  %v6778_v9 = vmax.f32 %v6673_v12, 0.0  ;;  %v6676_v3 = vadd.f32 %v18161_v20, %v6675_v31  ;;  %v15483_v47 = vpop.f32.mrb[43].mxu0  ;;  %v9384_v14 = vshll.u32 %v15655_v7, 16 }
 0x349   : > { %1396 = vrot.lane.b32.xlu1 %v14508_v46, %s15956_s26  ;;  %2755 = vrot.lane.b32.xlu0 %v18100_v55, %s15960_s30  ;;  %v6236_v1 = vcombine.low %v6227_v17, %v6234_v38  ;;  %v6243_v55 = vrot.slane %v6235_v11, %v16292_v19  ;;  %v13606_v46 = vld [vmem:[%s16023_s25 + $0x1d0] sm:$0xff] }
 0x34a   : > { %v1840_v10 = vpop.permute.xlu1 %1839  ;;  %v7180_v44 = vcombine.high %v6778_v9, %v6778_v9  ;;  %v7187_v4 = vrot.slane %v6778_v9, %v17020_v61  ;;  %v18173_v59 = vmax.f32 %v6676_v3, 0.0  ;;  %v14726_v35 = vpack.c.bf16 %v13606_v46, %v13606_v46  ;;  %v13822_v11 = vld [vmem:[%s16023_s25 + $0x1d2] sm:$0xff]  ;;  %v13391_v46 = vld [vmem:[%s16023_s25 + $0x1c1] sm:$0x3] }
 0x34b   : > { %1958 = vst.msk [vmem:[#allocation2 + $0xb4] sm:$0xf] %vm1911_vm6, %v1840_v10  ;;  %v1838_v23 = vpop.permute.xlu0 %1837  ;;  %v6250_v22 = vrot.slane %v6236_v1, %v16292_v19  ;;  %v14670_v9 = vpack.c.bf16 %v13496_v18, %v13496_v18  ;;  %v9386_v47 = vrot.slane %v9384_v14, 1  ;;  %v13604_v10 = vld [vmem:[%s16023_s25 + $0x1c0] sm:$0x3]  ;;  %v15672_v18 = vld [vmem:[%s19266_s3 + $0x110] sm:$0xff]  }
 0x34c   : > { %1957 = vst.msk [vmem:[#allocation2 + $0xb0] sm:$0x1] %vm19416_vm1, %v1838_v23  ;;  %v7194_v57 = vrot.slane %v7180_v44, %v17020_v61  ;;  %v7195_v53 = vcombine.high %v7187_v4, %v7187_v4  ;;  %v8198_v43 = vrot.slane %v7187_v4, %v17020_v61  ;;  %v18190_v0 = vrot.slane %v18173_v59, %v17020_v61  ;;  %v319_v23 = vld [vmem:[%s16023_s25 + $0x1a8] sm:$0x3]  ;;  %v13607_v14 = vld [vmem:[%s16023_s25 + $0x1d8] sm:$0x3] }
 0x34d   : > { %3208 = vrot.lane.b32.xlu1 %v14725_v42, %s15961_s6  ;;  %2305 = vrot.lane.b32.xlu0 %v18088_v36, %s15959_s29  ;;  %v6251_v51 = vcombine.low %v6243_v55, %v6250_v22  ;;  %vm19420_vm1 = vcmask 385344   ;;  %v14780_v42 = vpack.c.bf16 %v13714_v33, %v13714_v33  ;;  %v9382_v44 = vshrl.u32 %v15655_v7, 16 }
 0x34e   : > { %v2290_v2 = vpop.permute.xlu1 %2289  ;;  %v8199_v50 = vcombine.low %v7195_v53, %v7194_v57  ;;  %v8648_v5 = vsel %vm7667_vm13, %v8198_v43, 0.0  ;;  %v7196_v30 = vcombine.high %v7194_v57, %v7194_v57  ;;  %v14834_v22 = vpack.c.bf16 %v13822_v11, %v13822_v11 }
 0x34f   : > { %2409 = vst.msk [vmem:[#allocation2 + $0xb0] sm:$0x1] %vm2366_vm2, %v2290_v2  ;;  %v2740_v13 = vpop.permute.xlu0 %2739  ;;  %v14859_v36 = vpack.c.bf16 %v8648_v5, %v8648_v5  ;;  %15501 = vmatmul.mubr.msk.bf16.gmra.mrb[60].mxu0 %vm6490_vm14, %v6251_v51  ;;  %v14403_v55 = vpack.c.bf16 %v319_v23, %v319_v23  ;;  %v14724_v57 = vpack.c.bf16 %v13604_v10, %v13604_v10  ;;  %v13712_v2 = vld [vmem:[%s16023_s25 + $0x1c1] sm:$0x3]  ;;  %v15674_v10 = vld [vmem:[%s19266_s3 + $0x118] sm:$0xff]  }
 0x350   : > { %2860 = vst.msk [vmem:[#allocation2 + $0xac] sm:$0xf] %vm2815_vm8, %v2740_v13  ;;  %v8200_v26 = vcombine.low %v7196_v30, %v18190_v0  ;;  %15504 = vmatprep.mubr.msk.bf16.mxu0 %vm19281_vm15, %v15962_v34  ;;  %v8207_v56 = vrot.slane %v8199_v50, %v17020_v61  ;;  %v9387_v53 = vor.u32 %v9386_v47, %v9382_v44  ;;  %v15657_v50 = vld [vmem:[#allocation3 + $0x60] sm:$0xff]   ;;  %v663_v30 = vld [vmem:[%s16023_s25 + $0x1a9] sm:$0x3] }
 0x351   : > { %2757 = vrot.lane.b32.xlu1 %v18097_v54, %s15960_s30  ;;  %1849 = vrot.lane.b32.xlu0 %v14562_v45, %s15958_s28  ;;  %8936 = vst [vmem:[#allocation3 + $0x68] sm:$0x1] %v14859_v36  ;;  %v13820_v45 = vld [vmem:[%s16023_s25 + $0x1c2] sm:$0x3]  ;;  %v1115_v13 = vld [vmem:[%s16023_s25 + $0x1aa] sm:$0x3]  ;;  %v14778_v36 = vpack.c.bf16 %v13712_v2, %v13712_v2  ;;  %v14727_v11 = vpack.c.bf16 %v13607_v14, %v13607_v14 }
 0x352   : > { %v8214_v54 = vrot.slane %v8200_v26, %v17020_v61  ;;  %v14832_v5 = vpack.c.bf16 %v13820_v45, %v13820_v45  ;;  %v14511_v7 = vpack.c.bf16 %v1115_v13, %v1115_v13  ;;  %v13823_v47 = vld [vmem:[%s16023_s25 + $0x1da] sm:$0x3]  ;;  %v15675_v2 = vld [vmem:[%s19266_s3 + $0x160] sm:$0xff]   ;;  %v15677_v13 = vld [vmem:[%s19266_s3 + $0x168] sm:$0xff]  }
 0x353   : > { %v3193_v27 = vpop.permute.xlu1 %3192  ;;  %v2292_v15 = vpop.permute.xlu0 %2291  ;;  %v13715_v44 = vld [vmem:[%s16023_s25 + $0x1d9] sm:$0x3]  ;;  %v14835_v23 = vpack.c.bf16 %v13823_v47, %v13823_v47 }
 0x354   : > { %3313 = vst.msk [vmem:[#allocation2 + $0xac] sm:$0xf] %vm19417_vm7, %v3193_v27  ;;  %v8215_v16 = vcombine.low %v8207_v56, %v8214_v54  ;;  %vm19421_vm7 = vcmask 57344   ;;  %v14457_v27 = vpack.c.bf16 %v663_v30, %v663_v30  ;;  %v15666_v56 = vld [vmem:[%s19266_s3 + $0x148] sm:$0xff]  }
 0x355   : > { %2410 = vst.msk [vmem:[#allocation2 + $0xb4] sm:$0xf] %vm19418_vm0, %v2292_v15  ;;  %2301 = vrot.lane.b32.xlu1 %v14616_v60, %s15959_s29  ;;  %3660 = vrot.lane.b32.xlu0 %v14779_v8, %s15963_s9  ;;  %vm19422_vm0 = vcmask 450944   ;;  %v15664_v60 = vld [vmem:[%s19266_s3 + $0x140] sm:$0xff]   ;;  %v15667_v54 = vld [vmem:[%s19266_s3 + $0x108] sm:$0xff]  }
 0x356   : > { %v8649_v17 = vsel %vm19419_vm3, %v8215_v16, 0.0  ;;  %609 = vst.msk [vmem:[#allocation2 + $0xd4] sm:$0x1] %vm19421_vm7, %v14403_v55  ;;  %vm19423_vm3 = vsmask.f32 7424  ;;  %v15665_v8 = vld [vmem:[%s19266_s3 + $0x100] sm:$0xff]   ;;  %15182 = vmatprep.subr.bf16.mxu0 %v15664_v60 }
 0x357   : > { %v2742_v12 = vpop.permute.xlu1 %2741  ;;  %v937_v38 = vpop.permute.xlu0 %936  ;;  %v14860_v31 = vpack.c.bf16 %v8649_v17, %v8649_v17  ;;  %vm19425_vm7 = vcmask 454016   ;;  %15183 = vmatpush3.bf16.msra.mxu0 %v15665_v8  ;;  %v15678_v60 = vld [vmem:[%s19266_s3 + $0x128] sm:$0xff]  }
 0x358   : > { %2861 = vst.msk [vmem:[#allocation2 + $0xb0] sm:$0x1] %vm19420_vm1, %v2742_v12  ;;  %v15656_v3 = vld [vmem:[#allocation3 + $0x68] ss:$0 sps:$4 sm:$0x11]   ;;  %vm19424_vm1 = vcmask 585216   ;;  %15184 = vmatprep.subr.bf16.mxu0 %v15666_v56 }
 0x359   : > { %1054 = vst.msk [vmem:[#allocation2 + $0xb8] sm:$0xf] %vm1006_vm4, %v937_v38  ;;  %4112 = vrot.lane.b32.xlu1 %v14833_v32, %s15964_s14  ;;  %3210 = vrot.lane.b32.xlu0 %v14726_v35, %s15961_s6  ;;  %8937 = vst [vmem:[#allocation3 + $0x6c] sm:$0xf] %v14860_v31  ;;  %v9389_v4 = vshll.u32 %v15656_v3, 16  ;;  %v14619_v35 = vpack.c.bf16 %v13391_v46, %v13391_v46  ;;  %v15670_v12 = vld [vmem:[%s19266_s3 + $0x150] sm:$0xff]   ;;  %v7212_v46 = vcombine.high %v18190_v0, %v18190_v0 }
 0x35a   : > { %v13283_v32 = vld [vmem:[%s16023_s25 + $0x1c0] sm:$0x3]  ;;  %v13499_v38 = vld [vmem:[%s16023_s25 + $0x1c2] sm:$0x3] }
 0x35b   : > { %v3645_v1 = vpop.permute.xlu1 %3644  ;;  %v2744_v41 = vpop.permute.xlu0 %2743  ;;  %v9391_v43 = vrot.slane %v9389_v4, 1  ;;  %15185 = vmatpush3.bf16.msra.mxu0 %v15667_v54  ;;  %v14565_v33 = vpack.c.bf16 %v13283_v32, %v13283_v32  ;;  %v14673_v3 = vpack.c.bf16 %v13499_v38, %v13499_v38 }
 0x35c   : > { %3765 = vst.msk [vmem:[#allocation2 + $0xac] sm:$0xf] %vm3720_vm10, %v3645_v1  ;;  %15186 = vmatprep.subr.bf16.mxu0 %v15670_v12  ;;  %v15673_v1 = vld [vmem:[%s19266_s3 + $0x158] sm:$0xff]  }
 0x35d   : > { %2862 = vst.msk [vmem:[#allocation2 + $0xb4] sm:$0xf] %vm2815_vm8, %v2744_v41  ;;  %3662 = vrot.lane.b32.xlu1 %v14780_v42, %s15963_s9  ;;  %2753 = vrot.lane.b32.xlu0 %v14670_v9, %s15960_s30  ;;  %v9392_v6 = vsel %vm19423_vm3, %v9387_v53, %v9391_v43  ;;  %vm19427_vm3 = vmmov %vm19424_vm1  ;;  %v14781_v53 = vpack.c.bf16 %v13715_v44, %v13715_v44 }
 0x35e   : > { %12191 = vmatprep.mubr.bf16.mxu1 %v9392_v6  ;;  %v7197_v43 = vcombine.high %v18173_v59, %v18173_v59 }
 0x35f   : > { %v3195_v63 = vpop.permute.xlu1 %3194  ;;  %v1389_v51 = vpop.permute.xlu0 %1388  ;;  %12192 = vmatmul.mubr.bf16.gmra.mrb[32].mxu1 %v15657_v50  ;;  %15187 = vmatpush3.bf16.msra.mxu0 %v15672_v18  ;;  %v15679_v18 = vld [vmem:[%s19266_s3 + $0x170] sm:$0xff]  }
 0x360   : > { %3314 = vst.msk [vmem:[#allocation2 + $0xb0] sm:$0x1] %vm19422_vm0, %v3195_v63  ;;  %vm19426_vm0 = vcmask 322816   ;;  %15188 = vmatprep.subr.bf16.mxu0 %v15673_v1 }
 0x361   : > { %1506 = vst.msk [vmem:[#allocation2 + $0xb8] sm:$0xf] %vm1458_vm5, %v1389_v51  ;;  %4114 = vrot.lane.b32.xlu1 %v14834_v22, %s15964_s14  ;;  %3206 = vrot.lane.b32.xlu0 %v14724_v57, %s15961_s6 }
 0x363   : > { %v4097_v26 = vpop.permute.xlu1 %4096  ;;  %v3197_v52 = vpop.permute.xlu0 %3196  ;;  %15189 = vmatpush3.bf16.msra.mxu0 %v15674_v10 }
 0x364   : > { %4217 = vst.msk [vmem:[#allocation2 + $0xac] sm:$0xf] %vm19424_vm1, %v4097_v26  ;;  %15190 = vmatprep.subr.bf16.mxu0 %v15675_v2  ;;  %v7211_v26 = vrot.slane %v7197_v43, %v17020_v61  ;;  %vm19428_vm1 = vmmov %vm19425_vm7 }
 0x365   : > { %3315 = vst.msk [vmem:[#allocation2 + $0xb4] sm:$0xf] %vm19425_vm7, %v3197_v52  ;;  %4110 = vrot.lane.b32.xlu1 %v14832_v5, %s15964_s14  ;;  %3658 = vrot.lane.b32.xlu0 %v14778_v36, %s15963_s9  ;;  %v15676_v5 = vld [vmem:[%s19266_s3 + $0x120] sm:$0xff]   ;;  %vm19429_vm7 = vcmask 188544  }
 0x366   : > { %v7213_v38 = vcombine.high %v7211_v26, %v7211_v26 }
 0x367   : > { %v3647_v15 = vpop.permute.xlu1 %3646  ;;  %v1842_v16 = vpop.permute.xlu0 %1841  ;;  %15191 = vmatpush3.bf16.msra.mxu0 %v15676_v5 }
 0x368   : > { %3766 = vst.msk [vmem:[#allocation2 + $0xb0] sm:$0x1] %vm3723_vm11, %v3647_v15  ;;  %15192 = vmatprep.subr.bf16.mxu0 %v15677_v13 }
 0x369   : > { %1959 = vst.msk [vmem:[#allocation2 + $0xb8] sm:$0xf] %vm1911_vm6, %v1842_v16  ;;  %1402 = vrot.lane.b32.xlu1 %v14511_v7, %s15956_s26  ;;  %950 = vrot.lane.b32.xlu0 %v14457_v27, %s15957_s27  ;;  %v13947_v27 = vcombine.high %v18134_v49, %v18137_v48  ;;  %s14349_s27 = sshll.u32 %s19572_s18, 8 }
 0x36a   : > { %s19159_s25 = scalar_lea.vmem %s19268_s5, %s14349_s27 }
 0x36b   : > { %v2294_v17 = vpop.permute.xlu1 %2293  ;;  %v13921_v31 = vld.sshfl [vmem:[#allocation2 + $0xac] sm:$0x33 pattern:$0x75316420]  ;;  %v3649_v42 = vpop.permute.xlu0 %3648  ;;  %15193 = vmatpush3.bf16.msra.mxu0 %v15678_v60 }
 0x36c   : > { %2411 = vst.msk [vmem:[#allocation2 + $0xb8] sm:$0xf] %vm19426_vm0, %v2294_v17  ;;  %v5235_v9 = vcombine.high %v13921_v31, %v13921_v31  ;;  %v5242_v22 = vrot.slane %v13921_v31, %v16292_v19  ;;  %v15680_v17 = vld [vmem:[%s19266_s3 + $0x130] sm:$0xff]   ;;  %15194 = vmatprep.subr.bf16.mxu0 %v15679_v18  ;;  %vm19430_vm0 = vcmask 254144  }
 0x36d   : > { %3767 = vst.msk [vmem:[#allocation2 + $0xb4] sm:$0xf] %vm3720_vm10, %v3649_v42  ;;  %2307 = vrot.lane.b32.xlu1 %v14619_v35, %s15959_s29  ;;  %1855 = vrot.lane.b32.xlu0 %v14565_v33, %s15958_s28 }
 0x36e   : > { %v5249_v55 = vrot.slane %v5235_v9, %v16292_v19  ;;  %v8216_v9 = vcombine.low %v7212_v46, %v7211_v26 }
 0x36f   : > { %v4101_v41 = vpop.permute.xlu1 %4100  ;;  %v4099_v4 = vpop.permute.xlu0 %4098  ;;  %15195 = vmatpush3.bf16.msra.mxu0 %v15680_v17 }
 0x370   : > { %4219 = vst.msk [vmem:[#allocation2 + $0xb4] sm:$0xf] %vm19427_vm3, %v4101_v41  ;;  %v14998_v57 = vpop.f32.mrb[16].mxu1  ;;  %v6253_v30 = vcombine.low %v5242_v22, %v5249_v55  ;;  %v13948_v48 = vcombine.high %v5242_v22, %v5249_v55 }
 0x371   : > { %4218 = vst.msk [vmem:[#allocation2 + $0xb0] sm:$0x1] %vm4175_vm9, %v4099_v4  ;;  %3212 = vrot.lane.b32.xlu1 %v14727_v11, %s15961_s6  ;;  %2759 = vrot.lane.b32.xlu0 %v14673_v3, %s15960_s30  ;;  %v14999_v63 = vpop.f32.mrb[17].mxu1  ;;  %v6262_v11 = vrot.slane %v13947_v27, %v16292_v19 }
 0x372   : > { %v18288_v6 = vadd.f32 %v14999_v63, %v14998_v57  ;;  %v15001_v50 = vpop.f32.mrb[18].mxu1  ;;  %v6269_v33 = vrot.slane %v6253_v30, %v16292_v19  ;;  %v6276_v41 = vrot.slane %v13948_v48, %v16292_v19  ;;  %v8224_v63 = vrot.slane %v8216_v9, %v17020_v61 }
 0x373   : > { %v2746_v45 = vpop.permute.xlu1 %2745  ;;  %v939_v51 = vpop.permute.xlu0 %938 }
 0x374   : > { %2863 = vst.msk [vmem:[#allocation2 + $0xb8] sm:$0xf] %vm2815_vm8, %v2746_v45  ;;  %v15002_v59 = vpop.f32.mrb[19].mxu1  ;;  %v6284_v4 = vcombine.low %v6262_v11, %v6269_v33  ;;  %v15683_v45 = vld [vmem:[%s19266_s3 + $0x178] sm:$0xff]  }
 0x375   : > { %1055 = vst.msk [vmem:[#allocation2 + $0xbc] sm:$0x1] %vm1009_vm12, %v939_v51  ;;  %4116 = vrot.lane.b32.xlu1 %v14835_v23, %s15964_s14  ;;  %3664 = vrot.lane.b32.xlu0 %v14781_v53, %s15963_s9  ;;  %v18299_v36 = vadd.f32 %v15002_v59, %v15001_v50  ;;  %v6680_v52 = vpop.f32.mrb[44].mxu0  ;;  %v15684_v59 = vld [vmem:[%s19266_s3 + $0x138] sm:$0xff]  }
 0x376   : > { %v6681_v54 = vadd.f32 %v18161_v20, %v6680_v52  ;;  %v15486_v15 = vpop.f32.mrb[45].mxu0  ;;  %v6292_v13 = vrot.slane %v6284_v4, %v16292_v19  ;;  %15196 = vmatprep.subr.bf16.mxu0 %v15683_v45 }
 0x377   : > { %v3199_v8 = vpop.permute.xlu1 %3198  ;;  %v18305_v7 = vld.sshfl [vmem:[#allocation2 + $0xb4] sm:$0x33 pattern:$0x75316420]  ;;  %v1391_v56 = vpop.permute.xlu0 %1390  ;;  %15197 = vmatpush3.bf16.msra.mxu0 %v15684_v59 }
 0x378   : > { %3316 = vst.msk [vmem:[#allocation2 + $0xb8] sm:$0xf] %vm19428_vm1, %v3199_v8  ;;  %v13922_v32 = vld.sshfl [vmem:[#allocation2 + $0xb0] sm:$0x1 pattern:$0x75316420]  ;;  %v18315_v16 = vrot.slane %v18305_v7, %v16292_v19 }
 0x379   : > { %1507 = vst.msk [vmem:[#allocation2 + $0xbc] sm:$0x1] %vm19429_vm7, %v1391_v56  ;;  %v6683_v35 = vpop.f32.mrb[46].mxu0  ;;  %v5265_v49 = vrot.slane %v13922_v32, %v16292_v19  ;;  %v6780_v0 = vmax.f32 %v6681_v54, 0.0  ;;  %vm19431_vm1 = vcmask 385344   ;;  %vm19432_vm7 = vcmask 450944  }
 0x37a   : > { %v6684_v14 = vadd.f32 %v18161_v20, %v6683_v35  ;;  %v15487_v12 = vpop.f32.mrb[47].mxu0  ;;  %v5288_v11 = vcombine.high %v18315_v16, %v18315_v16 }
 0x37b   : > { %v3651_v31 = vpop.permute.xlu1 %3650  ;;  %v6255_v42 = vcombine.low %v5265_v49, %v18315_v16  ;;  %v7214_v3 = vcombine.high %v6780_v0, %v6780_v0  ;;  %v7221_v47 = vrot.slane %v6780_v0, %v17020_v61  ;;  %v1844_v10 = vpop.permute.xlu0 %1843  ;;  %v5273_v49 = vcombine.high %v18305_v7, %v18305_v7 }
 0x37c   : > { %v18330_v1 = vmax.f32 %v6684_v14, 0.0  ;;  %3768 = vst.msk [vmem:[#allocation2 + $0xb8] sm:$0xf] %vm3720_vm10, %v3651_v31 }
 0x37d   : > { %1960 = vst.msk [vmem:[#allocation2 + $0xbc] sm:$0x1] %vm19430_vm0, %v1844_v10  ;;  %v6283_v44 = vrot.slane %v6255_v42, %v16292_v19  ;;  %v7228_v23 = vrot.slane %v7214_v3, %v17020_v61  ;;  %v7229_v22 = vcombine.high %v7221_v47, %v7221_v47  ;;  %v8217_v55 = vcombine.low %v7213_v38, %v7221_v47 }
 0x37e   : > { %v7238_v57 = vrot.slane %v18330_v1, %v17020_v61  ;;  %v5287_v7 = vrot.slane %v5273_v49, %v16292_v19  ;;  %vm19433_vm0 = vsmask.f32 7424 }
 0x37f   : > { %v4103_v53 = vpop.permute.xlu1 %4102  ;;  %v6285_v43 = vcombine.low %v6276_v41, %v6283_v44  ;;  %v7230_v2 = vcombine.high %v7228_v23, %v7228_v23  ;;  %v8231_v51 = vrot.slane %v8217_v55, %v17020_v61  ;;  %v8239_v50 = vrot.slane %v7229_v22, %v17020_v61  ;;  %v2296_v5 = vpop.permute.xlu0 %2295 }
 0x380   : > { %4220 = vst.msk [vmem:[#allocation2 + $0xb8] sm:$0xf] %vm19427_vm3, %v4103_v53  ;;  %v7246_v30 = vcombine.high %v7238_v57, %v7238_v57  ;;  %v5289_v9 = vcombine.high %v5287_v7, %v5287_v7  ;;  %v6301_v55 = vcombine.low %v5287_v7, %v5288_v11  ;;  %vm19434_vm3 = vcmask 322816  }
 0x381   : > { %2412 = vst.msk [vmem:[#allocation2 + $0xbc] sm:$0x1] %vm2366_vm2, %v2296_v5  ;;  %v6299_v60 = vrot.slane %v6285_v43, %v16292_v19  ;;  %v8232_v26 = vcombine.low %v8224_v63, %v8231_v51  ;;  %v8240_v8 = vcombine.low %v7228_v23, %v7230_v2  ;;  %v8651_v52 = vsel %vm7667_vm13, %v8239_v50, 0.0 }
 0x382   : > { %v14862_v27 = vpack.c.bf16 %v8651_v52, %v8651_v52  ;;  %v8241_v46 = vcombine.low %v7238_v57, %v7246_v30 }
 0x383   : > { %v3201_v56 = vpop.permute.xlu1 %3200  ;;  %v6300_v54 = vcombine.low %v6292_v13, %v6299_v60  ;;  %v8248_v15 = vrot.slane %v8240_v8, %v17020_v61  ;;  %v14861_v32 = vpack.c.bf16 %v8232_v26, %v8232_v26  ;;  %v2748_v35 = vpop.permute.xlu0 %2747  ;;  %v6311_v13 = vrot.slane %v6301_v55, %v16292_v19 }
 0x384   : > { %8939 = vst [vmem:[#allocation3 + $0x74] sm:$0x1] %v14862_v27  ;;  %v8255_v48 = vrot.slane %v8241_v46, %v17020_v61  ;;  %2864 = vst.msk [vmem:[#allocation2 + $0xbc] sm:$0x1] %vm19431_vm1, %v2748_v35 }
 0x385   : > { %15505 = vmatmul.mubr.msk.bf16.gmra.mrb[64].mxu0 %vm6490_vm14, %v6300_v54  ;;  %8938 = vst [vmem:[#allocation3 + $0x70] sm:$0xf] %v14861_v32  ;;  %3317 = vst.msk [vmem:[#allocation2 + $0xbc] sm:$0x1] %vm19432_vm7, %v3201_v56  ;;  %vm19436_vm7 = vcmask 454016  }
 0x386   : > { %15508 = vmatprep.mubr.msk.bf16.mxu0 %vm19281_vm15, %v15962_v34  ;;  %v18363_v33 = vcombine.low %v8248_v15, %v8255_v48  ;;  %vm19435_vm1 = vmmov %vm19434_vm3  ;;  %v15701_v48 = vld [vmem:[%s19266_s3 + $0xc0] sm:$0xff]  }
 0x387   : > { %v4105_v0 = vpop.permute.xlu1 %4104  ;;  %v13924_v14 = vld.sshfl [vmem:[#allocation2 + $0xb8] sm:$0x33 pattern:$0x75316420]  ;;  %v3653_v12 = vpop.permute.xlu0 %3652  ;;  %15070 = vmatprep.subr.bf16.mxu1 %v15701_v48 }
 0x388   : > { %3769 = vst.msk [vmem:[#allocation2 + $0xbc] sm:$0x1] %vm3723_vm11, %v3653_v12  ;;  %v5297_v18 = vcombine.high %v13924_v14, %v13924_v14  ;;  %v5304_v17 = vrot.slane %v13924_v14, %v16292_v19 }
 0x389   : > { %4221 = vst.msk [vmem:[#allocation2 + $0xbc] sm:$0x1] %vm4175_vm9, %v4105_v0  ;;  %v15702_v0 = vld [vmem:[%s19266_s3 + $0x80] sm:$0xff]  }
 0x38a   : > { %v5311_v47 = vrot.slane %v5297_v18, %v16292_v19  ;;  %v5312_v41 = vcombine.high %v5304_v17, %v5304_v17  ;;  %v6302_v44 = vcombine.low %v5289_v9, %v5304_v17  ;;  %15071 = vmatpush3.bf16.msra.mxu1 %v15702_v0 }
 0x38b   : > { %v943_v38 = vpop.permute.xlu1 %942  ;;  %v941_v31 = vpop.permute.xlu0 %940  ;;  %v15659_v42 = vld [vmem:[#allocation3 + $0x74] ss:$0 sps:$4 sm:$0x11]  }
 0x38c   : > { %1057 = vst.msk [vmem:[#allocation2 + $0xc4] sm:$0xf] %vm1006_vm4, %v943_v38  ;;  %1056 = vst.msk [vmem:[#allocation2 + $0xc0] sm:$0xf] %vm1006_vm4, %v941_v31  ;;  %v15658_v3 = vld [vmem:[#allocation3 + $0x6c] sm:$0xff]   ;;  %v9401_v10 = vshll.u32 %v15659_v42, 16  ;;  %v5313_v43 = vcombine.high %v5311_v47, %v5311_v47  ;;  %v6303_v2 = vcombine.low %v5311_v47, %v5312_v41  ;;  %v6318_v51 = vrot.slane %v6302_v44, %v16292_v19 }
 0x38d   : > { %v9396_v23 = vshll.u32 %v15658_v3, 16  ;;  %v9394_v57 = vshrl.u32 %v15658_v3, 16  ;;  %v15660_v26 = vld [vmem:[#allocation3 + $0x6c] sm:$0xff]   ;;  %v7231_v38 = vcombine.high %v18330_v1, %v18330_v1 }
 0x38e   : > { %v9403_v45 = vrot.slane %v9401_v10, 1  ;;  %v6325_v8 = vrot.slane %v6303_v2, %v16292_v19  ;;  %v6333_v27 = vcombine.low %v6311_v13, %v6318_v51 }
 0x38f   : > { %v1395_v4 = vpop.permute.xlu1 %1394  ;;  %v1393_v22 = vpop.permute.xlu0 %1392  ;;  %v9398_v53 = vrot.slane %v9396_v23, 1  ;;  %v7245_v3 = vrot.slane %v7231_v38, %v17020_v61 }
 0x390   : > { %1509 = vst.msk [vmem:[#allocation2 + $0xc4] sm:$0xf] %vm1458_vm5, %v1395_v4  ;;  %1508 = vst.msk [vmem:[#allocation2 + $0xc0] sm:$0xf] %vm1458_vm5, %v1393_v22  ;;  %v6341_v15 = vrot.slane %v6333_v27, %v16292_v19 }
 0x391   : > { %v13925_v16 = vld.sshfl [vmem:[#allocation2 + $0xbc] sm:$0x1 pattern:$0x75316420]  ;;  %v9399_v5 = vor.u32 %v9398_v53, %v9394_v57  ;;  %v7247_v4 = vcombine.high %v7245_v3, %v7245_v3 }
 0x392   : > { %v5327_v63 = vrot.slane %v13925_v16, %v16292_v19 }
 0x393   : > { %v1848_v50 = vpop.permute.xlu1 %1847  ;;  %v1846_v59 = vpop.permute.xlu0 %1845  ;;  %v9404_v60 = vsel %vm19433_vm0, %v9399_v5, %v9403_v45  ;;  %vm19437_vm0 = vmmov %vm19436_vm7  ;;  %v8257_v2 = vcombine.low %v7245_v3, %v7247_v4 }
 0x394   : > { %1962 = vst.msk [vmem:[#allocation2 + $0xc4] sm:$0xf] %vm1911_vm6, %v1848_v50  ;;  %v6304_v30 = vcombine.low %v5313_v43, %v5327_v63  ;;  %1961 = vst.msk [vmem:[#allocation2 + $0xc0] sm:$0xf] %vm1911_vm6, %v1846_v59  ;;  %12199 = vmatprep.mubr.bf16.mxu1 %v9404_v60 }
 0x395   : > { %12200 = vmatmul.mubr.bf16.gmra.mrb[36].mxu1 %v15660_v26  ;;  %v8265_v27 = vrot.slane %v8257_v2, %v17020_v61  ;;  %v15714_v2 = vld [vmem:[%s19266_s3 + $0xc8] sm:$0xff]  }
 0x396   : > { %v6332_v52 = vrot.slane %v6304_v30, %v16292_v19  ;;  %15072 = vmatprep.subr.bf16.mxu1 %v15714_v2 }
 0x397   : > { %v2300_v46 = vpop.permute.xlu1 %2299  ;;  %v2298_v56 = vpop.permute.xlu0 %2297 }
 0x398   : > { %2414 = vst.msk [vmem:[#allocation2 + $0xc4] sm:$0xf] %vm19434_vm3, %v2300_v46  ;;  %v6334_v54 = vcombine.low %v6325_v8, %v6332_v52  ;;  %v15004_v35 = vpop.f32.mrb[20].mxu1  ;;  %vm19438_vm3 = vcmask 585216  }
 0x399   : > { %2413 = vst.msk [vmem:[#allocation2 + $0xc0] sm:$0xf] %vm19435_vm1, %v2298_v56  ;;  %v15005_v12 = vpop.f32.mrb[21].mxu1  ;;  %vm19439_vm1 = vmmov %vm19438_vm3 }
 0x39a   : > { %v6348_v32 = vrot.slane %v6334_v54, %v16292_v19  ;;  %v18396_v18 = vadd.f32 %v15005_v12, %v15004_v35  ;;  %v15007_v17 = vpop.f32.mrb[22].mxu1 }
 0x39b   : > { %v2752_v49 = vpop.permute.xlu1 %2751  ;;  %v2750_v14 = vpop.permute.xlu0 %2749 }
 0x39c   : > { %2866 = vst.msk [vmem:[#allocation2 + $0xc4] sm:$0xf] %vm2815_vm8, %v2752_v49  ;;  %v6349_v7 = vcombine.low %v6341_v15, %v6348_v32  ;;  %2865 = vst.msk [vmem:[#allocation2 + $0xc0] sm:$0xf] %vm2815_vm8, %v2750_v14  ;;  %v15008_v31 = vpop.f32.mrb[23].mxu1 }
 0x39d   : > { %v18401_v42 = vadd.f32 %v15008_v31, %v15007_v17 }
 0x39e   : > { %15509 = vmatmul.mubr.msk.bf16.gmra.mrb[68].mxu0 %vm6490_vm14, %v6349_v7 }
 0x39f   : > { %v3205_v11 = vpop.permute.xlu1 %3204  ;;  %15512 = vmatprep.mubr.msk.bf16.mxu0 %vm19281_vm15, %v15962_v34  ;;  %v3203_v9 = vpop.permute.xlu0 %3202 }
 0x3a0   : > { %3319 = vst.msk [vmem:[#allocation2 + $0xc4] sm:$0xf] %vm19436_vm7, %v3205_v11  ;;  %vm19440_vm7 = vcmp.ge.s32.totalorder %v17052_v39, 0 }
 0x3a1   : > { %3318 = vst.msk [vmem:[#allocation2 + $0xc0] sm:$0xf] %vm19437_vm0, %v3203_v9  ;;  %v8652_v11 = vsel %vm19440_vm7, %v18363_v33, 0.0  ;;  %vm19441_vm0 = vcmask 322816  }
 0x3a3   : > { %v3657_v47 = vpop.permute.xlu1 %3656  ;;  %v3655_v10 = vpop.permute.xlu0 %3654 }
 0x3a4   : > { %v6688_v1 = vpop.f32.mrb[48].mxu0  ;;  %3771 = vst.msk [vmem:[#allocation2 + $0xc4] sm:$0xf] %vm3720_vm10, %v3657_v47  ;;  %3770 = vst.msk [vmem:[#allocation2 + $0xc0] sm:$0xf] %vm3720_vm10, %v3655_v10 }
 0x3a5   : > { %v6689_v41 = vadd.f32 %v18161_v20, %v6688_v1  ;;  %v15490_v44 = vpop.f32.mrb[49].mxu0 }
 0x3a6   : > { %v6691_v23 = vpop.f32.mrb[50].mxu0 }
 0x3a7   : > { %v6782_v22 = vmax.f32 %v6689_v41, 0.0  ;;  %v6692_v55 = vadd.f32 %v18161_v20, %v6691_v23  ;;  %v15491_v57 = vpop.f32.mrb[51].mxu0  ;;  %v4109_v53 = vpop.permute.xlu1 %4108 }
 0x3a8   : > { %v4107_v16 = vpop.permute.xlu0 %4106  ;;  %4223 = vst.msk [vmem:[#allocation2 + $0xc4] sm:$0xf] %vm19438_vm3, %v4109_v53  ;;  %vm19445_vm3 = vmmov %vm19441_vm0 }
 0x3a9   : > { %v7248_v43 = vcombine.high %v6782_v22, %v6782_v22  ;;  %v7255_v45 = vrot.slane %v6782_v22, %v17020_v61  ;;  %v6783_v63 = vmax.f32 %v6692_v55, 0.0  ;;  %4222 = vst.msk [vmem:[#allocation2 + $0xc0] sm:$0xf] %vm19439_vm1, %v4107_v16  ;;  %vm19446_vm1 = vsmask.f32 7424 }
 0x3ab   : > { %v7262_v51 = vrot.slane %v7248_v43, %v17020_v61  ;;  %v7263_v50 = vcombine.high %v7255_v45, %v7255_v45  ;;  %v7265_v5 = vcombine.high %v6783_v63, %v6783_v63  ;;  %v7272_v59 = vrot.slane %v6783_v63, %v17020_v61  ;;  %v1399_v30 = vpop.permute.xlu1 %1398 }
 0x3ac   : > { %v947_v20 = vpop.permute.xlu0 %946 }
 0x3ad   : > { %v8258_v13 = vcombine.low %v7255_v45, %v7263_v50  ;;  %v8280_v60 = vrot.slane %v7262_v51, %v17020_v61  ;;  %v7264_v26 = vcombine.high %v7262_v51, %v7262_v51  ;;  %v18419_v8 = vrot.slane %v7265_v5, %v17020_v61  ;;  %1059 = vst.msk [vmem:[#allocation2 + $0xcc] sm:$0xf] %vm1006_vm4, %v947_v20  ;;  %v15715_v51 = vld [vmem:[%s19266_s3 + $0x88] sm:$0xff]  }
 0x3ae   : > { %v7280_v52 = vcombine.high %v7272_v59, %v7272_v59  ;;  %1511 = vst.msk [vmem:[#allocation2 + $0xcc] sm:$0xf] %vm1458_vm5, %v1399_v30  ;;  %15073 = vmatpush3.bf16.msra.mxu1 %v15715_v51 }
 0x3af   : > { %v8272_v46 = vrot.slane %v8258_v13, %v17020_v61  ;;  %v8654_v56 = vsel %vm7667_vm13, %v8280_v60, 0.0  ;;  %v8281_v54 = vcombine.low %v7264_v26, %v7272_v59  ;;  %v1852_v15 = vpop.permute.xlu1 %1851  ;;  %v13927_v32 = vld.sshfl [vmem:[#allocation2 + $0xc4] sm:$0x33 pattern:$0x75316420]  ;;  %v15724_v26 = vld [vmem:[%s19266_s3 + $0xd0] sm:$0xff]  }
 0x3b0   : > { %v14865_v35 = vpack.c.bf16 %v8654_v56, %v8654_v56  ;;  %v8282_v49 = vcombine.low %v7280_v52, %v18419_v8  ;;  %v949_v48 = vpop.permute.xlu0 %948  ;;  %1964 = vst.msk [vmem:[#allocation2 + $0xcc] sm:$0xf] %vm1911_vm6, %v1852_v15  ;;  %v13926_v0 = vld.sshfl [vmem:[#allocation2 + $0xc0] sm:$0x33 pattern:$0x75316420]  ;;  %v5359_v14 = vcombine.high %v13927_v32, %v13927_v32  ;;  %v5366_v12 = vrot.slane %v13927_v32, %v16292_v19 }
 0x3b1   : > { %v8273_v7 = vcombine.low %v8265_v27, %v8272_v46  ;;  %v8289_v17 = vrot.slane %v8281_v54, %v17020_v61  ;;  %1060 = vst.msk [vmem:[#allocation2 + $0xd0] sm:$0xf] %vm1006_vm4, %v949_v48  ;;  %v5335_v38 = vcombine.high %v13926_v0, %v13926_v0  ;;  %v5342_v31 = vrot.slane %v13926_v0, %v16292_v19  ;;  %vm19442_vm4 = vmmov %vm19440_vm7  ;;  %v15725_v52 = vld [vmem:[%s19266_s3 + $0x90] sm:$0xff]  }
 0x3b2   : > { %8942 = vst [vmem:[#allocation3 + $0x80] sm:$0x1] %v14865_v35  ;;  %v8296_v9 = vrot.slane %v8282_v49, %v17020_v61  ;;  %v5373_v3 = vrot.slane %v5359_v14, %v16292_v19  ;;  %15074 = vmatprep.subr.bf16.mxu1 %v15724_v26  ;;  %vm19447_vm7 = vcmask 254144  }
 0x3b3   : > { %v14907_v47 = vpack.c.bf16 %v8273_v7, %v8652_v11  ;;  %v2304_v10 = vpop.permute.xlu1 %2303  ;;  %v5349_v1 = vrot.slane %v5335_v38, %v16292_v19  ;;  %15075 = vmatpush3.bf16.msra.mxu1 %v15725_v52 }
 0x3b4   : > { %v8297_v41 = vcombine.low %v8289_v17, %v8296_v9  ;;  %v1401_v44 = vpop.permute.xlu0 %1400  ;;  %2416 = vst.msk [vmem:[#allocation2 + $0xcc] sm:$0xf] %vm19441_vm0, %v2304_v10  ;;  %v6352_v4 = vcombine.low %v5366_v12, %v5373_v3  ;;  %v13950_v23 = vcombine.high %v5366_v12, %v5373_v3  ;;  %v18476_v3 = vld [vmem:[%s19265_s2] ss:$0 sm:$0xff] }
 0x3b5   : > { %14928 = vst [vmem:[#allocation3 + $0x78] sm:$0xff] %v14907_v47   ;;  %1512 = vst.msk [vmem:[#allocation2 + $0xd0] sm:$0xf] %vm1458_vm5, %v1401_v44  ;;  %v6350_v22 = vcombine.low %v5342_v31, %v5349_v1  ;;  %v13949_v33 = vcombine.high %v5342_v31, %v5349_v1  ;;  %vm19443_vm5 = vcmask 188544  }
 0x3b6   : > { %v8655_v55 = vsel %vm19442_vm4, %v8297_v41, 0.0  ;;  %v6374_v57 = vrot.slane %v6352_v4, %v16292_v19  ;;  %v6381_v53 = vrot.slane %v13950_v23, %v16292_v19  ;;  %v15737_v23 = vld [vmem:[%s19266_s3 + $0xd8] sm:$0xff]   ;;  %vm19450_vm4 = vcmask 385344  }
 0x3b7   : > { %v14866_v16 = vpack.c.bf16 %v8655_v55, %v8655_v55  ;;  %v1854_v43 = vpop.permute.xlu1 %1853  ;;  %v6360_v45 = vrot.slane %v6350_v22, %v16292_v19  ;;  %v6367_v63 = vrot.slane %v13949_v33, %v16292_v19  ;;  %v15738_v22 = vld [vmem:[%s19266_s3 + $0x98] sm:$0xff]   ;;  %v7281_v33 = vcombine.high %v18419_v8, %v18419_v8  ;;  %15076 = vmatprep.subr.bf16.mxu1 %v15737_v23 }
 0x3b8   : > { %v945_v50 = vpop.permute.xlu0 %944  ;;  %1965 = vst.msk [vmem:[#allocation2 + $0xd0] sm:$0xf] %vm1911_vm6, %v1854_v43  ;;  %v6383_v5 = vcombine.low %v6374_v57, %v6381_v53  ;;  %vm19444_vm6 = vcmask 454016   ;;  %15077 = vmatpush3.bf16.msra.mxu1 %v15738_v22 }
 0x3b9   : > { %8943 = vst [vmem:[#allocation3 + $0x84] sm:$0xf] %v14866_v16  ;;  %1058 = vst.msk [vmem:[#allocation2 + $0xc8] sm:$0x1] %vm1009_vm12, %v945_v50  ;;  %v6382_v59 = vcombine.low %v6360_v45, %v6367_v63 }
 0x3ba   : > { %v15662_v30 = vld [vmem:[#allocation3 + $0x80] ss:$0 sps:$4 sm:$0x11]   ;;  %v6397_v20 = vrot.slane %v6383_v5, %v16292_v19  ;;  %vm19449_vm0 = vmmov %vm19444_vm6 }
 0x3bb   : > { %v1397_v13 = vpop.permute.xlu1 %1396  ;;  %v6390_v60 = vrot.slane %v6382_v59, %v16292_v19  ;;  %v9413_v15 = vshll.u32 %v15662_v30, 16 }
 0x3bc   : > { %v2756_v27 = vpop.permute.xlu0 %2755  ;;  %1510 = vst.msk [vmem:[#allocation2 + $0xc8] sm:$0x1] %vm19443_vm5, %v1397_v13  ;;  %v15661_v46 = vld [vmem:[#allocation3 + $0x78] sm:$0xff]   ;;  %vm19452_vm5 = vcmask 450944  }
 0x3bd   : > { %2868 = vst.msk [vmem:[#allocation2 + $0xcc] sm:$0xf] %vm2815_vm8, %v2756_v27  ;;  %v6398_v56 = vcombine.low %v6390_v60, %v6397_v20  ;;  %v9408_v54 = vshll.u32 %v15661_v46, 16  ;;  %v9406_v49 = vshrl.u32 %v15661_v46, 16  ;;  %v9415_v14 = vrot.slane %v9413_v15, 1  ;;  %v15663_v38 = vld [vmem:[#allocation3 + $0x78] sm:$0xff]  }
 0x3bf   : > { %v3209_v32 = vpop.permute.xlu1 %3208  ;;  %15513 = vmatmul.mubr.msk.bf16.gmra.mrb[72].mxu0 %vm6490_vm14, %v6398_v56  ;;  %v9410_v48 = vrot.slane %v9408_v54, 1 }
 0x3c0   : > { %v2306_v35 = vpop.permute.xlu0 %2305  ;;  %3321 = vst.msk [vmem:[#allocation2 + $0xcc] sm:$0xf] %vm19444_vm6, %v3209_v32  ;;  %15516 = vmatprep.mubr.msk.bf16.mxu0 %vm19281_vm15, %v15962_v34  ;;  %vm19453_vm6 = vcmask 188544  }
 0x3c1   : > { %2417 = vst.msk [vmem:[#allocation2 + $0xd0] sm:$0xf] %vm19445_vm3, %v2306_v35  ;;  %v9411_v0 = vor.u32 %v9410_v48, %v9406_v49  ;;  %vm19454_vm3 = vmmov %vm19447_vm7 }
 0x3c3   : > { %v2758_v12 = vpop.permute.xlu1 %2757  ;;  %v9416_v17 = vsel %vm19446_vm1, %v9411_v0, %v9415_v14  ;;  %vm19456_vm1 = vmmov %vm19452_vm5 }
 0x3c4   : > { %v1850_v7 = vpop.permute.xlu0 %1849  ;;  %2869 = vst.msk [vmem:[#allocation2 + $0xd0] sm:$0xf] %vm2815_vm8, %v2758_v12  ;;  %12207 = vmatprep.mubr.bf16.mxu1 %v9416_v17  ;;  %vm19448_vm8 = vcmask 585216  }
 0x3c5   : > { %1963 = vst.msk [vmem:[#allocation2 + $0xc8] sm:$0x1] %vm19447_vm7, %v1850_v7  ;;  %12208 = vmatmul.mubr.bf16.gmra.mrb[40].mxu1 %v15663_v38 }
 0x3c6   : > { %v6696_v31 = vpop.f32.mrb[52].mxu0 }
 0x3c7   : > { %v2302_v11 = vpop.permute.xlu1 %2301  ;;  %v6697_v47 = vadd.f32 %v18476_v3, %v6696_v31  ;;  %v15494_v10 = vpop.f32.mrb[53].mxu0 }
 0x3c8   : > { %v3661_v9 = vpop.permute.xlu0 %3660  ;;  %2415 = vst.msk [vmem:[#allocation2 + $0xc8] sm:$0x1] %vm2366_vm2, %v2302_v11  ;;  %v18481_v1 = vpop.f32.mrb[54].mxu0 }
 0x3c9   : > { %3773 = vst.msk [vmem:[#allocation2 + $0xcc] sm:$0xf] %vm3720_vm10, %v3661_v9  ;;  %v6784_v41 = vmax.f32 %v6697_v47, 0.0  ;;  %v15495_v44 = vpop.f32.mrb[55].mxu0 }
 0x3cb   : > { %v4113_v4 = vpop.permute.xlu1 %4112  ;;  %v7282_v55 = vcombine.high %v6784_v41, %v6784_v41  ;;  %v7289_v57 = vrot.slane %v6784_v41, %v17020_v61 }
 0x3cc   : > { %v3211_v53 = vpop.permute.xlu0 %3210  ;;  %4225 = vst.msk [vmem:[#allocation2 + $0xcc] sm:$0xf] %vm19448_vm8, %v4113_v4 }
 0x3cd   : > { %3322 = vst.msk [vmem:[#allocation2 + $0xd0] sm:$0xf] %vm19449_vm0, %v3211_v53  ;;  %v7296_v16 = vrot.slane %v7282_v55, %v17020_v61  ;;  %v7297_v43 = vcombine.high %v7289_v57, %v7289_v57  ;;  %v8298_v45 = vcombine.low %v7281_v33, %v7289_v57 }
 0x3ce   : > { %v15010_v63 = vpop.f32.mrb[24].mxu1 }
 0x3cf   : > { %v3663_v2 = vpop.permute.xlu1 %3662  ;;  %v7298_v51 = vcombine.high %v7296_v16, %v7296_v16  ;;  %v8299_v50 = vcombine.low %v7297_v43, %v7296_v16  ;;  %v15011_v8 = vpop.f32.mrb[25].mxu1  ;;  %v8306_v20 = vrot.slane %v8298_v45, %v17020_v61 }
 0x3d0   : > { %v2754_v5 = vpop.permute.xlu0 %2753  ;;  %3774 = vst.msk [vmem:[#allocation2 + $0xd0] sm:$0xf] %vm3720_vm10, %v3663_v2  ;;  %v18497_v59 = vadd.f32 %v15011_v8, %v15010_v63  ;;  %v15013_v30 = vpop.f32.mrb[26].mxu1  ;;  %vm19451_vm10 = vmmov %vm19448_vm8 }
 0x3d1   : > { %2867 = vst.msk [vmem:[#allocation2 + $0xc8] sm:$0x1] %vm19450_vm4, %v2754_v5  ;;  %v8313_v13 = vrot.slane %v8299_v50, %v17020_v61  ;;  %v8321_v60 = vrot.slane %v7298_v51, %v17020_v61  ;;  %v15014_v26 = vpop.f32.mrb[27].mxu1 }
 0x3d2   : > { %v18502_v52 = vadd.f32 %v15014_v26, %v15013_v30 }
 0x3d3   : > { %v4115_v27 = vpop.permute.xlu1 %4114  ;;  %v13929_v46 = vld.sshfl [vmem:[#allocation2 + $0xcc] sm:$0x33 pattern:$0x75316420]  ;;  %v8314_v56 = vcombine.low %v8306_v20, %v8313_v13  ;;  %v8657_v54 = vsel %vm7667_vm13, %v8321_v60, 0.0 }
 0x3d4   : > { %v3207_v15 = vpop.permute.xlu0 %3206  ;;  %4226 = vst.msk [vmem:[#allocation2 + $0xd0] sm:$0xf] %vm19451_vm10, %v4115_v27  ;;  %v5397_v32 = vcombine.high %v13929_v46, %v13929_v46  ;;  %v14868_v35 = vpack.c.bf16 %v8657_v54, %v8657_v54  ;;  %v5404_v12 = vrot.slane %v13929_v46, %v16292_v19 }
 0x3d5   : > { %3320 = vst.msk [vmem:[#allocation2 + $0xc8] sm:$0x1] %vm19452_vm5, %v3207_v15  ;;  %v14867_v49 = vpack.c.bf16 %v8314_v56, %v8314_v56 }
 0x3d6   : > { %v5411_v48 = vrot.slane %v5397_v32, %v16292_v19  ;;  %8945 = vst [vmem:[#allocation3 + $0x8c] sm:$0x1] %v14868_v35  ;;  %v5412_v11 = vcombine.high %v5404_v12, %v5404_v12 }
 0x3d7   : > { %v4111_v0 = vpop.permute.xlu1 %4110  ;;  %8944 = vst [vmem:[#allocation3 + $0x88] sm:$0xf] %v14867_v49 }
 0x3d8   : > { %v3659_v14 = vpop.permute.xlu0 %3658  ;;  %v5413_v7 = vcombine.high %v5411_v48, %v5411_v48  ;;  %v6400_v55 = vcombine.low %v5411_v48, %v5412_v11  ;;  %v6700_v48 = vadd.f32 %v18476_v3, %v18481_v1  ;;  %v15752_v1 = vld [vmem:[%s19266_s3 + $0xa8] sm:$0xff]  }
 0x3d9   : > { %3772 = vst.msk [vmem:[#allocation2 + $0xc8] sm:$0x1] %vm3723_vm11, %v3659_v14  ;;  %v15748_v14 = vld [vmem:[%s19266_s3 + $0xa0] sm:$0xff]  }
 0x3da   : > { %4224 = vst.msk [vmem:[#allocation2 + $0xc8] sm:$0x1] %vm4175_vm9, %v4111_v0  ;;  %v6416_v20 = vrot.slane %v6400_v55, %v16292_v19  ;;  %v15747_v0 = vld [vmem:[%s19266_s3 + $0xe0] sm:$0xff]  }
 0x3db   : > { %v1403_v17 = vpop.permute.xlu1 %1402  ;;  %v13930_v38 = vld.sshfl [vmem:[#allocation2 + $0xd0] sm:$0x33 pattern:$0x75316420]  ;;  %15078 = vmatprep.subr.bf16.mxu1 %v15747_v0 }
 0x3dc   : > { %v951_v31 = vpop.permute.xlu0 %950  ;;  %v5421_v9 = vcombine.high %v13930_v38, %v13930_v38  ;;  %v5428_v47 = vrot.slane %v13930_v38, %v16292_v19  ;;  %15079 = vmatpush3.bf16.msra.mxu1 %v15748_v14 }
 0x3dd   : > { %1061 = vst.msk [vmem:[#allocation2 + $0xd4] sm:$0x1] %vm1009_vm12, %v951_v31  ;;  %v15669_v10 = vld [vmem:[#allocation3 + $0x8c] ss:$0 sps:$4 sm:$0x11]   ;;  %vm19455_vm12 = vmmov %vm19450_vm4 }
 0x3de   : > { %1513 = vst.msk [vmem:[#allocation2 + $0xd4] sm:$0x1] %vm19453_vm6, %v1403_v17  ;;  %v18516_v41 = vrot.slane %v5421_v9, %v16292_v19  ;;  %v5436_v44 = vcombine.high %v5428_v47, %v5428_v47  ;;  %v6401_v4 = vcombine.low %v5413_v7, %v5428_v47  ;;  %v15668_v22 = vld [vmem:[#allocation3 + $0x84] sm:$0xff]   ;;  %v9425_v43 = vshll.u32 %v15669_v10, 16  ;;  %v15751_v7 = vld [vmem:[%s19266_s3 + $0xe8] sm:$0xff]  }
 0x3df   : > { %v2308_v23 = vpop.permute.xlu1 %2307  ;;  %v9420_v16 = vshll.u32 %v15668_v22, 16  ;;  %v9418_v50 = vshrl.u32 %v15668_v22, 16  ;;  %v15671_v54 = vld [vmem:[#allocation3 + $0x84] sm:$0xff]   ;;  %v6785_v17 = vmax.f32 %v6700_v48, 0.0  ;;  %15080 = vmatprep.subr.bf16.mxu1 %v15751_v7  ;;  %v15681_v22 = vld [vmem:[#allocation3 + $0xc] sm:$0xfe]  }
 0x3e0   : > { %v1856_v33 = vpop.permute.xlu0 %1855  ;;  %v6402_v57 = vcombine.low %v18516_v41, %v5436_v44  ;;  %v6423_v53 = vrot.slane %v6401_v4, %v16292_v19  ;;  %v9427_v26 = vrot.slane %v9425_v43, 1  ;;  %v5437_v11 = vcombine.high %v18516_v41, %v18516_v41  ;;  %v15685_v44 = vld [vmem:[#allocation3 + $0xc] sm:$0xff]   ;;  %15081 = vmatpush3.bf16.msra.mxu1 %v15752_v1  ;;  %v15690_v7 = vld [vmem:[#allocation3 + $0x20] ss:$0 sps:$4 sm:$0x11]  }
 0x3e1   : > { %1966 = vst.msk [vmem:[#allocation2 + $0xd4] sm:$0x1] %vm19454_vm3, %v1856_v33  ;;  %v13928_v45 = vld.sshfl [vmem:[#allocation2 + $0xc8] sm:$0x1 pattern:$0x75316420]  ;;  %v7299_v55 = vcombine.high %v6785_v17, %v6785_v17 }
 0x3e2   : > { %2418 = vst.msk [vmem:[#allocation2 + $0xd4] sm:$0x1] %vm2366_vm2, %v2308_v23  ;;  %v5389_v63 = vrot.slane %v13928_v45, %v16292_v19  ;;  %v6430_v2 = vrot.slane %v6402_v57, %v16292_v19  ;;  %v9422_v5 = vrot.slane %v9420_v16, 1  ;;  %vm19457_vm2 = vsmask.f32 7424 }
 0x3e3   : > { %v3213_v51 = vpop.permute.xlu1 %3212  ;;  %v15682_v33 = vld [vmem:[#allocation3 + $0x14] ss:$0 sps:$4 sm:$0x11]   ;;  %v10487_v41 = vrot.slane %v15681_v22, 1  ;;  %v7313_v45 = vrot.slane %v7299_v55, %v17020_v61  ;;  %v15691_v55 = vld [vmem:[#allocation3 + $0x24] sm:$0xfe]   ;;  %vm19461_vm7 = vmmov %vm19457_vm2 }
 0x3e4   : > { %v2760_v8 = vpop.permute.xlu0 %2759  ;;  %v6399_v30 = vcombine.low %v5389_v63, %v5404_v12  ;;  %v6432_v13 = vcombine.low %v6423_v53, %v6430_v2  ;;  %v9423_v60 = vor.u32 %v9422_v5, %v9418_v50  ;;  %v10090_v53 = vshll.u32 %v15685_v44, 16  ;;  %v15686_v63 = vld [vmem:[#allocation3 + $0x14] ss:$0 sps:$4 sm:$0x11]   ;;  %v15689_v5 = vld [vmem:[#allocation3 + $0x18] sm:$0xff]   ;;  %vm19462_vm8 = vmmov %vm19457_vm2 }
 0x3e5   : > { %2870 = vst.msk [vmem:[#allocation2 + $0xd4] sm:$0x1] %vm19455_vm12, %v2760_v8  ;;  %v10488_v43 = vrot.slane %v15682_v33, 1  ;;  %vm19463_vm0 = vmmov %vm19457_vm2 }
 0x3e6   : > { %3323 = vst.msk [vmem:[#allocation2 + $0xd4] sm:$0x1] %vm19456_vm1, %v3213_v51  ;;  %v6409_v27 = vrot.slane %v6399_v30, %v16292_v19  ;;  %v9428_v56 = vsel %vm19457_vm2, %v9423_v60, %v9427_v26  ;;  %v6446_v35 = vrot.slane %v6432_v13, %v16292_v19  ;;  %v7306_v51 = vrot.slane %v6785_v17, %v17020_v61  ;;  %v15687_v30 = vld [vmem:[#allocation3 + $0x18] sm:$0xfe]   ;;  %vm19464_vm4 = vmmov %vm19463_vm0 }
 0x3e7   : > { %v4117_v46 = vpop.permute.xlu1 %4116  ;;  %12215 = vmatprep.mubr.bf16.mxu1 %v9428_v56  ;;  %v10092_v50 = vrot.slane %v10090_v53, 1  ;;  %v10088_v60 = vshrl.u32 %v15685_v44, 16  ;;  %v10095_v26 = vshll.u32 %v15686_v63, 16  ;;  %v15688_v56 = vld [vmem:[#allocation3 + $0x20] ss:$0 sps:$4 sm:$0x11]   ;;  %vm19465_vm10 = vmmov %vm19463_vm0 }
 0x3e8   : > { %v3665_v15 = vpop.permute.xlu0 %3664  ;;  %v6431_v32 = vcombine.low %v6409_v27, %v6416_v20  ;;  %12216 = vmatmul.mubr.bf16.gmra.mrb[44].mxu1 %v15671_v54  ;;  %v7315_v20 = vcombine.high %v7313_v45, %v7313_v45  ;;  %v7314_v54 = vcombine.high %v7306_v51, %v7306_v51  ;;  %v10490_v0 = vrot.slane %v15687_v30, 1  ;;  %v15693_v44 = vld [vmem:[#allocation3 + $0x24] sm:$0xff]   ;;  %v15761_v30 = vld [vmem:[%s19266_s3 + $0xb0] sm:$0xff]   ;;  %vm19466_vm5 = vmmov %vm19463_vm0 }
 0x3e9   : > { %3775 = vst.msk [vmem:[#allocation2 + $0xd4] sm:$0x1] %vm3723_vm11, %v3665_v15  ;;  %v10093_v15 = vor.u32 %v10092_v50, %v10088_v60  ;;  %vm19458_vm11 = vmmov %vm19457_vm2  ;;  %v10114_v50 = vshll.u32 %v15693_v44, 16 }
 0x3ea   : > { %4227 = vst.msk [vmem:[#allocation2 + $0xd4] sm:$0x1] %vm4175_vm9, %v4117_v46  ;;  %v6439_v49 = vrot.slane %v6431_v32, %v16292_v19  ;;  %vm9685_vm9 = vcmask 1046528   ;;  %v10102_v32 = vshll.u32 %v15689_v5, 16  ;;  %v8323_v14 = vcombine.low %v7313_v45, %v7315_v20  ;;  %vm19468_vm3 = vmmov %vm19463_vm0 }
 0x3eb   : > { %v10489_v8 = vsel %vm9685_vm9, %v10487_v41, %v10488_v43  ;;  %v10107_v41 = vshll.u32 %v15690_v7, 16  ;;  %vm19469_vm12 = vmmov %vm19463_vm0 }
 0x3ec   : > { %v6447_v12 = vcombine.low %v6439_v49, %v6446_v35  ;;  %v8337_v53 = vrot.slane %v8323_v14, %v17020_v61  ;;  %vm19470_vm1 = vmmov %vm19463_vm0 }
 0x3ed   : > { %v15016_v38 = vpop.f32.mrb[28].mxu1 }
 0x3ee   : > { %15517 = vmatmul.mubr.msk.bf16.gmra.mrb[76].mxu0 %vm6490_vm14, %v6447_v12  ;;  %v15017_v31 = vpop.f32.mrb[29].mxu1  ;;  %v10097_v12 = vrot.slane %v10095_v26, 1 }
 0x3ef   : > { %15520 = vmatprep.mubr.msk.bf16.mxu0 %vm19281_vm15, %v15962_v34  ;;  %v18552_v9 = vadd.f32 %v15017_v31, %v15016_v38  ;;  %v15019_v47 = vpop.f32.mrb[30].mxu1  ;;  %v10491_v31 = vrot.slane %v15688_v56, 1  ;;  %v15694_v56 = vld [vmem:[#allocation3 + $0x2c] ss:$0 sps:$4 sm:$0x11]   ;;  %vm19460_vm15 = vcmp.ge.s32.totalorder %v17052_v39, 0 }
 0x3f0   : > { %v15020_v4 = vpop.f32.mrb[31].mxu1  ;;  %vm19467_vm6 = vmmov %vm19460_vm15  ;;  %v15782_v39 = vld [vmem:[#allocation3 + $0x20] ss:$0 sps:$4 sm:$0x11]  }
 0x3f1   : > { %v13931_v10 = vld.sshfl [vmem:[#allocation2 + $0xd4] sm:$0x1 pattern:$0x75316420]  ;;  %v18555_v57 = vadd.f32 %v15020_v4, %v15019_v47  ;;  %v10098_v47 = vsel %vm19458_vm11, %v10093_v15, %v10097_v12  ;;  %v10492_v33 = vsel %vm9685_vm9, %v10490_v0, %v10491_v31  ;;  %v15695_v12 = vld [vmem:[#allocation3 + $0x30] sm:$0xfe]   ;;  %vm19472_vm11 = vmmov %vm19463_vm0 }
 0x3f2   : > { %v5451_v23 = vrot.slane %v13931_v10, %v16292_v19  ;;  %v10104_v10 = vrot.slane %v10102_v32, 1  ;;  %v15697_v32 = vld [vmem:[#allocation3 + $0x30] sm:$0xff]   ;;  %v15696_v31 = vld [vmem:[#allocation3 + $0x38] ss:$0 sps:$4 sm:$0x11]  }
 0x3f4   : > { %v6448_v34 = vcombine.low %v5437_v11, %v5451_v23  ;;  %v8322_v11 = vcombine.low %v7306_v51, %v7314_v54 }
 0x3f6   : > { %v6455_v16 = vrot.slane %v6448_v34, %v16292_v19  ;;  %v15692_v34 = vld [vmem:[#allocation3 + $0x2c] ss:$0 sps:$4 sm:$0x11]   ;;  %v8330_v63 = vrot.slane %v8322_v11, %v17020_v61 }
 0x3f7   : > { %v10494_v60 = vrot.slane %v15692_v34, 1 }
 0x3f8   : > { %v6462_v2 = vrot.slane %v6455_v16, %v16292_v19  ;;  %v10100_v16 = vshrl.u32 %v15689_v5, 16  ;;  %v15762_v5 = vld [vmem:[%s19266_s3 + $0xf8] sm:$0xff]   ;;  %v8338_v26 = vcombine.low %v8330_v63, %v8337_v53 }
 0x3fa   : > { %15521 = vmatmul.mubr.msk.bf16.gmra.mrb[80].mxu0 %vm6490_vm14, %v6462_v2  ;;  %v6704_v13 = vpop.f32.mrb[56].mxu0  ;;  %v10105_v51 = vor.u32 %v10104_v10, %v10100_v16  ;;  %vm19459_vm14 = vmmov %vm19457_vm2  ;;  %v8658_v7 = vsel %vm19460_vm15, %v8338_v26, 0.0  ;;  %v10126_v10 = vshll.u32 %v15697_v32, 16 }
 0x3fb   : > { %12449 = vmatprep.mubr.bf16.mxu0 %v10489_v8  ;;  %v6705_v27 = vadd.f32 %v18476_v3, %v6704_v13  ;;  %v15498_v46 = vpop.f32.mrb[57].mxu0  ;;  %v15760_v8 = vld [vmem:[%s19266_s3 + $0xf0] sm:$0xff]   ;;  %v10493_v13 = vrot.slane %v15691_v55, 1  ;;  %v10497_v55 = vrot.slane %v15696_v31, 1  ;;  %vm19471_vm2 = vmmov %vm19463_vm0 }
 0x3fc   : > { %v6707_v19 = vpop.f32.mrb[58].mxu0  ;;  %v10109_v46 = vrot.slane %v10107_v41, 1  ;;  %15082 = vmatprep.subr.bf16.mxu1 %v15760_v8  ;;  %v10128_v34 = vrot.slane %v10126_v10, 1  ;;  %v15706_v41 = vld [vmem:[#allocation3 + $0x3c] sm:$0xff]   ;;  %v15772_v10 = vld [vmem:[%s19266_s3 + $0x1c0] sm:$0xff]   ;;  %vm19474_vm15 = vmmov %vm19463_vm0 }
 0x3fd   : > { %v6786_v35 = vmax.f32 %v6705_v27, 0.0  ;;  %v6708_v49 = vadd.f32 %v18476_v3, %v6707_v19  ;;  %v15499_v48 = vpop.f32.mrb[59].mxu0  ;;  %15083 = vmatpush3.bf16.msra.mxu1 %v15761_v30  ;;  %v10495_v14 = vsel %vm9685_vm9, %v10493_v13, %v10494_v60  ;;  %v15707_v30 = vld [vmem:[#allocation3 + $0x44] ss:$0 sps:$4 sm:$0x11]   ;;  %v15710_v13 = vld [vmem:[#allocation3 + $0x48] sm:$0xff]  }
 0x3fe   : > { %v10116_v48 = vrot.slane %v10114_v50, 1  ;;  %15084 = vmatprep.subr.bf16.mxu1 %v15762_v5  ;;  %v15700_v50 = vld [vmem:[#allocation3 + $0x44] ss:$0 sps:$4 sm:$0x11]   ;;  %v10138_v5 = vshll.u32 %v15706_v41, 16 }
 0x3ff   : > { %v7316_v1 = vcombine.high %v6786_v35, %v6786_v35  ;;  %v7323_v17 = vrot.slane %v6786_v35, %v17020_v61  ;;  %v18566_v38 = vmax.f32 %v6708_v49, 0.0  ;;  %v15763_v35 = vld [vmem:[%s19266_s3 + $0xb8] sm:$0xff]   ;;  %v10110_v49 = vsel %vm19459_vm14, %v10105_v51, %v10109_v46  ;;  %v15711_v31 = vld [vmem:[#allocation3 + $0x50] ss:$0 sps:$4 sm:$0x11]   ;;  %vm19473_vm14 = vmmov %vm19463_vm0 }
 0x400   : > { %v10500_v46 = vrot.slane %v15700_v50, 1 }
 0x401   : > { %v7330_v4 = vrot.slane %v7316_v1, %v17020_v61  ;;  %v7331_v23 = vcombine.high %v7323_v17, %v7323_v17  ;;  %v18572_v22 = vrot.slane %v18566_v38, %v17020_v61  ;;  %v10112_v1 = vshrl.u32 %v15693_v44, 16  ;;  %15085 = vmatpush3.bf16.msra.mxu1 %v15763_v35  ;;  %v15708_v35 = vld [vmem:[#allocation3 + $0x48] sm:$0xfe]  }
 0x402   : > { %12450 = vmatmul.mubr.bf16.vlgmr.msra.gmra.mrb[84].mxu0 %v10098_v47  ;;  %v15698_v47 = vld [vmem:[#allocation3 + $0x38] ss:$0 sps:$4 sm:$0x11]   ;;  %v10124_v44 = vshrl.u32 %v15697_v32, 16  ;;  %15294 = vmatprep.subr.bf16.mxu1 %v15772_v10 }
 0x403   : > { %12457 = vmatprep.mubr.bf16.mxu0 %v10492_v33  ;;  %v7332_v43 = vcombine.high %v7330_v4, %v7330_v4  ;;  %v8339_v45 = vcombine.low %v7323_v17, %v7331_v23  ;;  %v8362_v2 = vrot.slane %v18572_v22, %v17020_v61  ;;  %v10119_v17 = vshll.u32 %v15694_v56, 16 }
 0x404   : > { %v10496_v23 = vrot.slane %v15695_v12, 1  ;;  %v10131_v53 = vshll.u32 %v15698_v47, 16  ;;  %v10150_v12 = vshll.u32 %v15710_v13, 16 }
 0x405   : > { %v8340_v20 = vcombine.low %v7330_v4, %v7332_v43  ;;  %v8660_v27 = vsel %vm7667_vm13, %v8362_v2, 0.0  ;;  %v8347_v54 = vrot.slane %v8339_v45, %v17020_v61  ;;  %v10117_v4 = vor.u32 %v10116_v48, %v10112_v1  ;;  %v15699_v45 = vld [vmem:[#allocation3 + $0x3c] sm:$0xfe]  }
 0x406   : > { %v14871_v15 = vpack.c.bf16 %v8660_v27, %v8660_v27  ;;  %v10121_v33 = vrot.slane %v10119_v17, 1  ;;  %v10498_v43 = vsel %vm9685_vm9, %v10496_v23, %v10497_v55  ;;  %v10129_v2 = vor.u32 %v10128_v34, %v10124_v44  ;;  %v15716_v55 = vld [vmem:[#allocation3 + $0x54] sm:$0xff]  }
 0x407   : > { %v8354_v19 = vrot.slane %v8340_v20, %v17020_v61  ;;  %v10133_v51 = vrot.slane %v10131_v53, 1  ;;  %v10499_v20 = vrot.slane %v15699_v45, 1  ;;  %v10148_v53 = vshrl.u32 %v15710_v13, 16  ;;  %v15712_v44 = vld [vmem:[#allocation3 + $0x54] sm:$0xfe]  }
 0x408   : > { %8948 = vst [vmem:[#allocation3 + $0x98] sm:$0x1] %v14871_v15  ;;  %v10122_v16 = vsel %vm19461_vm7, %v10117_v4, %v10121_v33  ;;  %v10140_v15 = vrot.slane %v10138_v5, 1  ;;  %v7333_v4 = vcombine.high %v18566_v38, %v18566_v38  ;;  %v10152_v33 = vrot.slane %v10150_v12, 1  ;;  %vm19475_vm7 = vmmov %vm19467_vm6 }
 0x409   : > { %v8355_v0 = vcombine.low %v8347_v54, %v8354_v19  ;;  %v10134_v27 = vsel %vm19462_vm8, %v10129_v2, %v10133_v51  ;;  %v10136_v19 = vshrl.u32 %v15706_v41, 16  ;;  %v10501_v32 = vsel %vm9685_vm9, %v10499_v20, %v10500_v46  ;;  %v15713_v41 = vld [vmem:[#allocation3 + $0x5c] ss:$0 sps:$4 sm:$0x11]   ;;  %vm19476_vm8 = vmmov %vm19463_vm0 }
 0x40a   : > { %12458 = vmatmul.mubr.bf16.gmra.mrb[88].mxu0 %v10110_v49  ;;  %v15709_v49 = vld [vmem:[#allocation3 + $0x50] ss:$0 sps:$4 sm:$0x11]   ;;  %v7347_v45 = vrot.slane %v7333_v4, %v17020_v61  ;;  %v10153_v2 = vor.u32 %v10152_v33, %v10148_v53  ;;  %v10162_v51 = vshll.u32 %v15716_v55, 16  ;;  %v10505_v20 = vrot.slane %v15712_v44, 1 }
 0x40b   : > { %12465 = vmatprep.mubr.bf16.mxu0 %v10495_v14  ;;  %v14912_v11 = vpack.c.bf16 %v8355_v0, %v8658_v7  ;;  %v10143_v14 = vshll.u32 %v15707_v30, 16  ;;  %v10141_v17 = vor.u32 %v10140_v15, %v10136_v19  ;;  %v10503_v23 = vrot.slane %v15709_v49, 1  ;;  %v15721_v33 = vld [vmem:[#allocation3 + $0x68] ss:$0 sps:$4 sm:$0x11]  }
 0x40c   : > { %v10506_v13 = vrot.slane %v15713_v41, 1  ;;  %v10164_v19 = vrot.slane %v10162_v51, 1 }
 0x40d   : > { %14929 = vst [vmem:[#allocation3 + $0x90] sm:$0xff] %v14912_v11   ;;  %v10502_v11 = vrot.slane %v15708_v35, 1  ;;  %v10145_v47 = vrot.slane %v10143_v14, 1  ;;  %v15719_v14 = vld [vmem:[#allocation3 + $0x68] ss:$0 sps:$4 sm:$0x11]  }
 0x40e   : > { %v10507_v49 = vsel %vm9685_vm9, %v10505_v20, %v10506_v13  ;;  %v10509_v53 = vrot.slane %v15719_v14, 1  ;;  %v15722_v13 = vld [vmem:[#allocation3 + $0x6c] sm:$0xfe]  }
 0x40f   : > { %v15704_v63 = vld [vmem:[#allocation3 + $0x98] ss:$0 sps:$4 sm:$0x11]   ;;  %v10146_v34 = vsel %vm19464_vm4, %v10141_v17, %v10145_v47  ;;  %vm19477_vm4 = vmmov %vm19467_vm6 }
 0x410   : > { %v9437_v26 = vshll.u32 %v15704_v63, 16  ;;  %v7348_v63 = vcombine.high %v18572_v22, %v18572_v22  ;;  %v7349_v22 = vcombine.high %v7347_v45, %v7347_v45 }
 0x412   : > { %12466 = vmatmul.mubr.bf16.gmra.mrb[92].mxu0 %v10122_v16  ;;  %v9439_v0 = vrot.slane %v9437_v26, 1  ;;  %v10155_v16 = vshll.u32 %v15711_v31, 16 }
 0x413   : > { %12473 = vmatprep.mubr.bf16.mxu0 %v10498_v43  ;;  %v10504_v43 = vsel %vm9685_vm9, %v10502_v11, %v10503_v23  ;;  %v15718_v11 = vld [vmem:[#allocation3 + $0x60] sm:$0xfe]  }
 0x414   : > { %v15703_v8 = vld [vmem:[#allocation3 + $0x90] sm:$0xff]   ;;  %v10157_v30 = vrot.slane %v10155_v16, 1 }
 0x415   : > { %v9432_v60 = vshll.u32 %v15703_v8, 16  ;;  %v9430_v56 = vshrl.u32 %v15703_v8, 16  ;;  %v15705_v1 = vld [vmem:[#allocation3 + $0x90] sm:$0xff]  }
 0x417   : > { %v9434_v54 = vrot.slane %v9432_v60, 1  ;;  %v15717_v60 = vld [vmem:[#allocation3 + $0x5c] ss:$0 sps:$4 sm:$0x11]  }
 0x419   : > { %v9435_v48 = vor.u32 %v9434_v54, %v9430_v56  ;;  %v8363_v56 = vcombine.low %v7348_v63, %v7347_v45  ;;  %v10158_v54 = vsel %vm19465_vm10, %v10153_v2, %v10157_v30  ;;  %v10508_v63 = vrot.slane %v15718_v11, 1  ;;  %vm19478_vm10 = vmmov %vm19463_vm0 }
 0x41a   : > { %12474 = vmatmul.mubr.bf16.gmra.mrb[96].mxu0 %v10134_v27 }
 0x41b   : > { %12481 = vmatprep.mubr.bf16.mxu0 %v10501_v32  ;;  %v9440_v7 = vsel %vm19463_vm0, %v9435_v48, %v9439_v0  ;;  %v10160_v48 = vshrl.u32 %v15716_v55, 16  ;;  %v10167_v0 = vshll.u32 %v15717_v60, 16  ;;  %v8371_v47 = vrot.slane %v8363_v56, %v17020_v61  ;;  %v15723_v60 = vld [vmem:[#allocation3 + $0x74] ss:$0 sps:$4 sm:$0x11]  }
 0x41c   : > { %12223 = vmatprep.mubr.bf16.mxu1 %v9440_v7  ;;  %v10510_v20 = vsel %vm9685_vm9, %v10508_v63, %v10509_v53 }
 0x41d   : > { %12224 = vmatmul.mubr.bf16.gmra.mrb[48].mxu1 %v15705_v1  ;;  %v15720_v1 = vld [vmem:[#allocation3 + $0x60] sm:$0xff]   ;;  %v10165_v31 = vor.u32 %v10164_v19, %v10160_v48  ;;  %v10511_v48 = vrot.slane %v15722_v13, 1  ;;  %v15736_v13 = vld [vmem:[#allocation3 + $0x8c] ss:$0 sps:$4 sm:$0x11]  }
 0x41e   : > { %v10172_v56 = vshrl.u32 %v15720_v1, 16 }
 0x422   : > { %12482 = vmatmul.mubr.bf16.gmra.mrb[100].mxu0 %v10146_v34  ;;  %v6712_v38 = vpop.f32.mrb[60].mxu0  ;;  %v10169_v34 = vrot.slane %v10167_v0, 1  ;;  %v10512_v0 = vrot.slane %v15723_v60, 1 }
 0x423   : > { %12489 = vmatprep.mubr.bf16.mxu0 %v10504_v43  ;;  %v6713_v50 = vadd.f32 %v18476_v3, %v6712_v38  ;;  %v15502_v8 = vpop.f32.mrb[61].mxu0  ;;  %v10174_v43 = vshll.u32 %v15720_v1, 16 }
 0x424   : > { %v6715_v5 = vpop.f32.mrb[62].mxu0  ;;  %v10170_v45 = vsel %vm19466_vm5, %v10165_v31, %v10169_v34  ;;  %v15726_v8 = vld [vmem:[#allocation3 + $0x6c] sm:$0xff]   ;;  %vm19479_vm5 = vmmov %vm19463_vm0 }
 0x425   : > { %v6788_v26 = vmax.f32 %v6713_v50, 0.0  ;;  %v6716_v27 = vadd.f32 %v18476_v3, %v6715_v5  ;;  %v15503_v46 = vpop.f32.mrb[63].mxu0  ;;  %v10179_v50 = vshll.u32 %v15721_v33, 16  ;;  %v15729_v33 = vld [vmem:[#allocation3 + $0x80] ss:$0 sps:$4 sm:$0x11]  }
 0x426   : > { %v10176_v46 = vrot.slane %v10174_v43, 1 }
 0x427   : > { %v7350_v15 = vcombine.high %v6788_v26, %v6788_v26  ;;  %v7357_v32 = vrot.slane %v6788_v26, %v17020_v61  ;;  %v18618_v35 = vmax.f32 %v6716_v27, 0.0 }
 0x429   : > { %v7364_v12 = vrot.slane %v7350_v15, %v17020_v61  ;;  %v7365_v3 = vcombine.high %v7357_v32, %v7357_v32  ;;  %v8364_v7 = vcombine.low %v7349_v22, %v7357_v32  ;;  %v7374_v17 = vrot.slane %v18618_v35, %v17020_v61  ;;  %v15727_v15 = vld [vmem:[#allocation3 + $0x74] ss:$0 sps:$4 sm:$0x11]  }
 0x42a   : > { %12490 = vmatmul.mubr.bf16.gmra.mrb[104].mxu0 %v10158_v54  ;;  %v10181_v22 = vrot.slane %v10179_v50, 1  ;;  %v10186_v32 = vshll.u32 %v15726_v8, 16  ;;  %v10191_v11 = vshll.u32 %v15727_v15, 16 }
 0x42b   : > { %12497 = vmatprep.mubr.bf16.mxu0 %v10507_v49  ;;  %v8378_v10 = vrot.slane %v8364_v7, %v17020_v61  ;;  %v8380_v4 = vcombine.low %v7365_v3, %v7364_v12  ;;  %v7366_v23 = vcombine.high %v7364_v12, %v7364_v12  ;;  %v7382_v55 = vcombine.high %v7374_v17, %v7374_v17 }
 0x42c   : > { %v10177_v3 = vor.u32 %v10176_v46, %v10172_v56  ;;  %v10188_v1 = vrot.slane %v10186_v32, 1  ;;  %v10193_v53 = vrot.slane %v10191_v11, 1  ;;  %v10518_v32 = vrot.slane %v15736_v13, 1 }
 0x42d   : > { %v8379_v16 = vcombine.low %v8371_v47, %v8378_v10  ;;  %v8381_v41 = vcombine.low %v7366_v23, %v7374_v17  ;;  %v8403_v44 = vrot.slane %v7382_v55, %v17020_v61  ;;  %v8388_v38 = vrot.slane %v8380_v4, %v17020_v61  ;;  %v15733_v47 = vld [vmem:[#allocation3 + $0x78] sm:$0xff]  }
 0x42e   : > { %v10182_v31 = vsel %vm19468_vm3, %v10177_v3, %v10181_v22  ;;  %v10513_v10 = vsel %vm9685_vm9, %v10511_v48, %v10512_v0  ;;  %v10184_v4 = vshrl.u32 %v15726_v8, 16  ;;  %v15728_v23 = vld [vmem:[#allocation3 + $0x78] sm:$0xfe]   ;;  %v10196_v60 = vshrl.u32 %v15733_v47, 16  ;;  %v15743_v3 = vld [vmem:[#allocation3 + $0x90] sm:$0xff]   ;;  %vm19487_vm3 = vmmov %vm19463_vm0 }
 0x42f   : > { %v8661_v2 = vsel %vm19467_vm6, %v8379_v16, 0.0  ;;  %v8395_v51 = vrot.slane %v8381_v41, %v17020_v61  ;;  %v8663_v5 = vsel %vm7667_vm13, %v8403_v44, 0.0  ;;  %v10198_v16 = vshll.u32 %v15733_v47, 16  ;;  %v15740_v48 = vld [vmem:[#allocation3 + $0x8c] ss:$0 sps:$4 sm:$0x11]   ;;  %vm19481_vm6 = vmmov %vm19477_vm4 }
 0x430   : > { %v14872_v30 = vpack.c.bf16 %v8661_v2, %v8661_v2  ;;  %v14874_v27 = vpack.c.bf16 %v8663_v5, %v8663_v5  ;;  %v10189_v34 = vor.u32 %v10188_v1, %v10184_v4  ;;  %v10514_v41 = vrot.slane %v15728_v23, 1  ;;  %v15735_v2 = vld [vmem:[#allocation3 + $0x84] sm:$0xfe]   ;;  %v15742_v47 = vld [vmem:[#allocation3 + $0x98] ss:$0 sps:$4 sm:$0x11]  }
 0x431   : > { %v8396_v26 = vcombine.low %v8388_v38, %v8395_v51  ;;  %v10515_v44 = vrot.slane %v15729_v33, 1  ;;  %v10200_v50 = vrot.slane %v10198_v16, 1  ;;  %v10517_v15 = vrot.slane %v15735_v2, 1  ;;  %v15793_v23 = vld [vmem:[%s19266_s3 + $0x200] sm:$0xff]   ;;  %v15797_v33 = vld [vmem:[%s19266_s3 + $0x208] sm:$0xff]  }
 0x432   : > { %12498 = vmatmul.mubr.bf16.gmra.mrb[108].mxu0 %v10170_v45  ;;  %8949 = vst [vmem:[#allocation3 + $0x9c] sm:$0xf] %v14872_v30  ;;  %8951 = vst [vmem:[#allocation3 + $0xa4] sm:$0x1] %v14874_v27  ;;  %v15022_v19 = vpop.f32.mrb[32].mxu1  ;;  %v10194_v51 = vsel %vm19469_vm12, %v10189_v34, %v10193_v53  ;;  %v15739_v30 = vld [vmem:[#allocation3 + $0x84] sm:$0xff]   ;;  %15524 = vmatprep.subr.bf16.mxu0 %v15793_v23 }
 0x433   : > { %12505 = vmatprep.mubr.bf16.mxu0 %v10510_v20  ;;  %v14873_v54 = vpack.c.bf16 %v8396_v26, %v8396_v26  ;;  %v15023_v49 = vpop.f32.mrb[33].mxu1  ;;  %v15734_v45 = vld [vmem:[#allocation3 + $0x80] ss:$0 sps:$4 sm:$0x11]   ;;  %v10516_v8 = vsel %vm9685_vm9, %v10514_v41, %v10515_v44  ;;  %v10201_v56 = vor.u32 %v10200_v50, %v10196_v60  ;;  %v10208_v1 = vshrl.u32 %v15739_v30, 16  ;;  %15525 = vmatpush3.bf16.msra.mxu0 %v15793_v23  ;;  %v15809_v23 = vld [vmem:[%s19266_s3 + $0x228] sm:$0xff]   ;;  %vm19492_vm12 = vmmov %vm19463_vm0 }
 0x434   : > { %v18635_v14 = vadd.f32 %v15023_v49, %v15022_v19  ;;  %v15025_v12 = vpop.f32.mrb[34].mxu1  ;;  %v10203_v26 = vshll.u32 %v15734_v45, 16  ;;  %v10215_v11 = vshll.u32 %v15740_v48, 16  ;;  %v10222_v4 = vshll.u32 %v15743_v3, 16  ;;  %15526 = vmatprep.subr.bf16.mxu0 %v15797_v33  ;;  %v15798_v45 = vld [vmem:[%s19266_s3 + $0x210] sm:$0xff]  }
 0x435   : > { %8950 = vst [vmem:[#allocation3 + $0xa0] sm:$0xf] %v14873_v54  ;;  %v15026_v7 = vpop.f32.mrb[35].mxu1  ;;  %v10210_v54 = vshll.u32 %v15739_v30, 16  ;;  %v10521_v16 = vrot.slane %v15742_v47, 1 }
 0x436   : > { %v18637_v17 = vadd.f32 %v15026_v7, %v15025_v12  ;;  %v10205_v49 = vrot.slane %v10203_v26, 1  ;;  %v10519_v7 = vsel %vm9685_vm9, %v10517_v15, %v10518_v32  ;;  %v10217_v34 = vrot.slane %v10215_v11, 1  ;;  %v15744_v53 = vld [vmem:[#allocation3 + $0x98] ss:$0 sps:$4 sm:$0x11]   ;;  %v15805_v32 = vld [vmem:[%s19266_s3 + $0x220] sm:$0xff]  }
 0x437   : > { %v10212_v12 = vrot.slane %v10210_v54, 1  ;;  %v10224_v44 = vrot.slane %v10222_v4, 1  ;;  %v10227_v50 = vshll.u32 %v15744_v53, 16  ;;  %15527 = vmatpush3.bf16.msra.mxu0 %v15797_v33  ;;  %v18666_v54 = vld [vmem:[%s19265_s2] ss:$0 sm:$0xff] }
 0x438   : > { %v10206_v0 = vsel %vm19471_vm2, %v10201_v56, %v10205_v49  ;;  %15528 = vmatprep.subr.bf16.mxu0 %v15798_v45  ;;  %vm19498_vm2 = vmmov %vm19463_vm0 }
 0x439   : > { %v15731_v55 = vld [vmem:[#allocation3 + $0xa4] ss:$0 sps:$4 sm:$0x11]   ;;  %v10229_v26 = vrot.slane %v10227_v50, 1 }
 0x43a   : > { %12506 = vmatmul.mubr.bf16.gmra.mrb[112].mxu0 %v10182_v31  ;;  %v9449_v38 = vshll.u32 %v15731_v55, 16  ;;  %v15741_v31 = vld [vmem:[#allocation3 + $0x90] sm:$0xfe]   ;;  %v15746_v30 = vld [vmem:[#allocation3 + $0xa4] ss:$0 sps:$4 sm:$0x11]  }
 0x43b   : > { %12513 = vmatprep.mubr.bf16.mxu0 %v10513_v10  ;;  %v10213_v10 = vor.u32 %v10212_v12, %v10208_v1  ;;  %v10520_v55 = vrot.slane %v15741_v31, 1  ;;  %15529 = vmatpush3.bf16.msra.mxu0 %v15798_v45 }
 0x43c   : > { %v15730_v43 = vld [vmem:[#allocation3 + $0x9c] sm:$0xff]   ;;  %v9451_v46 = vrot.slane %v9449_v38, 1 }
 0x43d   : > { %v9444_v63 = vshll.u32 %v15730_v43, 16  ;;  %v9442_v5 = vshrl.u32 %v15730_v43, 16  ;;  %v15732_v22 = vld [vmem:[#allocation3 + $0x9c] sm:$0xff]   ;;  %v10218_v43 = vsel %vm19472_vm11, %v10213_v10, %v10217_v34  ;;  %v10522_v38 = vsel %vm9685_vm9, %v10520_v55, %v10521_v16  ;;  %vm19500_vm11 = vmmov %vm19463_vm0 }
 0x43e   : > { %v15749_v41 = vld [vmem:[#allocation3 + $0x9c] sm:$0xff]  }
 0x43f   : > { %v9446_v20 = vrot.slane %v9444_v63, 1  ;;  %v7367_v63 = vcombine.high %v18618_v35, %v18618_v35  ;;  %v15745_v2 = vld [vmem:[#allocation3 + $0x9c] sm:$0xfe]   ;;  %v15750_v35 = vld [vmem:[#allocation3 + $0xa4] ss:$0 sps:$4 sm:$0x11]  }
 0x440   : > { %v10523_v60 = vrot.slane %v15745_v2, 1  ;;  %v10232_v12 = vshrl.u32 %v15749_v41, 16  ;;  %v15814_v2 = vld [vmem:[%s19266_s3 + $0x230] sm:$0xff]  }
 0x441   : > { %v9447_v27 = vor.u32 %v9446_v20, %v9442_v5  ;;  %v15804_v20 = vld [vmem:[%s19266_s3 + $0x218] sm:$0xff]   ;;  %v7381_v13 = vrot.slane %v7367_v63, %v17020_v61 }
 0x442   : > { %12514 = vmatmul.mubr.bf16.gmra.mrb[116].mxu0 %v10194_v51  ;;  %v10220_v51 = vshrl.u32 %v15743_v3, 16  ;;  %15530 = vmatprep.subr.bf16.mxu0 %v15804_v20  ;;  %v10239_v3 = vshll.u32 %v15750_v35, 16 }
 0x443   : > { %12521 = vmatprep.mubr.bf16.mxu0 %v10516_v8  ;;  %v9452_v19 = vsel %vm19470_vm1, %v9447_v27, %v9451_v46  ;;  %v10234_v8 = vshll.u32 %v15749_v41, 16  ;;  %v10524_v46 = vrot.slane %v15746_v30, 1  ;;  %v7383_v49 = vcombine.high %v7381_v13, %v7381_v13  ;;  %15531 = vmatpush3.bf16.msra.mxu0 %v15804_v20  ;;  %vm19495_vm1 = vmmov %vm19463_vm0 }
 0x444   : > { %12231 = vmatprep.mubr.bf16.mxu1 %v9452_v19  ;;  %v10225_v5 = vor.u32 %v10224_v44, %v10220_v51  ;;  %15532 = vmatprep.subr.bf16.mxu0 %v15805_v32  ;;  %v10241_v55 = vrot.slane %v10239_v3, 1 }
 0x445   : > { %12232 = vmatmul.mubr.bf16.gmra.mrb[52].mxu1 %v15732_v22  ;;  %v10236_v56 = vrot.slane %v10234_v8, 1  ;;  %v8404_v33 = vcombine.low %v7381_v13, %v7383_v49 }
 0x446   : > { %v10230_v15 = vsel %vm19473_vm14, %v10225_v5, %v10229_v26  ;;  %v15822_v26 = vld [vmem:[%s19266_s3 + $0x238] sm:$0xff]   ;;  %vm19501_vm14 = vmmov %vm19463_vm0 }
 0x447   : > { %v10237_v11 = vor.u32 %v10236_v56, %v10232_v12  ;;  %15533 = vmatpush3.bf16.msra.mxu0 %v15805_v32  ;;  %v8412_v51 = vrot.slane %v8404_v33, %v17020_v61 }
 0x448   : > { %15534 = vmatprep.subr.bf16.mxu0 %v15809_v23 }
 0x44a   : > { %12522 = vmatmul.mubr.bf16.gmra.mrb[120].mxu0 %v10206_v0  ;;  %v10525_v0 = vsel %vm9685_vm9, %v10523_v60, %v10524_v46 }
 0x44b   : > { %12529 = vmatprep.mubr.bf16.mxu0 %v10519_v7  ;;  %15535 = vmatpush3.bf16.msra.mxu0 %v15809_v23 }
 0x44c   : > { %15536 = vmatprep.subr.bf16.mxu0 %v15814_v2 }
 0x44f   : > { %15537 = vmatpush3.bf16.msra.mxu0 %v15814_v2 }
 0x450   : > { %15538 = vmatprep.subr.bf16.mxu0 %v15822_v26 }
 0x452   : > { %12530 = vmatmul.mubr.bf16.gmra.mrb[124].mxu0 %v10218_v43  ;;  %v10242_v43 = vsel %vm19474_vm15, %v10237_v11, %v10241_v55  ;;  %vm19502_vm15 = vmmov %vm19463_vm0 }
 0x453   : > { %12537 = vmatprep.mubr.bf16.mxu0 %v10522_v38  ;;  %15539 = vmatpush3.bf16.msra.mxu0 %v15822_v26 }
 0x458   : > { %v6720_v27 = vpop.f32.mrb[64].mxu0 }
 0x459   : > { %v6721_v19 = vadd.f32 %v18666_v54, %v6720_v27  ;;  %v15506_v22 = vpop.f32.mrb[65].mxu0 }
 0x45a   : > { %v6723_v48 = vpop.f32.mrb[66].mxu0  ;;  %12538 = vmatmul.mubr.bf16.gmra.mrb[128].mxu0 %v10230_v15 }
 0x45b   : > { %v6790_v7 = vmax.f32 %v6721_v19, 0.0  ;;  %v6724_v31 = vadd.f32 %v18666_v54, %v6723_v48  ;;  %v15507_v1 = vpop.f32.mrb[67].mxu0  ;;  %12545 = vmatprep.mubr.bf16.mxu0 %v10525_v0 }
 0x45d   : > { %v7384_v47 = vcombine.high %v6790_v7, %v6790_v7  ;;  %v7391_v10 = vrot.slane %v6790_v7, %v17020_v61  ;;  %v6791_v4 = vmax.f32 %v6724_v31, 0.0 }
 0x45f   : > { %v7398_v34 = vrot.slane %v7384_v47, %v17020_v61  ;;  %v7399_v53 = vcombine.high %v7391_v10, %v7391_v10  ;;  %v7401_v16 = vcombine.high %v6791_v4, %v6791_v4  ;;  %v7408_v41 = vrot.slane %v6791_v4, %v17020_v61 }
 0x461   : > { %v7400_v44 = vcombine.high %v7398_v34, %v7398_v34  ;;  %v8405_v45 = vcombine.low %v7391_v10, %v7399_v53  ;;  %v7415_v63 = vrot.slane %v7401_v16, %v17020_v61  ;;  %v7416_v38 = vcombine.high %v7408_v41, %v7408_v41 }
 0x462   : > { %12546 = vmatmul.mubr.bf16.gmra.mrb[132].mxu0 %v10242_v43 }
 0x463   : > { %v8419_v50 = vrot.slane %v8405_v45, %v17020_v61  ;;  %v8421_v30 = vcombine.low %v7398_v34, %v7400_v44  ;;  %v8422_v8 = vcombine.low %v7408_v41, %v7416_v38  ;;  %v8444_v5 = vrot.slane %v7415_v63, %v17020_v61 }
 0x464   : > { %v7417_v53 = vcombine.high %v7415_v63, %v7415_v63 }
 0x465   : > { %v8420_v20 = vcombine.low %v8412_v51, %v8419_v50  ;;  %v8429_v13 = vrot.slane %v8421_v30, %v17020_v61  ;;  %v8436_v60 = vrot.slane %v8422_v8, %v17020_v61  ;;  %v8666_v35 = vsel %vm7667_vm13, %v8444_v5, 0.0 }
 0x466   : > { %v14877_v27 = vpack.c.bf16 %v8666_v35, %v8666_v35 }
 0x467   : > { %v8664_v46 = vsel %vm19475_vm7, %v8420_v20, 0.0  ;;  %v8437_v56 = vcombine.low %v8429_v13, %v8436_v60  ;;  %vm19507_vm7 = vmmov %vm19463_vm0 }
 0x468   : > { %8954 = vst [vmem:[#allocation3 + $0xb0] sm:$0x1] %v14877_v27  ;;  %v15028_v22 = vpop.f32.mrb[36].mxu1 }
 0x469   : > { %v14917_v19 = vpack.c.bf16 %v8437_v56, %v8664_v46  ;;  %v15029_v15 = vpop.f32.mrb[37].mxu1 }
 0x46a   : > { %v18698_v32 = vadd.f32 %v15029_v15, %v15028_v22  ;;  %v15031_v49 = vpop.f32.mrb[38].mxu1 }
 0x46b   : > { %14930 = vst [vmem:[#allocation3 + $0xa8] sm:$0xff] %v14917_v19   ;;  %v15032_v48 = vpop.f32.mrb[39].mxu1 }
 0x46c   : > { %v18700_v0 = vadd.f32 %v15032_v48, %v15031_v49 }
 0x46f   : > { %v15754_v12 = vld [vmem:[#allocation3 + $0xb0] ss:$0 sps:$4 sm:$0x11]  }
 0x470   : > { %v15756_v3 = vld [vmem:[#allocation3 + $0xb0] ss:$0 sps:$4 sm:$0x11]   ;;  %v10527_v55 = vrot.slane %v15754_v12, 1 }
 0x471   : > { %v6728_v7 = vpop.f32.mrb[68].mxu0  ;;  %v9461_v41 = vshll.u32 %v15756_v3, 16  ;;  %v15758_v51 = vld [vmem:[#allocation3 + $0xb0] ss:$0 sps:$4 sm:$0x11]  }
 0x472   : > { %v6729_v31 = vadd.f32 %v18666_v54, %v6728_v7  ;;  %v15510_v1 = vpop.f32.mrb[69].mxu0  ;;  %v15755_v11 = vld [vmem:[#allocation3 + $0xa8] sm:$0xff]   ;;  %v10251_v12 = vshll.u32 %v15758_v51, 16 }
 0x473   : > { %v6731_v47 = vpop.f32.mrb[70].mxu0  ;;  %v15753_v10 = vld [vmem:[#allocation3 + $0xa8] sm:$0xfe]   ;;  %v9456_v34 = vshll.u32 %v15755_v11, 16  ;;  %v9454_v30 = vshrl.u32 %v15755_v11, 16  ;;  %v9463_v35 = vrot.slane %v9461_v41, 1 }
 0x474   : > { %v6792_v4 = vmax.f32 %v6729_v31, 0.0  ;;  %v6732_v23 = vadd.f32 %v18666_v54, %v6731_v47  ;;  %v15511_v33 = vpop.f32.mrb[71].mxu0  ;;  %v10526_v16 = vrot.slane %v15753_v10, 1  ;;  %v15757_v2 = vld [vmem:[#allocation3 + $0xa8] sm:$0xff]   ;;  %v10253_v10 = vrot.slane %v10251_v12, 1 }
 0x475   : > { %v9458_v38 = vrot.slane %v9456_v34, 1  ;;  %v10246_v26 = vshll.u32 %v15757_v2, 16  ;;  %v10244_v19 = vshrl.u32 %v15757_v2, 16  ;;  %v15759_v22 = vld [vmem:[#allocation3 + $0xa8] sm:$0xff]   ;;  %v15773_v12 = vld [vmem:[#allocation3] sm:$0xfe]  }
 0x476   : > { %v7418_v43 = vcombine.high %v6792_v4, %v6792_v4  ;;  %v7425_v44 = vrot.slane %v6792_v4, %v17020_v61  ;;  %v6793_v45 = vmax.f32 %v6732_v23, 0.0  ;;  %v10528_v50 = vsel %vm9685_vm9, %v10526_v16, %v10527_v55 }
 0x477   : > { %12553 = vmatprep.mubr.bf16.mxu0 %v10528_v50  ;;  %v9459_v60 = vor.u32 %v9458_v38, %v9454_v30  ;;  %v10248_v48 = vrot.slane %v10246_v26, 1 }
 0x478   : > { %v7432_v8 = vrot.slane %v7418_v43, %v17020_v61  ;;  %v7433_v5 = vcombine.high %v7425_v44, %v7425_v44  ;;  %v8445_v20 = vcombine.low %v7417_v53, %v7425_v44  ;;  %v7435_v13 = vcombine.high %v6793_v45, %v6793_v45 }
 0x479   : > { %v7442_v63 = vrot.slane %v6793_v45, %v17020_v61  ;;  %v9464_v49 = vsel %vm19476_vm8, %v9459_v60, %v9463_v35  ;;  %v10249_v47 = vor.u32 %v10248_v48, %v10244_v19  ;;  %vm19508_vm8 = vmmov %vm19463_vm0 }
 0x47a   : > { %v8446_v27 = vcombine.low %v7433_v5, %v7432_v8  ;;  %v7434_v46 = vcombine.high %v7432_v8, %v7432_v8  ;;  %v7449_v56 = vrot.slane %v7435_v13, %v17020_v61  ;;  %v8453_v3 = vrot.slane %v8445_v20, %v17020_v61  ;;  %12239 = vmatprep.mubr.bf16.mxu1 %v9464_v49 }
 0x47b   : > { %v7450_v15 = vcombine.high %v7442_v63, %v7442_v63  ;;  %12240 = vmatmul.mubr.bf16.gmra.mrb[56].mxu1 %v15759_v22  ;;  %v10254_v34 = vsel %vm19463_vm0, %v10249_v47, %v10253_v10  ;;  %v15774_v22 = vld [vmem:[#allocation3 + $0x8] ss:$0 sps:$4 sm:$0x11]  }
 0x47c   : > { %v8460_v7 = vrot.slane %v8446_v27, %v17020_v61  ;;  %v7451_v31 = vcombine.high %v7449_v56, %v7449_v56  ;;  %v8462_v1 = vcombine.low %v7434_v46, %v7442_v63  ;;  %12554 = vmatmul.mubr.bf16.gmra.mrb[136].mxu0 %v10254_v34  ;;  %v15771_v34 = vld [vmem:[#allocation3 + $0xc] sm:$0xff]  }
 0x47d   : > { %v8463_v11 = vcombine.low %v7450_v15, %v7449_v56 }
 0x47e   : > { %v8461_v4 = vcombine.low %v8453_v3, %v8460_v7  ;;  %v8470_v23 = vrot.slane %v8462_v1, %v17020_v61  ;;  %v8485_v33 = vrot.slane %v7451_v31, %v17020_v61 }
 0x47f   : > { %v8477_v55 = vrot.slane %v8463_v11, %v17020_v61 }
 0x480   : > { %v8667_v53 = vsel %vm19477_vm4, %v8461_v4, 0.0  ;;  %v8669_v16 = vsel %vm7667_vm13, %v8485_v33, 0.0  ;;  %vm19513_vm4 = vmmov %vm19463_vm0 }
 0x481   : > { %v14878_v41 = vpack.c.bf16 %v8667_v53, %v8667_v53  ;;  %v8478_v43 = vcombine.low %v8470_v23, %v8477_v55  ;;  %v14880_v44 = vpack.c.bf16 %v8669_v16, %v8669_v16 }
 0x483   : > { %8955 = vst [vmem:[#allocation3 + $0xb4] sm:$0xf] %v14878_v41  ;;  %v14879_v45 = vpack.c.bf16 %v8478_v43, %v8478_v43  ;;  %8957 = vst [vmem:[#allocation3 + $0xbc] sm:$0x1] %v14880_v44  ;;  %v9686_v43 = vrot.slane %v15773_v12, 1  ;;  %v9687_v44 = vrot.slane %v15774_v22, 1 }
 0x485   : > { %8956 = vst [vmem:[#allocation3 + $0xb8] sm:$0xf] %v14879_v45 }
 0x48a   : > { %v15765_v38 = vld [vmem:[#allocation3 + $0xbc] ss:$0 sps:$4 sm:$0x11]  }
 0x48b   : > { %v10530_v51 = vrot.slane %v15765_v38, 1  ;;  %v15767_v30 = vld [vmem:[#allocation3 + $0xbc] ss:$0 sps:$4 sm:$0x11]  }
 0x48c   : > { %v15764_v2 = vld [vmem:[#allocation3 + $0xb4] sm:$0xfe]   ;;  %v9473_v13 = vshll.u32 %v15767_v30, 16  ;;  %v15769_v60 = vld [vmem:[#allocation3 + $0xbc] ss:$0 sps:$4 sm:$0x11]  }
 0x48d   : > { %v15766_v50 = vld [vmem:[#allocation3 + $0xb4] sm:$0xff]   ;;  %v10529_v5 = vrot.slane %v15764_v2, 1  ;;  %v10263_v19 = vshll.u32 %v15769_v60, 16 }
 0x48e   : > { %v15768_v8 = vld [vmem:[#allocation3 + $0xb4] sm:$0xff]   ;;  %v9468_v20 = vshll.u32 %v15766_v50, 16  ;;  %v9466_v26 = vshrl.u32 %v15766_v50, 16  ;;  %v9475_v48 = vrot.slane %v9473_v13, 1 }
 0x48f   : > { %v10531_v63 = vsel %vm9685_vm9, %v10529_v5, %v10530_v51  ;;  %v10258_v35 = vshll.u32 %v15768_v8, 16  ;;  %v10256_v46 = vshrl.u32 %v15768_v8, 16  ;;  %v10265_v1 = vrot.slane %v10263_v19, 1  ;;  %v15770_v10 = vld [vmem:[#allocation3 + $0xb4] sm:$0xff]  }
 0x490   : > { %12561 = vmatprep.mubr.bf16.mxu0 %v10531_v63  ;;  %v9470_v27 = vrot.slane %v9468_v20, 1 }
 0x491   : > { %v10260_v56 = vrot.slane %v10258_v35, 1  ;;  %v9688_v35 = vsel %vm9685_vm9, %v9686_v43, %v9687_v44  ;;  %v15779_v43 = vld [vmem:[#allocation3 + $0x24] sm:$0xff]   ;;  %v15781_v44 = vld [vmem:[#allocation3 + $0x18] sm:$0xfe]  }
 0x492   : > { %v6736_v15 = vpop.f32.mrb[72].mxu0  ;;  %v9471_v49 = vor.u32 %v9470_v27, %v9466_v26  ;;  %v15775_v26 = vld [vmem:[%s19266_s3 + $0x180] sm:$0xff]  }
 0x493   : > { %v6737_v3 = vadd.f32 %v18666_v54, %v6736_v15  ;;  %v15514_v7 = vpop.f32.mrb[73].mxu0  ;;  %v10261_v31 = vor.u32 %v10260_v56, %v10256_v46  ;;  %v15780_v56 = vld [vmem:[%s19266_s3 + $0x1c8] sm:$0xff]   ;;  %v15776_v15 = vld [vmem:[#allocation3 + $0x18] sm:$0xff]  }
 0x494   : > { %v6739_v11 = vpop.f32.mrb[74].mxu0  ;;  %v9476_v47 = vsel %vm19478_vm10, %v9471_v49, %v9475_v48  ;;  %v15777_v49 = vld [vmem:[#allocation3 + $0xc] sm:$0xfe]   ;;  %v15778_v48 = vld [vmem:[#allocation3 + $0x14] ss:$0 sps:$4 sm:$0x11]   ;;  %vm19514_vm10 = vmmov %vm19463_vm0 }
 0x495   : > { %v6794_v4 = vmax.f32 %v6737_v3, 0.0  ;;  %v6740_v23 = vadd.f32 %v18666_v54, %v6739_v11  ;;  %v15515_v33 = vpop.f32.mrb[75].mxu0  ;;  %12247 = vmatprep.mubr.bf16.mxu1 %v9476_v47  ;;  %v10266_v55 = vsel %vm19479_vm5, %v10261_v31, %v10265_v1  ;;  %v15783_v31 = vld [vmem:[%s19266_s3 + $0x188] sm:$0xff]   ;;  %vm19515_vm5 = vmmov %vm19463_vm0 }
 0x496   : > { %12562 = vmatmul.mubr.bf16.gmra.mrb[140].mxu0 %v10266_v55  ;;  %12248 = vmatmul.mubr.bf16.gmra.mrb[60].mxu1 %v15770_v10  ;;  %v15788_v10 = vld [vmem:[%s19266_s3 + $0x1d0] sm:$0xff]  }
 0x497   : > { %v7452_v53 = vcombine.high %v6794_v4, %v6794_v4  ;;  %v7459_v16 = vrot.slane %v6794_v4, %v17020_v61  ;;  %v6795_v41 = vmax.f32 %v6740_v23, 0.0  ;;  %12288 = vmatprep.mubr.bf16.mxu1 %v15771_v34  ;;  %v9689_v4 = vrot.slane %v15777_v49, 1  ;;  %v15787_v49 = vld [vmem:[#allocation3 + $0x3c] sm:$0xff]  }
 0x498   : > { %v15034_v45 = vpop.f32.mrb[40].mxu1  ;;  %v9690_v23 = vrot.slane %v15778_v48, 1  ;;  %v15789_v48 = vld [vmem:[#allocation3 + $0x30] sm:$0xfe]  }
 0x499   : > { %v7466_v38 = vrot.slane %v7452_v53, %v17020_v61  ;;  %v7467_v2 = vcombine.high %v7459_v16, %v7459_v16  ;;  %v7469_v51 = vcombine.high %v6795_v41, %v6795_v41  ;;  %v7476_v50 = vrot.slane %v6795_v41, %v17020_v61  ;;  %v15035_v30 = vpop.f32.mrb[41].mxu1  ;;  %v15791_v53 = vld [vmem:[%s19266_s3 + $0x190] sm:$0xff]  }
 0x49a   : > { %v18728_v8 = vadd.f32 %v15035_v30, %v15034_v45  ;;  %v15037_v5 = vpop.f32.mrb[42].mxu1  ;;  %v9691_v41 = vsel %vm9685_vm9, %v9689_v4, %v9690_v23  ;;  %v15820_v30 = vld [vmem:[%s19266_s3 + $0x1a0] sm:$0xff]  }
 0x49b   : > { %v7468_v20 = vcombine.high %v7466_v38, %v7466_v38  ;;  %v8486_v13 = vcombine.low %v7459_v16, %v7467_v2  ;;  %v7483_v63 = vrot.slane %v7469_v51, %v17020_v61  ;;  %v15038_v60 = vpop.f32.mrb[43].mxu1  ;;  %v7484_v27 = vcombine.high %v7476_v50, %v7476_v50  ;;  %v15799_v16 = vld [vmem:[%s19266_s3 + $0x1d8] sm:$0xff]   ;;  %v15815_v2 = vld [vmem:[%s19266_s3 + $0x1e0] sm:$0xff]  }
 0x49c   : > { %v18735_v46 = vadd.f32 %v15038_v60, %v15037_v5  ;;  %v9692_v51 = vrot.slane %v15781_v44, 1  ;;  %v15832_v5 = vld [vmem:[%s19266_s3 + $0x1e8] sm:$0xff]   ;;  %v15786_v60 = vld [vmem:[#allocation3 + $0x2c] ss:$0 sps:$4 sm:$0x11]  }
 0x49d   : > { %v8487_v19 = vcombine.low %v7466_v38, %v7468_v20  ;;  %v8494_v22 = vrot.slane %v8486_v13, %v17020_v61  ;;  %v7485_v12 = vcombine.high %v7483_v63, %v7483_v63  ;;  %v8503_v3 = vcombine.low %v7476_v50, %v7484_v27  ;;  %v15802_v38 = vld [vmem:[%s19266_s3 + $0x198] sm:$0xff]   ;;  %v15784_v13 = vld [vmem:[#allocation3 + $0x30] sm:$0xff]   ;;  %v15792_v4 = vld [vmem:[#allocation3 + $0x48] sm:$0xff]  }
 0x49e   : > { %19480 = vst [vmem:[#allocation5_spill] sm:$0xff] %v18735_v46  ;;  %12289 = vmatmul.mubr.bf16.vlgmr.msra.gmra.mrb[64].mxu1 %v9688_v35  ;;  %v9693_v50 = vrot.slane %v15782_v39, 1  ;;  %v15837_v35 = vld [vmem:[%s19266_s3 + $0x1a8] sm:$0xff]  }
 0x49f   : > { %v8501_v7 = vrot.slane %v8487_v19, %v17020_v61  ;;  %15295 = vmatpush3.bf16.msra.mxu1 %v15775_v26  ;;  %12296 = vmatprep.mubr.bf16.mxu1 %v15776_v15  ;;  %v8504_v1 = vcombine.low %v7483_v63, %v7485_v12  ;;  %v8511_v11 = vrot.slane %v8503_v3, %v17020_v61  ;;  %v15785_v63 = vld [vmem:[#allocation3 + $0x24] sm:$0xfe]   ;;  %v15848_v26 = vld [vmem:[%s19266_s3 + $0x1f0] sm:$0xff]   ;;  %v15890_v46 = vld [vmem:[#allocation3 + $0x50] ss:$0 sps:$4 sm:$0x11]  }
 0x4a0   : > { %15296 = vmatprep.subr.bf16.mxu1 %v15780_v56  ;;  %v9694_v20 = vsel %vm9685_vm9, %v9692_v51, %v9693_v50  ;;  %v9695_v27 = vrot.slane %v15785_v63, 1  ;;  %v9696_v56 = vrot.slane %v15786_v60, 1  ;;  %v15853_v19 = vld [vmem:[%s19266_s3 + $0x1b0] sm:$0xff]   ;;  %v15869_v3 = vld [vmem:[%s19266_s3 + $0x1b8] sm:$0xff]  }
 0x4a1   : > { %v8502_v47 = vcombine.low %v8494_v22, %v8501_v7  ;;  %v8518_v33 = vrot.slane %v8504_v1, %v17020_v61  ;;  %v15864_v22 = vld [vmem:[%s19266_s3 + $0x1f8] sm:$0xff]   ;;  %v15790_v12 = vld [vmem:[#allocation3 + $0x38] ss:$0 sps:$4 sm:$0x11]   ;;  %v9698_v7 = vrot.slane %v15789_v48, 1 }
 0x4a2   : > { %v9697_v15 = vsel %vm9685_vm9, %v9695_v27, %v9696_v56  ;;  %v9699_v1 = vrot.slane %v15790_v12, 1  ;;  %v15806_v56 = vld [vmem:[#allocation3 + $0x54] sm:$0xfe]  }
 0x4a3   : > { %v8670_v55 = vsel %vm19481_vm6, %v8502_v47, 0.0  ;;  %15297 = vmatpush3.bf16.msra.mxu1 %v15783_v31  ;;  %v8519_v34 = vcombine.low %v8511_v11, %v8518_v33  ;;  %v15794_v33 = vld [vmem:[#allocation3 + $0x3c] sm:$0xfe]   ;;  %v9707_v21 = vrot.slane %v15806_v56, 1  ;;  %vm19516_vm6 = vmmov %vm19463_vm0 }
 0x4a4   : > { %15298 = vmatprep.subr.bf16.mxu1 %v15788_v10  ;;  %v9700_v47 = vsel %vm9685_vm9, %v9698_v7, %v9699_v1 }
 0x4a5   : > { %v14922_v45 = vpack.c.bf16 %v8519_v34, %v8670_v55 }
 0x4a6   : > { %12297 = vmatmul.mubr.bf16.gmra.mrb[68].mxu1 %v9691_v41 }
 0x4a7   : > { %12304 = vmatprep.mubr.bf16.mxu1 %v15779_v43  ;;  %14931 = vst [vmem:[#allocation3 + $0xc0] sm:$0xff] %v14922_v45   ;;  %15299 = vmatpush3.bf16.msra.mxu1 %v15791_v53  ;;  %v15795_v53 = vld [vmem:[#allocation3 + $0x44] ss:$0 sps:$4 sm:$0x11]   ;;  %v9701_v43 = vrot.slane %v15794_v33, 1 }
 0x4a8   : > { %15300 = vmatprep.subr.bf16.mxu1 %v15799_v16  ;;  %v15817_v33 = vld [vmem:[#allocation3 + $0x20] ss:$0 sps:$4 sm:$0x11]  }
 0x4ab   : > { %15301 = vmatpush3.bf16.msra.mxu1 %v15802_v38  ;;  %v9702_v38 = vrot.slane %v15795_v53, 1 }
 0x4ac   : > { %15302 = vmatprep.subr.bf16.mxu1 %v15815_v2 }
 0x4ad   : > { %v9703_v50 = vsel %vm9685_vm9, %v9701_v43, %v9702_v38 }
 0x4ae   : > { %12305 = vmatmul.mubr.bf16.gmra.mrb[72].mxu1 %v9694_v20 }
 0x4af   : > { %12312 = vmatprep.mubr.bf16.mxu1 %v15784_v13  ;;  %15303 = vmatpush3.bf16.msra.mxu1 %v15820_v30  ;;  %v15796_v30 = vld [vmem:[#allocation3 + $0x54] sm:$0xff]   ;;  %v15801_v13 = vld [vmem:[#allocation3 + $0x50] ss:$0 sps:$4 sm:$0x11]  }
 0x4b0   : > { %15304 = vmatprep.subr.bf16.mxu1 %v15832_v5  ;;  %v15800_v5 = vld [vmem:[#allocation3 + $0x48] sm:$0xfe]  }
 0x4b1   : > { %v9704_v63 = vrot.slane %v15800_v5, 1  ;;  %v15818_v5 = vld [vmem:[#allocation3 + $0x60] sm:$0xfe]  }
 0x4b2   : > { %v9710_v56 = vrot.slane %v15818_v5, 1 }
 0x4b3   : > { %15305 = vmatpush3.bf16.msra.mxu1 %v15837_v35  ;;  %v15812_v35 = vld [vmem:[#allocation3 + $0xc0] sm:$0xff]  }
 0x4b4   : > { %15306 = vmatprep.subr.bf16.mxu1 %v15848_v26  ;;  %v9705_v26 = vrot.slane %v15801_v13, 1 }
 0x4b6   : > { %12313 = vmatmul.mubr.bf16.gmra.mrb[76].mxu1 %v9697_v15 }
 0x4b7   : > { %12320 = vmatprep.mubr.bf16.mxu1 %v15787_v49  ;;  %15307 = vmatpush3.bf16.msra.mxu1 %v15853_v19  ;;  %v9706_v19 = vsel %vm9685_vm9, %v9704_v63, %v9705_v26  ;;  %v15807_v49 = vld [vmem:[#allocation3 + $0x5c] ss:$0 sps:$4 sm:$0x11]   ;;  %v15824_v26 = vld [vmem:[#allocation3 + $0x2c] ss:$0 sps:$4 sm:$0x11]  }
 0x4b8   : > { %15308 = vmatprep.subr.bf16.mxu1 %v15864_v22  ;;  %v15803_v22 = vld [vmem:[#allocation3 + $0x60] sm:$0xff]   ;;  %v9708_v7 = vrot.slane %v15807_v49, 1  ;;  %v15827_v49 = vld [vmem:[#allocation3 + $0x6c] sm:$0xfe]  }
 0x4bb   : > { %v15040_v31 = vpop.f32.mrb[44].mxu1  ;;  %15309 = vmatpush3.bf16.msra.mxu1 %v15869_v3  ;;  %v15810_v3 = vld [vmem:[#allocation3 + $0xc0] sm:$0xfe]  }
 0x4bc   : > { %v15041_v11 = vpop.f32.mrb[45].mxu1 }
 0x4bd   : > { %v18789_v10 = vadd.f32 %v15041_v11, %v15040_v31  ;;  %v15043_v23 = vpop.f32.mrb[46].mxu1  ;;  %v10268_v31 = vshrl.u32 %v15812_v35, 16  ;;  %v15816_v11 = vld [vmem:[#allocation3 + $0x18] sm:$0xfe]  }
 0x4be   : > { %12321 = vmatmul.mubr.bf16.gmra.mrb[80].mxu1 %v9700_v47  ;;  %v15044_v55 = vpop.f32.mrb[47].mxu1  ;;  %v15808_v47 = vld [vmem:[#allocation3 + $0x6c] sm:$0xff]  }
 0x4bf   : > { %19482 = vst [vmem:[#allocation6_spill] sm:$0xff] %v18789_v10  ;;  %12328 = vmatprep.mubr.bf16.mxu1 %v15792_v4  ;;  %v18791_v34 = vadd.f32 %v15044_v55, %v15043_v23  ;;  %v10532_v23 = vrot.slane %v15810_v3, 1  ;;  %v15819_v55 = vld [vmem:[#allocation3 + $0x68] ss:$0 sps:$4 sm:$0x11]  }
 0x4c0   : > { %v9711_v63 = vrot.slane %v15819_v55, 1  ;;  %v15828_v3 = vld [vmem:[#allocation3 + $0x74] ss:$0 sps:$4 sm:$0x11]  }
 0x4c1   : > { %19483 = vst [vmem:[#allocation7_spill] sm:$0xff] %v18791_v34  ;;  %v6744_v16 = vpop.f32.mrb[76].mxu0  ;;  %v9714_v55 = vrot.slane %v15828_v3, 1 }
 0x4c2   : > { %v6745_v41 = vadd.f32 %v18666_v54, %v6744_v16  ;;  %v15518_v44 = vpop.f32.mrb[77].mxu0 }
 0x4c3   : > { %v6747_v45 = vpop.f32.mrb[78].mxu0 }
 0x4c4   : > { %v6796_v39 = vmax.f32 %v6745_v41, 0.0  ;;  %v15519_v2 = vpop.f32.mrb[79].mxu0  ;;  %v9709_v41 = vsel %vm9685_vm9, %v9707_v21, %v9708_v7 }
 0x4c6   : > { %v7493_v51 = vrot.slane %v6796_v39, %v17020_v61  ;;  %12329 = vmatmul.mubr.bf16.gmra.mrb[84].mxu1 %v9703_v50 }
 0x4c7   : > { %12336 = vmatprep.mubr.bf16.mxu1 %v15796_v30  ;;  %v11288_v30 = vrot.slane %v15816_v11, 1 }
 0x4c8   : > { %v8526_v20 = vrot.slane %v7493_v51, %v17020_v61  ;;  %v10270_v61 = vshll.u32 %v15812_v35, 16  ;;  %v15823_v35 = vld [vmem:[#allocation3 + $0x24] sm:$0xfe]  }
 0x4ca   : > { %v8672_v54 = vsel %vm7667_vm13, %v8526_v20, 0.0  ;;  %v10272_v1 = vrot.slane %v10270_v61, 1  ;;  %vm19484_vm13 = vmmov %vm19463_vm0 }
 0x4cb   : > { %v14883_v60 = vpack.c.bf16 %v8672_v54, %v8672_v54  ;;  %v11289_v54 = vrot.slane %v15817_v33, 1  ;;  %v9713_v33 = vrot.slane %v15827_v49, 1  ;;  %v15840_v49 = vld [vmem:[#allocation3 + $0x5c] ss:$0 sps:$4 sm:$0x11]  }
 0x4cc   : > { %v10273_v38 = vor.u32 %v10272_v1, %v10268_v31  ;;  %v11291_v31 = vrot.slane %v15823_v35, 1  ;;  %v11292_v1 = vrot.slane %v15824_v26, 1  ;;  %v15836_v35 = vld [vmem:[#allocation3 + $0x80] ss:$0 sps:$4 sm:$0x11]  }
 0x4cd   : > { %8960 = vst [vmem:[#allocation3 + $0xc8] sm:$0x1] %v14883_v60  ;;  %v6752_v27 = vpop.f32.mrb[80].mxu0 }
 0x4ce   : > { %v15522_v15 = vpop.f32.mrb[81].mxu0  ;;  %12337 = vmatmul.mubr.bf16.gmra.mrb[88].mxu1 %v9706_v19  ;;  %v11290_v27 = vsel %vm9685_vm9, %v11288_v30, %v11289_v54  ;;  %v15825_v19 = vld [vmem:[#allocation3 + $0x30] sm:$0xfe]   ;;  %v15835_v30 = vld [vmem:[#allocation3 + $0x78] sm:$0xfe]  }
 0x4cf   : > { %v6755_v48 = vpop.f32.mrb[82].mxu0  ;;  %12344 = vmatprep.mubr.bf16.mxu1 %v15803_v22  ;;  %v15826_v15 = vld [vmem:[#allocation3 + $0x38] ss:$0 sps:$4 sm:$0x11]  }
 0x4d0   : > { %v15523_v12 = vpop.f32.mrb[83].mxu0  ;;  %v9712_v48 = vsel %vm9685_vm9, %v9710_v56, %v9711_v63 }
 0x4d1   : > { %v15821_v12 = vld [vmem:[#allocation3 + $0x78] sm:$0xff]  }
 0x4d4   : > { %v15811_v4 = vld [vmem:[#allocation3 + $0xc8] ss:$0 sps:$4 sm:$0x11]  }
 0x4d5   : > { %v15198_v53 = vpop.f32.mrb[84].mxu0  ;;  %v15813_v16 = vld [vmem:[#allocation3 + $0xc8] ss:$0 sps:$4 sm:$0x11]   ;;  %v10533_v44 = vrot.slane %v15811_v4, 1 }
 0x4d6   : > { %v15199_v43 = vpop.f32.mrb[85].mxu0  ;;  %12345 = vmatmul.mubr.bf16.gmra.mrb[92].mxu1 %v9709_v41  ;;  %v10275_v2 = vshll.u32 %v15813_v16, 16  ;;  %v15830_v16 = vld [vmem:[#allocation3 + $0x3c] sm:$0xfe]  }
 0x4d7   : > { %v18801_v45 = vadd.f32 %v15199_v43, %v15198_v53  ;;  %v15201_v39 = vpop.f32.mrb[86].mxu0  ;;  %12352 = vmatprep.mubr.bf16.mxu1 %v15808_v47  ;;  %v10534_v50 = vsel %vm9685_vm9, %v10532_v23, %v10533_v44  ;;  %v11294_v47 = vrot.slane %v15825_v19, 1  ;;  %v11295_v23 = vrot.slane %v15826_v15, 1  ;;  %v15831_v43 = vld [vmem:[#allocation3 + $0x44] ss:$0 sps:$4 sm:$0x11]  }
 0x4d8   : > { %v15202_v51 = vpop.f32.mrb[87].mxu0  ;;  %12569 = vmatprep.mubr.bf16.mxu0 %v10534_v50  ;;  %v10277_v13 = vrot.slane %v10275_v2, 1  ;;  %v11293_v53 = vsel %vm9685_vm9, %v11291_v31, %v11292_v1  ;;  %v15833_v44 = vld [vmem:[#allocation3 + $0x48] sm:$0xfe]   ;;  %v9715_v2 = vsel %vm9685_vm9, %v9713_v33, %v9714_v55  ;;  %v11297_v54 = vrot.slane %v15830_v16, 1 }
 0x4d9   : > { %v18804_v20 = vadd.f32 %v15202_v51, %v15201_v39  ;;  %v11296_v41 = vsel %vm9685_vm9, %v11294_v47, %v11295_v23  ;;  %v15829_v50 = vld [vmem:[#allocation3 + $0x84] sm:$0xff]   ;;  %v9716_v19 = vrot.slane %v15835_v30, 1  ;;  %v15839_v15 = vld [vmem:[#allocation3 + $0x54] sm:$0xfe]   ;;  %v11304_v16 = vrot.slane %v15840_v49, 1 }
 0x4da   : > { %v10278_v60 = vsel %vm19484_vm13, %v10273_v38, %v10277_v13  ;;  %v15834_v38 = vld [vmem:[#allocation3 + $0x50] ss:$0 sps:$4 sm:$0x11]   ;;  %v15843_v31 = vld [vmem:[#allocation3 + $0x84] sm:$0xfe]   ;;  %vm19517_vm13 = vmmov %vm19463_vm0 }
 0x4db   : > { %12570 = vmatmul.mubr.bf16.gmra.mrb[144].mxu0 %v10278_v60  ;;  %v11300_v60 = vrot.slane %v15833_v44, 1  ;;  %v11301_v56 = vrot.slane %v15834_v38, 1  ;;  %v15838_v47 = vld [vmem:[#allocation3 + $0x90] sm:$0xff]   ;;  %v15844_v23 = vld [vmem:[#allocation3 + $0x8c] ss:$0 sps:$4 sm:$0x11]  }
 0x4dc   : > { %15540 = vmatprep.mubr.bf16.mxu0 %v11290_v27  ;;  %v11298_v27 = vrot.slane %v15831_v43, 1 }
 0x4dd   : > { %v15204_v22 = vpop.f32.mrb[88].mxu0 }
 0x4de   : > { %v15205_v61 = vpop.f32.mrb[89].mxu0  ;;  %12353 = vmatmul.mubr.bf16.gmra.mrb[96].mxu1 %v9712_v48  ;;  %v11302_v48 = vsel %vm9685_vm9, %v11300_v60, %v11301_v56 }
 0x4df   : > { %v18809_v21 = vadd.f32 %v15205_v61, %v15204_v22  ;;  %v15207_v7 = vpop.f32.mrb[90].mxu0  ;;  %12360 = vmatprep.mubr.bf16.mxu1 %v15821_v12  ;;  %v11299_v22 = vsel %vm9685_vm9, %v11297_v54, %v11298_v27  ;;  %v9717_v61 = vrot.slane %v15836_v35, 1  ;;  %v15842_v12 = vld [vmem:[#allocation3 + $0x68] ss:$0 sps:$4 sm:$0x11]  }
 0x4e0   : > { %v15208_v11 = vpop.f32.mrb[91].mxu0  ;;  %v11307_v43 = vrot.slane %v15842_v12, 1  ;;  %v15847_v54 = vld [vmem:[#allocation3 + $0x74] ss:$0 sps:$4 sm:$0x11]  }
 0x4e1   : > { %v18811_v4 = vadd.f32 %v15208_v11, %v15207_v7  ;;  %v15841_v7 = vld [vmem:[#allocation3 + $0x60] sm:$0xfe]   ;;  %v9718_v1 = vsel %vm9685_vm9, %v9716_v19, %v9717_v61  ;;  %v15849_v27 = vld [vmem:[#allocation3 + $0x78] sm:$0xfe]   ;;  %v15851_v12 = vld [vmem:[#allocation3 + $0x90] sm:$0xfe]  }
 0x4e2   : > { %v11306_v38 = vrot.slane %v15841_v7, 1  ;;  %v15845_v61 = vld [vmem:[#allocation3 + $0x9c] sm:$0xff]  }
 0x4e3   : > { %15541 = vmatmul.mubr.bf16.vlgmr.msra.gmra.mrb[148].mxu0 %v11293_v53  ;;  %v11303_v53 = vrot.slane %v15839_v15, 1 }
 0x4e4   : > { %15544 = vmatprep.mubr.bf16.mxu0 %v11296_v41  ;;  %v11308_v60 = vsel %vm9685_vm9, %v11306_v38, %v11307_v43  ;;  %v15855_v43 = vld [vmem:[#allocation3 + $0x84] sm:$0xfe]  }
 0x4e5   : > { %v15210_v39 = vpop.f32.mrb[92].mxu0 }
 0x4e6   : > { %v15211_v51 = vpop.f32.mrb[93].mxu0  ;;  %12361 = vmatmul.mubr.bf16.gmra.mrb[100].mxu1 %v9715_v2  ;;  %v9719_v2 = vrot.slane %v15843_v31, 1 }
 0x4e7   : > { %v18816_v5 = vadd.f32 %v15211_v51, %v15210_v39  ;;  %v15213_v13 = vpop.f32.mrb[94].mxu0  ;;  %12368 = vmatprep.mubr.bf16.mxu1 %v15829_v50  ;;  %v9720_v51 = vrot.slane %v15844_v23, 1  ;;  %v11305_v50 = vsel %vm9685_vm9, %v11303_v53, %v11304_v16  ;;  %v15852_v23 = vld [vmem:[#allocation3 + $0x98] ss:$0 sps:$4 sm:$0x11]   ;;  %v9722_v16 = vrot.slane %v15851_v12, 1 }
 0x4e8   : > { %v15214_v63 = vpop.f32.mrb[95].mxu0 }
 0x4e9   : > { %v18818_v26 = vadd.f32 %v15214_v63, %v15213_v13  ;;  %v15846_v13 = vld [vmem:[#allocation3 + $0x6c] sm:$0xfe]   ;;  %v9721_v15 = vsel %vm9685_vm9, %v9719_v2, %v9720_v51  ;;  %v9723_v2 = vrot.slane %v15852_v23, 1 }
 0x4ea   : > { %v11309_v31 = vrot.slane %v15846_v13, 1  ;;  %v15857_v51 = vld [vmem:[#allocation3 + $0x90] sm:$0xfe]  }
 0x4eb   : > { %15545 = vmatmul.mubr.bf16.gmra.mrb[152].mxu0 %v11299_v22  ;;  %v15850_v22 = vld [vmem:[#allocation3 + $0x80] ss:$0 sps:$4 sm:$0x11]   ;;  %v9724_v13 = vsel %vm9685_vm9, %v9722_v16, %v9723_v2  ;;  %v15865_v16 = vld [vmem:[#allocation3 + $0xa8] sm:$0xfe]   ;;  %v15861_v2 = vld [vmem:[#allocation3 + $0xb4] sm:$0xff]  }
 0x4ec   : > { %15548 = vmatprep.mubr.bf16.mxu0 %v11302_v48  ;;  %v11313_v53 = vrot.slane %v15850_v22, 1 }
 0x4ed   : > { %v15216_v3 = vpop.f32.mrb[96].mxu0 }
 0x4ee   : > { %v15217_v11 = vpop.f32.mrb[97].mxu0  ;;  %12369 = vmatmul.mubr.bf16.gmra.mrb[104].mxu1 %v9718_v1  ;;  %v11310_v1 = vrot.slane %v15847_v54, 1 }
 0x4ef   : > { %v18823_v33 = vadd.f32 %v15217_v11, %v15216_v3  ;;  %v15219_v55 = vpop.f32.mrb[98].mxu0  ;;  %12376 = vmatprep.mubr.bf16.mxu1 %v15838_v47  ;;  %v11312_v47 = vrot.slane %v15849_v27, 1 }
 0x4f0   : > { %v15220_v41 = vpop.f32.mrb[99].mxu0  ;;  %v15046_v39 = vpop.f32.mrb[48].mxu1 }
 0x4f1   : > { %v18825_v44 = vadd.f32 %v15220_v41, %v15219_v55  ;;  %v15047_v30 = vpop.f32.mrb[49].mxu1  ;;  %v11311_v41 = vsel %vm9685_vm9, %v11309_v31, %v11310_v1  ;;  %v11314_v38 = vsel %vm9685_vm9, %v11312_v47, %v11313_v53  ;;  %v15863_v53 = vld [vmem:[#allocation3 + $0xa4] ss:$0 sps:$4 sm:$0x11]  }
 0x4f2   : > { %v18828_v63 = vadd.f32 %v15047_v30, %v15046_v39  ;;  %v15049_v35 = vpop.f32.mrb[50].mxu1  ;;  %v15856_v39 = vld [vmem:[#allocation3 + $0x8c] ss:$0 sps:$4 sm:$0x11]  }
 0x4f3   : > { %15549 = vmatmul.mubr.bf16.gmra.mrb[156].mxu0 %v11305_v50  ;;  %v15050_v19 = vpop.f32.mrb[51].mxu1  ;;  %v15858_v30 = vld [vmem:[#allocation3 + $0x98] ss:$0 sps:$4 sm:$0x11]   ;;  %v11316_v22 = vrot.slane %v15856_v39, 1 }
 0x4f4   : > { %19485 = vst [vmem:[#allocation8_spill] sm:$0xff] %v18828_v63  ;;  %15552 = vmatprep.mubr.bf16.mxu0 %v11308_v60  ;;  %v18832_v48 = vadd.f32 %v15050_v19, %v15049_v35  ;;  %v15854_v60 = vld [vmem:[#allocation3 + $0xa8] sm:$0xff]   ;;  %v15859_v35 = vld [vmem:[#allocation3 + $0x9c] sm:$0xfe]   ;;  %v11315_v19 = vrot.slane %v15855_v43, 1 }
 0x4f5   : > { %v15222_v56 = vpop.f32.mrb[100].mxu0  ;;  %v9725_v31 = vrot.slane %v15859_v35, 1  ;;  %v15866_v43 = vld [vmem:[#allocation3 + $0xb0] ss:$0 sps:$4 sm:$0x11]   ;;  %v11324_v35 = vrot.slane %v15865_v16, 1 }
 0x4f6   : > { %v15223_v49 = vpop.f32.mrb[101].mxu0  ;;  %19486 = vst [vmem:[#allocation9_spill] sm:$0xff] %v18832_v48  ;;  %12377 = vmatmul.mubr.bf16.gmra.mrb[108].mxu1 %v9721_v15  ;;  %v11317_v1 = vsel %vm9685_vm9, %v11315_v19, %v11316_v22  ;;  %v11322_v22 = vrot.slane %v15863_v53, 1  ;;  %v15875_v16 = vld [vmem:[#allocation3 + $0xb4] sm:$0xfe]  }
 0x4f7   : > { %v18834_v3 = vadd.f32 %v15223_v49, %v15222_v56  ;;  %v15225_v7 = vpop.f32.mrb[102].mxu0  ;;  %12384 = vmatprep.mubr.bf16.mxu1 %v15845_v61  ;;  %v11318_v49 = vrot.slane %v15857_v51, 1  ;;  %v15860_v61 = vld [vmem:[#allocation3 + $0xa4] ss:$0 sps:$4 sm:$0x11]  }
 0x4f8   : > { %v15226_v11 = vpop.f32.mrb[103].mxu0  ;;  %v9726_v23 = vrot.slane %v15860_v61, 1  ;;  %v15867_v51 = vld [vmem:[#allocation3 + $0xa8] sm:$0xfe]  }
 0x4f9   : > { %v18836_v55 = vadd.f32 %v15226_v11, %v15225_v7  ;;  %v11319_v7 = vrot.slane %v15858_v30, 1  ;;  %v15862_v11 = vld [vmem:[#allocation3 + $0x9c] sm:$0xfe]  }
 0x4fa   : > { %v9727_v39 = vsel %vm9685_vm9, %v9725_v31, %v9726_v23  ;;  %v15872_v31 = vld [vmem:[#allocation3 + $0xbc] ss:$0 sps:$4 sm:$0x11]  }
 0x4fb   : > { %15553 = vmatmul.mubr.bf16.gmra.mrb[160].mxu0 %v11311_v41  ;;  %v11320_v47 = vsel %vm9685_vm9, %v11318_v49, %v11319_v7  ;;  %v9728_v49 = vrot.slane %v15867_v51, 1  ;;  %v15871_v7 = vld [vmem:[#allocation3 + $0xb4] sm:$0xfe]   ;;  %v15876_v51 = vld [vmem:[#allocation3 + $0xbc] ss:$0 sps:$4 sm:$0x11]  }
 0x4fc   : > { %15556 = vmatprep.mubr.bf16.mxu0 %v11314_v38 }
 0x4fd   : > { %v15228_v50 = vpop.f32.mrb[104].mxu0 }
 0x4fe   : > { %v15229_v54 = vpop.f32.mrb[105].mxu0  ;;  %12385 = vmatmul.mubr.bf16.gmra.mrb[112].mxu1 %v9724_v13  ;;  %v11321_v13 = vrot.slane %v15862_v11, 1  ;;  %v15873_v11 = vld [vmem:[#allocation3 + $0xc0] sm:$0xfe]  }
 0x4ff   : > { %v18841_v27 = vadd.f32 %v15229_v54, %v15228_v50  ;;  %v15231_v56 = vpop.f32.mrb[106].mxu0  ;;  %12392 = vmatprep.mubr.bf16.mxu1 %v15854_v60  ;;  %v15877_v54 = vld [vmem:[#allocation3 + $0x18] sm:$0xff]  }
 0x500   : > { %v15232_v15 = vpop.f32.mrb[107].mxu0  ;;  %v11323_v61 = vsel %vm9685_vm9, %v11321_v13, %v11322_v22  ;;  %v11328_v22 = vrot.slane %v15872_v31, 1  ;;  %v10889_v63 = vshrl.u32 %v15877_v54, 16 }
 0x501   : > { %v18843_v12 = vadd.f32 %v15232_v15, %v15231_v56  ;;  %v15868_v56 = vld [vmem:[#allocation3 + $0xb0] ss:$0 sps:$4 sm:$0x11]   ;;  %v11325_v15 = vrot.slane %v15866_v43, 1  ;;  %v15870_v43 = vld [vmem:[#allocation3 + $0xc0] sm:$0xff]  }
 0x502   : > { %v9729_v23 = vrot.slane %v15868_v56, 1 }
 0x503   : > { %15557 = vmatmul.mubr.bf16.gmra.mrb[164].mxu0 %v11317_v1  ;;  %v10891_v1 = vshll.u32 %v15877_v54, 16 }
 0x504   : > { %15560 = vmatprep.mubr.bf16.mxu0 %v11320_v47  ;;  %v11326_v47 = vsel %vm9685_vm9, %v11324_v35, %v11325_v15  ;;  %v15880_v35 = vld [vmem:[#allocation3 + $0x24] sm:$0xff]   ;;  %v11330_v15 = vrot.slane %v15873_v11, 1 }
 0x505   : > { %v15234_v41 = vpop.f32.mrb[108].mxu0 }
 0x506   : > { %v15235_v38 = vpop.f32.mrb[109].mxu0  ;;  %12393 = vmatmul.mubr.bf16.gmra.mrb[116].mxu1 %v9727_v39 }
 0x507   : > { %v18848_v50 = vadd.f32 %v15235_v38, %v15234_v41  ;;  %v15237_v30 = vpop.f32.mrb[110].mxu0  ;;  %12400 = vmatprep.mubr.bf16.mxu1 %v15861_v2  ;;  %v15874_v41 = vld [vmem:[#allocation3 + $0xc8] ss:$0 sps:$4 sm:$0x11]   ;;  %v9730_v2 = vsel %vm9685_vm9, %v9728_v49, %v9729_v23  ;;  %v9731_v49 = vrot.slane %v15875_v16, 1  ;;  %v9732_v23 = vrot.slane %v15876_v51, 1 }
 0x508   : > { %v15238_v60 = vpop.f32.mrb[111].mxu0  ;;  %v15878_v38 = vld [vmem:[#allocation3 + $0x20] ss:$0 sps:$4 sm:$0x11]   ;;  %v11331_v48 = vrot.slane %v15874_v41, 1  ;;  %v15883_v51 = vld [vmem:[#allocation3 + $0x30] sm:$0xff]  }
 0x509   : > { %v18850_v19 = vadd.f32 %v15238_v60, %v15237_v30  ;;  %v11327_v60 = vrot.slane %v15871_v7, 1  ;;  %v10896_v34 = vshll.u32 %v15878_v38, 16  ;;  %v9733_v11 = vsel %vm9685_vm9, %v9731_v49, %v9732_v23 }
 0x50a   : > { %v11332_v7 = vsel %vm9685_vm9, %v11330_v15, %v11331_v48  ;;  %v10915_v23 = vshll.u32 %v15883_v51, 16 }
 0x50b   : > { %15561 = vmatmul.mubr.bf16.gmra.mrb[168].mxu0 %v11323_v61  ;;  %v10893_v61 = vrot.slane %v10891_v1, 1  ;;  %v11329_v10 = vsel %vm9685_vm9, %v11327_v60, %v11328_v22  ;;  %v10898_v1 = vrot.slane %v10896_v34, 1  ;;  %v10901_v34 = vshrl.u32 %v15880_v35, 16 }
 0x50c   : > { %15564 = vmatprep.mubr.bf16.mxu0 %v11326_v47 }
 0x50d   : > { %v15240_v39 = vpop.f32.mrb[112].mxu0 }
 0x50e   : > { %v15241_v53 = vpop.f32.mrb[113].mxu0  ;;  %12401 = vmatmul.mubr.bf16.gmra.mrb[120].mxu1 %v9730_v2  ;;  %v10894_v2 = vor.u32 %v10893_v61, %v10889_v63 }
 0x50f   : > { %v18855_v30 = vadd.f32 %v15241_v53, %v15240_v39  ;;  %v15243_v13 = vpop.f32.mrb[114].mxu0  ;;  %12408 = vmatprep.mubr.bf16.mxu1 %v15870_v43  ;;  %v10903_v39 = vshll.u32 %v15880_v35, 16  ;;  %v15881_v53 = vld [vmem:[#allocation3 + $0x2c] ss:$0 sps:$4 sm:$0x11]  }
 0x510   : > { %v15244_v56 = vpop.f32.mrb[115].mxu0  ;;  %v15922_v43 = vld [vmem:[#allocation3 + $0xcc] sm:$0xfe]   ;;  %v10899_v38 = vsel %vm19487_vm3, %v10894_v2, %v10898_v1  ;;  %v10908_v61 = vshll.u32 %v15881_v53, 16 }
 0x511   : > { %v18857_v47 = vadd.f32 %v15244_v56, %v15243_v13  ;;  %v15923_v13 = vld [vmem:[#allocation3 + $0xd4] ss:$0 sps:$4 sm:$0x11]   ;;  %v10905_v63 = vrot.slane %v10903_v39, 1  ;;  %v11333_v48 = vrot.slane %v15922_v43, 1 }
 0x512   : > { %v11334_v60 = vrot.slane %v15923_v13, 1  ;;  %v10910_v1 = vrot.slane %v10908_v61, 1 }
 0x513   : > { %15565 = vmatmul.mubr.bf16.gmra.mrb[172].mxu0 %v11329_v10  ;;  %v10906_v49 = vor.u32 %v10905_v63, %v10901_v34  ;;  %v10917_v63 = vrot.slane %v10915_v23, 1  ;;  %v10913_v34 = vshrl.u32 %v15883_v51, 16 }
 0x514   : > { %15568 = vmatprep.mubr.bf16.mxu0 %v11332_v7  ;;  %v11335_v56 = vsel %vm9685_vm9, %v11333_v48, %v11334_v60  ;;  %vm19490_vm9 = vmmov %vm19463_vm0 }
 0x515   : > { %v15246_v31 = vpop.f32.mrb[116].mxu0  ;;  %v10918_v61 = vor.u32 %v10917_v63, %v10913_v34 }
 0x516   : > { %v15247_v41 = vpop.f32.mrb[117].mxu0  ;;  %12409 = vmatmul.mubr.bf16.gmra.mrb[124].mxu1 %v9733_v11 }
 0x517   : > { %v18862_v54 = vadd.f32 %v15247_v41, %v15246_v31  ;;  %v15249_v16 = vpop.f32.mrb[118].mxu0  ;;  %12610 = vmatprep.mubr.bf16.mxu1 %v10899_v38  ;;  %v15879_v31 = vld [vmem:[#allocation3 + $0x18] sm:$0xff]   ;;  %v10911_v38 = vsel %vm19490_vm9, %v10906_v49, %v10910_v1  ;;  %v15889_v1 = vld [vmem:[#allocation3 + $0x48] sm:$0xff]  }
 0x518   : > { %v15250_v10 = vpop.f32.mrb[119].mxu0  ;;  %v15052_v15 = vpop.f32.mrb[52].mxu1  ;;  %v15884_v41 = vld [vmem:[#allocation3 + $0x38] ss:$0 sps:$4 sm:$0x11]  }
 0x519   : > { %v18865_v22 = vadd.f32 %v15250_v10, %v15249_v16  ;;  %v15053_v7 = vpop.f32.mrb[53].mxu1  ;;  %v15886_v10 = vld [vmem:[#allocation3 + $0x3c] sm:$0xff]  }
 0x51a   : > { %v18868_v11 = vadd.f32 %v15053_v7, %v15052_v15  ;;  %v15055_v39 = vpop.f32.mrb[54].mxu1  ;;  %v10927_v15 = vshll.u32 %v15886_v10, 16  ;;  %v10925_v51 = vshrl.u32 %v15886_v10, 16  ;;  %v10937_v10 = vshrl.u32 %v15889_v1, 16 }
 0x51b   : > { %15569 = vmatmul.mubr.bf16.gmra.mrb[176].mxu0 %v11335_v56  ;;  %v15056_v13 = vpop.f32.mrb[55].mxu1  ;;  %v10920_v56 = vshll.u32 %v15884_v41, 16 }
 0x51c   : > { %19488 = vst [vmem:[#allocation10_spill] sm:$0xff] %v18868_v11  ;;  %v18872_v35 = vadd.f32 %v15056_v13, %v15055_v39  ;;  %v15882_v11 = vld [vmem:[#allocation3 + $0x24] sm:$0xff]   ;;  %v10929_v23 = vrot.slane %v10927_v15, 1 }
 0x51d   : > { %v15252_v2 = vpop.f32.mrb[120].mxu0 }
 0x51e   : > { %v15253_v43 = vpop.f32.mrb[121].mxu0  ;;  %12611 = vmatmul.mubr.bf16.vlgmr.msra.gmra.mrb[128].mxu1 %v15879_v31  ;;  %19489 = vst [vmem:[#allocation11_spill] sm:$0xff] %v18872_v35  ;;  %v10930_v63 = vor.u32 %v10929_v23, %v10925_v51 }
 0x51f   : > { %v18870_v16 = vadd.f32 %v15253_v43, %v15252_v2  ;;  %v15255_v53 = vpop.f32.mrb[122].mxu0  ;;  %12618 = vmatprep.mubr.bf16.mxu1 %v10911_v38  ;;  %v10922_v2 = vrot.slane %v10920_v56, 1  ;;  %v15887_v43 = vld [vmem:[#allocation3 + $0x44] ss:$0 sps:$4 sm:$0x11]   ;;  %v15885_v56 = vld [vmem:[#allocation3 + $0x30] sm:$0xff]  }
 0x520   : > { %v15256_v48 = vpop.f32.mrb[123].mxu0  ;;  %v10932_v41 = vshll.u32 %v15887_v43, 16  ;;  %v10944_v43 = vshll.u32 %v15890_v46, 16 }
 0x521   : > { %v18875_v60 = vadd.f32 %v15256_v48, %v15255_v53  ;;  %v10923_v49 = vsel %vm19492_vm12, %v10918_v61, %v10922_v2  ;;  %v10939_v48 = vshll.u32 %v15889_v1, 16  ;;  %v15892_v2 = vld [vmem:[#allocation3 + $0x54] sm:$0xff]  }
 0x522   : > { %v10934_v35 = vrot.slane %v10932_v41, 1  ;;  %v15888_v41 = vld [vmem:[#allocation3 + $0x3c] sm:$0xff]   ;;  %v10949_v1 = vshrl.u32 %v15892_v2, 16 }
 0x523   : > { %v10941_v15 = vrot.slane %v10939_v48, 1 }
 0x524   : > { %v10935_v61 = vsel %vm19495_vm1, %v10930_v63, %v10934_v35 }
 0x525   : > { %v15258_v7 = vpop.f32.mrb[124].mxu0  ;;  %v10942_v23 = vor.u32 %v10941_v15, %v10937_v10  ;;  %v15891_v10 = vld [vmem:[#allocation3 + $0x48] sm:$0xff]  }
 0x526   : > { %v15259_v31 = vpop.f32.mrb[125].mxu0  ;;  %12619 = vmatmul.mubr.bf16.gmra.mrb[132].mxu1 %v15882_v11 }
 0x527   : > { %v18877_v39 = vadd.f32 %v15259_v31, %v15258_v7  ;;  %v15261_v13 = vpop.f32.mrb[126].mxu0  ;;  %12626 = vmatprep.mubr.bf16.mxu1 %v10923_v49 }
 0x528   : > { %v15262_v53 = vpop.f32.mrb[127].mxu0 }
 0x529   : > { %19491 = vst [vmem:[#allocation12_spill] sm:$0xff] %v18877_v39  ;;  %v18880_v38 = vadd.f32 %v15262_v53, %v15261_v13  ;;  %v10951_v53 = vshll.u32 %v15892_v2, 16  ;;  %v15893_v39 = vld [vmem:[#allocation3 + $0x5c] ss:$0 sps:$4 sm:$0x11]  }
 0x52a   : > { %v10956_v46 = vshll.u32 %v15893_v39, 16  ;;  %v15899_v2 = vld [vmem:[#allocation3 + $0x74] ss:$0 sps:$4 sm:$0x11]  }
 0x52b   : > { %19493 = vst [vmem:[#allocation13_spill] sm:$0xff] %v18880_v38  ;;  %v10946_v38 = vrot.slane %v10944_v43, 1  ;;  %v10953_v63 = vrot.slane %v10951_v53, 1 }
 0x52c   : > { %v10958_v43 = vrot.slane %v10956_v46, 1 }
 0x52d   : > { %v15264_v34 = vpop.f32.mrb[128].mxu0  ;;  %v10947_v35 = vsel %vm19498_vm2, %v10942_v23, %v10946_v38  ;;  %v10954_v15 = vor.u32 %v10953_v63, %v10949_v1  ;;  %v15901_v1 = vld [vmem:[#allocation3 + $0x78] sm:$0xff]  }
 0x52e   : > { %v15265_v7 = vpop.f32.mrb[129].mxu0  ;;  %12627 = vmatmul.mubr.bf16.gmra.mrb[136].mxu1 %v15885_v56 }
 0x52f   : > { %v18882_v31 = vadd.f32 %v15265_v7, %v15264_v34  ;;  %v15267_v11 = vpop.f32.mrb[130].mxu0  ;;  %12634 = vmatprep.mubr.bf16.mxu1 %v10935_v61  ;;  %v15895_v61 = vld [vmem:[#allocation3 + $0x60] sm:$0xff]  }
 0x530   : > { %v15268_v13 = vpop.f32.mrb[131].mxu0  ;;  %v10961_v23 = vshrl.u32 %v15895_v61, 16 }
 0x531   : > { %19494 = vst [vmem:[#allocation14_spill] sm:$0xff] %v18882_v31  ;;  %v18885_v49 = vadd.f32 %v15268_v13, %v15267_v11  ;;  %v15896_v13 = vld [vmem:[#allocation3 + $0x68] ss:$0 sps:$4 sm:$0x11]  }
 0x533   : > { %19496 = vst [vmem:[#allocation15_spill] sm:$0xff] %v18885_v49  ;;  %v10963_v49 = vshll.u32 %v15895_v61, 16 }
 0x535   : > { %v15270_v51 = vpop.f32.mrb[132].mxu0  ;;  %v10965_v38 = vrot.slane %v10963_v49, 1 }
 0x536   : > { %v15271_v34 = vpop.f32.mrb[133].mxu0  ;;  %12635 = vmatmul.mubr.bf16.gmra.mrb[140].mxu1 %v15888_v41  ;;  %v10968_v41 = vshll.u32 %v15896_v13, 16  ;;  %v15897_v13 = vld [vmem:[#allocation3 + $0x60] sm:$0xff]  }
 0x537   : > { %v18887_v7 = vadd.f32 %v15271_v34, %v15270_v51  ;;  %v15273_v56 = vpop.f32.mrb[134].mxu0  ;;  %12642 = vmatprep.mubr.bf16.mxu1 %v10947_v35  ;;  %v10959_v51 = vsel %vm19500_vm11, %v10954_v15, %v10958_v43  ;;  %v15898_v34 = vld [vmem:[#allocation3 + $0x6c] sm:$0xff]   ;;  %v10987_v15 = vshll.u32 %v15901_v1, 16 }
 0x538   : > { %v15274_v48 = vpop.f32.mrb[135].mxu0  ;;  %v10970_v53 = vrot.slane %v10968_v41, 1  ;;  %v10975_v35 = vshll.u32 %v15898_v34, 16  ;;  %v10973_v46 = vshrl.u32 %v15898_v34, 16  ;;  %v15904_v41 = vld [vmem:[#allocation3 + $0x84] sm:$0xff]  }
 0x539   : > { %19497 = vst [vmem:[#allocation16_spill] sm:$0xff] %v18887_v7  ;;  %v18890_v11 = vadd.f32 %v15274_v48, %v15273_v56  ;;  %v15894_v56 = vld [vmem:[#allocation3 + $0x54] sm:$0xff]   ;;  %v10966_v48 = vor.u32 %v10965_v38, %v10961_v23  ;;  %v10989_v61 = vrot.slane %v10987_v15, 1  ;;  %v15900_v15 = vld [vmem:[#allocation3 + $0x6c] sm:$0xff]  }
 0x53a   : > { %v10977_v63 = vrot.slane %v10975_v35, 1 }
 0x53b   : > { %19499 = vst [vmem:[#allocation17_spill] sm:$0xff] %v18890_v11  ;;  %v10971_v39 = vsel %vm19501_vm14, %v10966_v48, %v10970_v53 }
 0x53c   : > { %v10978_v11 = vor.u32 %v10977_v63, %v10973_v46  ;;  %v10999_v63 = vshll.u32 %v15904_v41, 16 }
 0x53e   : > { %12643 = vmatmul.mubr.bf16.gmra.mrb[144].mxu1 %v15891_v10  ;;  %v10980_v10 = vshll.u32 %v15899_v2, 16 }
 0x53f   : > { %12650 = vmatprep.mubr.bf16.mxu1 %v10959_v51  ;;  %v15902_v51 = vld [vmem:[#allocation3 + $0x80] ss:$0 sps:$4 sm:$0x11]  }
 0x540   : > { %v10982_v43 = vrot.slane %v10980_v10, 1  ;;  %v10992_v53 = vshll.u32 %v15902_v51, 16  ;;  %v11001_v51 = vrot.slane %v10999_v63, 1  ;;  %v15906_v63 = vld [vmem:[#allocation3 + $0x84] sm:$0xff]  }
 0x542   : > { %v10983_v49 = vsel %vm19502_vm15, %v10978_v11, %v10982_v43  ;;  %v10994_v43 = vrot.slane %v10992_v53, 1 }
 0x546   : > { %12651 = vmatmul.mubr.bf16.gmra.mrb[148].mxu1 %v15894_v56  ;;  %v10985_v56 = vshrl.u32 %v15901_v1, 16 }
 0x547   : > { %12658 = vmatprep.mubr.bf16.mxu1 %v10971_v39 }
 0x548   : > { %v10990_v39 = vor.u32 %v10989_v61, %v10985_v56  ;;  %v10997_v61 = vshrl.u32 %v15904_v41, 16 }
 0x54a   : > { %v10995_v1 = vsel %vm19507_vm7, %v10990_v39, %v10994_v43  ;;  %v11002_v56 = vor.u32 %v11001_v51, %v10997_v61  ;;  %v15913_v51 = vld [vmem:[#allocation3 + $0xa8] sm:$0xff]  }
 0x54e   : > { %12659 = vmatmul.mubr.bf16.gmra.mrb[152].mxu1 %v15897_v13  ;;  %v15058_v38 = vpop.f32.mrb[56].mxu1 }
 0x54f   : > { %12666 = vmatprep.mubr.bf16.mxu1 %v10983_v49  ;;  %v15059_v23 = vpop.f32.mrb[57].mxu1  ;;  %v15276_v34 = vpop.f32.mrb[136].mxu0  ;;  %v15905_v49 = vld [vmem:[#allocation3 + $0x8c] ss:$0 sps:$4 sm:$0x11]  }
 0x550   : > { %v18895_v35 = vadd.f32 %v15059_v23, %v15058_v38  ;;  %v15061_v48 = vpop.f32.mrb[58].mxu1  ;;  %v15277_v46 = vpop.f32.mrb[137].mxu0  ;;  %v15907_v38 = vld [vmem:[#allocation3 + $0x90] sm:$0xff]   ;;  %v11004_v23 = vshll.u32 %v15905_v49, 16 }
 0x551   : > { %v15062_v2 = vpop.f32.mrb[59].mxu1  ;;  %v18899_v13 = vadd.f32 %v15277_v46, %v15276_v34  ;;  %v15279_v11 = vpop.f32.mrb[138].mxu0  ;;  %v15908_v46 = vld [vmem:[#allocation3 + $0x98] ss:$0 sps:$4 sm:$0x11]  }
 0x552   : > { %19503 = vst [vmem:[#allocation18_spill] sm:$0xff] %v18895_v35  ;;  %v18897_v10 = vadd.f32 %v15062_v2, %v15061_v48  ;;  %v15280_v7 = vpop.f32.mrb[139].mxu0  ;;  %v11011_v48 = vshll.u32 %v15907_v38, 16  ;;  %v15903_v2 = vld [vmem:[#allocation3 + $0x78] sm:$0xff]   ;;  %v11006_v34 = vrot.slane %v11004_v23, 1 }
 0x553   : > { %19505 = vst [vmem:[#allocation20_spill] sm:$0xff] %v18899_v13  ;;  %v18901_v31 = vadd.f32 %v15280_v7, %v15279_v11  ;;  %v15910_v35 = vld [vmem:[#allocation3 + $0x9c] sm:$0xff]   ;;  %v11009_v7 = vshrl.u32 %v15907_v38, 16  ;;  %v11016_v11 = vshll.u32 %v15908_v46, 16  ;;  %v11035_v38 = vshll.u32 %v15913_v51, 16 }
 0x554   : > { %19504 = vst [vmem:[#allocation19_spill] sm:$0xff] %v18897_v10  ;;  %v11007_v53 = vsel %vm19508_vm8, %v11002_v56, %v11006_v34  ;;  %v11013_v10 = vrot.slane %v11011_v48, 1  ;;  %v11023_v39 = vshll.u32 %v15910_v35, 16  ;;  %v11021_v61 = vshrl.u32 %v15910_v35, 16 }
 0x555   : > { %19506 = vst [vmem:[#allocation21_spill] sm:$0xff] %v18901_v31  ;;  %v11018_v43 = vrot.slane %v11016_v11, 1 }
 0x556   : > { %12667 = vmatmul.mubr.bf16.gmra.mrb[156].mxu1 %v15900_v15  ;;  %v11014_v15 = vor.u32 %v11013_v10, %v11009_v7  ;;  %v11025_v49 = vrot.slane %v11023_v39, 1 }
 0x557   : > { %12674 = vmatprep.mubr.bf16.mxu1 %v10995_v1  ;;  %v15911_v1 = vld [vmem:[#allocation3 + $0xa4] ss:$0 sps:$4 sm:$0x11]  }
 0x558   : > { %v11019_v41 = vsel %vm19463_vm0, %v11014_v15, %v11018_v43  ;;  %v11028_v23 = vshll.u32 %v15911_v1, 16  ;;  %v15914_v43 = vld [vmem:[#allocation3 + $0xb0] ss:$0 sps:$4 sm:$0x11]  }
 0x55a   : > { %v11030_v39 = vrot.slane %v11028_v23, 1 }
 0x55e   : > { %12675 = vmatmul.mubr.bf16.gmra.mrb[160].mxu1 %v15903_v2 }
 0x55f   : > { %12682 = vmatprep.mubr.bf16.mxu1 %v11007_v53  ;;  %v11026_v53 = vor.u32 %v11025_v49, %v11021_v61  ;;  %v11037_v49 = vrot.slane %v11035_v38, 1  ;;  %v15916_v61 = vld [vmem:[#allocation3 + $0xb4] sm:$0xff]   ;;  %v15912_v38 = vld [vmem:[#allocation3 + $0x9c] sm:$0xff]  }
 0x561   : > { %v11031_v1 = vsel %vm19513_vm4, %v11026_v53, %v11030_v39  ;;  %v15917_v39 = vld [vmem:[#allocation3 + $0xbc] ss:$0 sps:$4 sm:$0x11]  }
 0x566   : > { %12683 = vmatmul.mubr.bf16.gmra.mrb[164].mxu1 %v15906_v63  ;;  %v15909_v63 = vld [vmem:[#allocation3 + $0x90] sm:$0xff]  }
 0x567   : > { %12690 = vmatprep.mubr.bf16.mxu1 %v11019_v41 }
 0x569   : > { %v15282_v2 = vpop.f32.mrb[140].mxu0  ;;  %v15064_v56 = vpop.f32.mrb[60].mxu1 }
 0x56a   : > { %v15283_v48 = vpop.f32.mrb[141].mxu0  ;;  %v15065_v34 = vpop.f32.mrb[61].mxu1 }
 0x56b   : > { %v18906_v46 = vadd.f32 %v15283_v48, %v15282_v2  ;;  %v18908_v10 = vadd.f32 %v15065_v34, %v15064_v56  ;;  %v15285_v7 = vpop.f32.mrb[142].mxu0  ;;  %v15067_v11 = vpop.f32.mrb[62].mxu1  ;;  %v11033_v2 = vshrl.u32 %v15913_v51, 16  ;;  %v11040_v56 = vshll.u32 %v15914_v43, 16  ;;  %v18918_v34 = vld [vmem:[%s19267_s4] ss:$0 sm:$0xff] }
 0x56c   : > { %v15286_v31 = vpop.f32.mrb[143].mxu0  ;;  %v15068_v15 = vpop.f32.mrb[63].mxu1  ;;  %v12133_v51 = vadd.f32 %v17515_v24, %v18918_v34 }
 0x56d   : > { %19509 = vst [vmem:[#allocation22_spill] sm:$0xff] %v18906_v46  ;;  %19510 = vst [vmem:[#allocation23_spill] sm:$0xff] %v18908_v10  ;;  %v18910_v41 = vadd.f32 %v15286_v31, %v15285_v7  ;;  %v18912_v35 = vadd.f32 %v15068_v15, %v15067_v11  ;;  %v11038_v10 = vor.u32 %v11037_v49, %v11033_v2  ;;  %v11047_v31 = vshll.u32 %v15916_v61, 16  ;;  %v15919_v49 = vld [vmem:[#allocation3 + $0xc0] sm:$0xff]  }
 0x56e   : > { %12691 = vmatmul.mubr.bf16.gmra.mrb[168].mxu1 %v15909_v63  ;;  %v12130_v7 = vadd.f32 %v17510_v62, %v18918_v34  ;;  %v11042_v15 = vrot.slane %v11040_v56, 1 }
 0x56f   : > { %19511 = vst [vmem:[#allocation24_spill] sm:$0xff] %v18910_v41  ;;  %19512 = vst [vmem:[#allocation25_spill] sm:$0xff] %v18912_v35  ;;  %12698 = vmatprep.mubr.bf16.mxu1 %v11031_v1  ;;  %v11049_v41 = vrot.slane %v11047_v31, 1 }
 0x570   : > { %v11043_v35 = vsel %vm19514_vm10, %v11038_v10, %v11042_v15  ;;  %v12138_v10 = vadd.f32 %v17896_v29, %v18918_v34 }
 0x571   : > { %v15086_v48 = vpop.f32.mrb[64].mxu1 }
 0x572   : > { %v15087_v23 = vpop.f32.mrb[65].mxu1 }
 0x573   : > { %v15088_v11 = vadd.f32 %v15087_v23, %v15086_v48  ;;  %v15089_v63 = vpop.f32.mrb[66].mxu1  ;;  %v11045_v48 = vshrl.u32 %v15916_v61, 16  ;;  %v11052_v23 = vshll.u32 %v15917_v39, 16  ;;  %v12141_v61 = vadd.f32 %v17906_v25, %v18918_v34 }
 0x574   : > { %v15090_v53 = vpop.f32.mrb[67].mxu1 }
 0x575   : > { %v12291_v43 = vadd.f32 %v15088_v11, %v12130_v7  ;;  %v15091_v1 = vadd.f32 %v15090_v53, %v15089_v63  ;;  %v11050_v24 = vor.u32 %v11049_v41, %v11045_v48  ;;  %v15920_v7 = vld [vmem:[#allocation3 + $0xc8] ss:$0 sps:$4 sm:$0x11]   ;;  %v11059_v11 = vshll.u32 %v15919_v49, 16 }
 0x576   : > { %12699 = vmatmul.mubr.bf16.gmra.mrb[172].mxu1 %v15912_v38  ;;  %v11054_v38 = vrot.slane %v11052_v23, 1  ;;  %v11057_v41 = vshrl.u32 %v15919_v49, 16 }
 0x577   : > { %v12294_v2 = vadd.f32 %v15091_v1, %v12133_v51  ;;  %12706 = vmatprep.mubr.bf16.mxu1 %v11043_v35  ;;  %v18926_v62 = vadd.f32 %v18801_v45, %v12291_v43  ;;  %v15915_v35 = vld [vmem:[#allocation3 + $0xa8] sm:$0xff]   ;;  %v11061_v51 = vrot.slane %v11059_v11, 1  ;;  %v11064_v43 = vshll.u32 %v15920_v7, 16 }
 0x578   : > { %v15924_v45 = vld [vmem:[#allocation3 + $0xcc] sm:$0xff]  }
 0x579   : > { %v15092_v46 = vpop.f32.mrb[68].mxu1  ;;  %v18929_v56 = vadd.f32 %v18804_v20, %v12294_v2  ;;  %v11055_v20 = vsel %vm19515_vm5, %v11050_v24, %v11054_v38  ;;  %v11062_v23 = vor.u32 %v11061_v51, %v11057_v41  ;;  %v12146_v24 = vadd.f32 %v18030_v28, %v18918_v34 }
 0x57a   : > { %v15093_v13 = vpop.f32.mrb[69].mxu1 }
 0x57b   : > { %v15094_v31 = vadd.f32 %v15093_v13, %v15092_v46  ;;  %v15095_v63 = vpop.f32.mrb[70].mxu1  ;;  %v15925_v13 = vld [vmem:[#allocation3 + $0xd4] ss:$0 sps:$4 sm:$0x11]   ;;  %v11071_v46 = vshll.u32 %v15924_v45, 16 }
 0x57c   : > { %v15096_v53 = vpop.f32.mrb[71].mxu1 }
 0x57d   : > { %v12299_v15 = vadd.f32 %v15094_v31, %v12138_v10  ;;  %v15097_v39 = vadd.f32 %v15096_v53, %v15095_v63  ;;  %v11066_v10 = vrot.slane %v11064_v43, 1  ;;  %v15918_v31 = vld [vmem:[#allocation3 + $0xb4] sm:$0xff]   ;;  %v11069_v63 = vshrl.u32 %v15924_v45, 16 }
 0x57e   : > { %12707 = vmatmul.mubr.bf16.gmra.mrb[176].mxu1 %v15915_v35  ;;  %v11073_v53 = vrot.slane %v11071_v46, 1  ;;  %v12149_v35 = vadd.f32 %v18042_v37, %v18918_v34  ;;  %v12154_v37 = vadd.f32 %v18127_v58, %v18918_v34  ;;  %v15921_v46 = vld [vmem:[#allocation3 + $0xc0] sm:$0xff]  }
 0x57f   : > { %v12302_v1 = vadd.f32 %v15097_v39, %v12141_v61  ;;  %12714 = vmatprep.mubr.bf16.mxu1 %v11055_v20  ;;  %v18937_v29 = vadd.f32 %v18809_v21, %v12299_v15  ;;  %v11076_v21 = vshll.u32 %v15925_v13, 16 }
 0x580   : > { %v11074_v28 = vor.u32 %v11073_v53, %v11069_v63  ;;  %v12165_v53 = vadd.f32 %v18299_v36, %v18918_v34  ;;  %v12173_v36 = vadd.f32 %v18401_v42, %v18918_v34  ;;  %v12181_v42 = vadd.f32 %v18502_v52, %v18918_v34 }
 0x581   : > { %v15098_v2 = vpop.f32.mrb[72].mxu1  ;;  %v18940_v48 = vadd.f32 %v18811_v4, %v12302_v1  ;;  %v11067_v4 = vsel %vm19516_vm6, %v11062_v23, %v11066_v10  ;;  %v11078_v20 = vrot.slane %v11076_v21, 1  ;;  %v12189_v52 = vadd.f32 %v18555_v57, %v18918_v34 }
 0x582   : > { %v15099_v25 = vpop.f32.mrb[73].mxu1  ;;  %v12194_v57 = vadd.f32 %v18635_v14, %v18918_v34 }
 0x583   : > { %v15100_v49 = vadd.f32 %v15099_v25, %v15098_v2  ;;  %v15101_v11 = vpop.f32.mrb[74].mxu1  ;;  %v11079_v2 = vsel %vm19517_vm13, %v11074_v28, %v11078_v20 }
 0x584   : > { %v15102_v7 = vpop.f32.mrb[75].mxu1 }
 0x585   : > { %v12307_v38 = vadd.f32 %v15100_v49, %v12146_v24  ;;  %v15103_v61 = vadd.f32 %v15102_v7, %v15101_v11  ;;  %v15926_v11 = vld [vmem:[#allocation3 + $0xcc] sm:$0xff]   ;;  %v12162_v7 = vadd.f32 %v18288_v6, %v18918_v34  ;;  %v12170_v6 = vadd.f32 %v18396_v18, %v18918_v34 }
 0x586   : > { %12715 = vmatmul.mubr.bf16.gmra.mrb[180].mxu1 %v15918_v31  ;;  %v12178_v18 = vadd.f32 %v18497_v59, %v18918_v34  ;;  %v12186_v59 = vadd.f32 %v18552_v9, %v18918_v34 }
 0x587   : > { %v12310_v15 = vadd.f32 %v15103_v61, %v12149_v35  ;;  %12722 = vmatprep.mubr.bf16.mxu1 %v11067_v4  ;;  %v18948_v39 = vadd.f32 %v18816_v5, %v12307_v38  ;;  %v12157_v5 = vadd.f32 %v18131_v40, %v18918_v34 }
 0x589   : > { %v15104_v41 = vpop.f32.mrb[76].mxu1  ;;  %v18951_v45 = vadd.f32 %v18818_v26, %v12310_v15 }
 0x58a   : > { %v15105_v51 = vpop.f32.mrb[77].mxu1 }
 0x58b   : > { %v15106_v43 = vadd.f32 %v15105_v51, %v15104_v41  ;;  %v15107_v1 = vpop.f32.mrb[78].mxu1 }
 0x58c   : > { %v15108_v13 = vpop.f32.mrb[79].mxu1 }
 0x58d   : > { %v12315_v25 = vadd.f32 %v15106_v43, %v12154_v37  ;;  %v15109_v23 = vadd.f32 %v15108_v13, %v15107_v1 }
 0x58e   : > { %12723 = vmatmul.mubr.bf16.gmra.mrb[184].mxu1 %v15921_v46 }
 0x58f   : > { %v12318_v10 = vadd.f32 %v15109_v23, %v12157_v5  ;;  %12730 = vmatprep.mubr.bf16.mxu1 %v11079_v2  ;;  %v18959_v26 = vadd.f32 %v18823_v33, %v12315_v25 }
 0x591   : > { %v15110_v24 = vpop.f32.mrb[80].mxu1  ;;  %v18962_v58 = vadd.f32 %v18825_v44, %v12318_v10 }
 0x592   : > { %v15111_v49 = vpop.f32.mrb[81].mxu1 }
 0x593   : > { %v15112_v31 = vadd.f32 %v15111_v49, %v15110_v24  ;;  %v15113_v63 = vpop.f32.mrb[82].mxu1 }
 0x594   : > { %v15114_v40 = vpop.f32.mrb[83].mxu1 }
 0x595   : > { %v12323_v21 = vadd.f32 %v15112_v31, %v12162_v7  ;;  %v15115_v35 = vadd.f32 %v15114_v40, %v15113_v63 }
 0x596   : > { %12731 = vmatmul.mubr.bf16.gmra.mrb[188].mxu1 %v15926_v11 }
 0x597   : > { %v12326_v33 = vadd.f32 %v15115_v35, %v12165_v53  ;;  %v18969_v38 = vadd.f32 %v18834_v3, %v12323_v21 }
 0x599   : > { %v15116_v44 = vpop.f32.mrb[84].mxu1  ;;  %v18972_v61 = vadd.f32 %v18836_v55, %v12326_v33 }
 0x59a   : > { %v15117_v4 = vpop.f32.mrb[85].mxu1 }
 0x59b   : > { %v15118_v15 = vadd.f32 %v15117_v4, %v15116_v44  ;;  %v15119_v28 = vpop.f32.mrb[86].mxu1 }
 0x59c   : > { %v15120_v20 = vpop.f32.mrb[87].mxu1 }
 0x59d   : > { %v12331_v41 = vadd.f32 %v15118_v15, %v12170_v6  ;;  %v15121_v51 = vadd.f32 %v15120_v20, %v15119_v28 }
 0x59f   : > { %v12334_v37 = vadd.f32 %v15121_v51, %v12173_v36  ;;  %v18979_v3 = vadd.f32 %v18841_v27, %v12331_v41 }
 0x5a1   : > { %v15122_v43 = vpop.f32.mrb[88].mxu1  ;;  %v18982_v55 = vadd.f32 %v18843_v12, %v12334_v37 }
 0x5a2   : > { %v15123_v1 = vpop.f32.mrb[89].mxu1 }
 0x5a3   : > { %v15124_v13 = vadd.f32 %v15123_v1, %v15122_v43  ;;  %v15125_v46 = vpop.f32.mrb[90].mxu1 }
 0x5a4   : > { %v15126_v2 = vpop.f32.mrb[91].mxu1 }
 0x5a5   : > { %v12339_v5 = vadd.f32 %v15124_v13, %v12178_v18  ;;  %v15127_v25 = vadd.f32 %v15126_v2, %v15125_v46 }
 0x5a7   : > { %v12342_v23 = vadd.f32 %v15127_v25, %v12181_v42  ;;  %v18989_v27 = vadd.f32 %v18848_v50, %v12339_v5  ;;  %v12205_v25 = vadd.f32 %v18700_v0, %v18918_v34  ;;  %v12210_v0 = vadd.f32 %v18728_v8, %v18918_v34 }
 0x5a9   : > { %v15128_v10 = vpop.f32.mrb[92].mxu1  ;;  %v18992_v12 = vadd.f32 %v18850_v19, %v12342_v23 }
 0x5aa   : > { %v15129_v24 = vpop.f32.mrb[93].mxu1 }
 0x5ab   : > { %v15130_v49 = vadd.f32 %v15129_v24, %v15128_v10  ;;  %v15131_v11 = vpop.f32.mrb[94].mxu1 }
 0x5ac   : > { %v15132_v7 = vpop.f32.mrb[95].mxu1 }
 0x5ad   : > { %v12347_v31 = vadd.f32 %v15130_v49, %v12186_v59  ;;  %v15133_v63 = vadd.f32 %v15132_v7, %v15131_v11 }
 0x5ae   : > { %v15288_v40 = vpop.f32.mrb[144].mxu0 }
 0x5af   : > { %v12350_v53 = vadd.f32 %v15133_v63, %v12189_v52  ;;  %v15289_v50 = vpop.f32.mrb[145].mxu0  ;;  %v18999_v21 = vadd.f32 %v18855_v30, %v12347_v31  ;;  %v12197_v30 = vadd.f32 %v18637_v17, %v18918_v34  ;;  %v12202_v17 = vadd.f32 %v18698_v32, %v18918_v34 }
 0x5b0   : > { %v19001_v19 = vadd.f32 %v15289_v50, %v15288_v40  ;;  %v15291_v35 = vpop.f32.mrb[146].mxu0 }
 0x5b1   : > { %v15134_v33 = vpop.f32.mrb[96].mxu1  ;;  %v15292_v44 = vpop.f32.mrb[147].mxu0  ;;  %v19004_v9 = vadd.f32 %v18857_v47, %v12350_v53  ;;  %v19518_v53 = vld [vmem:[#allocation5_spill] sm:$0xff] }
 0x5b2   : > { %v15135_v4 = vpop.f32.mrb[97].mxu1  ;;  %v19006_v6 = vadd.f32 %v15292_v44, %v15291_v35  ;;  %v12213_v50 = vadd.f32 %v19518_v53, %v18918_v34 }
 0x5b3   : > { %v15136_v15 = vadd.f32 %v15135_v4, %v15134_v33  ;;  %v15137_v28 = vpop.f32.mrb[98].mxu1 }
 0x5b4   : > { %v15138_v20 = vpop.f32.mrb[99].mxu1 }
 0x5b5   : > { %v12355_v36 = vadd.f32 %v15136_v15, %v12194_v57  ;;  %v15139_v41 = vadd.f32 %v15138_v20, %v15137_v28  ;;  %v19519_v57 = vld [vmem:[#allocation12_spill] sm:$0xff]  ;;  %v19520_v20 = vld [vmem:[#allocation13_spill] sm:$0xff] }
 0x5b6   : > { %v19012_v51 = vpop.f32.mrb[148].mxu0 }
 0x5b7   : > { %v12358_v37 = vadd.f32 %v15139_v41, %v12197_v30  ;;  %v19014_v43 = vpop.f32.mrb[149].mxu0  ;;  %v19017_v47 = vadd.f32 %v18862_v54, %v12355_v36  ;;  %v19522_v41 = vld [vmem:[#allocation6_spill] sm:$0xff] }
 0x5b8   : > { %v19019_v1 = vpop.f32.mrb[150].mxu0 }
 0x5b9   : > { %v15140_v18 = vpop.f32.mrb[100].mxu1  ;;  %v19021_v14 = vpop.f32.mrb[151].mxu0  ;;  %v19024_v13 = vadd.f32 %v18865_v22, %v12358_v37  ;;  %v12218_v37 = vadd.f32 %v19522_v41, %v18918_v34 }
 0x5ba   : > { %v15141_v46 = vpop.f32.mrb[101].mxu1 }
 0x5bb   : > { %v15142_v2 = vadd.f32 %v15141_v46, %v15140_v18  ;;  %v15143_v42 = vpop.f32.mrb[102].mxu1 }
 0x5bc   : > { %v15144_v5 = vpop.f32.mrb[103].mxu1 }
 0x5bd   : > { %v12363_v54 = vadd.f32 %v15142_v2, %v12202_v17  ;;  %v15145_v23 = vadd.f32 %v15144_v5, %v15143_v42  ;;  %v19523_v2 = vld [vmem:[#allocation7_spill] sm:$0xff] }
 0x5be   : > { %v19030_v10 = vpop.f32.mrb[152].mxu0  ;;  %v12221_v42 = vadd.f32 %v19523_v2, %v18918_v34  ;;  %v19530_v2 = vld [vmem:[#allocation16_spill] sm:$0xff] }
 0x5bf   : > { %v12366_v24 = vadd.f32 %v15145_v23, %v12205_v25  ;;  %v19032_v59 = vpop.f32.mrb[153].mxu0  ;;  %v19035_v22 = vadd.f32 %v18870_v16, %v12363_v54 }
 0x5c0   : > { %v19037_v49 = vpop.f32.mrb[154].mxu0 }
 0x5c1   : > { %v15146_v11 = vpop.f32.mrb[104].mxu1  ;;  %v19039_v32 = vpop.f32.mrb[155].mxu0  ;;  %v19042_v7 = vadd.f32 %v18875_v60, %v12366_v24 }
 0x5c2   : > { %v15147_v52 = vpop.f32.mrb[105].mxu1 }
 0x5c3   : > { %v15148_v31 = vadd.f32 %v15147_v52, %v15146_v11  ;;  %v15149_v63 = vpop.f32.mrb[106].mxu1  ;;  %v19524_v11 = vld [vmem:[#allocation14_spill] sm:$0xff] }
 0x5c4   : > { %v15150_v40 = vpop.f32.mrb[107].mxu1 }
 0x5c5   : > { %v12371_v16 = vadd.f32 %v15148_v31, %v12210_v0  ;;  %v15151_v35 = vadd.f32 %v15150_v40, %v15149_v63  ;;  %v19526_v40 = vld [vmem:[#allocation15_spill] sm:$0xff] }
 0x5c6   : > { %v19048_v33 = vpop.f32.mrb[156].mxu0 }
 0x5c7   : > { %v12374_v44 = vadd.f32 %v15151_v35, %v12213_v50  ;;  %v19050_v4 = vpop.f32.mrb[157].mxu0  ;;  %v19053_v60 = vadd.f32 %v19519_v57, %v12371_v16  ;;  %v19528_v16 = vld [vmem:[#allocation8_spill] sm:$0xff] }
 0x5c8   : > { %v19055_v15 = vpop.f32.mrb[158].mxu0  ;;  %v12226_v35 = vadd.f32 %v19528_v16, %v18918_v34 }
 0x5c9   : > { %v15152_v28 = vpop.f32.mrb[108].mxu1  ;;  %v19057_v8 = vpop.f32.mrb[159].mxu0  ;;  %v19060_v30 = vadd.f32 %v19520_v20, %v12374_v44  ;;  %v19529_v20 = vld [vmem:[#allocation9_spill] sm:$0xff] }
 0x5ca   : > { %v15153_v36 = vpop.f32.mrb[109].mxu1 }
 0x5cb   : > { %19521 = vst [vmem:[#allocation5_spill] sm:$0xff] %v19060_v30  ;;  %v15154_v18 = vadd.f32 %v15153_v36, %v15152_v28  ;;  %v15155_v46 = vpop.f32.mrb[110].mxu1  ;;  %v12229_v36 = vadd.f32 %v19529_v20, %v18918_v34 }
 0x5cc   : > { %v15156_v17 = vpop.f32.mrb[111].mxu1 }
 0x5cd   : > { %v12379_v5 = vadd.f32 %v15154_v18, %v12218_v37  ;;  %v15157_v25 = vadd.f32 %v15156_v17, %v15155_v46 }
 0x5ce   : > { %v19066_v54 = vpop.f32.mrb[160].mxu0 }
 0x5cf   : > { %v12382_v23 = vadd.f32 %v15157_v25, %v12221_v42  ;;  %v19068_v24 = vpop.f32.mrb[161].mxu0  ;;  %v19071_v52 = vadd.f32 %v19524_v11, %v12379_v5  ;;  %v19532_v11 = vld [vmem:[#allocation17_spill] sm:$0xff] }
 0x5d0   : > { %v19073_v0 = vpop.f32.mrb[162].mxu0 }
 0x5d1   : > { %19525 = vst [vmem:[#allocation12_spill] sm:$0xff] %v19071_v52  ;;  %v15158_v31 = vpop.f32.mrb[112].mxu1  ;;  %v19075_v63 = vpop.f32.mrb[163].mxu0  ;;  %v19078_v53 = vadd.f32 %v19526_v40, %v12382_v23 }
 0x5d2   : > { %v15159_v50 = vpop.f32.mrb[113].mxu1 }
 0x5d3   : > { %19527 = vst [vmem:[#allocation13_spill] sm:$0xff] %v19078_v53  ;;  %v15160_v44 = vadd.f32 %v15159_v50, %v15158_v31  ;;  %v15161_v57 = vpop.f32.mrb[114].mxu1  ;;  %v19534_v50 = vld [vmem:[#allocation10_spill] sm:$0xff]  ;;  %v19537_v53 = vld [vmem:[#allocation20_spill] sm:$0xff] }
 0x5d4   : > { %v15162_v28 = vpop.f32.mrb[115].mxu1  ;;  %v12234_v16 = vadd.f32 %v19534_v50, %v18918_v34 }
 0x5d5   : > { %v12387_v41 = vadd.f32 %v15160_v44, %v12226_v35  ;;  %v15163_v37 = vadd.f32 %v15162_v28, %v15161_v57  ;;  %v19535_v28 = vld [vmem:[#allocation11_spill] sm:$0xff] }
 0x5d6   : > { %v19084_v18 = vpop.f32.mrb[164].mxu0  ;;  %v12237_v20 = vadd.f32 %v19535_v28, %v18918_v34 }
 0x5d7   : > { %v12390_v46 = vadd.f32 %v15163_v37, %v12229_v36  ;;  %v19086_v17 = vpop.f32.mrb[165].mxu0  ;;  %v19089_v42 = vadd.f32 %v19530_v2, %v12387_v41 }
 0x5d8   : > { %v19091_v5 = vpop.f32.mrb[166].mxu0 }
 0x5d9   : > { %19531 = vst [vmem:[#allocation6_spill] sm:$0xff] %v19089_v42  ;;  %v15164_v25 = vpop.f32.mrb[116].mxu1  ;;  %v19093_v23 = vpop.f32.mrb[167].mxu0  ;;  %v19096_v31 = vadd.f32 %v19532_v11, %v12390_v46 }
 0x5da   : > { %v15165_v40 = vpop.f32.mrb[117].mxu1 }
 0x5db   : > { %19533 = vst [vmem:[#allocation7_spill] sm:$0xff] %v19096_v31  ;;  %v15166_v35 = vadd.f32 %v15165_v40, %v15164_v25  ;;  %v15167_v44 = vpop.f32.mrb[118].mxu1  ;;  %v19541_v25 = vld [vmem:[#allocation21_spill] sm:$0xff] }
 0x5dc   : > { %v15168_v57 = vpop.f32.mrb[119].mxu1 }
 0x5dd   : > { %v12395_v36 = vadd.f32 %v15166_v35, %v12234_v16  ;;  %v15169_v41 = vadd.f32 %v15168_v57, %v15167_v44  ;;  %v19543_v16 = vld [vmem:[#allocation18_spill] sm:$0xff] }
 0x5de   : > { %v19102_v37 = vpop.f32.mrb[168].mxu0  ;;  %v12242_v35 = vadd.f32 %v19543_v16, %v18918_v34 }
 0x5df   : > { %19536 = vst [vmem:[#allocation14_spill] sm:$0xff] %v19102_v37  ;;  %v12398_v2 = vadd.f32 %v15169_v41, %v12237_v20  ;;  %v19104_v42 = vpop.f32.mrb[169].mxu0  ;;  %v19107_v46 = vadd.f32 %v19537_v53, %v12395_v36  ;;  %v19544_v20 = vld [vmem:[#allocation19_spill] sm:$0xff] }
 0x5e0   : > { %v19109_v11 = vpop.f32.mrb[170].mxu0  ;;  %v12245_v41 = vadd.f32 %v19544_v20, %v18918_v34 }
 0x5e1   : > { %19538 = vst [vmem:[#allocation15_spill] sm:$0xff] %v19107_v46  ;;  %19539 = vst [vmem:[#allocation8_spill] sm:$0xff] %v19109_v11  ;;  %v15170_v31 = vpop.f32.mrb[120].mxu1  ;;  %v19111_v50 = vpop.f32.mrb[171].mxu0  ;;  %v19114_v40 = vadd.f32 %v19541_v25, %v12398_v2 }
 0x5e2   : > { %19540 = vst [vmem:[#allocation9_spill] sm:$0xff] %v19111_v50  ;;  %v15171_v52 = vpop.f32.mrb[121].mxu1  ;;  %v19546_v50 = vld [vmem:[#allocation22_spill] sm:$0xff] }
 0x5e3   : > { %19542 = vst [vmem:[#allocation16_spill] sm:$0xff] %v19114_v40  ;;  %v15172_v44 = vadd.f32 %v15171_v52, %v15170_v31  ;;  %v15173_v57 = vpop.f32.mrb[122].mxu1  ;;  %v19549_v52 = vld [vmem:[#allocation24_spill] sm:$0xff] }
 0x5e4   : > { %v15174_v28 = vpop.f32.mrb[123].mxu1 }
 0x5e5   : > { %v12403_v53 = vadd.f32 %v15172_v44, %v12242_v35  ;;  %v15175_v36 = vadd.f32 %v15174_v28, %v15173_v57  ;;  %v19551_v35 = vld [vmem:[#allocation23_spill] sm:$0xff] }
 0x5e6   : > { %v19120_v46 = vpop.f32.mrb[172].mxu0  ;;  %v12250_v44 = vadd.f32 %v19551_v35, %v18918_v34 }
 0x5e7   : > { %19545 = vst [vmem:[#allocation17_spill] sm:$0xff] %v19120_v46  ;;  %v12406_v11 = vadd.f32 %v15175_v36, %v12245_v41  ;;  %v19122_v37 = vpop.f32.mrb[173].mxu0  ;;  %v19125_v2 = vadd.f32 %v19546_v50, %v12403_v53  ;;  %v19552_v41 = vld [vmem:[#allocation25_spill] sm:$0xff] }
 0x5e8   : > { %v19127_v25 = vpop.f32.mrb[174].mxu0  ;;  %v12253_v50 = vadd.f32 %v19552_v41, %v18918_v34 }
 0x5e9   : > { %19547 = vst [vmem:[#allocation10_spill] sm:$0xff] %v19125_v2  ;;  %19548 = vst [vmem:[#allocation11_spill] sm:$0xff] %v19127_v25  ;;  %v15176_v40 = vpop.f32.mrb[124].mxu1  ;;  %v19129_v16 = vpop.f32.mrb[175].mxu0  ;;  %v19132_v31 = vadd.f32 %v19549_v52, %v12406_v11 }
 0x5ea   : > { %v15177_v30 = vpop.f32.mrb[125].mxu1 }
 0x5eb   : > { %19550 = vst [vmem:[#allocation20_spill] sm:$0xff] %v19132_v31  ;;  %v15178_v57 = vadd.f32 %v15177_v30, %v15176_v40  ;;  %v15179_v28 = vpop.f32.mrb[126].mxu1 }
 0x5ec   : > { %v15180_v20 = vpop.f32.mrb[127].mxu1 }
 0x5ed   : > { %v12411_v53 = vadd.f32 %v15178_v57, %v12250_v44  ;;  %v15181_v36 = vadd.f32 %v15180_v20, %v15179_v28 }
 0x5ee   : > { %v19138_v2 = vpop.f32.mrb[176].mxu0 }
 0x5ef   : > { %v12414_v25 = vadd.f32 %v15181_v36, %v12253_v50  ;;  %v19140_v46 = vpop.f32.mrb[177].mxu0  ;;  %v19143_v11 = vadd.f32 %v19001_v19, %v12411_v53 }
 0x5f0   : > { %v19145_v52 = vpop.f32.mrb[178].mxu0 }
 0x5f1   : > { %v15310_v35 = vpop.f32.mrb[128].mxu1  ;;  %v19147_v30 = vpop.f32.mrb[179].mxu0  ;;  %v19150_v40 = vadd.f32 %v19006_v6, %v12414_v25 }
 0x5f2   : > { %v15311_v31 = vpop.f32.mrb[129].mxu1 }
 0x5f3   : > { %v15312_v34 = vadd.f32 %v15311_v31, %v15310_v35  ;;  %v15313_v44 = vpop.f32.mrb[130].mxu1 }
 0x5f4   : > { %v15314_v57 = vpop.f32.mrb[131].mxu1 }
 0x5f5   : > { %v12613_v28 = vadd.f32 %v15312_v34, %v18926_v62  ;;  %v15315_v20 = vadd.f32 %v15314_v57, %v15313_v44 }
 0x5f7   : > { %v12774_v41 = vadd.f32 %v19014_v43, %v12613_v28  ;;  %v12616_v19 = vadd.f32 %v15315_v20, %v18929_v56 }
 0x5f9   : > { %v12900_v6 = vmax.f32 %v12774_v41, 0.0  ;;  %v12777_v25 = vadd.f32 %v19021_v14, %v12616_v19  ;;  %v15316_v31 = vpop.f32.mrb[132].mxu1 }
 0x5fa   : > { %v15317_v50 = vpop.f32.mrb[133].mxu1 }
 0x5fb   : > { %12932 = vst [vmem:[%s19159_s25] sm:$0xff] %v12900_v6  ;;  %v12901_v62 = vmax.f32 %v12777_v25, 0.0  ;;  %v15318_v53 = vadd.f32 %v15317_v50, %v15316_v31  ;;  %v15319_v36 = vpop.f32.mrb[134].mxu1 }
 0x5fc   : > { %v15320_v43 = vpop.f32.mrb[135].mxu1 }
 0x5fd   : > { %12933 = vst [vmem:[%s19159_s25 + $0x8] sm:$0xff] %v12901_v62  ;;  %v12621_v56 = vadd.f32 %v15318_v53, %v18937_v29  ;;  %v15321_v35 = vadd.f32 %v15320_v43, %v15319_v36 }
 0x5ff   : > { %v12782_v34 = vadd.f32 %v19012_v51, %v12621_v56  ;;  %v12624_v44 = vadd.f32 %v15321_v35, %v18940_v48 }
 0x601   : > { %v12902_v57 = vmax.f32 %v12782_v34, 0.0  ;;  %v12785_v14 = vadd.f32 %v19019_v1, %v12624_v44  ;;  %v15322_v28 = vpop.f32.mrb[136].mxu1 }
 0x602   : > { %v15323_v20 = vpop.f32.mrb[137].mxu1 }
 0x603   : > { %12934 = vst [vmem:[%s19159_s25 + $0x10] sm:$0xff] %v12902_v57  ;;  %v12903_v41 = vmax.f32 %v12785_v14, 0.0  ;;  %v15324_v19 = vadd.f32 %v15323_v20, %v15322_v28  ;;  %v15325_v6 = vpop.f32.mrb[138].mxu1 }
 0x604   : > { %v15326_v25 = vpop.f32.mrb[139].mxu1 }
 0x605   : > { %12935 = vst [vmem:[%s19159_s25 + $0x18] sm:$0xff] %v12903_v41  ;;  %v12629_v29 = vadd.f32 %v15324_v19, %v18948_v39  ;;  %v15327_v31 = vadd.f32 %v15326_v25, %v15325_v6 }
 0x607   : > { %v12790_v51 = vadd.f32 %v19032_v59, %v12629_v29  ;;  %v12632_v48 = vadd.f32 %v15327_v31, %v18951_v45 }
 0x609   : > { %v12904_v50 = vmax.f32 %v12790_v51, 0.0  ;;  %v12793_v1 = vadd.f32 %v19039_v32, %v12632_v48  ;;  %v15328_v62 = vpop.f32.mrb[140].mxu1 }
 0x60a   : > { %v15329_v53 = vpop.f32.mrb[141].mxu1 }
 0x60b   : > { %12936 = vst [vmem:[%s19159_s25 + $0x20] sm:$0xff] %v12904_v50  ;;  %v12905_v36 = vmax.f32 %v12793_v1, 0.0  ;;  %v15330_v43 = vadd.f32 %v15329_v53, %v15328_v62  ;;  %v15331_v56 = vpop.f32.mrb[142].mxu1 }
 0x60c   : > { %v15332_v35 = vpop.f32.mrb[143].mxu1 }
 0x60d   : > { %12937 = vst [vmem:[%s19159_s25 + $0x28] sm:$0xff] %v12905_v36  ;;  %v12637_v39 = vadd.f32 %v15330_v43, %v18959_v26  ;;  %v15333_v34 = vadd.f32 %v15332_v35, %v15331_v56 }
 0x60f   : > { %v12798_v59 = vadd.f32 %v19030_v10, %v12637_v39  ;;  %v12640_v45 = vadd.f32 %v15333_v34, %v18962_v58 }
 0x611   : > { %v12906_v44 = vmax.f32 %v12798_v59, 0.0  ;;  %v12801_v32 = vadd.f32 %v19037_v49, %v12640_v45  ;;  %v15334_v57 = vpop.f32.mrb[144].mxu1 }
 0x612   : > { %v15335_v14 = vpop.f32.mrb[145].mxu1 }
 0x613   : > { %12938 = vst [vmem:[%s19159_s25 + $0x30] sm:$0xff] %v12906_v44  ;;  %v12907_v28 = vmax.f32 %v12801_v32, 0.0  ;;  %v15336_v20 = vadd.f32 %v15335_v14, %v15334_v57  ;;  %v15337_v41 = vpop.f32.mrb[146].mxu1 }
 0x614   : > { %v15338_v19 = vpop.f32.mrb[147].mxu1 }
 0x615   : > { %12939 = vst [vmem:[%s19159_s25 + $0x38] sm:$0xff] %v12907_v28  ;;  %v12645_v26 = vadd.f32 %v15336_v20, %v18969_v38  ;;  %v15339_v6 = vadd.f32 %v15338_v19, %v15337_v41 }
 0x617   : > { %v12806_v10 = vadd.f32 %v19050_v4, %v12645_v26  ;;  %v12648_v58 = vadd.f32 %v15339_v6, %v18972_v61 }
 0x619   : > { %v12908_v25 = vmax.f32 %v12806_v10, 0.0  ;;  %v12809_v49 = vadd.f32 %v19057_v8, %v12648_v58  ;;  %v15340_v29 = vpop.f32.mrb[148].mxu1 }
 0x61a   : > { %v15341_v31 = vpop.f32.mrb[149].mxu1 }
 0x61b   : > { %12940 = vst [vmem:[%s19159_s25 + $0x40] sm:$0xff] %v12908_v25  ;;  %v12909_v51 = vmax.f32 %v12809_v49, 0.0  ;;  %v15342_v48 = vadd.f32 %v15341_v31, %v15340_v29  ;;  %v15343_v50 = vpop.f32.mrb[150].mxu1 }
 0x61c   : > { %v15344_v1 = vpop.f32.mrb[151].mxu1 }
 0x61d   : > { %12941 = vst [vmem:[%s19159_s25 + $0x48] sm:$0xff] %v12909_v51  ;;  %v12653_v38 = vadd.f32 %v15342_v48, %v18979_v3  ;;  %v15345_v62 = vadd.f32 %v15344_v1, %v15343_v50 }
 0x61f   : > { %v12814_v4 = vadd.f32 %v19048_v33, %v12653_v38  ;;  %v12656_v61 = vadd.f32 %v15345_v62, %v18982_v55 }
 0x621   : > { %v12910_v53 = vmax.f32 %v12814_v4, 0.0  ;;  %v12817_v8 = vadd.f32 %v19055_v15, %v12656_v61  ;;  %v15346_v36 = vpop.f32.mrb[152].mxu1 }
 0x622   : > { %v15347_v43 = vpop.f32.mrb[153].mxu1 }
 0x623   : > { %12942 = vst [vmem:[%s19159_s25 + $0x50] sm:$0xff] %v12910_v53  ;;  %v12911_v56 = vmax.f32 %v12817_v8, 0.0  ;;  %v15348_v35 = vadd.f32 %v15347_v43, %v15346_v36  ;;  %v15349_v39 = vpop.f32.mrb[154].mxu1 }
 0x624   : > { %v15350_v34 = vpop.f32.mrb[155].mxu1 }
 0x625   : > { %12943 = vst [vmem:[%s19159_s25 + $0x58] sm:$0xff] %v12911_v56  ;;  %v12661_v3 = vadd.f32 %v15348_v35, %v18989_v27  ;;  %v15351_v59 = vadd.f32 %v15350_v34, %v15349_v39  ;;  %v19553_v34 = vld [vmem:[#allocation5_spill] sm:$0xff] }
 0x627   : > { %v12822_v33 = vadd.f32 %v19068_v24, %v12661_v3  ;;  %v12664_v55 = vadd.f32 %v15351_v59, %v18992_v12  ;;  %v19554_v59 = vld [vmem:[#allocation9_spill] sm:$0xff] }
 0x629   : > { %v12912_v45 = vmax.f32 %v12822_v33, 0.0  ;;  %v12825_v15 = vadd.f32 %v19075_v63, %v12664_v55  ;;  %v15352_v44 = vpop.f32.mrb[156].mxu1 }
 0x62a   : > { %v15353_v32 = vpop.f32.mrb[157].mxu1 }
 0x62b   : > { %12944 = vst [vmem:[%s19159_s25 + $0x60] sm:$0xff] %v12912_v45  ;;  %v12913_v57 = vmax.f32 %v12825_v15, 0.0  ;;  %v15354_v14 = vadd.f32 %v15353_v32, %v15352_v44  ;;  %v15355_v28 = vpop.f32.mrb[158].mxu1 }
 0x62c   : > { %v15356_v20 = vpop.f32.mrb[159].mxu1 }
 0x62d   : > { %12945 = vst [vmem:[%s19159_s25 + $0x68] sm:$0xff] %v12913_v57  ;;  %v12669_v27 = vadd.f32 %v15354_v14, %v18999_v21  ;;  %v15357_v41 = vadd.f32 %v15356_v20, %v15355_v28  ;;  %v19555_v57 = vld [vmem:[#allocation12_spill] sm:$0xff]  ;;  %v19556_v28 = vld [vmem:[#allocation14_spill] sm:$0xff]  ;;  %v19557_v20 = vld [vmem:[#allocation13_spill] sm:$0xff] }
 0x62f   : > { %v12830_v24 = vadd.f32 %v19066_v54, %v12669_v27  ;;  %v12672_v12 = vadd.f32 %v15357_v41, %v19004_v9 }
 0x631   : > { %v12914_v19 = vmax.f32 %v12830_v24, 0.0  ;;  %v12833_v63 = vadd.f32 %v19073_v0, %v12672_v12  ;;  %v15358_v26 = vpop.f32.mrb[160].mxu1  ;;  %v19558_v24 = vld [vmem:[#allocation8_spill] sm:$0xff] }
 0x632   : > { %v15359_v6 = vpop.f32.mrb[161].mxu1 }
 0x633   : > { %12946 = vst [vmem:[%s19159_s25 + $0x70] sm:$0xff] %v12914_v19  ;;  %v12915_v10 = vmax.f32 %v12833_v63, 0.0  ;;  %v15360_v58 = vadd.f32 %v15359_v6, %v15358_v26  ;;  %v15361_v25 = vpop.f32.mrb[162].mxu1 }
 0x634   : > { %v15362_v49 = vpop.f32.mrb[163].mxu1 }
 0x635   : > { %12947 = vst [vmem:[%s19159_s25 + $0x78] sm:$0xff] %v12915_v10  ;;  %v12677_v21 = vadd.f32 %v15360_v58, %v19017_v47  ;;  %v15363_v29 = vadd.f32 %v15362_v49, %v15361_v25  ;;  %v19559_v25 = vld [vmem:[#allocation6_spill] sm:$0xff] }
 0x637   : > { %v12838_v54 = vadd.f32 %v19086_v17, %v12677_v21  ;;  %v12680_v9 = vadd.f32 %v15363_v29, %v19024_v13 }
 0x639   : > { %v12916_v31 = vmax.f32 %v12838_v54, 0.0  ;;  %v12841_v0 = vadd.f32 %v19093_v23, %v12680_v9  ;;  %v15364_v51 = vpop.f32.mrb[164].mxu1  ;;  %v19560_v54 = vld [vmem:[#allocation7_spill] sm:$0xff] }
 0x63a   : > { %v15365_v48 = vpop.f32.mrb[165].mxu1 }
 0x63b   : > { %12948 = vst [vmem:[%s19159_s25 + $0x80] sm:$0xff] %v12916_v31  ;;  %v12917_v50 = vmax.f32 %v12841_v0, 0.0  ;;  %v15366_v1 = vadd.f32 %v15365_v48, %v15364_v51  ;;  %v15367_v38 = vpop.f32.mrb[166].mxu1 }
 0x63c   : > { %v15368_v62 = vpop.f32.mrb[167].mxu1 }
 0x63d   : > { %12949 = vst [vmem:[%s19159_s25 + $0x88] sm:$0xff] %v12917_v50  ;;  %v12685_v47 = vadd.f32 %v15366_v1, %v19035_v22  ;;  %v15369_v4 = vadd.f32 %v15368_v62, %v15367_v38 }
 0x63f   : > { %v12846_v17 = vadd.f32 %v19084_v18, %v12685_v47  ;;  %v12688_v13 = vadd.f32 %v15369_v4, %v19042_v7  ;;  %v19561_v47 = vld [vmem:[#allocation15_spill] sm:$0xff] }
 0x641   : > { %v12918_v61 = vmax.f32 %v12846_v17, 0.0  ;;  %v12849_v23 = vadd.f32 %v19091_v5, %v12688_v13  ;;  %v15370_v53 = vpop.f32.mrb[168].mxu1  ;;  %v19562_v13 = vld [vmem:[#allocation17_spill] sm:$0xff] }
 0x642   : > { %v15371_v8 = vpop.f32.mrb[169].mxu1 }
 0x643   : > { %12950 = vst [vmem:[%s19159_s25 + $0x90] sm:$0xff] %v12918_v61  ;;  %v12919_v36 = vmax.f32 %v12849_v23, 0.0  ;;  %v15372_v43 = vadd.f32 %v15371_v8, %v15370_v53  ;;  %v15373_v56 = vpop.f32.mrb[170].mxu1  ;;  %v19563_v61 = vld [vmem:[#allocation16_spill] sm:$0xff]  ;;  %v19564_v8 = vld [vmem:[#allocation11_spill] sm:$0xff] }
 0x644   : > { %v15374_v35 = vpop.f32.mrb[171].mxu1 }
 0x645   : > { %12951 = vst [vmem:[%s19159_s25 + $0x98] sm:$0xff] %v12919_v36  ;;  %v12693_v22 = vadd.f32 %v15372_v43, %v19053_v60  ;;  %v15375_v39 = vadd.f32 %v15374_v35, %v15373_v56 }
 0x647   : > { %v12854_v18 = vadd.f32 %v19104_v42, %v12693_v22  ;;  %v12696_v7 = vadd.f32 %v15375_v39, %v19553_v34  ;;  %v19565_v34 = vld [vmem:[#allocation10_spill] sm:$0xff] }
 0x649   : > { %v12920_v3 = vmax.f32 %v12854_v18, 0.0  ;;  %v12857_v5 = vadd.f32 %v19554_v59, %v12696_v7  ;;  %v15376_v33 = vpop.f32.mrb[172].mxu1  ;;  %v19566_v59 = vld [vmem:[#allocation20_spill] sm:$0xff] }
 0x64a   : > { %v15377_v55 = vpop.f32.mrb[173].mxu1 }
 0x64b   : > { %12952 = vst [vmem:[%s19159_s25 + $0xa0] sm:$0xff] %v12920_v3  ;;  %v12921_v45 = vmax.f32 %v12857_v5, 0.0  ;;  %v15378_v15 = vadd.f32 %v15377_v55, %v15376_v33  ;;  %v15379_v44 = vpop.f32.mrb[174].mxu1 }
 0x64c   : > { %v15380_v32 = vpop.f32.mrb[175].mxu1 }
 0x64d   : > { %12953 = vst [vmem:[%s19159_s25 + $0xa8] sm:$0xff] %v12921_v45  ;;  %v12701_v60 = vadd.f32 %v15378_v15, %v19555_v57  ;;  %v15381_v14 = vadd.f32 %v15380_v32, %v15379_v44 }
 0x64f   : > { %v12862_v42 = vadd.f32 %v19556_v28, %v12701_v60  ;;  %v12704_v27 = vadd.f32 %v15381_v14, %v19557_v20 }
 0x651   : > { %v12922_v41 = vmax.f32 %v12862_v42, 0.0  ;;  %v12865_v12 = vadd.f32 %v19558_v24, %v12704_v27  ;;  %v15382_v19 = vpop.f32.mrb[176].mxu1 }
 0x652   : > { %v15383_v63 = vpop.f32.mrb[177].mxu1 }
 0x653   : > { %12954 = vst [vmem:[%s19159_s25 + $0xb0] sm:$0xff] %v12922_v41  ;;  %v12923_v26 = vmax.f32 %v12865_v12, 0.0  ;;  %v15384_v6 = vadd.f32 %v15383_v63, %v15382_v19  ;;  %v15385_v10 = vpop.f32.mrb[178].mxu1 }
 0x654   : > { %v15386_v58 = vpop.f32.mrb[179].mxu1 }
 0x655   : > { %12955 = vst [vmem:[%s19159_s25 + $0xb8] sm:$0xff] %v12923_v26  ;;  %v12709_v49 = vadd.f32 %v15384_v6, %v19559_v25  ;;  %v15387_v21 = vadd.f32 %v15386_v58, %v15385_v10 }
 0x657   : > { %v12870_v29 = vadd.f32 %v19122_v37, %v12709_v49  ;;  %v12712_v9 = vadd.f32 %v15387_v21, %v19560_v54 }
 0x659   : > { %v12924_v31 = vmax.f32 %v12870_v29, 0.0  ;;  %v12873_v0 = vadd.f32 %v19129_v16, %v12712_v9  ;;  %v15388_v51 = vpop.f32.mrb[180].mxu1 }
 0x65a   : > { %v15389_v48 = vpop.f32.mrb[181].mxu1 }
 0x65b   : > { %12956 = vst [vmem:[%s19159_s25 + $0xc0] sm:$0xff] %v12924_v31  ;;  %v12925_v50 = vmax.f32 %v12873_v0, 0.0  ;;  %v15390_v1 = vadd.f32 %v15389_v48, %v15388_v51  ;;  %v15391_v38 = vpop.f32.mrb[182].mxu1 }
 0x65c   : > { %v15392_v62 = vpop.f32.mrb[183].mxu1 }
 0x65d   : > { %12957 = vst [vmem:[%s19159_s25 + $0xc8] sm:$0xff] %v12925_v50  ;;  %v12717_v4 = vadd.f32 %v15390_v1, %v19561_v47  ;;  %v15393_v17 = vadd.f32 %v15392_v62, %v15391_v38 }
 0x65f   : > { %v12878_v37 = vadd.f32 %v19562_v13, %v12717_v4  ;;  %v12720_v23 = vadd.f32 %v15393_v17, %v19563_v61 }
 0x661   : > { %v12926_v53 = vmax.f32 %v12878_v37, 0.0  ;;  %v12881_v16 = vadd.f32 %v19564_v8, %v12720_v23  ;;  %v15394_v36 = vpop.f32.mrb[184].mxu1 }
 0x662   : > { %v15395_v43 = vpop.f32.mrb[185].mxu1 }
 0x663   : > { %12958 = vst [vmem:[%s19159_s25 + $0xd0] sm:$0xff] %v12926_v53  ;;  %v12927_v56 = vmax.f32 %v12881_v16, 0.0  ;;  %v15396_v35 = vadd.f32 %v15395_v43, %v15394_v36  ;;  %v15397_v22 = vpop.f32.mrb[186].mxu1 }
 0x664   : > { %v15398_v39 = vpop.f32.mrb[187].mxu1 }
 0x665   : > { %12959 = vst [vmem:[%s19159_s25 + $0xd8] sm:$0xff] %v12927_v56  ;;  %v15399_v18 = vadd.f32 %v15398_v39, %v15397_v22  ;;  %v12725_v7 = vadd.f32 %v15396_v35, %v19565_v34 }
 0x667   : > { %v12886_v3 = vadd.f32 %v19140_v46, %v12725_v7  ;;  %v12728_v5 = vadd.f32 %v15399_v18, %v19566_v59 }
 0x669   : > { %v12928_v33 = vmax.f32 %v12886_v3, 0.0  ;;  %v12889_v55 = vadd.f32 %v19147_v30, %v12728_v5  ;;  %v15400_v45 = vpop.f32.mrb[188].mxu1 }
 0x66a   : > { %v15401_v15 = vpop.f32.mrb[189].mxu1 }
 0x66b   : > { %12960 = vst [vmem:[%s19159_s25 + $0xe0] sm:$0xff] %v12928_v33  ;;  %v12929_v44 = vmax.f32 %v12889_v55, 0.0  ;;  %v15402_v32 = vadd.f32 %v15401_v15, %v15400_v45  ;;  %v15403_v57 = vpop.f32.mrb[190].mxu1 }
 0x66c   : > { %v15404_v60 = vpop.f32.mrb[191].mxu1 }
 0x66d   : > { %12961 = vst [vmem:[%s19159_s25 + $0xe8] sm:$0xff] %v12929_v44  ;;  %v12733_v14 = vadd.f32 %v15402_v32, %v19143_v11  ;;  %v15405_v28 = vadd.f32 %v15404_v60, %v15403_v57 }
 0x66f   : > { %v12894_v46 = vadd.f32 %v19138_v2, %v12733_v14  ;;  %v12736_v42 = vadd.f32 %v15405_v28, %v19150_v40 }
 0x671   : > { %v12930_v20 = vmax.f32 %v12894_v46, 0.0  ;;  %v12897_v27 = vadd.f32 %v19145_v52, %v12736_v42 }
 0x673   : > { %12962 = vst [vmem:[%s19159_s25 + $0xf0] sm:$0xff] %v12930_v20  ;;  %v12931_v30 = vmax.f32 %v12897_v27, 0.0 }
 0x675   : > { %12963 = vst [vmem:[%s19159_s25 + $0xf8] sm:$0xff] %v12931_v30 }
 0x676 PF: > { %s15_s20 = sadd.s32 1, %s15954_s20   ;;  %s19567_s18 = smov %s15950_s19 }
 0x677   : > { %p12_p5 = scmp.ge.s32.totalorder %s15_s20, 4   ;;  %s19568_s19 = smov %s19570_s21 }
 0x679   :  { %14 = sbr.rel (!%p12_p5) target bundleno = 2 (0x2), region = 74 }

</bundles_post_ra>
